<compile_context>
chip_gen: v7x
topology: tpu7x:2x2x1
jax: 0.10.0
libtpu: 0.0.40
codegen_flags: <defaults>
</compile_context>

<pallas_src>
import jax
import jax.numpy as jnp
from jax import lax
from jax.experimental import pallas as pl
from jax.experimental.pallas import tpu as pltpu

KS = 3        # conv kernel size
EPS = 1e-5    # BatchNorm eps


# ----------------------------------------------------------------------------
# In-kernel helpers
# ----------------------------------------------------------------------------
def _dw3x3(xp, w):
    """Depthwise 3x3 stencil on an NHWC tile.

    xp : (Ho+2, Wo+2, C) zero-padded activation (H major, W sublanes, C lanes).
    w  : (9, C) per-channel taps, row k = dy*3 + dx.
    Returns (Ho, Wo, C) float32.
    """
    Ho = xp.shape[0] - (KS - 1)
    Wo = xp.shape[1] - (KS - 1)
    acc = xp[0:Ho, 0:Wo, :] * w[0]                 # single running accumulator
    for k in range(1, KS * KS):
        dy, dx = divmod(k, KS)
        acc = acc + xp[dy:dy + Ho, dx:dx + Wo, :] * w[k]
    return acc


def _pad_tile(center, top, bot, h, nh):
    """Build the zero-padded (Ht+2, W+2, C) stencil input in VMEM.

    center : (Ht, W, C) tile rows.
    top/bot: (1, W, C) halo rows (zeroed at the image boundary).
    """
    top = jnp.where(h == 0, 0.0, top)
    bot = jnp.where(h == nh - 1, 0.0, bot)
    xc = jnp.concatenate([top, center, bot], axis=0)          # (Ht+2, W, C)
    zcol = jnp.zeros((xc.shape[0], 1, xc.shape[2]), xc.dtype)
    return jnp.concatenate([zcol, xc, zcol], axis=1)          # (Ht+2, W+2, C)


def _block_stats(y, ps_ref, pm2_ref):
    """Per-block, per-channel sum and block-centered sum of squared deviations
    (Chan-style partials; merged globally in XLA glue). y: (Ht, W, C) f32."""
    cnt = y.shape[0] * y.shape[1]
    ps = jnp.sum(y, axis=(0, 1))                               # (C,)
    mean_b = ps * (1.0 / cnt)
    d = y - mean_b
    pm2 = jnp.sum(d * d, axis=(0, 1))                          # (C,)
    ps_ref[...] = ps.reshape(ps_ref.shape)
    pm2_ref[...] = pm2.reshape(pm2_ref.shape)


# ----------------------------------------------------------------------------
# Kernels
# ----------------------------------------------------------------------------
def _conv1_kernel(x_ref, xt_ref, xb_ref, w_ref, y_ref, ps_ref, pm2_ref):
    # Depthwise conv1 (conv bias omitted: exactly cancelled by the following
    # training-mode BN mean subtraction) + BN1 partial statistics.
    h = pl.program_id(1)
    nh = pl.num_programs(1)
    xp = _pad_tile(x_ref[0], xt_ref[0], xb_ref[0], h, nh)
    y = _dw3x3(xp, w_ref[...])
    y_ref[0] = y.astype(y_ref.dtype)
    _block_stats(y, ps_ref, pm2_ref)


def _bn1_relu_conv2_kernel(y1_ref, y1t_ref, y1b_ref, w_ref, s_ref, t_ref,
                           y_ref, ps_ref, pm2_ref):
    # BN1 folded into one per-channel FMA + ReLU (applied to real halo rows
    # too), zero padding added AFTER bn+relu (== conv2's spatial zero pad),
    # then depthwise conv2 + BN2 partial statistics.
    h = pl.program_id(1)
    nh = pl.num_programs(1)
    s = s_ref[0]                                               # (C,)
    t = t_ref[0]
    bnrelu = lambda v: jnp.maximum(v.astype(jnp.float32) * s + t, 0.0)
    ap = _pad_tile(bnrelu(y1_ref[0]), bnrelu(y1t_ref[0]), bnrelu(y1b_ref[0]),
                   h, nh)
    y = _dw3x3(ap, w_ref[...])
    y_ref[0] = y.astype(y_ref.dtype)
    _block_stats(y, ps_ref, pm2_ref)


def _bn2_relu_res_kernel(y2_ref, r_ref, s_ref, t_ref, o_ref):
    # BN2 (folded FMA) + ReLU + residual add.
    a = jnp.maximum(y2_ref[0].astype(jnp.float32) * s_ref[0] + t_ref[0], 0.0)
    o_ref[0] = (a + r_ref[0].astype(jnp.float32)).astype(o_ref.dtype)


# ----------------------------------------------------------------------------
# XLA glue
# ----------------------------------------------------------------------------
def _bn_fold(ps, pm2, gamma, beta, cnt_block, m_total):
    """Merge per-block centered partials (Chan) and fold BN into y*s + t."""
    total = jnp.sum(ps, axis=(0, 1, 2))                        # (C,)
    mu = total / m_total
    mean_b = ps[:, :, 0, :] / cnt_block                        # (N, nH, C)
    m2 = (jnp.sum(pm2, axis=(0, 1, 2))
          + cnt_block * jnp.sum((mean_b - mu) ** 2, axis=(0, 1)))
    var = m2 / m_total                                         # biased (training-mode BN)
    s = gamma * lax.rsqrt(var + EPS)
    t = beta - mu * s
    return s, t


def _pick_ht(H, W, C, itemsize, target_bytes=2 << 20):
    """Largest divisor of H whose padded tile stays under ~target_bytes."""
    best = 1
    for ht in range(1, H + 1):
        if H % ht == 0 and (ht + 2) * (W + 2) * C * itemsize <= target_bytes:
            best = ht
    return best


def res_block_forward(x, params, *, intermediates_dtype=jnp.float32):
    """Forward pass of `_res_block` (training-mode BN). x: (N, C, H, W) f32."""
    w1, _b1, w2, _b2, g1, be1, g2, be2 = params   # conv biases cancelled by BN
    N, C, H, W = x.shape
    M = N * H * W

    x = x.astype(jnp.float32)
    xt = jnp.transpose(x, (0, 2, 3, 1))           # (N, H, W, C): C on lanes

    # depthwise taps -> (9, C), row k = dy*3 + dx
    w1r = jnp.transpose(w1[:, 0].reshape(C, KS * KS), (1, 0))
    w2r = jnp.transpose(w2[:, 0].reshape(C, KS * KS), (1, 0))

    Ht = _pick_ht(H, W, C, 4)
    nH = H // Ht
    cnt_block = Ht * W
    grid = (N, nH)

    cparams = pltpu.CompilerParams(
        dimension_semantics=("parallel", "parallel"),
        vmem_limit_bytes=32 * 1024 * 1024,        # safe on v5e/v6e/v7x with H tiling
    )

    center_spec = pl.BlockSpec((1, Ht, W, C), lambda n, h: (n, h, 0, 0))
    # 1-row halos: Blocked H dim of size 1 (block index == row index), clamped
    # in-bounds; the kernel zeroes them at the image boundary.
    top_spec = pl.BlockSpec((1, 1, W, C),
                            lambda n, h: (n, jnp.maximum(h * Ht - 1, 0), 0, 0))
    bot_spec = pl.BlockSpec((1, 1, W, C),
                            lambda n, h: (n, jnp.minimum(h * Ht + Ht, H - 1), 0, 0))
    w_spec = pl.BlockSpec((KS * KS, C), lambda n, h: (0, 0))
    vec_spec = pl.BlockSpec((1, C), lambda n, h: (0, 0))
    stat_spec = pl.BlockSpec((1, 1, 1, C), lambda n, h: (n, h, 0, 0))

    conv_out_shape = (
        jax.ShapeDtypeStruct((N, H, W, C), intermediates_dtype),  # conv output
        jax.ShapeDtypeStruct((N, nH, 1, C), jnp.float32),          # per-block channel sum
        jax.ShapeDtypeStruct((N, nH, 1, C), jnp.float32),          # per-block centered sumsq
    )
    conv_out_specs = (center_spec, stat_spec, stat_spec)

    # ---- pass 1: depthwise conv1 + BN1 partial stats ------------------------
    y1, ps1, pm21 = pl.pallas_call(
        _conv1_kernel,
        grid=grid,
        in_specs=[center_spec, top_spec, bot_spec, w_spec],
        out_specs=conv_out_specs,
        out_shape=conv_out_shape,
        compiler_params=cparams,
    )(xt, xt, xt, w1r)

    s1, t1 = _bn_fold(ps1, pm21, g1, be1, cnt_block, M)       # tiny (C,) XLA glue

    # ---- pass 2: bn1+relu (folded FMA) -> depthwise conv2 + BN2 partial stats
    y2, ps2, pm22 = pl.pallas_call(
        _bn1_relu_conv2_kernel,
        grid=grid,
        in_specs=[center_spec, top_spec, bot_spec, w_spec, vec_spec, vec_spec],
        out_specs=conv_out_specs,
        out_shape=conv_out_shape,
        compiler_params=cparams,
    )(y1, y1, y1, w2r, s1.reshape(1, C), t1.reshape(1, C))

    s2, t2 = _bn_fold(ps2, pm22, g2, be2, cnt_block, M)

    # ---- pass 3: bn2 + relu + residual add -----------------------------------
    out_t = pl.pallas_call(
        _bn2_relu_res_kernel,
        grid=grid,
        in_specs=[center_spec, center_spec, vec_spec, vec_spec],
        out_specs=center_spec,
        out_shape=jax.ShapeDtypeStruct((N, H, W, C), jnp.float32),
        compiler_params=cparams,
    )(y2, xt, s2.reshape(1, C), t2.reshape(1, C))

    return jnp.transpose(out_t, (0, 3, 1, 2))                 # back to NCHW


# ----------------------------------------------------------------------------
# Parameters + pure-JAX reference (mirrors the PyTorch module, incl. biases)
# ----------------------------------------------------------------------------
def init_params(key, dim, kernel_size=KS):
    """Shapes mirror _res_block(in_dim=dim, out_dim=dim)."""
    k1, k2, k3, k4 = jax.random.split(key, 4)
    bound = 1.0 / (kernel_size * kernel_size) ** 0.5          # depthwise fan_in = k*k
    w1 = jax.random.uniform(k1, (dim, 1, kernel_size, kernel_size), jnp.float32, -bound, bound)
    b1 = jax.random.uniform(k2, (dim,), jnp.float32, -bound, bound)
    w2 = jax.random.uniform(k3, (dim, 1, kernel_size, kernel_size), jnp.float32, -bound, bound)
    b2 = jax.random.uniform(k4, (dim,), jnp.float32, -bound, bound)
    g1, be1 = jnp.ones((dim,), jnp.float32), jnp.zeros((dim,), jnp.float32)
    g2, be2 = jnp.ones((dim,), jnp.float32), jnp.zeros((dim,), jnp.float32)
    return w1, b1, w2, b2, g1, be1, g2, be2


def reference_forward(x, params):
    """Pure-JAX reference of the PyTorch forward (with conv biases)."""
    w1, b1, w2, b2, g1, be1, g2, be2 = params

    def dwconv(v, w, b):
        out = lax.conv_general_dilated(
            v, w, window_strides=(1, 1), padding=((1, 1), (1, 1)),
            dimension_numbers=("NCHW", "OIHW", "NCHW"),
            feature_group_count=v.shape[1])
        return out + b[None, :, None, None]

    def bn(v, g, b):
        mu = jnp.mean(v, axis=(0, 2, 3), keepdims=True)
        var = jnp.mean((v - mu) ** 2, axis=(0, 2, 3), keepdims=True)
        return (v - mu) * lax.rsqrt(var + EPS) * g[None, :, None, None] + b[None, :, None, None]

    h = jax.nn.relu(bn(dwconv(x, w1, b1), g1, be1))
    h = jax.nn.relu(bn(dwconv(h, w2, b2), g2, be2))
    return h + x


if __name__ == "__main__":
    key = jax.random.PRNGKey(0)
    kx, kp = jax.random.split(key)

    N, C, H, W = 2, 4, 16, 16
    x = jax.random.normal(kx, (N, C, H, W), jnp.float32)
    params = init_params(kp, C)

    fwd = jax.jit(res_block_forward)
    out = fwd(x, params)
    jax.block_until_ready(out)

    assert out.shape == (N, C, H, W)
    assert bool(jnp.all(jnp.isfinite(out)))

    ref = reference_forward(x, params)
    assert bool(jnp.allclose(out, ref, rtol=1e-4, atol=1e-4)), \
        float(jnp.max(jnp.abs(out - ref)))

    print("KERNEL_OK")
</pallas_src>

<mosaic_0001>
module attributes {stable_mosaic.version = 11 : i64} {
  func.func @_conv1_kernel(%arg0: i32, %arg1: i32, %arg2: memref<1x16x16x4xf32, #tpu.memory_space<vmem>>, %arg3: memref<1x1x16x4xf32, #tpu.memory_space<vmem>>, %arg4: memref<1x1x16x4xf32, #tpu.memory_space<vmem>>, %arg5: memref<9x4xf32, #tpu.memory_space<vmem>>, %arg6: memref<1x16x16x4xf32, #tpu.memory_space<vmem>>, %arg7: memref<1x1x1x4xf32, #tpu.memory_space<vmem>>, %arg8: memref<1x1x1x4xf32, #tpu.memory_space<vmem>>) attributes {dimension_semantics = [#tpu.dimension_semantics<parallel>, #tpu.dimension_semantics<parallel>], iteration_bounds = array<i64: 2, 1>, scalar_prefetch = 0 : i64, scratch_operands = 0 : i64, tpu.core_type = #tpu.core_type<tc>, window_params = [{transform_indices = @transform_0, window_bounds = array<i64: 1, 16, 16, 4>}, {transform_indices = @transform_1, window_bounds = array<i64: 1, 1, 16, 4>}, {transform_indices = @transform_2, window_bounds = array<i64: 1, 1, 16, 4>}, {pipeline_mode = #tpu.pipeline_mode<synchronous>, transform_indices = @transform_3, window_bounds = array<i64: 9, 4>}, {transform_indices = @transform_4, window_bounds = array<i64: 1, 16, 16, 4>}, {transform_indices = @transform_5, window_bounds = array<i64: 1, 1, 1, 4>}, {transform_indices = @transform_6, window_bounds = array<i64: 1, 1, 1, 4>}]} {
    %c0 = arith.constant 0 : index
    %c0_0 = arith.constant 0 : index
    %c0_1 = arith.constant 0 : index
    %c0_2 = arith.constant 0 : index
    %0 = vector.load %arg2[%c0, %c0_0, %c0_1, %c0_2] : memref<1x16x16x4xf32, #tpu.memory_space<vmem>>, vector<1x16x16x4xf32>
    %1 = vector.shape_cast %0 : vector<1x16x16x4xf32> to vector<16x16x4xf32>
    %c0_3 = arith.constant 0 : index
    %c0_4 = arith.constant 0 : index
    %c0_5 = arith.constant 0 : index
    %c0_6 = arith.constant 0 : index
    %2 = vector.load %arg3[%c0_3, %c0_4, %c0_5, %c0_6] : memref<1x1x16x4xf32, #tpu.memory_space<vmem>>, vector<1x1x16x4xf32>
    %3 = vector.shape_cast %2 : vector<1x1x16x4xf32> to vector<1x16x4xf32>
    %c0_7 = arith.constant 0 : index
    %c0_8 = arith.constant 0 : index
    %c0_9 = arith.constant 0 : index
    %c0_10 = arith.constant 0 : index
    %4 = vector.load %arg4[%c0_7, %c0_8, %c0_9, %c0_10] : memref<1x1x16x4xf32, #tpu.memory_space<vmem>>, vector<1x1x16x4xf32>
    %5 = vector.shape_cast %4 : vector<1x1x16x4xf32> to vector<1x16x4xf32>
    %c0_i32 = arith.constant 0 : i32
    %6 = arith.cmpi eq, %arg1, %c0_i32 : i32
    %cst = arith.constant 0.000000e+00 : f32
    %7 = vector.broadcast %cst : f32 to vector<1x16x4xf32>
    %8 = arith.select %6, %7, %3 : vector<1x16x4xf32>
    %c0_i32_11 = arith.constant 0 : i32
    %9 = arith.cmpi eq, %arg1, %c0_i32_11 : i32
    %cst_12 = arith.constant 0.000000e+00 : f32
    %10 = vector.broadcast %cst_12 : f32 to vector<1x16x4xf32>
    %11 = arith.select %9, %10, %5 : vector<1x16x4xf32>
    %12 = tpu.concatenate %8, %1, %11 in 0 : vector<1x16x4xf32>, vector<16x16x4xf32>, vector<1x16x4xf32> -> vector<18x16x4xf32>
    %cst_13 = arith.constant 0.000000e+00 : f32
    %13 = vector.broadcast %cst_13 : f32 to vector<18x1x4xf32>
    %14 = tpu.concatenate %13, %12, %13 in 1 : vector<18x1x4xf32>, vector<18x16x4xf32>, vector<18x1x4xf32> -> vector<18x18x4xf32>
    %c0_14 = arith.constant 0 : index
    %c0_15 = arith.constant 0 : index
    %15 = vector.load %arg5[%c0_14, %c0_15] : memref<9x4xf32, #tpu.memory_space<vmem>>, vector<9x4xf32>
    %16 = vector.extract_strided_slice %14 {offsets = [0, 0, 0], sizes = [16, 16, 4], strides = [1, 1, 1]} : vector<18x18x4xf32> to vector<16x16x4xf32>
    %17 = vector.extract_strided_slice %15 {offsets = [0, 0], sizes = [1, 4], strides = [1, 1]} : vector<9x4xf32> to vector<1x4xf32>
    %18 = vector.shape_cast %17 : vector<1x4xf32> to vector<4xf32>
    %19 = vector.shape_cast %18 : vector<4xf32> to vector<1x1x4xf32>
    %20 = vector.broadcast %19 : vector<1x1x4xf32> to vector<16x16x4xf32>
    %21 = arith.mulf %16, %20 : vector<16x16x4xf32>
    %22 = vector.extract_strided_slice %14 {offsets = [0, 1, 0], sizes = [16, 16, 4], strides = [1, 1, 1]} : vector<18x18x4xf32> to vector<16x16x4xf32>
    %23 = vector.extract_strided_slice %15 {offsets = [1, 0], sizes = [1, 4], strides = [1, 1]} : vector<9x4xf32> to vector<1x4xf32>
    %24 = vector.shape_cast %23 : vector<1x4xf32> to vector<4xf32>
    %25 = vector.shape_cast %24 : vector<4xf32> to vector<1x1x4xf32>
    %26 = vector.broadcast %25 : vector<1x1x4xf32> to vector<16x16x4xf32>
    %27 = arith.mulf %22, %26 : vector<16x16x4xf32>
    %28 = arith.addf %21, %27 : vector<16x16x4xf32>
    %29 = vector.extract_strided_slice %14 {offsets = [0, 2, 0], sizes = [16, 16, 4], strides = [1, 1, 1]} : vector<18x18x4xf32> to vector<16x16x4xf32>
    %30 = vector.extract_strided_slice %15 {offsets = [2, 0], sizes = [1, 4], strides = [1, 1]} : vector<9x4xf32> to vector<1x4xf32>
    %31 = vector.shape_cast %30 : vector<1x4xf32> to vector<4xf32>
    %32 = vector.shape_cast %31 : vector<4xf32> to vector<1x1x4xf32>
    %33 = vector.broadcast %32 : vector<1x1x4xf32> to vector<16x16x4xf32>
    %34 = arith.mulf %29, %33 : vector<16x16x4xf32>
    %35 = arith.addf %28, %34 : vector<16x16x4xf32>
    %36 = vector.extract_strided_slice %14 {offsets = [1, 0, 0], sizes = [16, 16, 4], strides = [1, 1, 1]} : vector<18x18x4xf32> to vector<16x16x4xf32>
    %37 = vector.extract_strided_slice %15 {offsets = [3, 0], sizes = [1, 4], strides = [1, 1]} : vector<9x4xf32> to vector<1x4xf32>
    %38 = vector.shape_cast %37 : vector<1x4xf32> to vector<4xf32>
    %39 = vector.shape_cast %38 : vector<4xf32> to vector<1x1x4xf32>
    %40 = vector.broadcast %39 : vector<1x1x4xf32> to vector<16x16x4xf32>
    %41 = arith.mulf %36, %40 : vector<16x16x4xf32>
    %42 = arith.addf %35, %41 : vector<16x16x4xf32>
    %43 = vector.extract_strided_slice %14 {offsets = [1, 1, 0], sizes = [16, 16, 4], strides = [1, 1, 1]} : vector<18x18x4xf32> to vector<16x16x4xf32>
    %44 = vector.extract_strided_slice %15 {offsets = [4, 0], sizes = [1, 4], strides = [1, 1]} : vector<9x4xf32> to vector<1x4xf32>
    %45 = vector.shape_cast %44 : vector<1x4xf32> to vector<4xf32>
    %46 = vector.shape_cast %45 : vector<4xf32> to vector<1x1x4xf32>
    %47 = vector.broadcast %46 : vector<1x1x4xf32> to vector<16x16x4xf32>
    %48 = arith.mulf %43, %47 : vector<16x16x4xf32>
    %49 = arith.addf %42, %48 : vector<16x16x4xf32>
    %50 = vector.extract_strided_slice %14 {offsets = [1, 2, 0], sizes = [16, 16, 4], strides = [1, 1, 1]} : vector<18x18x4xf32> to vector<16x16x4xf32>
    %51 = vector.extract_strided_slice %15 {offsets = [5, 0], sizes = [1, 4], strides = [1, 1]} : vector<9x4xf32> to vector<1x4xf32>
    %52 = vector.shape_cast %51 : vector<1x4xf32> to vector<4xf32>
    %53 = vector.shape_cast %52 : vector<4xf32> to vector<1x1x4xf32>
    %54 = vector.broadcast %53 : vector<1x1x4xf32> to vector<16x16x4xf32>
    %55 = arith.mulf %50, %54 : vector<16x16x4xf32>
    %56 = arith.addf %49, %55 : vector<16x16x4xf32>
    %57 = vector.extract_strided_slice %14 {offsets = [2, 0, 0], sizes = [16, 16, 4], strides = [1, 1, 1]} : vector<18x18x4xf32> to vector<16x16x4xf32>
    %58 = vector.extract_strided_slice %15 {offsets = [6, 0], sizes = [1, 4], strides = [1, 1]} : vector<9x4xf32> to vector<1x4xf32>
    %59 = vector.shape_cast %58 : vector<1x4xf32> to vector<4xf32>
    %60 = vector.shape_cast %59 : vector<4xf32> to vector<1x1x4xf32>
    %61 = vector.broadcast %60 : vector<1x1x4xf32> to vector<16x16x4xf32>
    %62 = arith.mulf %57, %61 : vector<16x16x4xf32>
    %63 = arith.addf %56, %62 : vector<16x16x4xf32>
    %64 = vector.extract_strided_slice %14 {offsets = [2, 1, 0], sizes = [16, 16, 4], strides = [1, 1, 1]} : vector<18x18x4xf32> to vector<16x16x4xf32>
    %65 = vector.extract_strided_slice %15 {offsets = [7, 0], sizes = [1, 4], strides = [1, 1]} : vector<9x4xf32> to vector<1x4xf32>
    %66 = vector.shape_cast %65 : vector<1x4xf32> to vector<4xf32>
    %67 = vector.shape_cast %66 : vector<4xf32> to vector<1x1x4xf32>
    %68 = vector.broadcast %67 : vector<1x1x4xf32> to vector<16x16x4xf32>
    %69 = arith.mulf %64, %68 : vector<16x16x4xf32>
    %70 = arith.addf %63, %69 : vector<16x16x4xf32>
    %71 = vector.extract_strided_slice %14 {offsets = [2, 2, 0], sizes = [16, 16, 4], strides = [1, 1, 1]} : vector<18x18x4xf32> to vector<16x16x4xf32>
    %72 = vector.extract_strided_slice %15 {offsets = [8, 0], sizes = [1, 4], strides = [1, 1]} : vector<9x4xf32> to vector<1x4xf32>
    %73 = vector.shape_cast %72 : vector<1x4xf32> to vector<4xf32>
    %74 = vector.shape_cast %73 : vector<4xf32> to vector<1x1x4xf32>
    %75 = vector.broadcast %74 : vector<1x1x4xf32> to vector<16x16x4xf32>
    %76 = arith.mulf %71, %75 : vector<16x16x4xf32>
    %77 = arith.addf %70, %76 : vector<16x16x4xf32>
    %c0_16 = arith.constant 0 : index
    %c0_17 = arith.constant 0 : index
    %c0_18 = arith.constant 0 : index
    %c0_19 = arith.constant 0 : index
    %78 = vector.load %arg6[%c0_16, %c0_17, %c0_18, %c0_19] : memref<1x16x16x4xf32, #tpu.memory_space<vmem>>, vector<1x16x16x4xf32>
    %79 = vector.shape_cast %78 : vector<1x16x16x4xf32> to vector<16x16x4xf32>
    %80 = vector.shape_cast %77 : vector<16x16x4xf32> to vector<1x16x16x4xf32>
    tpu.vector_store %arg6[%c0_16, %c0_17, %c0_18, %c0_19], %80 {strides = array<i32>} : memref<1x16x16x4xf32, #tpu.memory_space<vmem>>, vector<1x16x16x4xf32>,
    %cst_20 = arith.constant dense<0.000000e+00> : vector<4xf32>
    %81 = vector.multi_reduction <add>, %77, %cst_20 [0, 1] : vector<16x16x4xf32> to vector<4xf32>
    %cst_21 = arith.constant 3.906250e-03 : f32
    %82 = vector.broadcast %cst_21 : f32 to vector<4xf32>
    %83 = arith.mulf %81, %82 : vector<4xf32>
    %84 = vector.shape_cast %83 : vector<4xf32> to vector<1x1x4xf32>
    %85 = vector.broadcast %84 : vector<1x1x4xf32> to vector<16x16x4xf32>
    %86 = arith.subf %77, %85 : vector<16x16x4xf32>
    %87 = arith.mulf %86, %86 : vector<16x16x4xf32>
    %cst_22 = arith.constant dense<0.000000e+00> : vector<4xf32>
    %88 = vector.multi_reduction <add>, %87, %cst_22 [0, 1] : vector<16x16x4xf32> to vector<4xf32>
    %89 = vector.shape_cast %81 : vector<4xf32> to vector<1x1x1x4xf32>
    %c0_23 = arith.constant 0 : index
    %c0_24 = arith.constant 0 : index
    %c0_25 = arith.constant 0 : index
    %c0_26 = arith.constant 0 : index
    %90 = vector.load %arg7[%c0_23, %c0_24, %c0_25, %c0_26] : memref<1x1x1x4xf32, #tpu.memory_space<vmem>>, vector<1x1x1x4xf32>
    tpu.vector_store %arg7[%c0_23, %c0_24, %c0_25, %c0_26], %89 {strides = array<i32>} : memref<1x1x1x4xf32, #tpu.memory_space<vmem>>, vector<1x1x1x4xf32>,
    %91 = vector.shape_cast %88 : vector<4xf32> to vector<1x1x1x4xf32>
    %c0_27 = arith.constant 0 : index
    %c0_28 = arith.constant 0 : index
    %c0_29 = arith.constant 0 : index
    %c0_30 = arith.constant 0 : index
    %92 = vector.load %arg8[%c0_27, %c0_28, %c0_29, %c0_30] : memref<1x1x1x4xf32, #tpu.memory_space<vmem>>, vector<1x1x1x4xf32>
    tpu.vector_store %arg8[%c0_27, %c0_28, %c0_29, %c0_30], %91 {strides = array<i32>} : memref<1x1x1x4xf32, #tpu.memory_space<vmem>>, vector<1x1x1x4xf32>,
    return
  }
  func.func @transform_0(%arg0: i32, %arg1: i32) -> (i32, i32, i32, i32) {
    %c0_i32 = arith.constant 0 : i32
    %c0_i32_0 = arith.constant 0 : i32
    %c0_i32_1 = arith.constant 0 : i32
    return %arg0, %arg1, %c0_i32, %c0_i32_0 : i32, i32, i32, i32
  }
  func.func @transform_1(%arg0: i32, %arg1: i32) -> (i32, i32, i32, i32) {
    %c16_i32 = arith.constant 16 : i32
    %0 = arith.muli %arg1, %c16_i32 : i32
    %c1_i32 = arith.constant 1 : i32
    %1 = arith.subi %0, %c1_i32 : i32
    %c0_i32 = arith.constant 0 : i32
    %2 = arith.maxsi %1, %c0_i32 : i32
    %c0_i32_0 = arith.constant 0 : i32
    %c0_i32_1 = arith.constant 0 : i32
    %c0_i32_2 = arith.constant 0 : i32
    return %arg0, %2, %c0_i32_0, %c0_i32_1 : i32, i32, i32, i32
  }
  func.func @transform_2(%arg0: i32, %arg1: i32) -> (i32, i32, i32, i32) {
    %c16_i32 = arith.constant 16 : i32
    %0 = arith.muli %arg1, %c16_i32 : i32
    %c16_i32_0 = arith.constant 16 : i32
    %1 = arith.addi %0, %c16_i32_0 : i32
    %c15_i32 = arith.constant 15 : i32
    %2 = arith.minsi %1, %c15_i32 : i32
    %c0_i32 = arith.constant 0 : i32
    %c0_i32_1 = arith.constant 0 : i32
    %c0_i32_2 = arith.constant 0 : i32
    return %arg0, %2, %c0_i32, %c0_i32_1 : i32, i32, i32, i32
  }
  func.func @transform_3(%arg0: i32, %arg1: i32) -> (i32, i32) {
    %c0_i32 = arith.constant 0 : i32
    %c0_i32_0 = arith.constant 0 : i32
    %c0_i32_1 = arith.constant 0 : i32
    return %c0_i32, %c0_i32_0 : i32, i32
  }
  func.func @transform_4(%arg0: i32, %arg1: i32) -> (i32, i32, i32, i32) {
    %c0_i32 = arith.constant 0 : i32
    %c0_i32_0 = arith.constant 0 : i32
    %c0_i32_1 = arith.constant 0 : i32
    return %arg0, %arg1, %c0_i32, %c0_i32_0 : i32, i32, i32, i32
  }
  func.func @transform_5(%arg0: i32, %arg1: i32) -> (i32, i32, i32, i32) {
    %c0_i32 = arith.constant 0 : i32
    %c0_i32_0 = arith.constant 0 : i32
    %c0_i32_1 = arith.constant 0 : i32
    return %arg0, %arg1, %c0_i32, %c0_i32_0 : i32, i32, i32, i32
  }
  func.func @transform_6(%arg0: i32, %arg1: i32) -> (i32, i32, i32, i32) {
    %c0_i32 = arith.constant 0 : i32
    %c0_i32_0 = arith.constant 0 : i32
    %c0_i32_1 = arith.constant 0 : i32
    return %arg0, %arg1, %c0_i32, %c0_i32_0 : i32, i32, i32, i32
  }
}

module attributes {stable_mosaic.version = 11 : i64} {
  func.func @_bn2_relu_res_kernel(%arg0: i32, %arg1: i32, %arg2: memref<1x16x16x4xf32, #tpu.memory_space<vmem>>, %arg3: memref<1x16x16x4xf32, #tpu.memory_space<vmem>>, %arg4: memref<1x4xf32, #tpu.memory_space<vmem>>, %arg5: memref<1x4xf32, #tpu.memory_space<vmem>>, %arg6: memref<1x16x16x4xf32, #tpu.memory_space<vmem>>) attributes {dimension_semantics = [#tpu.dimension_semantics<parallel>, #tpu.dimension_semantics<parallel>], iteration_bounds = array<i64: 2, 1>, scalar_prefetch = 0 : i64, scratch_operands = 0 : i64, tpu.core_type = #tpu.core_type<tc>, window_params = [{transform_indices = @transform_0, window_bounds = array<i64: 1, 16, 16, 4>}, {transform_indices = @transform_1, window_bounds = array<i64: 1, 16, 16, 4>}, {pipeline_mode = #tpu.pipeline_mode<synchronous>, transform_indices = @transform_2, window_bounds = array<i64: 1, 4>}, {pipeline_mode = #tpu.pipeline_mode<synchronous>, transform_indices = @transform_3, window_bounds = array<i64: 1, 4>}, {transform_indices = @transform_4, window_bounds = array<i64: 1, 16, 16, 4>}]} {
    %c0 = arith.constant 0 : index
    %c0_0 = arith.constant 0 : index
    %c0_1 = arith.constant 0 : index
    %c0_2 = arith.constant 0 : index
    %0 = vector.load %arg2[%c0, %c0_0, %c0_1, %c0_2] : memref<1x16x16x4xf32, #tpu.memory_space<vmem>>, vector<1x16x16x4xf32>
    %1 = vector.shape_cast %0 : vector<1x16x16x4xf32> to vector<16x16x4xf32>
    %c0_3 = arith.constant 0 : index
    %c0_4 = arith.constant 0 : index
    %2 = vector.load %arg4[%c0_3, %c0_4] : memref<1x4xf32, #tpu.memory_space<vmem>>, vector<1x4xf32>
    %3 = vector.shape_cast %2 : vector<1x4xf32> to vector<4xf32>
    %4 = vector.shape_cast %3 : vector<4xf32> to vector<1x1x4xf32>
    %5 = vector.broadcast %4 : vector<1x1x4xf32> to vector<16x16x4xf32>
    %6 = arith.mulf %1, %5 : vector<16x16x4xf32>
    %c0_5 = arith.constant 0 : index
    %c0_6 = arith.constant 0 : index
    %7 = vector.load %arg5[%c0_5, %c0_6] : memref<1x4xf32, #tpu.memory_space<vmem>>, vector<1x4xf32>
    %8 = vector.shape_cast %7 : vector<1x4xf32> to vector<4xf32>
    %9 = vector.shape_cast %8 : vector<4xf32> to vector<1x1x4xf32>
    %10 = vector.broadcast %9 : vector<1x1x4xf32> to vector<16x16x4xf32>
    %11 = arith.addf %6, %10 : vector<16x16x4xf32>
    %cst = arith.constant 0.000000e+00 : f32
    %12 = vector.broadcast %cst : f32 to vector<16x16x4xf32>
    %13 = arith.maximumf %11, %12 : vector<16x16x4xf32>
    %c0_7 = arith.constant 0 : index
    %c0_8 = arith.constant 0 : index
    %c0_9 = arith.constant 0 : index
    %c0_10 = arith.constant 0 : index
    %14 = vector.load %arg3[%c0_7, %c0_8, %c0_9, %c0_10] : memref<1x16x16x4xf32, #tpu.memory_space<vmem>>, vector<1x16x16x4xf32>
    %15 = vector.shape_cast %14 : vector<1x16x16x4xf32> to vector<16x16x4xf32>
    %16 = arith.addf %13, %15 : vector<16x16x4xf32>
    %c0_11 = arith.constant 0 : index
    %c0_12 = arith.constant 0 : index
    %c0_13 = arith.constant 0 : index
    %c0_14 = arith.constant 0 : index
    %17 = vector.load %arg6[%c0_11, %c0_12, %c0_13, %c0_14] : memref<1x16x16x4xf32, #tpu.memory_space<vmem>>, vector<1x16x16x4xf32>
    %18 = vector.shape_cast %17 : vector<1x16x16x4xf32> to vector<16x16x4xf32>
    %19 = vector.shape_cast %16 : vector<16x16x4xf32> to vector<1x16x16x4xf32>
    tpu.vector_store %arg6[%c0_11, %c0_12, %c0_13, %c0_14], %19 {strides = array<i32>} : memref<1x16x16x4xf32, #tpu.memory_space<vmem>>, vector<1x16x16x4xf32>,
    return
  }
  func.func @transform_0(%arg0: i32, %arg1: i32) -> (i32, i32, i32, i32) {
    %c0_i32 = arith.constant 0 : i32
    %c0_i32_0 = arith.constant 0 : i32
    %c0_i32_1 = arith.constant 0 : i32
    return %arg0, %arg1, %c0_i32, %c0_i32_0 : i32, i32, i32, i32
  }
  func.func @transform_1(%arg0: i32, %arg1: i32) -> (i32, i32, i32, i32) {
    %c0_i32 = arith.constant 0 : i32
    %c0_i32_0 = arith.constant 0 : i32
    %c0_i32_1 = arith.constant 0 : i32
    return %arg0, %arg1, %c0_i32, %c0_i32_0 : i32, i32, i32, i32
  }
  func.func @transform_2(%arg0: i32, %arg1: i32) -> (i32, i32) {
    %c0_i32 = arith.constant 0 : i32
    %c0_i32_0 = arith.constant 0 : i32
    %c0_i32_1 = arith.constant 0 : i32
    return %c0_i32, %c0_i32_0 : i32, i32
  }
  func.func @transform_3(%arg0: i32, %arg1: i32) -> (i32, i32) {
    %c0_i32 = arith.constant 0 : i32
    %c0_i32_0 = arith.constant 0 : i32
    %c0_i32_1 = arith.constant 0 : i32
    return %c0_i32, %c0_i32_0 : i32, i32
  }
  func.func @transform_4(%arg0: i32, %arg1: i32) -> (i32, i32, i32, i32) {
    %c0_i32 = arith.constant 0 : i32
    %c0_i32_0 = arith.constant 0 : i32
    %c0_i32_1 = arith.constant 0 : i32
    return %arg0, %arg1, %c0_i32, %c0_i32_0 : i32, i32, i32, i32
  }
}

module attributes {stable_mosaic.version = 11 : i64} {
  func.func @_bn1_relu_conv2_kernel(%arg0: i32, %arg1: i32, %arg2: memref<1x16x16x4xf32, #tpu.memory_space<vmem>>, %arg3: memref<1x1x16x4xf32, #tpu.memory_space<vmem>>, %arg4: memref<1x1x16x4xf32, #tpu.memory_space<vmem>>, %arg5: memref<9x4xf32, #tpu.memory_space<vmem>>, %arg6: memref<1x4xf32, #tpu.memory_space<vmem>>, %arg7: memref<1x4xf32, #tpu.memory_space<vmem>>, %arg8: memref<1x16x16x4xf32, #tpu.memory_space<vmem>>, %arg9: memref<1x1x1x4xf32, #tpu.memory_space<vmem>>, %arg10: memref<1x1x1x4xf32, #tpu.memory_space<vmem>>) attributes {dimension_semantics = [#tpu.dimension_semantics<parallel>, #tpu.dimension_semantics<parallel>], iteration_bounds = array<i64: 2, 1>, scalar_prefetch = 0 : i64, scratch_operands = 0 : i64, tpu.core_type = #tpu.core_type<tc>, window_params = [{transform_indices = @transform_0, window_bounds = array<i64: 1, 16, 16, 4>}, {transform_indices = @transform_1, window_bounds = array<i64: 1, 1, 16, 4>}, {transform_indices = @transform_2, window_bounds = array<i64: 1, 1, 16, 4>}, {pipeline_mode = #tpu.pipeline_mode<synchronous>, transform_indices = @transform_3, window_bounds = array<i64: 9, 4>}, {pipeline_mode = #tpu.pipeline_mode<synchronous>, transform_indices = @transform_4, window_bounds = array<i64: 1, 4>}, {pipeline_mode = #tpu.pipeline_mode<synchronous>, transform_indices = @transform_5, window_bounds = array<i64: 1, 4>}, {transform_indices = @transform_6, window_bounds = array<i64: 1, 16, 16, 4>}, {transform_indices = @transform_7, window_bounds = array<i64: 1, 1, 1, 4>}, {transform_indices = @transform_8, window_bounds = array<i64: 1, 1, 1, 4>}]} {
    %c0 = arith.constant 0 : index
    %c0_0 = arith.constant 0 : index
    %0 = vector.load %arg6[%c0, %c0_0] : memref<1x4xf32, #tpu.memory_space<vmem>>, vector<1x4xf32>
    %1 = vector.shape_cast %0 : vector<1x4xf32> to vector<4xf32>
    %c0_1 = arith.constant 0 : index
    %c0_2 = arith.constant 0 : index
    %2 = vector.load %arg7[%c0_1, %c0_2] : memref<1x4xf32, #tpu.memory_space<vmem>>, vector<1x4xf32>
    %3 = vector.shape_cast %2 : vector<1x4xf32> to vector<4xf32>
    %c0_3 = arith.constant 0 : index
    %c0_4 = arith.constant 0 : index
    %c0_5 = arith.constant 0 : index
    %c0_6 = arith.constant 0 : index
    %4 = vector.load %arg2[%c0_3, %c0_4, %c0_5, %c0_6] : memref<1x16x16x4xf32, #tpu.memory_space<vmem>>, vector<1x16x16x4xf32>
    %5 = vector.shape_cast %4 : vector<1x16x16x4xf32> to vector<16x16x4xf32>
    %6 = vector.shape_cast %1 : vector<4xf32> to vector<1x1x4xf32>
    %7 = vector.broadcast %6 : vector<1x1x4xf32> to vector<16x16x4xf32>
    %8 = arith.mulf %5, %7 : vector<16x16x4xf32>
    %9 = vector.shape_cast %3 : vector<4xf32> to vector<1x1x4xf32>
    %10 = vector.broadcast %9 : vector<1x1x4xf32> to vector<16x16x4xf32>
    %11 = arith.addf %8, %10 : vector<16x16x4xf32>
    %cst = arith.constant 0.000000e+00 : f32
    %12 = vector.broadcast %cst : f32 to vector<16x16x4xf32>
    %13 = arith.maximumf %11, %12 : vector<16x16x4xf32>
    %c0_7 = arith.constant 0 : index
    %c0_8 = arith.constant 0 : index
    %c0_9 = arith.constant 0 : index
    %c0_10 = arith.constant 0 : index
    %14 = vector.load %arg3[%c0_7, %c0_8, %c0_9, %c0_10] : memref<1x1x16x4xf32, #tpu.memory_space<vmem>>, vector<1x1x16x4xf32>
    %15 = vector.shape_cast %14 : vector<1x1x16x4xf32> to vector<1x16x4xf32>
    %16 = vector.shape_cast %1 : vector<4xf32> to vector<1x1x4xf32>
    %17 = vector.broadcast %16 : vector<1x1x4xf32> to vector<1x16x4xf32>
    %18 = arith.mulf %15, %17 : vector<1x16x4xf32>
    %19 = vector.shape_cast %3 : vector<4xf32> to vector<1x1x4xf32>
    %20 = vector.broadcast %19 : vector<1x1x4xf32> to vector<1x16x4xf32>
    %21 = arith.addf %18, %20 : vector<1x16x4xf32>
    %cst_11 = arith.constant 0.000000e+00 : f32
    %22 = vector.broadcast %cst_11 : f32 to vector<1x16x4xf32>
    %23 = arith.maximumf %21, %22 : vector<1x16x4xf32>
    %c0_12 = arith.constant 0 : index
    %c0_13 = arith.constant 0 : index
    %c0_14 = arith.constant 0 : index
    %c0_15 = arith.constant 0 : index
    %24 = vector.load %arg4[%c0_12, %c0_13, %c0_14, %c0_15] : memref<1x1x16x4xf32, #tpu.memory_space<vmem>>, vector<1x1x16x4xf32>
    %25 = vector.shape_cast %24 : vector<1x1x16x4xf32> to vector<1x16x4xf32>
    %26 = vector.shape_cast %1 : vector<4xf32> to vector<1x1x4xf32>
    %27 = vector.broadcast %26 : vector<1x1x4xf32> to vector<1x16x4xf32>
    %28 = arith.mulf %25, %27 : vector<1x16x4xf32>
    %29 = vector.shape_cast %3 : vector<4xf32> to vector<1x1x4xf32>
    %30 = vector.broadcast %29 : vector<1x1x4xf32> to vector<1x16x4xf32>
    %31 = arith.addf %28, %30 : vector<1x16x4xf32>
    %cst_16 = arith.constant 0.000000e+00 : f32
    %32 = vector.broadcast %cst_16 : f32 to vector<1x16x4xf32>
    %33 = arith.maximumf %31, %32 : vector<1x16x4xf32>
    %c0_i32 = arith.constant 0 : i32
    %34 = arith.cmpi eq, %arg1, %c0_i32 : i32
    %cst_17 = arith.constant 0.000000e+00 : f32
    %35 = vector.broadcast %cst_17 : f32 to vector<1x16x4xf32>
    %36 = arith.select %34, %35, %23 : vector<1x16x4xf32>
    %c0_i32_18 = arith.constant 0 : i32
    %37 = arith.cmpi eq, %arg1, %c0_i32_18 : i32
    %cst_19 = arith.constant 0.000000e+00 : f32
    %38 = vector.broadcast %cst_19 : f32 to vector<1x16x4xf32>
    %39 = arith.select %37, %38, %33 : vector<1x16x4xf32>
    %40 = tpu.concatenate %36, %13, %39 in 0 : vector<1x16x4xf32>, vector<16x16x4xf32>, vector<1x16x4xf32> -> vector<18x16x4xf32>
    %cst_20 = arith.constant 0.000000e+00 : f32
    %41 = vector.broadcast %cst_20 : f32 to vector<18x1x4xf32>
    %42 = tpu.concatenate %41, %40, %41 in 1 : vector<18x1x4xf32>, vector<18x16x4xf32>, vector<18x1x4xf32> -> vector<18x18x4xf32>
    %c0_21 = arith.constant 0 : index
    %c0_22 = arith.constant 0 : index
    %43 = vector.load %arg5[%c0_21, %c0_22] : memref<9x4xf32, #tpu.memory_space<vmem>>, vector<9x4xf32>
    %44 = vector.extract_strided_slice %42 {offsets = [0, 0, 0], sizes = [16, 16, 4], strides = [1, 1, 1]} : vector<18x18x4xf32> to vector<16x16x4xf32>
    %45 = vector.extract_strided_slice %43 {offsets = [0, 0], sizes = [1, 4], strides = [1, 1]} : vector<9x4xf32> to vector<1x4xf32>
    %46 = vector.shape_cast %45 : vector<1x4xf32> to vector<4xf32>
    %47 = vector.shape_cast %46 : vector<4xf32> to vector<1x1x4xf32>
    %48 = vector.broadcast %47 : vector<1x1x4xf32> to vector<16x16x4xf32>
    %49 = arith.mulf %44, %48 : vector<16x16x4xf32>
    %50 = vector.extract_strided_slice %42 {offsets = [0, 1, 0], sizes = [16, 16, 4], strides = [1, 1, 1]} : vector<18x18x4xf32> to vector<16x16x4xf32>
    %51 = vector.extract_strided_slice %43 {offsets = [1, 0], sizes = [1, 4], strides = [1, 1]} : vector<9x4xf32> to vector<1x4xf32>
    %52 = vector.shape_cast %51 : vector<1x4xf32> to vector<4xf32>
    %53 = vector.shape_cast %52 : vector<4xf32> to vector<1x1x4xf32>
    %54 = vector.broadcast %53 : vector<1x1x4xf32> to vector<16x16x4xf32>
    %55 = arith.mulf %50, %54 : vector<16x16x4xf32>
    %56 = arith.addf %49, %55 : vector<16x16x4xf32>
    %57 = vector.extract_strided_slice %42 {offsets = [0, 2, 0], sizes = [16, 16, 4], strides = [1, 1, 1]} : vector<18x18x4xf32> to vector<16x16x4xf32>
    %58 = vector.extract_strided_slice %43 {offsets = [2, 0], sizes = [1, 4], strides = [1, 1]} : vector<9x4xf32> to vector<1x4xf32>
    %59 = vector.shape_cast %58 : vector<1x4xf32> to vector<4xf32>
    %60 = vector.shape_cast %59 : vector<4xf32> to vector<1x1x4xf32>
    %61 = vector.broadcast %60 : vector<1x1x4xf32> to vector<16x16x4xf32>
    %62 = arith.mulf %57, %61 : vector<16x16x4xf32>
    %63 = arith.addf %56, %62 : vector<16x16x4xf32>
    %64 = vector.extract_strided_slice %42 {offsets = [1, 0, 0], sizes = [16, 16, 4], strides = [1, 1, 1]} : vector<18x18x4xf32> to vector<16x16x4xf32>
    %65 = vector.extract_strided_slice %43 {offsets = [3, 0], sizes = [1, 4], strides = [1, 1]} : vector<9x4xf32> to vector<1x4xf32>
    %66 = vector.shape_cast %65 : vector<1x4xf32> to vector<4xf32>
    %67 = vector.shape_cast %66 : vector<4xf32> to vector<1x1x4xf32>
    %68 = vector.broadcast %67 : vector<1x1x4xf32> to vector<16x16x4xf32>
    %69 = arith.mulf %64, %68 : vector<16x16x4xf32>
    %70 = arith.addf %63, %69 : vector<16x16x4xf32>
    %71 = vector.extract_strided_slice %42 {offsets = [1, 1, 0], sizes = [16, 16, 4], strides = [1, 1, 1]} : vector<18x18x4xf32> to vector<16x16x4xf32>
    %72 = vector.extract_strided_slice %43 {offsets = [4, 0], sizes = [1, 4], strides = [1, 1]} : vector<9x4xf32> to vector<1x4xf32>
    %73 = vector.shape_cast %72 : vector<1x4xf32> to vector<4xf32>
    %74 = vector.shape_cast %73 : vector<4xf32> to vector<1x1x4xf32>
    %75 = vector.broadcast %74 : vector<1x1x4xf32> to vector<16x16x4xf32>
    %76 = arith.mulf %71, %75 : vector<16x16x4xf32>
    %77 = arith.addf %70, %76 : vector<16x16x4xf32>
    %78 = vector.extract_strided_slice %42 {offsets = [1, 2, 0], sizes = [16, 16, 4], strides = [1, 1, 1]} : vector<18x18x4xf32> to vector<16x16x4xf32>
    %79 = vector.extract_strided_slice %43 {offsets = [5, 0], sizes = [1, 4], strides = [1, 1]} : vector<9x4xf32> to vector<1x4xf32>
    %80 = vector.shape_cast %79 : vector<1x4xf32> to vector<4xf32>
    %81 = vector.shape_cast %80 : vector<4xf32> to vector<1x1x4xf32>
    %82 = vector.broadcast %81 : vector<1x1x4xf32> to vector<16x16x4xf32>
    %83 = arith.mulf %78, %82 : vector<16x16x4xf32>
    %84 = arith.addf %77, %83 : vector<16x16x4xf32>
    %85 = vector.extract_strided_slice %42 {offsets = [2, 0, 0], sizes = [16, 16, 4], strides = [1, 1, 1]} : vector<18x18x4xf32> to vector<16x16x4xf32>
    %86 = vector.extract_strided_slice %43 {offsets = [6, 0], sizes = [1, 4], strides = [1, 1]} : vector<9x4xf32> to vector<1x4xf32>
    %87 = vector.shape_cast %86 : vector<1x4xf32> to vector<4xf32>
    %88 = vector.shape_cast %87 : vector<4xf32> to vector<1x1x4xf32>
    %89 = vector.broadcast %88 : vector<1x1x4xf32> to vector<16x16x4xf32>
    %90 = arith.mulf %85, %89 : vector<16x16x4xf32>
    %91 = arith.addf %84, %90 : vector<16x16x4xf32>
    %92 = vector.extract_strided_slice %42 {offsets = [2, 1, 0], sizes = [16, 16, 4], strides = [1, 1, 1]} : vector<18x18x4xf32> to vector<16x16x4xf32>
    %93 = vector.extract_strided_slice %43 {offsets = [7, 0], sizes = [1, 4], strides = [1, 1]} : vector<9x4xf32> to vector<1x4xf32>
    %94 = vector.shape_cast %93 : vector<1x4xf32> to vector<4xf32>
    %95 = vector.shape_cast %94 : vector<4xf32> to vector<1x1x4xf32>
    %96 = vector.broadcast %95 : vector<1x1x4xf32> to vector<16x16x4xf32>
    %97 = arith.mulf %92, %96 : vector<16x16x4xf32>
    %98 = arith.addf %91, %97 : vector<16x16x4xf32>
    %99 = vector.extract_strided_slice %42 {offsets = [2, 2, 0], sizes = [16, 16, 4], strides = [1, 1, 1]} : vector<18x18x4xf32> to vector<16x16x4xf32>
    %100 = vector.extract_strided_slice %43 {offsets = [8, 0], sizes = [1, 4], strides = [1, 1]} : vector<9x4xf32> to vector<1x4xf32>
    %101 = vector.shape_cast %100 : vector<1x4xf32> to vector<4xf32>
    %102 = vector.shape_cast %101 : vector<4xf32> to vector<1x1x4xf32>
    %103 = vector.broadcast %102 : vector<1x1x4xf32> to vector<16x16x4xf32>
    %104 = arith.mulf %99, %103 : vector<16x16x4xf32>
    %105 = arith.addf %98, %104 : vector<16x16x4xf32>
    %c0_23 = arith.constant 0 : index
    %c0_24 = arith.constant 0 : index
    %c0_25 = arith.constant 0 : index
    %c0_26 = arith.constant 0 : index
    %106 = vector.load %arg8[%c0_23, %c0_24, %c0_25, %c0_26] : memref<1x16x16x4xf32, #tpu.memory_space<vmem>>, vector<1x16x16x4xf32>
    %107 = vector.shape_cast %106 : vector<1x16x16x4xf32> to vector<16x16x4xf32>
    %108 = vector.shape_cast %105 : vector<16x16x4xf32> to vector<1x16x16x4xf32>
    tpu.vector_store %arg8[%c0_23, %c0_24, %c0_25, %c0_26], %108 {strides = array<i32>} : memref<1x16x16x4xf32, #tpu.memory_space<vmem>>, vector<1x16x16x4xf32>,
    %cst_27 = arith.constant dense<0.000000e+00> : vector<4xf32>
    %109 = vector.multi_reduction <add>, %105, %cst_27 [0, 1] : vector<16x16x4xf32> to vector<4xf32>
    %cst_28 = arith.constant 3.906250e-03 : f32
    %110 = vector.broadcast %cst_28 : f32 to vector<4xf32>
    %111 = arith.mulf %109, %110 : vector<4xf32>
    %112 = vector.shape_cast %111 : vector<4xf32> to vector<1x1x4xf32>
    %113 = vector.broadcast %112 : vector<1x1x4xf32> to vector<16x16x4xf32>
    %114 = arith.subf %105, %113 : vector<16x16x4xf32>
    %115 = arith.mulf %114, %114 : vector<16x16x4xf32>
    %cst_29 = arith.constant dense<0.000000e+00> : vector<4xf32>
    %116 = vector.multi_reduction <add>, %115, %cst_29 [0, 1] : vector<16x16x4xf32> to vector<4xf32>
    %117 = vector.shape_cast %109 : vector<4xf32> to vector<1x1x1x4xf32>
    %c0_30 = arith.constant 0 : index
    %c0_31 = arith.constant 0 : index
    %c0_32 = arith.constant 0 : index
    %c0_33 = arith.constant 0 : index
    %118 = vector.load %arg9[%c0_30, %c0_31, %c0_32, %c0_33] : memref<1x1x1x4xf32, #tpu.memory_space<vmem>>, vector<1x1x1x4xf32>
    tpu.vector_store %arg9[%c0_30, %c0_31, %c0_32, %c0_33], %117 {strides = array<i32>} : memref<1x1x1x4xf32, #tpu.memory_space<vmem>>, vector<1x1x1x4xf32>,
    %119 = vector.shape_cast %116 : vector<4xf32> to vector<1x1x1x4xf32>
    %c0_34 = arith.constant 0 : index
    %c0_35 = arith.constant 0 : index
    %c0_36 = arith.constant 0 : index
    %c0_37 = arith.constant 0 : index
    %120 = vector.load %arg10[%c0_34, %c0_35, %c0_36, %c0_37] : memref<1x1x1x4xf32, #tpu.memory_space<vmem>>, vector<1x1x1x4xf32>
    tpu.vector_store %arg10[%c0_34, %c0_35, %c0_36, %c0_37], %119 {strides = array<i32>} : memref<1x1x1x4xf32, #tpu.memory_space<vmem>>, vector<1x1x1x4xf32>,
    return
  }
  func.func @transform_0(%arg0: i32, %arg1: i32) -> (i32, i32, i32, i32) {
    %c0_i32 = arith.constant 0 : i32
    %c0_i32_0 = arith.constant 0 : i32
    %c0_i32_1 = arith.constant 0 : i32
    return %arg0, %arg1, %c0_i32, %c0_i32_0 : i32, i32, i32, i32
  }
  func.func @transform_1(%arg0: i32, %arg1: i32) -> (i32, i32, i32, i32) {
    %c16_i32 = arith.constant 16 : i32
    %0 = arith.muli %arg1, %c16_i32 : i32
    %c1_i32 = arith.constant 1 : i32
    %1 = arith.subi %0, %c1_i32 : i32
    %c0_i32 = arith.constant 0 : i32
    %2 = arith.maxsi %1, %c0_i32 : i32
    %c0_i32_0 = arith.constant 0 : i32
    %c0_i32_1 = arith.constant 0 : i32
    %c0_i32_2 = arith.constant 0 : i32
    return %arg0, %2, %c0_i32_0, %c0_i32_1 : i32, i32, i32, i32
  }
  func.func @transform_2(%arg0: i32, %arg1: i32) -> (i32, i32, i32, i32) {
    %c16_i32 = arith.constant 16 : i32
    %0 = arith.muli %arg1, %c16_i32 : i32
    %c16_i32_0 = arith.constant 16 : i32
    %1 = arith.addi %0, %c16_i32_0 : i32
    %c15_i32 = arith.constant 15 : i32
    %2 = arith.minsi %1, %c15_i32 : i32
    %c0_i32 = arith.constant 0 : i32
    %c0_i32_1 = arith.constant 0 : i32
    %c0_i32_2 = arith.constant 0 : i32
    return %arg0, %2, %c0_i32, %c0_i32_1 : i32, i32, i32, i32
  }
  func.func @transform_3(%arg0: i32, %arg1: i32) -> (i32, i32) {
    %c0_i32 = arith.constant 0 : i32
    %c0_i32_0 = arith.constant 0 : i32
    %c0_i32_1 = arith.constant 0 : i32
    return %c0_i32, %c0_i32_0 : i32, i32
  }
  func.func @transform_4(%arg0: i32, %arg1: i32) -> (i32, i32) {
    %c0_i32 = arith.constant 0 : i32
    %c0_i32_0 = arith.constant 0 : i32
    %c0_i32_1 = arith.constant 0 : i32
    return %c0_i32, %c0_i32_0 : i32, i32
  }
  func.func @transform_5(%arg0: i32, %arg1: i32) -> (i32, i32) {
    %c0_i32 = arith.constant 0 : i32
    %c0_i32_0 = arith.constant 0 : i32
    %c0_i32_1 = arith.constant 0 : i32
    return %c0_i32, %c0_i32_0 : i32, i32
  }
  func.func @transform_6(%arg0: i32, %arg1: i32) -> (i32, i32, i32, i32) {
    %c0_i32 = arith.constant 0 : i32
    %c0_i32_0 = arith.constant 0 : i32
    %c0_i32_1 = arith.constant 0 : i32
    return %arg0, %arg1, %c0_i32, %c0_i32_0 : i32, i32, i32, i32
  }
  func.func @transform_7(%arg0: i32, %arg1: i32) -> (i32, i32, i32, i32) {
    %c0_i32 = arith.constant 0 : i32
    %c0_i32_0 = arith.constant 0 : i32
    %c0_i32_1 = arith.constant 0 : i32
    return %arg0, %arg1, %c0_i32, %c0_i32_0 : i32, i32, i32, i32
  }
  func.func @transform_8(%arg0: i32, %arg1: i32) -> (i32, i32, i32, i32) {
    %c0_i32 = arith.constant 0 : i32
    %c0_i32_0 = arith.constant 0 : i32
    %c0_i32_1 = arith.constant 0 : i32
    return %arg0, %arg1, %c0_i32, %c0_i32_0 : i32, i32, i32, i32
  }
}

</mosaic_0001>

<bundles_post_ra>
// kernel: res_block_forward.5
= control target key start
LH: loop header
LB: loop body
LE: loop exit
PB: predicated region body
PF: predicated region fallthrough
CT: control target
= control target key end

     0   :  { %s728_s15 = smov 0   ;;  %s730_s16 = smov 0   ;;  %s977_s0 = inlined_call_operand.vmem [shape: f32[2,16,16,4], index: 0, kind: input, shape index: {}]   ;;  %s978_s1 = inlined_call_operand.vmem [shape: f32[2,16,16,4], index: 1, kind: input, shape index: {}]   ;;  %s979_s2 = inlined_call_operand.vmem [shape: f32[1,4], index: 2, kind: input, shape index: {}]   ;;  %s980_s3 = inlined_call_operand.vmem [shape: f32[1,4], index: 3, kind: input, shape index: {}]   ;;  %s981_s4 = inlined_call_operand.vmem [shape: f32[2,16,16,4], index: 4, kind: output, shape index: {}]  }
   0x1   :  { %s732_s17 = smov 0  }
   0x2 LB: > { %s26_s18 = sadd.s32 1, %s697_s16  ;;  %p641_p0 = scmp.ge.s32.totalorder %s701_s17, 1  ;;  %s701_s17 = sphi %s732_s17, %s14_s17   ;;  %s697_s16 = sphi %s730_s16, %s983_s16   ;;  %s693_s15 = sphi %s728_s15, %s982_s15  }
   0x3   : > { %p28_p1 = scmp.ge.s32.totalorder %s26_s18, 2  ;;  %p202_p2 = scmp.lt.s32.totalorder %s701_s17, 3 }
   0x5   : > { %s985_s18 = smov (%p28_p1, %s26_s18), 0  ;;  %p203_p3 = pnand %p641_p0, %p202_p2 }
   0x6   : > { %p249_p4 = scmp.lt.s32.totalorder (!%p203_p3), %s693_s15, 1  ;;  %v751_v0 = vld [vmem:[%s979_s2] ss:$0 sm:$0xff] (!%p203_p3)  ;;  %vm487_vm0 = vcmask (!%p203_p3), 31744  }
   0x7   : > { %206 = sbr.rel (%p203_p3) target bundleno = 55 (0x37), region = 36  ;;  %v769_v2 = vld [vmem:[%s980_s3] ss:$0 sm:$0xff] (!%p203_p3) }
   0xe   : > { %s987_s15 = smov (!%p249_p4, %s693_s15), 1 }
   0xf   : > { %s746_s19 = sshll.u32 %s987_s15, 8 }
  0x10   : > { %s757_s24 = scalar_lea.vmem %s977_s0, %s746_s19  ;;  %s763_s27 = scalar_lea.vmem %s978_s1, %s746_s19 }
  0x11   : > { %v281_v1 = vld [vmem:[%s757_s24] sm:$0xff]  ;;  %v282_v3 = vld [vmem:[%s757_s24 + $0x8] sm:$0xff]  ;;  %v283_v6 = vld [vmem:[%s757_s24 + $0x10] sm:$0xff]  ;;  %s797_s6 = scalar_lea.vmem %s981_s4, %s746_s19 }
  0x12   : > { %v320_v4 = vmul.f32 %v751_v0, %v281_v1  ;;  %v321_v5 = vmul.f32 %v751_v0, %v282_v3  ;;  %v322_v7 = vmul.f32 %v751_v0, %v283_v6  ;;  %v284_v8 = vld [vmem:[%s757_s24 + $0x18] sm:$0xff]  ;;  %v285_v9 = vld [vmem:[%s757_s24 + $0x20] sm:$0xff]  ;;  %v286_v15 = vld [vmem:[%s757_s24 + $0x28] sm:$0xff] }
  0x13   : > { %v423_v11 = vld [vmem:[%s763_s27] sm:$0xff]  ;;  %v323_v13 = vmul.f32 %v751_v0, %v284_v8  ;;  %v324_v14 = vmul.f32 %v751_v0, %v285_v9  ;;  %v424_v16 = vld [vmem:[%s763_s27 + $0x8] sm:$0xff]  ;;  %v325_v18 = vmul.f32 %v751_v0, %v286_v15  ;;  %v287_v19 = vld [vmem:[%s757_s24 + $0x30] sm:$0xff] }
  0x14   : > { %v359_v10 = vadd.f32 %v769_v2, %v320_v4  ;;  %v360_v12 = vadd.f32 %v769_v2, %v321_v5  ;;  %v361_v17 = vadd.f32 %v769_v2, %v322_v7  ;;  %v288_v20 = vld [vmem:[%s757_s24 + $0x38] sm:$0xff]  ;;  %v425_v23 = vld [vmem:[%s763_s27 + $0x10] sm:$0xff]  ;;  %v427_v28 = vld [vmem:[%s763_s27 + $0x20] sm:$0xff]  ;;  %v326_v30 = vmul.f32 %v751_v0, %v287_v19 }
  0x15   : > { %v362_v24 = vadd.f32 %v769_v2, %v323_v13  ;;  %v426_v25 = vld [vmem:[%s763_s27 + $0x18] sm:$0xff]  ;;  %v363_v26 = vadd.f32 %v769_v2, %v324_v14  ;;  %v364_v29 = vadd.f32 %v769_v2, %v325_v18  ;;  %v327_v31 = vmul.f32 %v751_v0, %v288_v20  ;;  %v289_v32 = vld [vmem:[%s757_s24 + $0x40] sm:$0xff]  ;;  %v290_v33 = vld [vmem:[%s757_s24 + $0x48] sm:$0xff] }
  0x16   : > { %v391_v21 = vmax.f32 %v359_v10, 0.0  ;;  %v392_v22 = vmax.f32 %v360_v12, 0.0  ;;  %v393_v27 = vmax.f32 %v361_v17, 0.0  ;;  %v428_v38 = vld [vmem:[%s763_s27 + $0x28] sm:$0xff]  ;;  %v291_v39 = vld [vmem:[%s757_s24 + $0x50] sm:$0xff]  ;;  %v365_v42 = vadd.f32 %v769_v2, %v326_v30  ;;  %v292_v44 = vld [vmem:[%s757_s24 + $0x58] sm:$0xff] }
  0x17   : > { %v394_v36 = vmax.f32 %v362_v24, 0.0  ;;  %v395_v37 = vmax.f32 %v363_v26, 0.0  ;;  %v396_v41 = vmax.f32 %v364_v29, 0.0  ;;  %v366_v43 = vadd.f32 %v769_v2, %v327_v31  ;;  %v293_v45 = vld [vmem:[%s757_s24 + $0x60] sm:$0xff]  ;;  %v429_v48 = vld [vmem:[%s763_s27 + $0x30] sm:$0xff]  ;;  %v430_v49 = vld [vmem:[%s763_s27 + $0x38] sm:$0xff] }
  0x18   : > { %v455_v34 = vadd.f32 %v423_v11, %v391_v21  ;;  %v456_v35 = vadd.f32 %v424_v16, %v392_v22  ;;  %v457_v40 = vadd.f32 %v425_v23, %v393_v27  ;;  %v328_v50 = vmul.f32 %v751_v0, %v289_v32  ;;  %v294_v52 = vld [vmem:[%s757_s24 + $0x68] sm:$0xff]  ;;  %v295_v61 = vld [vmem:[%s757_s24 + $0x70] sm:$0xff]  ;;  %v296_v62 = vld [vmem:[%s757_s24 + $0x78] sm:$0xff] }
  0x19   : > { %v458_v46 = vadd.f32 %v426_v25, %v394_v36  ;;  %v459_v47 = vadd.f32 %v427_v28, %v395_v37  ;;  %v329_v51 = vmul.f32 %v751_v0, %v290_v33  ;;  %v460_v53 = vadd.f32 %v428_v38, %v396_v41  ;;  %v431_v3 = vld [vmem:[%s763_s27 + $0x40] sm:$0xff]  ;;  %v432_v4 = vld [vmem:[%s763_s27 + $0x48] sm:$0xff]  ;;  %v433_v9 = vld [vmem:[%s763_s27 + $0x50] sm:$0xff] }
  0x1a   : > { %488 = vst.msk [vmem:[%s797_s6] sm:$0xff] %vm487_vm0, %v455_v34  ;;  %489 = vst.msk [vmem:[%s797_s6 + $0x8] sm:$0xff] %vm487_vm0, %v456_v35  ;;  %v397_v54 = vmax.f32 %v365_v42, 0.0  ;;  %v398_v55 = vmax.f32 %v366_v43, 0.0  ;;  %v330_v56 = vmul.f32 %v751_v0, %v291_v39  ;;  %v367_v57 = vadd.f32 %v769_v2, %v328_v50  ;;  %v434_v11 = vld [vmem:[%s763_s27 + $0x58] sm:$0xff]  ;;  %v435_v14 = vld [vmem:[%s763_s27 + $0x60] sm:$0xff] }
  0x1b   : > { %490 = vst.msk [vmem:[%s797_s6 + $0x10] sm:$0xff] %vm487_vm0, %v457_v40  ;;  %491 = vst.msk [vmem:[%s797_s6 + $0x18] sm:$0xff] %vm487_vm0, %v458_v46  ;;  %v368_v58 = vadd.f32 %v769_v2, %v329_v51  ;;  %v331_v59 = vmul.f32 %v751_v0, %v292_v44  ;;  %v332_v60 = vmul.f32 %v751_v0, %v293_v45  ;;  %v297_v18 = vld [vmem:[%s757_s24 + $0x80] sm:$0xff]  ;;  %v298_v19 = vld [vmem:[%s757_s24 + $0x88] sm:$0xff] }
  0x1c   : > { %492 = vst.msk [vmem:[%s797_s6 + $0x20] sm:$0xff] %vm487_vm0, %v459_v47  ;;  %493 = vst.msk [vmem:[%s797_s6 + $0x28] sm:$0xff] %vm487_vm0, %v460_v53  ;;  %v461_v63 = vadd.f32 %v429_v48, %v397_v54  ;;  %v462_v1 = vadd.f32 %v430_v49, %v398_v55  ;;  %v369_v5 = vadd.f32 %v769_v2, %v330_v56  ;;  %v399_v7 = vmax.f32 %v367_v57, 0.0  ;;  %v436_v24 = vld [vmem:[%s763_s27 + $0x68] sm:$0xff]  ;;  %v299_v25 = vld [vmem:[%s757_s24 + $0x90] sm:$0xff] }
  0x1d   : > { %v333_v6 = vmul.f32 %v751_v0, %v294_v52  ;;  %v400_v8 = vmax.f32 %v368_v58, 0.0  ;;  %v370_v10 = vadd.f32 %v769_v2, %v331_v59  ;;  %v371_v12 = vadd.f32 %v769_v2, %v332_v60  ;;  %v300_v30 = vld [vmem:[%s757_s24 + $0x98] sm:$0xff]  ;;  %v301_v31 = vld [vmem:[%s757_s24 + $0xa0] sm:$0xff]  ;;  %v437_v34 = vld [vmem:[%s763_s27 + $0x70] sm:$0xff] }
  0x1e   : > { %494 = vst.msk [vmem:[%s797_s6 + $0x30] sm:$0xff] %vm487_vm0, %v461_v63  ;;  %495 = vst.msk [vmem:[%s797_s6 + $0x38] sm:$0xff] %vm487_vm0, %v462_v1  ;;  %v401_v13 = vmax.f32 %v369_v5, 0.0  ;;  %v334_v16 = vmul.f32 %v751_v0, %v295_v61  ;;  %v335_v17 = vmul.f32 %v751_v0, %v296_v62  ;;  %v463_v20 = vadd.f32 %v431_v3, %v399_v7  ;;  %v438_v35 = vld [vmem:[%s763_s27 + $0x78] sm:$0xff]  ;;  %v302_v38 = vld [vmem:[%s757_s24 + $0xa8] sm:$0xff] }
  0x1f   : > { %v372_v15 = vadd.f32 %v769_v2, %v333_v6  ;;  %v464_v21 = vadd.f32 %v432_v4, %v400_v8  ;;  %v402_v22 = vmax.f32 %v370_v10, 0.0  ;;  %v403_v23 = vmax.f32 %v371_v12, 0.0  ;;  %v303_v47 = vld [vmem:[%s757_s24 + $0xb0] sm:$0xff]  ;;  %v304_v48 = vld [vmem:[%s757_s24 + $0xb8] sm:$0xff]  ;;  %v439_v51 = vld [vmem:[%s763_s27 + $0x80] sm:$0xff] }
  0x20   : > { %v465_v26 = vadd.f32 %v433_v9, %v401_v13  ;;  %v373_v28 = vadd.f32 %v769_v2, %v334_v16  ;;  %v374_v29 = vadd.f32 %v769_v2, %v335_v17  ;;  %496 = vst.msk [vmem:[%s797_s6 + $0x40] sm:$0xff] %vm487_vm0, %v463_v20  ;;  %v336_v36 = vmul.f32 %v751_v0, %v297_v18  ;;  %v440_v52 = vld [vmem:[%s763_s27 + $0x88] sm:$0xff]  ;;  %v441_v57 = vld [vmem:[%s763_s27 + $0x90] sm:$0xff]  ;;  %v442_v59 = vld [vmem:[%s763_s27 + $0x98] sm:$0xff] }
  0x21   : > { %v404_v27 = vmax.f32 %v372_v15, 0.0  ;;  %497 = vst.msk [vmem:[%s797_s6 + $0x48] sm:$0xff] %vm487_vm0, %v464_v21  ;;  %v466_v32 = vadd.f32 %v434_v11, %v402_v22  ;;  %v467_v33 = vadd.f32 %v435_v14, %v403_v23  ;;  %v337_v37 = vmul.f32 %v751_v0, %v298_v19  ;;  %v443_v62 = vld [vmem:[%s763_s27 + $0xa0] sm:$0xff]  ;;  %v306_v5 = vld [vmem:[%s757_s24 + $0xc8] sm:$0xff]  ;;  %v307_v11 = vld [vmem:[%s757_s24 + $0xd0] sm:$0xff] }
  0x22   : > { %498 = vst.msk [vmem:[%s797_s6 + $0x50] sm:$0xff] %vm487_vm0, %v465_v26  ;;  %v405_v40 = vmax.f32 %v373_v28, 0.0  ;;  %v406_v41 = vmax.f32 %v374_v29, 0.0  ;;  %v338_v42 = vmul.f32 %v751_v0, %v299_v25  ;;  %v375_v43 = vadd.f32 %v769_v2, %v336_v36  ;;  %v305_v4 = vld [vmem:[%s757_s24 + $0xc0] sm:$0xff]  ;;  %v444_v10 = vld [vmem:[%s763_s27 + $0xa8] sm:$0xff]  ;;  %v308_v16 = vld [vmem:[%s757_s24 + $0xd8] sm:$0xff] }
  0x23   : > { %v468_v39 = vadd.f32 %v436_v24, %v404_v27  ;;  %499 = vst.msk [vmem:[%s797_s6 + $0x58] sm:$0xff] %vm487_vm0, %v466_v32  ;;  %500 = vst.msk [vmem:[%s797_s6 + $0x60] sm:$0xff] %vm487_vm0, %v467_v33  ;;  %v376_v44 = vadd.f32 %v769_v2, %v337_v37  ;;  %v339_v45 = vmul.f32 %v751_v0, %v300_v30  ;;  %v309_v17 = vld [vmem:[%s757_s24 + $0xe0] sm:$0xff]  ;;  %v445_v20 = vld [vmem:[%s763_s27 + $0xb0] sm:$0xff] }
  0x24   : > { %v340_v46 = vmul.f32 %v751_v0, %v301_v31  ;;  %v469_v49 = vadd.f32 %v437_v34, %v405_v40  ;;  %v470_v50 = vadd.f32 %v438_v35, %v406_v41  ;;  %v377_v53 = vadd.f32 %v769_v2, %v338_v42  ;;  %v446_v21 = vld [vmem:[%s763_s27 + $0xb8] sm:$0xff]  ;;  %v310_v24 = vld [vmem:[%s757_s24 + $0xe8] sm:$0xff]  ;;  %v311_v33 = vld [vmem:[%s757_s24 + $0xf0] sm:$0xff] }
  0x25   : > { %501 = vst.msk [vmem:[%s797_s6 + $0x68] sm:$0xff] %vm487_vm0, %v468_v39  ;;  %v341_v54 = vmul.f32 %v751_v0, %v302_v38  ;;  %v407_v55 = vmax.f32 %v375_v43, 0.0  ;;  %v408_v56 = vmax.f32 %v376_v44, 0.0  ;;  %v378_v58 = vadd.f32 %v769_v2, %v339_v45  ;;  %v312_v34 = vld [vmem:[%s757_s24 + $0xf8] sm:$0xff]  ;;  %v447_v37 = vld [vmem:[%s763_s27 + $0xc0] sm:$0xff]  ;;  %v448_v38 = vld [vmem:[%s763_s27 + $0xc8] sm:$0xff] }
  0x26   : > { %v379_v60 = vadd.f32 %v769_v2, %v340_v46  ;;  %502 = vst.msk [vmem:[%s797_s6 + $0x70] sm:$0xff] %vm487_vm0, %v469_v49  ;;  %503 = vst.msk [vmem:[%s797_s6 + $0x78] sm:$0xff] %vm487_vm0, %v470_v50  ;;  %v409_v61 = vmax.f32 %v377_v53, 0.0  ;;  %v342_v1 = vmul.f32 %v751_v0, %v303_v47  ;;  %v343_v3 = vmul.f32 %v751_v0, %v304_v48  ;;  %v449_v43 = vld [vmem:[%s763_s27 + $0xd0] sm:$0xff]  ;;  %v450_v47 = vld [vmem:[%s763_s27 + $0xd8] sm:$0xff] }
  0x27   : > { %v380_v63 = vadd.f32 %v769_v2, %v341_v54  ;;  %v471_v6 = vadd.f32 %v439_v51, %v407_v55  ;;  %v472_v7 = vadd.f32 %v440_v52, %v408_v56  ;;  %v410_v8 = vmax.f32 %v378_v58, 0.0  ;;  %v451_v48 = vld [vmem:[%s763_s27 + $0xe0] sm:$0xff]  ;;  %v452_v56 = vld [vmem:[%s763_s27 + $0xe8] sm:$0xff] }
  0x28   : > { %v411_v9 = vmax.f32 %v379_v60, 0.0  ;;  %v473_v12 = vadd.f32 %v441_v57, %v409_v61  ;;  %v381_v14 = vadd.f32 %v769_v2, %v342_v1  ;;  %v382_v15 = vadd.f32 %v769_v2, %v343_v3 }
  0x29   : > { %v412_v13 = vmax.f32 %v380_v63, 0.0  ;;  %504 = vst.msk [vmem:[%s797_s6 + $0x80] sm:$0xff] %vm487_vm0, %v471_v6  ;;  %505 = vst.msk [vmem:[%s797_s6 + $0x88] sm:$0xff] %vm487_vm0, %v472_v7  ;;  %v474_v18 = vadd.f32 %v442_v59, %v410_v8  ;;  %v344_v22 = vmul.f32 %v751_v0, %v305_v4  ;;  %v345_v23 = vmul.f32 %v751_v0, %v306_v5  ;;  %v454_v63 = vld [vmem:[%s763_s27 + $0xf8] sm:$0xff] }
  0x2a   : > { %v475_v19 = vadd.f32 %v443_v62, %v411_v9  ;;  %506 = vst.msk [vmem:[%s797_s6 + $0x90] sm:$0xff] %vm487_vm0, %v473_v12  ;;  %v413_v26 = vmax.f32 %v381_v14, 0.0  ;;  %v414_v27 = vmax.f32 %v382_v15, 0.0  ;;  %v346_v28 = vmul.f32 %v751_v0, %v307_v11  ;;  %v453_v62 = vld [vmem:[%s763_s27 + $0xf0] sm:$0xff] }
  0x2b   : > { %v476_v25 = vadd.f32 %v444_v10, %v412_v13  ;;  %507 = vst.msk [vmem:[%s797_s6 + $0x98] sm:$0xff] %vm487_vm0, %v474_v18  ;;  %v383_v29 = vadd.f32 %v769_v2, %v344_v22  ;;  %v384_v30 = vadd.f32 %v769_v2, %v345_v23  ;;  %v347_v31 = vmul.f32 %v751_v0, %v308_v16 }
  0x2c   : > { %508 = vst.msk [vmem:[%s797_s6 + $0xa0] sm:$0xff] %vm487_vm0, %v475_v19  ;;  %v348_v32 = vmul.f32 %v751_v0, %v309_v17  ;;  %v477_v35 = vadd.f32 %v445_v20, %v413_v26  ;;  %v478_v36 = vadd.f32 %v446_v21, %v414_v27  ;;  %v385_v39 = vadd.f32 %v769_v2, %v346_v28 }
  0x2d   : > { %509 = vst.msk [vmem:[%s797_s6 + $0xa8] sm:$0xff] %vm487_vm0, %v476_v25  ;;  %v349_v40 = vmul.f32 %v751_v0, %v310_v24  ;;  %v415_v41 = vmax.f32 %v383_v29, 0.0  ;;  %v416_v42 = vmax.f32 %v384_v30, 0.0  ;;  %v386_v44 = vadd.f32 %v769_v2, %v347_v31 }
  0x2e   : > { %v387_v45 = vadd.f32 %v769_v2, %v348_v32  ;;  %510 = vst.msk [vmem:[%s797_s6 + $0xb0] sm:$0xff] %vm487_vm0, %v477_v35  ;;  %511 = vst.msk [vmem:[%s797_s6 + $0xb8] sm:$0xff] %vm487_vm0, %v478_v36  ;;  %v417_v46 = vmax.f32 %v385_v39, 0.0  ;;  %v350_v50 = vmul.f32 %v751_v0, %v311_v33  ;;  %v351_v51 = vmul.f32 %v751_v0, %v312_v34 }
  0x2f   : > { %v388_v49 = vadd.f32 %v769_v2, %v349_v40  ;;  %v479_v52 = vadd.f32 %v447_v37, %v415_v41  ;;  %v480_v53 = vadd.f32 %v448_v38, %v416_v42  ;;  %v418_v54 = vmax.f32 %v386_v44, 0.0 }
  0x30   : > { %v419_v55 = vmax.f32 %v387_v45, 0.0  ;;  %v481_v57 = vadd.f32 %v449_v43, %v417_v46  ;;  %v389_v59 = vadd.f32 %v769_v2, %v350_v50  ;;  %v390_v60 = vadd.f32 %v769_v2, %v351_v51 }
  0x31   : > { %v420_v58 = vmax.f32 %v388_v49, 0.0  ;;  %512 = vst.msk [vmem:[%s797_s6 + $0xc0] sm:$0xff] %vm487_vm0, %v479_v52  ;;  %513 = vst.msk [vmem:[%s797_s6 + $0xc8] sm:$0xff] %vm487_vm0, %v480_v53  ;;  %v482_v0 = vadd.f32 %v450_v47, %v418_v54 }
  0x32   : > { %v483_v61 = vadd.f32 %v451_v48, %v419_v55  ;;  %514 = vst.msk [vmem:[%s797_s6 + $0xd0] sm:$0xff] %vm487_vm0, %v481_v57  ;;  %v421_v3 = vmax.f32 %v389_v59, 0.0  ;;  %v422_v4 = vmax.f32 %v390_v60, 0.0 }
  0x33   : > { %v484_v1 = vadd.f32 %v452_v56, %v420_v58  ;;  %515 = vst.msk [vmem:[%s797_s6 + $0xd8] sm:$0xff] %vm487_vm0, %v482_v0 }
  0x34   : > { %516 = vst.msk [vmem:[%s797_s6 + $0xe0] sm:$0xff] %vm487_vm0, %v483_v61  ;;  %v485_v2 = vadd.f32 %v453_v62, %v421_v3  ;;  %v486_v5 = vadd.f32 %v454_v63, %v422_v4 }
  0x35   : > { %517 = vst.msk [vmem:[%s797_s6 + $0xe8] sm:$0xff] %vm487_vm0, %v484_v1 }
  0x36   : > { %518 = vst.msk [vmem:[%s797_s6 + $0xf0] sm:$0xff] %vm487_vm0, %v485_v2  ;;  %519 = vst.msk [vmem:[%s797_s6 + $0xf8] sm:$0xff] %vm487_vm0, %v486_v5 }
  0x37 PF: > { %s14_s17 = sadd.s32 1, %s701_s17   ;;  %s982_s15 = smov %s697_s16 }
  0x38   : > { %p11_p5 = scmp.ge.s32.totalorder %s14_s17, 4   ;;  %s983_s16 = smov %s985_s18 }
  0x3a   :  { %13 = sbr.rel (!%p11_p5) target bundleno = 2 (0x2), region = 69 }

// kernel: res_block_forward.3
= control target key start
LH: loop header
LB: loop body
LE: loop exit
PB: predicated region body
PF: predicated region fallthrough
CT: control target
= control target key end

     0   :  { %s2872_s21 = smov 0   ;;  %s2874_s22 = smov 0   ;;  %s6112_s0 = inlined_call_operand.vmem [shape: f32[2,16,16,4], index: 0, kind: input, shape index: {}, may-alias: {0,1,2}]   ;;  %s6113_s1 = inlined_call_operand.vmem [shape: f32[2,16,16,4], index: 1, kind: input, shape index: {}, may-alias: {0,1,2}]   ;;  %s6114_s2 = inlined_call_operand.vmem [shape: f32[2,16,16,4], index: 2, kind: input, shape index: {}, may-alias: {0,1,2}]   ;;  %s6115_s3 = inlined_call_operand.vmem [shape: f32[9,4], index: 3, kind: input, shape index: {}]   ;;  %s6116_s4 = inlined_call_operand.vmem [shape: f32[2,16,16,4], index: 4, kind: output, shape index: {0}]   ;;  %s6117_s5 = inlined_call_operand.vmem [shape: f32[2,1,1,4], index: 5, kind: output, shape index: {1}]   ;;  %s6118_s6 = inlined_call_operand.vmem [shape: f32[2,1,1,4], index: 6, kind: output, shape index: {2}]  }
   0x1   :  { %s2876_s1 = smov 0  }
   0x2 LB: > { %s29_s2 = sadd.s32 1, %s2830_s22  ;;  %p2769_p0 = scmp.ge.s32.totalorder %s2834_s1, 1  ;;  %s2834_s1 = sphi %s2876_s1, %s17_s1   ;;  %s2830_s22 = sphi %s2874_s22, %s7025_s22   ;;  %s2826_s21 = sphi %s2872_s21, %s7024_s21  }
   0x3   : > { %p31_p1 = scmp.ge.s32.totalorder %s29_s2, 2  ;;  %p307_p2 = scmp.lt.s32.totalorder %s2834_s1, 3 }
   0x5   : > { %s7027_s2 = smov (%p31_p1, %s29_s2), 0  ;;  %p308_p3 = pnand %p2769_p0, %p307_p2 }
   0x7   : > { %311 = sbr.rel (%p308_p3) target bundleno = 528 (0x210), region = 36 }
   0xe   : > { %p386_p4 = scmp.lt.s32.totalorder %s2826_s21, 1  ;;  %v680_v0 = vlaneseq  ;;  %v2836_v1 = vmov 0.0   ;;  %vm533_vm0 = vcmask 1040384   ;;  %v678_v4 = vld [vmem:[%s6115_s3] sm:$0xff]  ;;  %vm816_vm1 = vcmask 1046528  }
   0xf   : > { %v2890_v2 = vrot.slane %v2836_v1, 7  ;;  %vm1061_vm2 = vcmask 1045504   ;;  %vm2318_vm3 = vcmask 31744   ;;  %vm2554_vm4 = vcmask 24576  }
  0x10   : > { %s7029_s21 = smov (!%p386_p4, %s2826_s21), 1  ;;  %v2894_v3 = vshrl.u32 %v680_v0, 7 }
  0x11   : > { %6250 = vst [vmem:[#allocation2_spill] sm:$0xff] %v2890_v2  ;;  %s2781_s25 = sshll.u32 %s7029_s21, 8  ;;  %v2913_v9 = vsel %vm533_vm0, 0.0, %v2890_v2  ;;  %v2917_v10 = vsel %vm533_vm0, %v2890_v2, 0.0  ;;  %s446_s14 = scalar_lea.vmem %s6117_s5, %s7029_s21 }
  0x12   : > { %6251 = vst [vmem:[#allocation3_spill] sm:$0xff] %v2894_v3  ;;  %v682_v5 = vsub.s32 0, %v2894_v3  ;;  %v718_v6 = vsub.s32 1, %v2894_v3  ;;  %v963_v7 = vsub.s32 2, %v2894_v3  ;;  %v1208_v8 = vsub.s32 3, %v2894_v3  ;;  %s2909_s28 = scalar_lea.vmem %s6112_s0, %s2781_s25  ;;  %6252 = vst [vmem:[#allocation4_spill] sm:$0xff] %v2913_v9  ;;  %s5800_s11 = scalar_lea.vmem %s6116_s4, %s2781_s25 }
  0x13   : > { %6253 = vst [vmem:[#allocation5_spill] sm:$0xff] %v2917_v10  ;;  %v1276_v11 = vsub.s32 4, %v2894_v3  ;;  %v2921_v12 = vld [vmem:[%s2909_s28] sm:$0xff]  ;;  %v2924_v13 = vld [vmem:[%s2909_s28 + $0x8] sm:$0xff]  ;;  %v2927_v14 = vld [vmem:[%s2909_s28 + $0x10] sm:$0xff]  ;;  %s452_s17 = scalar_lea.vmem %s6118_s6, %s7029_s21 }
  0x14   : > { %v2929_v15 = vrot.slane %v678_v4, %v682_v5  ;;  %v2931_v16 = vrot.slane %v678_v4, %v718_v6  ;;  %v2933_v17 = vrot.slane %v678_v4, %v963_v7  ;;  %v2935_v18 = vrot.slane %v678_v4, %v1208_v8  ;;  %v2938_v19 = vld [vmem:[%s2909_s28 + $0x18] sm:$0xff]  ;;  %v2941_v20 = vld [vmem:[%s2909_s28 + $0x20] sm:$0xff]  ;;  %v2944_v21 = vld [vmem:[%s2909_s28 + $0x28] sm:$0xff] }
  0x15   : > { %v537_v22 = vrot.slane %v2921_v12, 7  ;;  %v6125_v23 = vrot.slane %v2924_v13, 7  ;;  %v6129_v24 = vrot.slane %v2927_v14, 7  ;;  %v2949_v25 = vrot.slane %v678_v4, %v1276_v11  ;;  %v2952_v26 = vld [vmem:[%s2909_s28 + $0x30] sm:$0xff]  ;;  %v2955_v27 = vld [vmem:[%s2909_s28 + $0x38] sm:$0xff]  ;;  %v2958_v28 = vld [vmem:[%s2909_s28 + $0x40] sm:$0xff] }
  0x16   : > { %6254 = vst [vmem:[#allocation6_spill] sm:$0xff] %v2933_v17  ;;  %6255 = vst [vmem:[#allocation7_spill] sm:$0xff] %v2935_v18  ;;  %v6124_v29 = vrot.slane %v2938_v19, 7  ;;  %v6128_v30 = vrot.slane %v2941_v20, 7  ;;  %v6123_v31 = vrot.slane %v2944_v21, 7  ;;  %v2965_v32 = vmul.f32 %v2929_v15, %v2913_v9  ;;  %v2968_v33 = vld [vmem:[%s2909_s28 + $0x48] sm:$0xff] }
  0x17   : > { %6256 = vst [vmem:[#allocation8_spill] sm:$0xff] %v2949_v25  ;;  %v2971_v34 = vld [vmem:[%s2909_s28 + $0x50] sm:$0xff]  ;;  %v2974_v35 = vld [vmem:[%s2909_s28 + $0x58] sm:$0xff]  ;;  %v2981_v36 = vsel %vm533_vm0, %v537_v22, %v6125_v23  ;;  %v6127_v37 = vrot.slane %v2952_v26, 7  ;;  %v6122_v38 = vrot.slane %v2955_v27, 7  ;;  %v6126_v39 = vrot.slane %v2958_v28, 7 }
  0x18   : > { %6257 = vst [vmem:[#allocation9_spill] sm:$0xff] %v2981_v36  ;;  %v2987_v40 = vld [vmem:[%s2909_s28 + $0x60] sm:$0xff]  ;;  %v2990_v41 = vld [vmem:[%s2909_s28 + $0x68] sm:$0xff]  ;;  %v2993_v42 = vld [vmem:[%s2909_s28 + $0x70] sm:$0xff]  ;;  %v3000_v43 = vsel %vm533_vm0, %v6129_v24, %v6124_v29  ;;  %v3007_v44 = vsel %vm533_vm0, %v6128_v30, %v6123_v31  ;;  %v6121_v45 = vrot.slane %v2968_v33, 7  ;;  %v552_v46 = vrot.slane %v2971_v34, 7 }
  0x19   : > { %6258 = vst [vmem:[#allocation10_spill] sm:$0xff] %v3000_v43  ;;  %6259 = vst [vmem:[#allocation11_spill] sm:$0xff] %v3007_v44  ;;  %v3012_v47 = vld [vmem:[%s2909_s28 + $0x78] sm:$0xff]  ;;  %v469_v48 = vld [vmem:[%s2909_s28 + $0x80] sm:$0xff]  ;;  %v3023_v50 = vsel %vm533_vm0, %v6127_v37, %v6122_v38  ;;  %v6120_v51 = vrot.slane %v2974_v35, 7  ;;  %v555_v52 = vrot.slane %v2987_v40, 7 }
  0x1a   : > { %v3016_v49 = vld [vmem:[%s2909_s28 + $0x88] sm:$0xff]  ;;  %6260 = vst [vmem:[#allocation12_spill] sm:$0xff] %v3023_v50  ;;  %v6119_v53 = vrot.slane %v2990_v41, 7  ;;  %v471_v54 = vld [vmem:[%s2909_s28 + $0x90] sm:$0xff]  ;;  %v3030_v55 = vld [vmem:[%s2909_s28 + $0x98] sm:$0xff]  ;;  %v3038_v57 = vsel %vm533_vm0, %v6126_v39, %v6121_v45  ;;  %v558_v58 = vrot.slane %v2993_v42, 7 }
  0x1b   : > { %v473_v56 = vld [vmem:[%s2909_s28 + $0xa0] sm:$0xff]  ;;  %6261 = vst [vmem:[#allocation13_spill] sm:$0xff] %v3038_v57  ;;  %v559_v59 = vrot.slane %v3012_v47, 7  ;;  %v561_v60 = vrot.slane %v469_v48, 7  ;;  %v3043_v61 = vld [vmem:[%s2909_s28 + $0xa8] sm:$0xff]  ;;  %v475_v62 = vld [vmem:[%s2909_s28 + $0xb0] sm:$0xff]  ;;  %v3052_v0 = vsel %vm533_vm0, %v552_v46, %v6120_v51 }
  0x1c   : > { %v3047_v63 = vld [vmem:[%s2909_s28 + $0xb8] sm:$0xff]  ;;  %6262 = vst [vmem:[#allocation14_spill] sm:$0xff] %v3052_v0  ;;  %v3057_v1 = vsel %vm533_vm0, %v555_v52, %v6119_v53  ;;  %v562_v4 = vrot.slane %v3016_v49, 7  ;;  %v564_v5 = vrot.slane %v471_v54, 7  ;;  %v477_v6 = vld [vmem:[%s2909_s28 + $0xc0] sm:$0xff]  ;;  %v478_v7 = vld [vmem:[%s2909_s28 + $0xc8] sm:$0xff]  ;;  %v3268_v17 = vmul.f32 %v2929_v15, %v3052_v0 }
  0x1d   : > { %6263 = vst [vmem:[#allocation15_spill] sm:$0xff] %v3057_v1  ;;  %v479_v8 = vld [vmem:[%s2909_s28 + $0xd0] sm:$0xff]  ;;  %v3064_v11 = vsel %vm533_vm0, %v558_v58, %v559_v59  ;;  %v565_v34 = vrot.slane %v3030_v55, 7  ;;  %v567_v40 = vrot.slane %v473_v56, 7  ;;  %v568_v42 = vrot.slane %v3043_v61, 7  ;;  %v480_v47 = vld [vmem:[%s2909_s28 + $0xd8] sm:$0xff] }
  0x1e   : > { %6264 = vst [vmem:[#allocation16_spill] sm:$0xff] %v3064_v11  ;;  %v481_v48 = vld [vmem:[%s2909_s28 + $0xe0] sm:$0xff]  ;;  %v482_v53 = vld [vmem:[%s2909_s28 + $0xe8] sm:$0xff]  ;;  %v3072_v51 = vsel %vm533_vm0, %v561_v60, %v562_v4  ;;  %v570_v49 = vrot.slane %v475_v62, 7  ;;  %v571_v54 = vrot.slane %v3047_v63, 7  ;;  %v573_v45 = vrot.slane %v477_v6, 7 }
  0x1f   : > { %6265 = vst [vmem:[#allocation17_spill] sm:$0xff] %v3072_v51  ;;  %v483_v38 = vld [vmem:[%s2909_s28 + $0xf0] sm:$0xff]  ;;  %v484_v31 = vld [vmem:[%s2909_s28 + $0xf8] sm:$0xff]  ;;  %v3078_v29 = vsel %vm533_vm0, %v564_v5, %v565_v34  ;;  %v3081_v55 = vsel %vm533_vm0, %v567_v40, %v568_v42  ;;  %v574_v56 = vrot.slane %v478_v7, 7  ;;  %v576_v61 = vrot.slane %v479_v8, 7  ;;  %6327 = vst [vmem:[#allocation68_spill] sm:$0xff] %v3268_v17 }
  0x20   : > { %6266 = vst [vmem:[#allocation18_spill] sm:$0xff] %v3078_v29  ;;  %6267 = vst [vmem:[#allocation19_spill] sm:$0xff] %v3081_v55  ;;  %v3084_v23 = vsel %vm533_vm0, %v570_v49, %v571_v54  ;;  %v577_v39 = vrot.slane %v480_v47, 7  ;;  %v579_v37 = vrot.slane %v481_v48, 7  ;;  %v580_v30 = vrot.slane %v482_v53, 7 }
  0x21   : > { %6268 = vst [vmem:[#allocation20_spill] sm:$0xff] %v3084_v23  ;;  %v3087_v62 = vsel %vm533_vm0, %v573_v45, %v574_v56  ;;  %v582_v63 = vrot.slane %v483_v38, 7  ;;  %v583_v6 = vrot.slane %v484_v31, 7  ;;  %v3092_v24 = vsel %vm533_vm0, 0.0, %v537_v22 }
  0x22   : > { %6269 = vst [vmem:[#allocation21_spill] sm:$0xff] %v3087_v62  ;;  %6270 = vst [vmem:[#allocation22_spill] sm:$0xff] %v3092_v24  ;;  %v3095_v3 = vsel %vm533_vm0, %v576_v61, %v577_v39  ;;  %v3098_v7 = vsel %vm533_vm0, %v579_v37, %v580_v30  ;;  %v6273_v8 = vrot.slane %v2927_v14, 7  ;;  %v6275_v47 = vrot.slane %v2941_v20, 7 }
  0x23   : > { %6271 = vst [vmem:[#allocation23_spill] sm:$0xff] %v3095_v3  ;;  %6272 = vst [vmem:[#allocation24_spill] sm:$0xff] %v3098_v7  ;;  %v3111_v12 = vsel %vm533_vm0, %v582_v63, %v583_v6  ;;  %v6278_v22 = vrot.slane %v2952_v26, 7  ;;  %v6280_v48 = vrot.slane %v2958_v28, 7  ;;  %v3127_v20 = vsel %vm533_vm0, 0.0, %v555_v52 }
  0x24   : > { %v3103_v53 = vsel %vm533_vm0, 0.0, %v6273_v8  ;;  %v3108_v31 = vsel %vm533_vm0, 0.0, %v6275_v47  ;;  %6277 = vst [vmem:[#allocation27_spill] sm:$0xff] %v3111_v12  ;;  %v3124_v8 = vsel %vm533_vm0, 0.0, %v552_v46  ;;  %6283 = vst [vmem:[#allocation31_spill] sm:$0xff] %v3127_v20  ;;  %v3130_v47 = vsel %vm533_vm0, 0.0, %v558_v58 }
  0x25   : > { %6274 = vst [vmem:[#allocation25_spill] sm:$0xff] %v3103_v53  ;;  %6276 = vst [vmem:[#allocation26_spill] sm:$0xff] %v3108_v31  ;;  %v3116_v38 = vsel %vm533_vm0, 0.0, %v6278_v22  ;;  %v3121_v14 = vsel %vm533_vm0, 0.0, %v6280_v48  ;;  %v3133_v25 = vsel %vm533_vm0, 0.0, %v561_v60  ;;  %v3136_v26 = vsel %vm533_vm0, 0.0, %v564_v5 }
  0x26   : > { %6279 = vst [vmem:[#allocation28_spill] sm:$0xff] %v3116_v38  ;;  %6281 = vst [vmem:[#allocation29_spill] sm:$0xff] %v3121_v14  ;;  %v3139_v28 = vsel %vm533_vm0, 0.0, %v567_v40  ;;  %v3142_v22 = vsel %vm533_vm0, 0.0, %v570_v49  ;;  %v3145_v46 = vsel %vm533_vm0, 0.0, %v573_v45  ;;  %v3148_v52 = vsel %vm533_vm0, 0.0, %v576_v61 }
  0x27   : > { %6282 = vst [vmem:[#allocation30_spill] sm:$0xff] %v3124_v8  ;;  %6284 = vst [vmem:[#allocation32_spill] sm:$0xff] %v3130_v47  ;;  %v3151_v58 = vsel %vm533_vm0, 0.0, %v579_v37  ;;  %v3154_v60 = vsel %vm533_vm0, 0.0, %v582_v63  ;;  %v6293_v5 = vrot.slane %v2924_v13, 7  ;;  %v6295_v49 = vrot.slane %v2938_v19, 7 }
  0x28   : > { %6285 = vst [vmem:[#allocation33_spill] sm:$0xff] %v3133_v25  ;;  %6286 = vst [vmem:[#allocation34_spill] sm:$0xff] %v3136_v26  ;;  %v6297_v45 = vrot.slane %v2944_v21, 7  ;;  %v6299_v37 = vrot.slane %v2955_v27, 7  ;;  %v6301_v13 = vrot.slane %v2968_v33, 7  ;;  %v6303_v19 = vrot.slane %v2974_v35, 7 }
  0x29   : > { %6287 = vst [vmem:[#allocation35_spill] sm:$0xff] %v3139_v28  ;;  %6288 = vst [vmem:[#allocation36_spill] sm:$0xff] %v3142_v22  ;;  %v3159_v40 = vsel %vm533_vm0, %v6293_v5, 0.0  ;;  %v3164_v48 = vsel %vm533_vm0, %v6295_v49, 0.0  ;;  %v6305_v21 = vrot.slane %v2990_v41, 7  ;;  %v3192_v27 = vsel %vm533_vm0, %v559_v59, 0.0 }
  0x2a   : > { %6289 = vst [vmem:[#allocation37_spill] sm:$0xff] %v3145_v46  ;;  %6290 = vst [vmem:[#allocation38_spill] sm:$0xff] %v3148_v52  ;;  %v3169_v61 = vsel %vm533_vm0, %v6297_v45, 0.0  ;;  %v3174_v63 = vsel %vm533_vm0, %v6299_v37, 0.0  ;;  %v3179_v5 = vsel %vm533_vm0, %v6301_v13, 0.0  ;;  %v3184_v49 = vsel %vm533_vm0, %v6303_v19, 0.0 }
  0x2b   : > { %6291 = vst [vmem:[#allocation39_spill] sm:$0xff] %v3151_v58  ;;  %6292 = vst [vmem:[#allocation40_spill] sm:$0xff] %v3154_v60  ;;  %v3189_v45 = vsel %vm533_vm0, %v6305_v21, 0.0  ;;  %v3195_v37 = vsel %vm533_vm0, %v562_v4, 0.0  ;;  %v3198_v33 = vsel %vm533_vm0, %v565_v34, 0.0  ;;  %v3201_v13 = vsel %vm533_vm0, %v568_v42, 0.0 }
  0x2c   : > { %6294 = vst [vmem:[#allocation41_spill] sm:$0xff] %v3159_v40  ;;  %6296 = vst [vmem:[#allocation42_spill] sm:$0xff] %v3164_v48  ;;  %v3204_v35 = vsel %vm533_vm0, %v571_v54, 0.0  ;;  %v3207_v41 = vsel %vm533_vm0, %v574_v56, 0.0  ;;  %v3210_v19 = vsel %vm533_vm0, %v577_v39, 0.0  ;;  %v3213_v59 = vsel %vm533_vm0, %v580_v30, 0.0 }
  0x2d   : > { %6298 = vst [vmem:[#allocation43_spill] sm:$0xff] %v3169_v61  ;;  %6300 = vst [vmem:[#allocation44_spill] sm:$0xff] %v3174_v63  ;;  %v3216_v4 = vsel %vm533_vm0, %v583_v6, 0.0  ;;  %v3220_v34 = vmul.f32 %v2929_v15, %v2890_v2  ;;  %v3224_v42 = vmul.f32 %v2929_v15, %v3092_v24  ;;  %v3228_v54 = vmul.f32 %v2929_v15, %v2981_v36 }
  0x2e   : > { %6302 = vst [vmem:[#allocation45_spill] sm:$0xff] %v3179_v5  ;;  %6304 = vst [vmem:[#allocation46_spill] sm:$0xff] %v3184_v49  ;;  %v3232_v39 = vmul.f32 %v2929_v15, %v3103_v53  ;;  %v3236_v30 = vmul.f32 %v2929_v15, %v3000_v43  ;;  %v3240_v56 = vmul.f32 %v2929_v15, %v3108_v31 }
  0x2f   : > { %6306 = vst [vmem:[#allocation47_spill] sm:$0xff] %v3189_v45  ;;  %6307 = vst [vmem:[#allocation48_spill] sm:$0xff] %v3192_v27  ;;  %v3244_v6 = vmul.f32 %v2929_v15, %v3007_v44  ;;  %v3248_v21 = vmul.f32 %v2929_v15, %v3116_v38  ;;  %v3256_v12 = vmul.f32 %v2929_v15, %v3121_v14 }
  0x30   : > { %6308 = vst [vmem:[#allocation49_spill] sm:$0xff] %v3195_v37  ;;  %6309 = vst [vmem:[#allocation50_spill] sm:$0xff] %v3198_v33  ;;  %v3260_v60 = vmul.f32 %v2929_v15, %v3038_v57  ;;  %v3264_v18 = vmul.f32 %v2929_v15, %v3124_v8  ;;  %v3292_v17 = vmul.f32 %v2929_v15, %v3072_v51 }
  0x31   : > { %6310 = vst [vmem:[#allocation51_spill] sm:$0xff] %v3201_v13  ;;  %6311 = vst [vmem:[#allocation52_spill] sm:$0xff] %v3204_v35 }
  0x32   : > { %6312 = vst [vmem:[#allocation53_spill] sm:$0xff] %v3207_v41  ;;  %6313 = vst [vmem:[#allocation54_spill] sm:$0xff] %v3210_v19 }
  0x33   : > { %6314 = vst [vmem:[#allocation55_spill] sm:$0xff] %v3213_v59  ;;  %6315 = vst [vmem:[#allocation56_spill] sm:$0xff] %v3216_v4  ;;  %v3252_v4 = vmul.f32 %v2929_v15, %v3023_v50 }
  0x34   : > { %6316 = vst [vmem:[#allocation57_spill] sm:$0xff] %v3224_v42  ;;  %6317 = vst [vmem:[#allocation58_spill] sm:$0xff] %v3228_v54 }
  0x35   : > { %6318 = vst [vmem:[#allocation59_spill] sm:$0xff] %v3232_v39  ;;  %6319 = vst [vmem:[#allocation60_spill] sm:$0xff] %v3236_v30 }
  0x36   : > { %6320 = vst [vmem:[#allocation61_spill] sm:$0xff] %v3240_v56  ;;  %6321 = vst [vmem:[#allocation62_spill] sm:$0xff] %v3244_v6  ;;  %v724_v6 = vmul.f32 %v2931_v16, %v2981_v36  ;;  %v3368_v36 = vmul.f32 %v2931_v16, %v3169_v61  ;;  %v3388_v61 = vmul.f32 %v2931_v16, %v3038_v57 }
  0x37   : > { %6322 = vst [vmem:[#allocation63_spill] sm:$0xff] %v3248_v21  ;;  %6323 = vst [vmem:[#allocation64_spill] sm:$0xff] %v3252_v4  ;;  %v3272_v21 = vmul.f32 %v2929_v15, %v3127_v20  ;;  %v3276_v4 = vmul.f32 %v2929_v15, %v3057_v1  ;;  %v3408_v57 = vmul.f32 %v2931_v16, %v3127_v20 }
  0x38   : > { %6324 = vst [vmem:[#allocation65_spill] sm:$0xff] %v3256_v12  ;;  %6325 = vst [vmem:[#allocation66_spill] sm:$0xff] %v3260_v60  ;;  %v3280_v12 = vmul.f32 %v2929_v15, %v3130_v47  ;;  %v3284_v60 = vmul.f32 %v2929_v15, %v3064_v11  ;;  %v3428_v20 = vmul.f32 %v2931_v16, %v3192_v27  ;;  %v823_v56 = vrot.slane %v724_v6, 1 }
  0x39   : > { %6326 = vst [vmem:[#allocation67_spill] sm:$0xff] %v3264_v18  ;;  %6328 = vst [vmem:[#allocation69_spill] sm:$0xff] %v3272_v21  ;;  %v3288_v18 = vmul.f32 %v2929_v15, %v3133_v25  ;;  %v3296_v21 = vmul.f32 %v2929_v15, %v3136_v26  ;;  %v3448_v27 = vmul.f32 %v2931_v16, %v3078_v29 }
  0x3a   : > { %6329 = vst [vmem:[#allocation70_spill] sm:$0xff] %v3276_v4  ;;  %6330 = vst [vmem:[#allocation71_spill] sm:$0xff] %v3280_v12  ;;  %v3300_v4 = vmul.f32 %v2929_v15, %v3078_v29  ;;  %v3304_v12 = vmul.f32 %v2929_v15, %v3139_v28  ;;  %v3468_v29 = vmul.f32 %v2931_v16, %v3142_v22 }
  0x3b   : > { %6331 = vst [vmem:[#allocation72_spill] sm:$0xff] %v3284_v60  ;;  %6332 = vst [vmem:[#allocation73_spill] sm:$0xff] %v3288_v18  ;;  %v3308_v60 = vmul.f32 %v2929_v15, %v3081_v55  ;;  %v3312_v18 = vmul.f32 %v2929_v15, %v3142_v22  ;;  %v3488_v22 = vmul.f32 %v2931_v16, %v3207_v41 }
  0x3c   : > { %6333 = vst [vmem:[#allocation74_spill] sm:$0xff] %v3292_v17  ;;  %6334 = vst [vmem:[#allocation75_spill] sm:$0xff] %v3296_v21  ;;  %v3316_v17 = vmul.f32 %v2929_v15, %v3084_v23  ;;  %v3320_v21 = vmul.f32 %v2929_v15, %v3145_v46  ;;  %v3508_v41 = vmul.f32 %v2931_v16, %v3098_v7 }
  0x3d   : > { %6335 = vst [vmem:[#allocation76_spill] sm:$0xff] %v3300_v4  ;;  %6336 = vst [vmem:[#allocation77_spill] sm:$0xff] %v3304_v12  ;;  %v3324_v4 = vmul.f32 %v2929_v15, %v3087_v62  ;;  %v3328_v12 = vmul.f32 %v2929_v15, %v3148_v52 }
  0x3e   : > { %6337 = vst [vmem:[#allocation78_spill] sm:$0xff] %v3308_v60  ;;  %6338 = vst [vmem:[#allocation79_spill] sm:$0xff] %v3312_v18  ;;  %v3332_v60 = vmul.f32 %v2929_v15, %v3095_v3  ;;  %v3336_v18 = vmul.f32 %v2929_v15, %v3151_v58 }
  0x3f   : > { %6339 = vst [vmem:[#allocation80_spill] sm:$0xff] %v3316_v17  ;;  %6340 = vst [vmem:[#allocation81_spill] sm:$0xff] %v3320_v21  ;;  %v3340_v17 = vmul.f32 %v2929_v15, %v3098_v7  ;;  %v720_v21 = vmul.f32 %v2931_v16, %v2913_v9  ;;  %v726_v15 = vmul.f32 %v2931_v16, %v3103_v53 }
  0x40   : > { %6341 = vst [vmem:[#allocation82_spill] sm:$0xff] %v3324_v4  ;;  %6342 = vst [vmem:[#allocation83_spill] sm:$0xff] %v3328_v12  ;;  %v721_v4 = vmul.f32 %v2931_v16, %v2890_v2  ;;  %v722_v12 = vmul.f32 %v2931_v16, %v2917_v10  ;;  %v727_v9 = vmul.f32 %v2931_v16, %v3000_v43 }
  0x41   : > { %6343 = vst [vmem:[#allocation84_spill] sm:$0xff] %v3332_v60  ;;  %6344 = vst [vmem:[#allocation85_spill] sm:$0xff] %v3336_v18  ;;  %v723_v60 = vmul.f32 %v2931_v16, %v3092_v24  ;;  %v725_v18 = vmul.f32 %v2931_v16, %v3159_v40  ;;  %v728_v2 = vmul.f32 %v2931_v16, %v3164_v48 }
  0x42   : > { %6345 = vst [vmem:[#allocation86_spill] sm:$0xff] %v3340_v17  ;;  %v729_v10 = vmul.f32 %v2931_v16, %v3108_v31  ;;  %v3364_v24 = vmul.f32 %v2931_v16, %v3007_v44  ;;  %v3372_v53 = vmul.f32 %v2931_v16, %v3116_v38  ;;  %v3376_v43 = vmul.f32 %v2931_v16, %v3023_v50 }
  0x43   : > { %v3380_v48 = vmul.f32 %v2931_v16, %v3174_v63  ;;  %v3384_v44 = vmul.f32 %v2931_v16, %v3121_v14  ;;  %v3392_v38 = vmul.f32 %v2931_v16, %v3179_v5  ;;  %v3396_v50 = vmul.f32 %v2931_v16, %v3124_v8 }
  0x44   : > { %v3400_v63 = vmul.f32 %v2931_v16, %v3052_v0  ;;  %v3404_v14 = vmul.f32 %v2931_v16, %v3184_v49  ;;  %v3412_v5 = vmul.f32 %v2931_v16, %v3057_v1  ;;  %v3416_v8 = vmul.f32 %v2931_v16, %v3189_v45 }
  0x45   : > { %v3420_v0 = vmul.f32 %v2931_v16, %v3130_v47  ;;  %v3424_v49 = vmul.f32 %v2931_v16, %v3064_v11  ;;  %v3432_v1 = vmul.f32 %v2931_v16, %v3133_v25  ;;  %v3436_v45 = vmul.f32 %v2931_v16, %v3072_v51 }
  0x46   : > { %v3440_v47 = vmul.f32 %v2931_v16, %v3195_v37  ;;  %v3444_v11 = vmul.f32 %v2931_v16, %v3136_v26  ;;  %v3452_v25 = vmul.f32 %v2931_v16, %v3198_v33  ;;  %v3456_v51 = vmul.f32 %v2931_v16, %v3139_v28 }
  0x47   : > { %v3460_v37 = vmul.f32 %v2931_v16, %v3081_v55  ;;  %v3464_v26 = vmul.f32 %v2931_v16, %v3201_v13  ;;  %v3472_v33 = vmul.f32 %v2931_v16, %v3084_v23  ;;  %v3476_v28 = vmul.f32 %v2931_v16, %v3204_v35 }
  0x48   : > { %v3480_v55 = vmul.f32 %v2931_v16, %v3145_v46  ;;  %v3484_v13 = vmul.f32 %v2931_v16, %v3087_v62  ;;  %v3492_v23 = vmul.f32 %v2931_v16, %v3148_v52  ;;  %v3496_v35 = vmul.f32 %v2931_v16, %v3095_v3 }
  0x49   : > { %v3500_v46 = vmul.f32 %v2931_v16, %v3210_v19  ;;  %v3504_v62 = vmul.f32 %v2931_v16, %v3151_v58  ;;  %v3512_v52 = vmul.f32 %v2931_v16, %v3213_v59  ;;  %v817_v31 = vrot.slane %v720_v21, 1 }
  0x4a   : > { %v818_v40 = vrot.slane %v721_v4, 1  ;;  %v820_v3 = vrot.slane %v722_v12, 1  ;;  %v822_v17 = vrot.slane %v723_v60, 1  ;;  %v825_v30 = vrot.slane %v725_v18, 1 }
  0x4b   : > { %v827_v19 = vrot.slane %v726_v15, 1  ;;  %v828_v54 = vrot.slane %v727_v9, 1  ;;  %v830_v7 = vrot.slane %v728_v2, 1  ;;  %v832_v4 = vrot.slane %v729_v10, 1 }
  0x4c   : > { %v3515_v39 = vsel %vm816_vm1, %v817_v31, %v818_v40  ;;  %v3518_v58 = vsel %vm816_vm1, %v818_v40, %v820_v3  ;;  %v3521_v42 = vsel %vm816_vm1, %v822_v17, %v823_v56  ;;  %v3524_v16 = vsel %vm816_vm1, %v823_v56, %v825_v30 }
  0x4d   : > { %v833_v12 = vrot.slane %v3364_v24, 1  ;;  %v3528_v18 = vsel %vm816_vm1, %v827_v19, %v828_v54  ;;  %v3531_v31 = vsel %vm816_vm1, %v828_v54, %v830_v7  ;;  %v835_v3 = vrot.slane %v3368_v36, 1 }
  0x4e   : > { %v837_v9 = vrot.slane %v3372_v53, 1  ;;  %v838_v17 = vrot.slane %v3376_v43, 1  ;;  %v840_v60 = vrot.slane %v3380_v48, 1  ;;  %v842_v10 = vrot.slane %v3384_v44, 1 }
  0x4f   : > { %v3536_v2 = vsel %vm816_vm1, %v832_v4, %v833_v12  ;;  %v3542_v24 = vsel %vm816_vm1, %v833_v12, %v835_v3  ;;  %v843_v40 = vrot.slane %v3388_v61, 1  ;;  %v845_v7 = vrot.slane %v3392_v38, 1 }
  0x50   : > { %v847_v36 = vrot.slane %v3396_v50, 1  ;;  %v839_v53 = vsel %vm816_vm1, %v837_v9, %v838_v17  ;;  %v841_v19 = vsel %vm816_vm1, %v838_v17, %v840_v60  ;;  %v848_v54 = vrot.slane %v3400_v63, 1 }
  0x51   : > { %v850_v43 = vrot.slane %v3404_v14, 1  ;;  %v844_v48 = vsel %vm816_vm1, %v842_v10, %v843_v40  ;;  %v846_v44 = vsel %vm816_vm1, %v843_v40, %v845_v7  ;;  %v852_v30 = vrot.slane %v3408_v57, 1 }
  0x52   : > { %v853_v61 = vrot.slane %v3412_v5, 1  ;;  %v849_v38 = vsel %vm816_vm1, %v847_v36, %v848_v54  ;;  %v855_v56 = vrot.slane %v3416_v8, 1  ;;  %v857_v6 = vrot.slane %v3420_v0, 1 }
  0x53   : > { %v851_v50 = vsel %vm816_vm1, %v848_v54, %v850_v43  ;;  %v858_v14 = vrot.slane %v3424_v49, 1  ;;  %v860_v21 = vrot.slane %v3428_v20, 1  ;;  %v862_v15 = vrot.slane %v3432_v1, 1 }
  0x54   : > { %v854_v63 = vsel %vm816_vm1, %v852_v30, %v853_v61  ;;  %v856_v57 = vsel %vm816_vm1, %v853_v61, %v855_v56  ;;  %v863_v5 = vrot.slane %v3436_v45, 1  ;;  %v865_v4 = vrot.slane %v3440_v47, 1  ;;  %v6346_v56 = vld [vmem:[#allocation57_spill] sm:$0xff] }
  0x55   : > { %v867_v12 = vrot.slane %v3444_v11, 1  ;;  %v859_v8 = vsel %vm816_vm1, %v857_v6, %v858_v14  ;;  %v861_v0 = vsel %vm816_vm1, %v858_v14, %v860_v21  ;;  %v868_v3 = vrot.slane %v3448_v27, 1  ;;  %v6350_v14 = vld [vmem:[#allocation59_spill] sm:$0xff] }
  0x56   : > { %v870_v49 = vrot.slane %v3452_v25, 1  ;;  %v864_v20 = vsel %vm816_vm1, %v862_v15, %v863_v5  ;;  %v866_v1 = vsel %vm816_vm1, %v863_v5, %v865_v4  ;;  %v872_v9 = vrot.slane %v3456_v51, 1  ;;  %v6360_v4 = vld [vmem:[#allocation64_spill] sm:$0xff] }
  0x57   : > { %v873_v45 = vrot.slane %v3460_v37, 1  ;;  %v869_v47 = vsel %vm816_vm1, %v867_v12, %v868_v3  ;;  %v875_v17 = vrot.slane %v3464_v26, 1  ;;  %v877_v60 = vrot.slane %v3468_v29, 1 }
  0x58   : > { %v871_v11 = vsel %vm816_vm1, %v868_v3, %v870_v49  ;;  %v878_v25 = vrot.slane %v3472_v33, 1  ;;  %v880_v10 = vrot.slane %v3476_v28, 1  ;;  %v882_v40 = vrot.slane %v3480_v55, 1  ;;  %v6364_v49 = vld [vmem:[#allocation66_spill] sm:$0xff] }
  0x59   : > { %v874_v27 = vsel %vm816_vm1, %v872_v9, %v873_v45  ;;  %v876_v51 = vsel %vm816_vm1, %v873_v45, %v875_v17  ;;  %v883_v37 = vrot.slane %v3484_v13, 1  ;;  %v885_v7 = vrot.slane %v3488_v22, 1  ;;  %v6366_v9 = vld [vmem:[#allocation67_spill] sm:$0xff] }
  0x5a   : > { %v887_v36 = vrot.slane %v3492_v23, 1  ;;  %v879_v26 = vsel %vm816_vm1, %v877_v60, %v878_v25  ;;  %v881_v29 = vsel %vm816_vm1, %v878_v25, %v880_v10  ;;  %v888_v54 = vrot.slane %v3496_v35, 1 }
  0x5b   : > { %v890_v33 = vrot.slane %v3500_v46, 1  ;;  %v884_v28 = vsel %vm816_vm1, %v882_v40, %v883_v37  ;;  %v886_v55 = vsel %vm816_vm1, %v883_v37, %v885_v7  ;;  %v892_v43 = vrot.slane %v3504_v62, 1 }
  0x5c   : > { %v893_v13 = vrot.slane %v3508_v41, 1  ;;  %v889_v22 = vsel %vm816_vm1, %v887_v36, %v888_v54  ;;  %v895_v30 = vrot.slane %v3512_v52, 1  ;;  %v3600_v61 = vadd.f32 %v3515_v39, %v2965_v32  ;;  %v6348_v41 = vld [vmem:[#allocation58_spill] sm:$0xff]  ;;  %v6352_v39 = vld [vmem:[#allocation60_spill] sm:$0xff] }
  0x5d   : > { %v891_v23 = vsel %vm816_vm1, %v888_v54, %v890_v33  ;;  %v3605_v35 = vadd.f32 %v3518_v58, %v3220_v34  ;;  %v3609_v62 = vadd.f32 %v3521_v42, %v6346_v56  ;;  %v3613_v6 = vadd.f32 %v3524_v16, %v6348_v41  ;;  %v6354_v58 = vld [vmem:[#allocation61_spill] sm:$0xff]  ;;  %v6356_v42 = vld [vmem:[#allocation62_spill] sm:$0xff]  ;;  %v6358_v16 = vld [vmem:[#allocation63_spill] sm:$0xff] }
  0x5e   : > { %v894_v46 = vsel %vm816_vm1, %v892_v43, %v893_v13  ;;  %v896_v52 = vsel %vm816_vm1, %v893_v13, %v895_v30  ;;  %v3618_v32 = vadd.f32 %v3528_v18, %v6350_v14  ;;  %v3622_v21 = vadd.f32 %v3531_v31, %v6352_v39  ;;  %v6362_v18 = vld [vmem:[#allocation65_spill] sm:$0xff] }
  0x5f   : > { %6347 = vst [vmem:[#allocation57_spill] sm:$0xff] %v3609_v62  ;;  %6349 = vst [vmem:[#allocation58_spill] sm:$0xff] %v3613_v6  ;;  %v3626_v34 = vadd.f32 %v3536_v2, %v6354_v58  ;;  %v3630_v15 = vadd.f32 %v3542_v24, %v6356_v42  ;;  %v3633_v5 = vadd.f32 %v839_v53, %v6358_v16  ;;  %v6368_v2 = vld [vmem:[#allocation68_spill] sm:$0xff]  ;;  %v6370_v24 = vld [vmem:[#allocation69_spill] sm:$0xff] }
  0x60   : > { %6351 = vst [vmem:[#allocation59_spill] sm:$0xff] %v3618_v32  ;;  %6353 = vst [vmem:[#allocation60_spill] sm:$0xff] %v3622_v21  ;;  %v3636_v12 = vadd.f32 %v841_v19, %v6360_v4  ;;  %v3639_v3 = vadd.f32 %v844_v48, %v6362_v18  ;;  %v3642_v31 = vadd.f32 %v846_v44, %v6364_v49  ;;  %v6372_v53 = vld [vmem:[#allocation70_spill] sm:$0xff]  ;;  %v6374_v19 = vld [vmem:[#allocation71_spill] sm:$0xff] }
  0x61   : > { %6355 = vst [vmem:[#allocation61_spill] sm:$0xff] %v3626_v34  ;;  %6357 = vst [vmem:[#allocation62_spill] sm:$0xff] %v3630_v15  ;;  %v3645_v45 = vadd.f32 %v849_v38, %v6366_v9  ;;  %v3648_v17 = vadd.f32 %v851_v50, %v6368_v2  ;;  %v3651_v60 = vadd.f32 %v854_v63, %v6370_v24  ;;  %v6376_v48 = vld [vmem:[#allocation72_spill] sm:$0xff]  ;;  %v6378_v44 = vld [vmem:[#allocation73_spill] sm:$0xff] }
  0x62   : > { %6359 = vst [vmem:[#allocation63_spill] sm:$0xff] %v3633_v5  ;;  %6361 = vst [vmem:[#allocation64_spill] sm:$0xff] %v3636_v12  ;;  %v3654_v25 = vadd.f32 %v856_v57, %v6372_v53  ;;  %v3657_v10 = vadd.f32 %v859_v8, %v6374_v19  ;;  %v3660_v40 = vadd.f32 %v861_v0, %v6376_v48  ;;  %v6380_v38 = vld [vmem:[#allocation74_spill] sm:$0xff]  ;;  %v6382_v50 = vld [vmem:[#allocation75_spill] sm:$0xff] }
  0x63   : > { %6363 = vst [vmem:[#allocation65_spill] sm:$0xff] %v3639_v3  ;;  %6365 = vst [vmem:[#allocation66_spill] sm:$0xff] %v3642_v31  ;;  %v3663_v37 = vadd.f32 %v864_v20, %v6378_v44  ;;  %v3666_v7 = vadd.f32 %v866_v1, %v6380_v38  ;;  %v3669_v36 = vadd.f32 %v869_v47, %v6382_v50  ;;  %v6384_v63 = vld [vmem:[#allocation76_spill] sm:$0xff]  ;;  %v6386_v57 = vld [vmem:[#allocation77_spill] sm:$0xff] }
  0x64   : > { %6367 = vst [vmem:[#allocation67_spill] sm:$0xff] %v3645_v45  ;;  %6369 = vst [vmem:[#allocation68_spill] sm:$0xff] %v3648_v17  ;;  %v3672_v54 = vadd.f32 %v871_v11, %v6384_v63  ;;  %v3675_v33 = vadd.f32 %v874_v27, %v6386_v57  ;;  %v6388_v8 = vld [vmem:[#allocation78_spill] sm:$0xff]  ;;  %v6390_v0 = vld [vmem:[#allocation79_spill] sm:$0xff] }
  0x65   : > { %6371 = vst [vmem:[#allocation69_spill] sm:$0xff] %v3651_v60  ;;  %6373 = vst [vmem:[#allocation70_spill] sm:$0xff] %v3654_v25  ;;  %v3678_v43 = vadd.f32 %v876_v51, %v6388_v8  ;;  %v3681_v13 = vadd.f32 %v879_v26, %v6390_v0  ;;  %v6392_v20 = vld [vmem:[#allocation80_spill] sm:$0xff]  ;;  %v6394_v1 = vld [vmem:[#allocation81_spill] sm:$0xff] }
  0x66   : > { %6375 = vst [vmem:[#allocation71_spill] sm:$0xff] %v3657_v10  ;;  %6377 = vst [vmem:[#allocation72_spill] sm:$0xff] %v3660_v40  ;;  %v3684_v30 = vadd.f32 %v881_v29, %v6392_v20  ;;  %v3687_v56 = vadd.f32 %v884_v28, %v6394_v1  ;;  %v6396_v47 = vld [vmem:[#allocation82_spill] sm:$0xff]  ;;  %v6398_v11 = vld [vmem:[#allocation83_spill] sm:$0xff] }
  0x67   : > { %6379 = vst [vmem:[#allocation73_spill] sm:$0xff] %v3663_v37  ;;  %6381 = vst [vmem:[#allocation74_spill] sm:$0xff] %v3666_v7  ;;  %v3690_v41 = vadd.f32 %v886_v55, %v6396_v47  ;;  %v3693_v14 = vadd.f32 %v889_v22, %v6398_v11  ;;  %v6400_v27 = vld [vmem:[#allocation84_spill] sm:$0xff]  ;;  %v6402_v51 = vld [vmem:[#allocation85_spill] sm:$0xff] }
  0x68   : > { %6383 = vst [vmem:[#allocation75_spill] sm:$0xff] %v3669_v36  ;;  %6385 = vst [vmem:[#allocation76_spill] sm:$0xff] %v3672_v54  ;;  %v3696_v39 = vadd.f32 %v891_v23, %v6400_v27  ;;  %v3699_v58 = vadd.f32 %v894_v46, %v6402_v51  ;;  %v6404_v26 = vld [vmem:[#allocation86_spill] sm:$0xff]  ;;  %v6406_v29 = vld [vmem:[#allocation4_spill] sm:$0xff] }
  0x69   : > { %6387 = vst [vmem:[#allocation77_spill] sm:$0xff] %v3675_v33  ;;  %6389 = vst [vmem:[#allocation78_spill] sm:$0xff] %v3678_v43  ;;  %v3702_v42 = vadd.f32 %v896_v52, %v6404_v26  ;;  %v6407_v16 = vld [vmem:[#allocation6_spill] sm:$0xff]  ;;  %v6409_v55 = vld [vmem:[#allocation5_spill] sm:$0xff] }
  0x6a   : > { %6391 = vst [vmem:[#allocation79_spill] sm:$0xff] %v3681_v13  ;;  %6393 = vst [vmem:[#allocation80_spill] sm:$0xff] %v3684_v30  ;;  %v965_v4 = vmul.f32 %v6407_v16, %v6406_v29  ;;  %v6408_v28 = vld [vmem:[#allocation2_spill] sm:$0xff]  ;;  %v967_v49 = vmul.f32 %v6407_v16, %v6409_v55  ;;  %v6411_v23 = vld [vmem:[#allocation9_spill] sm:$0xff] }
  0x6b   : > { %6395 = vst [vmem:[#allocation81_spill] sm:$0xff] %v3687_v56  ;;  %6397 = vst [vmem:[#allocation82_spill] sm:$0xff] %v3690_v41  ;;  %v966_v18 = vmul.f32 %v6407_v16, %v6408_v28  ;;  %v6410_v22 = vld [vmem:[#allocation22_spill] sm:$0xff]  ;;  %v969_v2 = vmul.f32 %v6407_v16, %v6411_v23  ;;  %v6412_v46 = vld [vmem:[#allocation41_spill] sm:$0xff] }
  0x6c   : > { %6399 = vst [vmem:[#allocation83_spill] sm:$0xff] %v3693_v14  ;;  %6401 = vst [vmem:[#allocation84_spill] sm:$0xff] %v3696_v39  ;;  %v968_v9 = vmul.f32 %v6407_v16, %v6410_v22  ;;  %v970_v24 = vmul.f32 %v6407_v16, %v6412_v46  ;;  %v6413_v52 = vld [vmem:[#allocation25_spill] sm:$0xff]  ;;  %v6414_v19 = vld [vmem:[#allocation10_spill] sm:$0xff]  ;;  %v1062_v12 = vrot.slane %v965_v4, 2 }
  0x6d   : > { %6403 = vst [vmem:[#allocation85_spill] sm:$0xff] %v3699_v58  ;;  %6405 = vst [vmem:[#allocation86_spill] sm:$0xff] %v3702_v42  ;;  %v971_v53 = vmul.f32 %v6407_v16, %v6413_v52  ;;  %v972_v48 = vmul.f32 %v6407_v16, %v6414_v19  ;;  %v6415_v44 = vld [vmem:[#allocation42_spill] sm:$0xff]  ;;  %v6417_v57 = vld [vmem:[#allocation11_spill] sm:$0xff]  ;;  %v1063_v5 = vrot.slane %v966_v18, 2  ;;  %v1068_v34 = vrot.slane %v969_v2, 2 }
  0x6e   : > { %v973_v38 = vmul.f32 %v6407_v16, %v6415_v44  ;;  %v6416_v50 = vld [vmem:[#allocation26_spill] sm:$0xff]  ;;  %v3726_v8 = vmul.f32 %v6407_v16, %v6417_v57  ;;  %v6418_v0 = vld [vmem:[#allocation43_spill] sm:$0xff]  ;;  %v6419_v1 = vld [vmem:[#allocation28_spill] sm:$0xff]  ;;  %v1067_v15 = vrot.slane %v968_v9, 2  ;;  %v1070_v21 = vrot.slane %v970_v24, 2 }
  0x6f   : > { %v974_v63 = vmul.f32 %v6407_v16, %v6416_v50  ;;  %v3730_v20 = vmul.f32 %v6407_v16, %v6418_v0  ;;  %v3734_v47 = vmul.f32 %v6407_v16, %v6419_v1  ;;  %v6420_v11 = vld [vmem:[#allocation12_spill] sm:$0xff]  ;;  %v6422_v55 = vld [vmem:[#allocation29_spill] sm:$0xff]  ;;  %v6425_v1 = vld [vmem:[#allocation30_spill] sm:$0xff]  ;;  %v3877_v32 = vsel %vm1061_vm2, %v1062_v12, %v1063_v5 }
  0x70   : > { %v3738_v27 = vmul.f32 %v6407_v16, %v6420_v11  ;;  %v6421_v51 = vld [vmem:[#allocation44_spill] sm:$0xff]  ;;  %v3746_v28 = vmul.f32 %v6407_v16, %v6422_v55  ;;  %v6423_v29 = vld [vmem:[#allocation13_spill] sm:$0xff]  ;;  %v3758_v11 = vmul.f32 %v6407_v16, %v6425_v1  ;;  %v6426_v57 = vld [vmem:[#allocation14_spill] sm:$0xff]  ;;  %v1073_v6 = vrot.slane %v972_v48, 2 }
  0x71   : > { %v3742_v26 = vmul.f32 %v6407_v16, %v6421_v51  ;;  %v3750_v0 = vmul.f32 %v6407_v16, %v6423_v29  ;;  %v6424_v44 = vld [vmem:[#allocation45_spill] sm:$0xff]  ;;  %v3762_v51 = vmul.f32 %v6407_v16, %v6426_v57  ;;  %v6427_v50 = vld [vmem:[#allocation46_spill] sm:$0xff]  ;;  %v6428_v19 = vld [vmem:[#allocation31_spill] sm:$0xff]  ;;  %v3883_v62 = vsel %vm1061_vm2, %v1067_v15, %v1068_v34 }
  0x72   : > { %v3754_v46 = vmul.f32 %v6407_v16, %v6424_v44  ;;  %v3766_v55 = vmul.f32 %v6407_v16, %v6427_v50  ;;  %v3770_v29 = vmul.f32 %v6407_v16, %v6428_v19  ;;  %v6429_v52 = vld [vmem:[#allocation15_spill] sm:$0xff]  ;;  %v6431_v22 = vld [vmem:[#allocation32_spill] sm:$0xff]  ;;  %v6434_v39 = vld [vmem:[#allocation33_spill] sm:$0xff]  ;;  %v1077_v4 = vrot.slane %v974_v63, 2 }
  0x73   : > { %v3774_v44 = vmul.f32 %v6407_v16, %v6429_v52  ;;  %v6430_v23 = vld [vmem:[#allocation47_spill] sm:$0xff]  ;;  %v3782_v57 = vmul.f32 %v6407_v16, %v6431_v22  ;;  %v6432_v42 = vld [vmem:[#allocation16_spill] sm:$0xff]  ;;  %v3794_v52 = vmul.f32 %v6407_v16, %v6434_v39  ;;  %v6435_v14 = vld [vmem:[#allocation17_spill] sm:$0xff]  ;;  %v1078_v18 = vrot.slane %v3726_v8, 2 }
  0x74   : > { %v3778_v1 = vmul.f32 %v6407_v16, %v6430_v23  ;;  %v3786_v50 = vmul.f32 %v6407_v16, %v6432_v42  ;;  %v6433_v58 = vld [vmem:[#allocation48_spill] sm:$0xff]  ;;  %v3798_v23 = vmul.f32 %v6407_v16, %v6435_v14  ;;  %v6436_v41 = vld [vmem:[#allocation49_spill] sm:$0xff]  ;;  %v6437_v56 = vld [vmem:[#allocation34_spill] sm:$0xff]  ;;  %v1083_v15 = vrot.slane %v3738_v27, 2 }
  0x75   : > { %v3790_v19 = vmul.f32 %v6407_v16, %v6433_v58  ;;  %v3802_v22 = vmul.f32 %v6407_v16, %v6436_v41  ;;  %v3806_v42 = vmul.f32 %v6407_v16, %v6437_v56  ;;  %v6438_v30 = vld [vmem:[#allocation18_spill] sm:$0xff]  ;;  %v6440_v43 = vld [vmem:[#allocation35_spill] sm:$0xff]  ;;  %v6443_v36 = vld [vmem:[#allocation36_spill] sm:$0xff]  ;;  %v3898_v9 = vsel %vm1061_vm2, %v1077_v4, %v1078_v18 }
  0x76   : > { %v3810_v58 = vmul.f32 %v6407_v16, %v6438_v30  ;;  %v6439_v13 = vld [vmem:[#allocation50_spill] sm:$0xff]  ;;  %v3818_v14 = vmul.f32 %v6407_v16, %v6440_v43  ;;  %v6441_v33 = vld [vmem:[#allocation19_spill] sm:$0xff]  ;;  %v3830_v30 = vmul.f32 %v6407_v16, %v6443_v36  ;;  %v6444_v7 = vld [vmem:[#allocation20_spill] sm:$0xff]  ;;  %v1093_v48 = vrot.slane %v3762_v51, 2 }
  0x77   : > { %v3814_v39 = vmul.f32 %v6407_v16, %v6439_v13  ;;  %v3822_v41 = vmul.f32 %v6407_v16, %v6441_v33  ;;  %v6442_v54 = vld [vmem:[#allocation51_spill] sm:$0xff]  ;;  %v3834_v13 = vmul.f32 %v6407_v16, %v6444_v7  ;;  %v6445_v37 = vld [vmem:[#allocation52_spill] sm:$0xff]  ;;  %v6446_v40 = vld [vmem:[#allocation37_spill] sm:$0xff]  ;;  %v1097_v8 = vrot.slane %v3770_v29, 2 }
  0x78   : > { %v3826_v56 = vmul.f32 %v6407_v16, %v6442_v54  ;;  %v3838_v43 = vmul.f32 %v6407_v16, %v6445_v37  ;;  %v3842_v33 = vmul.f32 %v6407_v16, %v6446_v40  ;;  %v6447_v10 = vld [vmem:[#allocation21_spill] sm:$0xff]  ;;  %v6449_v60 = vld [vmem:[#allocation38_spill] sm:$0xff]  ;;  %v6450_v17 = vld [vmem:[#allocation23_spill] sm:$0xff]  ;;  %v1105_v51 = vrot.slane %v3790_v19, 2 }
  0x79   : > { %v3846_v54 = vmul.f32 %v6407_v16, %v6447_v10  ;;  %v6448_v25 = vld [vmem:[#allocation53_spill] sm:$0xff]  ;;  %v3854_v7 = vmul.f32 %v6407_v16, %v6449_v60  ;;  %v3858_v37 = vmul.f32 %v6407_v16, %v6450_v17  ;;  %v6451_v45 = vld [vmem:[#allocation54_spill] sm:$0xff]  ;;  %v6452_v31 = vld [vmem:[#allocation39_spill] sm:$0xff]  ;;  %v3874_v60 = vmul.f32 %v6407_v16, %v3213_v59 }
  0x7a   : > { %v3850_v36 = vmul.f32 %v6407_v16, %v6448_v25  ;;  %v3862_v40 = vmul.f32 %v6407_v16, %v6451_v45  ;;  %v3866_v10 = vmul.f32 %v6407_v16, %v6452_v31  ;;  %v6453_v3 = vld [vmem:[#allocation24_spill] sm:$0xff]  ;;  %v1065_v17 = vrot.slane %v967_v49, 2 }
  0x7b   : > { %v3870_v25 = vmul.f32 %v6407_v16, %v6453_v3  ;;  %v1072_v45 = vrot.slane %v971_v53, 2  ;;  %v1075_v3 = vrot.slane %v973_v38, 2  ;;  %v3886_v16 = vsel %vm1061_vm2, %v1068_v34, %v1070_v21  ;;  %v6508_v59 = vld [vmem:[#allocation16_spill] sm:$0xff] }
  0x7c   : > { %v3880_v31 = vsel %vm1061_vm2, %v1063_v5, %v1065_v17  ;;  %v1080_v5 = vrot.slane %v3730_v20, 2  ;;  %v1082_v17 = vrot.slane %v3734_v47, 2  ;;  %v1085_v21 = vrot.slane %v3742_v26, 2 }
  0x7d   : > { %v3890_v49 = vsel %vm1061_vm2, %v1072_v45, %v1073_v6  ;;  %v3893_v12 = vsel %vm1061_vm2, %v1073_v6, %v1075_v3  ;;  %v1087_v34 = vrot.slane %v3746_v28, 2  ;;  %v1088_v45 = vrot.slane %v3750_v0, 2 }
  0x7e   : > { %v3904_v2 = vsel %vm1061_vm2, %v1078_v18, %v1080_v5  ;;  %v1090_v6 = vrot.slane %v3754_v46, 2  ;;  %v1092_v3 = vrot.slane %v3758_v11, 2  ;;  %v1084_v24 = vsel %vm1061_vm2, %v1082_v17, %v1083_v15 }
  0x7f   : > { %v1086_v53 = vsel %vm1061_vm2, %v1083_v15, %v1085_v21  ;;  %v1095_v38 = vrot.slane %v3766_v55, 2  ;;  %v1089_v63 = vsel %vm1061_vm2, %v1087_v34, %v1088_v45  ;;  %v1098_v0 = vrot.slane %v3774_v44, 2 }
  0x80   : > { %v1091_v28 = vsel %vm1061_vm2, %v1088_v45, %v1090_v6  ;;  %v1094_v46 = vsel %vm1061_vm2, %v1092_v3, %v1093_v48  ;;  %v1100_v47 = vrot.slane %v3778_v1, 2  ;;  %v1102_v11 = vrot.slane %v3782_v57, 2 }
  0x81   : > { %v1096_v20 = vsel %vm1061_vm2, %v1093_v48, %v1095_v38  ;;  %v1099_v27 = vsel %vm1061_vm2, %v1097_v8, %v1098_v0  ;;  %v1103_v55 = vrot.slane %v3786_v50, 2  ;;  %v1107_v26 = vrot.slane %v3794_v52, 2 }
  0x82   : > { %v1101_v29 = vsel %vm1061_vm2, %v1098_v0, %v1100_v47  ;;  %v1108_v44 = vrot.slane %v3798_v23, 2  ;;  %v1110_v4 = vrot.slane %v3802_v22, 2  ;;  %v1112_v18 = vrot.slane %v3806_v42, 2  ;;  %v6454_v47 = vld [vmem:[#allocation57_spill] sm:$0xff] }
  0x83   : > { %v1104_v1 = vsel %vm1061_vm2, %v1102_v11, %v1103_v55  ;;  %v1106_v57 = vsel %vm1061_vm2, %v1103_v55, %v1105_v51  ;;  %v1113_v5 = vrot.slane %v3810_v58, 2  ;;  %v1115_v50 = vrot.slane %v3814_v39, 2  ;;  %v6456_v55 = vld [vmem:[#allocation59_spill] sm:$0xff] }
  0x84   : > { %v1109_v19 = vsel %vm1061_vm2, %v1107_v26, %v1108_v44  ;;  %v1111_v52 = vsel %vm1061_vm2, %v1108_v44, %v1110_v4  ;;  %v1117_v17 = vrot.slane %v3818_v14, 2  ;;  %v1118_v23 = vrot.slane %v3822_v41, 2  ;;  %v6461_v4 = vld [vmem:[#allocation64_spill] sm:$0xff] }
  0x85   : > { %v1114_v22 = vsel %vm1061_vm2, %v1112_v18, %v1113_v5  ;;  %v1116_v42 = vsel %vm1061_vm2, %v1113_v5, %v1115_v50  ;;  %v1120_v15 = vrot.slane %v3826_v56, 2  ;;  %v1122_v21 = vrot.slane %v3830_v30, 2  ;;  %v6463_v50 = vld [vmem:[#allocation66_spill] sm:$0xff] }
  0x86   : > { %v1119_v58 = vsel %vm1061_vm2, %v1117_v17, %v1118_v23  ;;  %v1123_v39 = vrot.slane %v3834_v13, 2  ;;  %v1125_v34 = vrot.slane %v3838_v43, 2  ;;  %v1127_v45 = vrot.slane %v3842_v33, 2  ;;  %v6464_v17 = vld [vmem:[#allocation67_spill] sm:$0xff] }
  0x87   : > { %v1121_v14 = vsel %vm1061_vm2, %v1118_v23, %v1120_v15  ;;  %v1128_v41 = vrot.slane %v3846_v54, 2  ;;  %v1130_v6 = vrot.slane %v3850_v36, 2  ;;  %v1132_v3 = vrot.slane %v3854_v7, 2 }
  0x88   : > { %v1124_v56 = vsel %vm1061_vm2, %v1122_v21, %v1123_v39  ;;  %v1126_v30 = vsel %vm1061_vm2, %v1123_v39, %v1125_v34  ;;  %v1133_v48 = vrot.slane %v3858_v37, 2  ;;  %v1135_v13 = vrot.slane %v3862_v40, 2 }
  0x89   : > { %v1129_v43 = vsel %vm1061_vm2, %v1127_v45, %v1128_v41  ;;  %v1131_v33 = vsel %vm1061_vm2, %v1128_v41, %v1130_v6  ;;  %v1137_v38 = vrot.slane %v3866_v10, 2  ;;  %v1138_v54 = vrot.slane %v3870_v25, 2  ;;  %v6455_v25 = vld [vmem:[#allocation58_spill] sm:$0xff] }
  0x8a   : > { %v1134_v36 = vsel %vm1061_vm2, %v1132_v3, %v1133_v48  ;;  %v1136_v7 = vsel %vm1061_vm2, %v1133_v48, %v1135_v13  ;;  %v1140_v8 = vrot.slane %v3874_v60, 2  ;;  %v3962_v0 = vadd.f32 %v3877_v32, %v3600_v61  ;;  %v6457_v32 = vld [vmem:[#allocation60_spill] sm:$0xff] }
  0x8b   : > { %v1139_v40 = vsel %vm1061_vm2, %v1137_v38, %v1138_v54  ;;  %v3967_v37 = vadd.f32 %v3880_v31, %v3605_v35  ;;  %v3971_v10 = vadd.f32 %v3883_v62, %v6454_v47  ;;  %v3975_v11 = vadd.f32 %v3886_v16, %v6455_v25  ;;  %v6458_v35 = vld [vmem:[#allocation61_spill] sm:$0xff]  ;;  %v6459_v62 = vld [vmem:[#allocation62_spill] sm:$0xff]  ;;  %v6460_v16 = vld [vmem:[#allocation63_spill] sm:$0xff] }
  0x8c   : > { %v1141_v60 = vsel %vm1061_vm2, %v1138_v54, %v1140_v8  ;;  %v3980_v61 = vadd.f32 %v3890_v49, %v6456_v55  ;;  %v3984_v51 = vadd.f32 %v3893_v12, %v6457_v32  ;;  %v3988_v31 = vadd.f32 %v3898_v9, %v6458_v35  ;;  %v6462_v49 = vld [vmem:[#allocation65_spill] sm:$0xff]  ;;  %v6465_v9 = vld [vmem:[#allocation68_spill] sm:$0xff] }
  0x8d   : > { %v3992_v26 = vadd.f32 %v3904_v2, %v6459_v62  ;;  %v3995_v44 = vadd.f32 %v1084_v24, %v6460_v16  ;;  %v3998_v18 = vadd.f32 %v1086_v53, %v6461_v4  ;;  %v4001_v5 = vadd.f32 %v1089_v63, %v6462_v49  ;;  %v6466_v2 = vld [vmem:[#allocation69_spill] sm:$0xff]  ;;  %v6467_v24 = vld [vmem:[#allocation70_spill] sm:$0xff]  ;;  %v6468_v53 = vld [vmem:[#allocation71_spill] sm:$0xff] }
  0x8e   : > { %v4004_v12 = vadd.f32 %v1091_v28, %v6463_v50  ;;  %v4007_v23 = vadd.f32 %v1094_v46, %v6464_v17  ;;  %v4010_v15 = vadd.f32 %v1096_v20, %v6465_v9  ;;  %v4013_v21 = vadd.f32 %v1099_v27, %v6466_v2  ;;  %v6469_v63 = vld [vmem:[#allocation72_spill] sm:$0xff]  ;;  %v6470_v28 = vld [vmem:[#allocation73_spill] sm:$0xff]  ;;  %v6471_v46 = vld [vmem:[#allocation74_spill] sm:$0xff] }
  0x8f   : > { %v4016_v39 = vadd.f32 %v1101_v29, %v6467_v24  ;;  %v4019_v34 = vadd.f32 %v1104_v1, %v6468_v53  ;;  %v4022_v45 = vadd.f32 %v1106_v57, %v6469_v63  ;;  %v4025_v41 = vadd.f32 %v1109_v19, %v6470_v28  ;;  %v6472_v20 = vld [vmem:[#allocation75_spill] sm:$0xff]  ;;  %v6473_v27 = vld [vmem:[#allocation76_spill] sm:$0xff]  ;;  %v6474_v29 = vld [vmem:[#allocation77_spill] sm:$0xff] }
  0x90   : > { %v4028_v6 = vadd.f32 %v1111_v52, %v6471_v46  ;;  %v4031_v3 = vadd.f32 %v1114_v22, %v6472_v20  ;;  %v4034_v48 = vadd.f32 %v1116_v42, %v6473_v27  ;;  %v4037_v13 = vadd.f32 %v1119_v58, %v6474_v29  ;;  %v6475_v1 = vld [vmem:[#allocation78_spill] sm:$0xff]  ;;  %v6476_v57 = vld [vmem:[#allocation79_spill] sm:$0xff]  ;;  %v6478_v19 = vld [vmem:[#allocation80_spill] sm:$0xff] }
  0x91   : > { %v4040_v38 = vadd.f32 %v1121_v14, %v6475_v1  ;;  %v4043_v54 = vadd.f32 %v1124_v56, %v6476_v57  ;;  %v4046_v8 = vadd.f32 %v1126_v30, %v6478_v19  ;;  %v6480_v52 = vld [vmem:[#allocation81_spill] sm:$0xff]  ;;  %v6482_v22 = vld [vmem:[#allocation82_spill] sm:$0xff]  ;;  %v6484_v42 = vld [vmem:[#allocation83_spill] sm:$0xff] }
  0x92   : > { %v4049_v47 = vadd.f32 %v1129_v43, %v6480_v52  ;;  %v4052_v25 = vadd.f32 %v1131_v33, %v6482_v22  ;;  %v4055_v55 = vadd.f32 %v1134_v36, %v6484_v42  ;;  %v6486_v58 = vld [vmem:[#allocation84_spill] sm:$0xff]  ;;  %v6488_v14 = vld [vmem:[#allocation85_spill] sm:$0xff]  ;;  %v6490_v56 = vld [vmem:[#allocation86_spill] sm:$0xff] }
  0x93   : > { %6477 = vst [vmem:[#allocation6_spill] sm:$0xff] %v4043_v54  ;;  %6479 = vst [vmem:[#allocation57_spill] sm:$0xff] %v4046_v8  ;;  %v4058_v32 = vadd.f32 %v1136_v7, %v6486_v58  ;;  %v4061_v35 = vadd.f32 %v1139_v40, %v6488_v14  ;;  %v4064_v62 = vadd.f32 %v1141_v60, %v6490_v56  ;;  %v6492_v30 = vld [vmem:[#allocation22_spill] sm:$0xff]  ;;  %v6493_v16 = vld [vmem:[#allocation7_spill] sm:$0xff] }
  0x94   : > { %6481 = vst [vmem:[#allocation58_spill] sm:$0xff] %v4049_v47  ;;  %6483 = vst [vmem:[#allocation59_spill] sm:$0xff] %v4052_v25  ;;  %v1210_v4 = vmul.f32 %v6493_v16, %v6492_v30  ;;  %v6494_v43 = vld [vmem:[#allocation9_spill] sm:$0xff]  ;;  %v6496_v36 = vld [vmem:[#allocation10_spill] sm:$0xff] }
  0x95   : > { %6485 = vst [vmem:[#allocation60_spill] sm:$0xff] %v4055_v55  ;;  %6487 = vst [vmem:[#allocation61_spill] sm:$0xff] %v4058_v32  ;;  %v1211_v49 = vmul.f32 %v6493_v16, %v6494_v43  ;;  %v6495_v33 = vld [vmem:[#allocation25_spill] sm:$0xff]  ;;  %v1213_v17 = vmul.f32 %v6493_v16, %v6496_v36  ;;  %v6497_v7 = vld [vmem:[#allocation26_spill] sm:$0xff] }
  0x96   : > { %6489 = vst [vmem:[#allocation62_spill] sm:$0xff] %v4061_v35  ;;  %6491 = vst [vmem:[#allocation63_spill] sm:$0xff] %v4064_v62  ;;  %v1212_v50 = vmul.f32 %v6493_v16, %v6495_v33  ;;  %v1214_v9 = vmul.f32 %v6493_v16, %v6497_v7  ;;  %v6498_v40 = vld [vmem:[#allocation11_spill] sm:$0xff]  ;;  %v6499_v60 = vld [vmem:[#allocation28_spill] sm:$0xff] }
  0x97   : > { %v1215_v2 = vmul.f32 %v6493_v16, %v6498_v40  ;;  %v1216_v24 = vmul.f32 %v6493_v16, %v6499_v60  ;;  %v6500_v53 = vld [vmem:[#allocation12_spill] sm:$0xff]  ;;  %v6501_v28 = vld [vmem:[#allocation29_spill] sm:$0xff]  ;;  %v6503_v29 = vld [vmem:[#allocation30_spill] sm:$0xff] }
  0x98   : > { %v1217_v63 = vmul.f32 %v6493_v16, %v6500_v53  ;;  %v1218_v46 = vmul.f32 %v6493_v16, %v6501_v28  ;;  %v6502_v20 = vld [vmem:[#allocation13_spill] sm:$0xff]  ;;  %v1220_v1 = vmul.f32 %v6493_v16, %v6503_v29  ;;  %v6504_v57 = vld [vmem:[#allocation14_spill] sm:$0xff]  ;;  %v6505_v52 = vld [vmem:[#allocation31_spill] sm:$0xff]  ;;  %v1225_v28 = vmul.f32 %v6493_v16, %v6508_v59 }
  0x99   : > { %v1219_v27 = vmul.f32 %v6493_v16, %v6502_v20  ;;  %v1221_v19 = vmul.f32 %v6493_v16, %v6504_v57  ;;  %v1222_v22 = vmul.f32 %v6493_v16, %v6505_v52  ;;  %v6506_v42 = vld [vmem:[#allocation15_spill] sm:$0xff]  ;;  %v6507_v14 = vld [vmem:[#allocation32_spill] sm:$0xff]  ;;  %v6509_v53 = vld [vmem:[#allocation33_spill] sm:$0xff] }
  0x9a   : > { %v1223_v58 = vmul.f32 %v6493_v16, %v6506_v42  ;;  %v1224_v56 = vmul.f32 %v6493_v16, %v6507_v14  ;;  %v1226_v20 = vmul.f32 %v6493_v16, %v6509_v53  ;;  %v6510_v60 = vld [vmem:[#allocation17_spill] sm:$0xff]  ;;  %v6511_v40 = vld [vmem:[#allocation34_spill] sm:$0xff]  ;;  %v6513_v36 = vld [vmem:[#allocation35_spill] sm:$0xff] }
  0x9b   : > { %v1227_v29 = vmul.f32 %v6493_v16, %v6510_v60  ;;  %v1228_v57 = vmul.f32 %v6493_v16, %v6511_v40  ;;  %v6512_v7 = vld [vmem:[#allocation18_spill] sm:$0xff]  ;;  %v1230_v42 = vmul.f32 %v6493_v16, %v6513_v36  ;;  %v6514_v33 = vld [vmem:[#allocation19_spill] sm:$0xff]  ;;  %v6515_v43 = vld [vmem:[#allocation36_spill] sm:$0xff] }
  0x9c   : > { %v1229_v52 = vmul.f32 %v6493_v16, %v6512_v7  ;;  %v1231_v14 = vmul.f32 %v6493_v16, %v6514_v33  ;;  %v1232_v59 = vmul.f32 %v6493_v16, %v6515_v43  ;;  %v6516_v30 = vld [vmem:[#allocation20_spill] sm:$0xff]  ;;  %v6517_v62 = vld [vmem:[#allocation37_spill] sm:$0xff]  ;;  %v6519_v32 = vld [vmem:[#allocation38_spill] sm:$0xff] }
  0x9d   : > { %v1233_v53 = vmul.f32 %v6493_v16, %v6516_v30  ;;  %v1234_v60 = vmul.f32 %v6493_v16, %v6517_v62  ;;  %v6518_v35 = vld [vmem:[#allocation21_spill] sm:$0xff]  ;;  %v1236_v7 = vmul.f32 %v6493_v16, %v6519_v32  ;;  %v6520_v55 = vld [vmem:[#allocation23_spill] sm:$0xff]  ;;  %v6522_v47 = vld [vmem:[#allocation24_spill] sm:$0xff]  ;;  %v4134_v32 = vadd.f32 %v1211_v49, %v3967_v37 }
  0x9e   : > { %v1235_v40 = vmul.f32 %v6493_v16, %v6518_v35  ;;  %v1237_v36 = vmul.f32 %v6493_v16, %v6520_v55  ;;  %v6521_v25 = vld [vmem:[#allocation39_spill] sm:$0xff]  ;;  %v1239_v43 = vmul.f32 %v6493_v16, %v6522_v47  ;;  %v6523_v8 = vld [vmem:[#allocation40_spill] sm:$0xff]  ;;  %v4131_v35 = vadd.f32 %v1210_v4, %v3962_v0 }
  0x9f   : > { %v1238_v33 = vmul.f32 %v6493_v16, %v6521_v25  ;;  %v1240_v30 = vmul.f32 %v6493_v16, %v6523_v8  ;;  %v6524_v54 = vld [vmem:[#allocation27_spill] sm:$0xff]  ;;  %v4137_v55 = vadd.f32 %v1212_v50, %v3971_v10  ;;  %v4140_v25 = vadd.f32 %v1213_v17, %v3975_v11 }
  0xa0   : > { %v1241_v62 = vmul.f32 %v6493_v16, %v6524_v54  ;;  %v4143_v47 = vadd.f32 %v1214_v9, %v3980_v61  ;;  %v4146_v8 = vadd.f32 %v1215_v2, %v3984_v51  ;;  %v4149_v16 = vadd.f32 %v1216_v24, %v3988_v31 }
  0xa1   : > { %6525 = vst [vmem:[#allocation64_spill] sm:$0xff] %v4137_v55  ;;  %6526 = vst [vmem:[#allocation65_spill] sm:$0xff] %v4140_v25  ;;  %v4152_v0 = vadd.f32 %v1217_v63, %v3992_v26  ;;  %v4155_v37 = vadd.f32 %v1218_v46, %v3995_v44  ;;  %v4158_v10 = vadd.f32 %v1219_v27, %v3998_v18 }
  0xa2   : > { %6527 = vst [vmem:[#allocation66_spill] sm:$0xff] %v4143_v47  ;;  %6528 = vst [vmem:[#allocation67_spill] sm:$0xff] %v4146_v8  ;;  %v4161_v11 = vadd.f32 %v1220_v1, %v4001_v5  ;;  %v4164_v61 = vadd.f32 %v1221_v19, %v4004_v12  ;;  %v4167_v51 = vadd.f32 %v1222_v22, %v4007_v23 }
  0xa3   : > { %6529 = vst [vmem:[#allocation68_spill] sm:$0xff] %v4149_v16  ;;  %6530 = vst [vmem:[#allocation69_spill] sm:$0xff] %v4152_v0  ;;  %v4170_v31 = vadd.f32 %v1223_v58, %v4010_v15  ;;  %v4173_v26 = vadd.f32 %v1224_v56, %v4013_v21  ;;  %v4176_v44 = vadd.f32 %v1225_v28, %v4016_v39 }
  0xa4   : > { %6531 = vst [vmem:[#allocation70_spill] sm:$0xff] %v4155_v37  ;;  %6532 = vst [vmem:[#allocation71_spill] sm:$0xff] %v4158_v10  ;;  %v4179_v18 = vadd.f32 %v1226_v20, %v4019_v34  ;;  %v4182_v5 = vadd.f32 %v1227_v29, %v4022_v45  ;;  %v4185_v12 = vadd.f32 %v1228_v57, %v4025_v41  ;;  %v6547_v45 = vld [vmem:[#allocation6_spill] sm:$0xff]  ;;  %v6549_v41 = vld [vmem:[#allocation57_spill] sm:$0xff] }
  0xa5   : > { %6533 = vst [vmem:[#allocation72_spill] sm:$0xff] %v4161_v11  ;;  %6534 = vst [vmem:[#allocation73_spill] sm:$0xff] %v4164_v61  ;;  %v4188_v23 = vadd.f32 %v1229_v52, %v4028_v6  ;;  %v4191_v15 = vadd.f32 %v1230_v42, %v4031_v3  ;;  %v4194_v21 = vadd.f32 %v1231_v14, %v4034_v48  ;;  %v6551_v6 = vld [vmem:[#allocation58_spill] sm:$0xff]  ;;  %v6553_v3 = vld [vmem:[#allocation59_spill] sm:$0xff] }
  0xa6   : > { %6535 = vst [vmem:[#allocation74_spill] sm:$0xff] %v4167_v51  ;;  %6536 = vst [vmem:[#allocation75_spill] sm:$0xff] %v4170_v31  ;;  %v4197_v39 = vadd.f32 %v1232_v59, %v4037_v13  ;;  %v4200_v34 = vadd.f32 %v1233_v53, %v4040_v38  ;;  %v4203_v4 = vadd.f32 %v1234_v60, %v6547_v45  ;;  %v6555_v48 = vld [vmem:[#allocation60_spill] sm:$0xff]  ;;  %v6557_v59 = vld [vmem:[#allocation61_spill] sm:$0xff] }
  0xa7   : > { %6537 = vst [vmem:[#allocation76_spill] sm:$0xff] %v4173_v26  ;;  %6538 = vst [vmem:[#allocation77_spill] sm:$0xff] %v4176_v44  ;;  %v4206_v49 = vadd.f32 %v1235_v40, %v6549_v41  ;;  %v4209_v50 = vadd.f32 %v1236_v7, %v6551_v6  ;;  %v4212_v17 = vadd.f32 %v1237_v36, %v6553_v3  ;;  %v6559_v38 = vld [vmem:[#allocation62_spill] sm:$0xff]  ;;  %v6561_v60 = vld [vmem:[#allocation63_spill] sm:$0xff] }
  0xa8   : > { %6539 = vst [vmem:[#allocation78_spill] sm:$0xff] %v4179_v18  ;;  %6540 = vst [vmem:[#allocation79_spill] sm:$0xff] %v4182_v5  ;;  %v4215_v9 = vadd.f32 %v1238_v33, %v6555_v48  ;;  %v4218_v13 = vadd.f32 %v1239_v43, %v6557_v59  ;;  %v4221_v2 = vadd.f32 %v1240_v30, %v6559_v38  ;;  %v6563_v40 = vld [vmem:[#allocation22_spill] sm:$0xff]  ;;  %v6564_v53 = vld [vmem:[#allocation8_spill] sm:$0xff] }
  0xa9   : > { %6541 = vst [vmem:[#allocation80_spill] sm:$0xff] %v4185_v12  ;;  %6542 = vst [vmem:[#allocation81_spill] sm:$0xff] %v4188_v23  ;;  %v4224_v24 = vadd.f32 %v1241_v62, %v6561_v60  ;;  %v1278_v63 = vmul.f32 %v6564_v53, %v6563_v40  ;;  %v6565_v7 = vld [vmem:[#allocation9_spill] sm:$0xff]  ;;  %v6568_v43 = vld [vmem:[#allocation10_spill] sm:$0xff] }
  0xaa   : > { %6543 = vst [vmem:[#allocation82_spill] sm:$0xff] %v4191_v15  ;;  %6544 = vst [vmem:[#allocation83_spill] sm:$0xff] %v4194_v21  ;;  %v1279_v28 = vmul.f32 %v6564_v53, %v6565_v7  ;;  %v6566_v36 = vld [vmem:[#allocation41_spill] sm:$0xff]  ;;  %v1282_v27 = vmul.f32 %v6564_v53, %v6568_v43  ;;  %v6569_v30 = vld [vmem:[#allocation42_spill] sm:$0xff] }
  0xab   : > { %6545 = vst [vmem:[#allocation84_spill] sm:$0xff] %v4197_v39  ;;  %6546 = vst [vmem:[#allocation85_spill] sm:$0xff] %v4200_v34  ;;  %v1280_v46 = vmul.f32 %v6564_v53, %v6566_v36  ;;  %v6567_v33 = vld [vmem:[#allocation25_spill] sm:$0xff]  ;;  %v1283_v29 = vmul.f32 %v6564_v53, %v6569_v30  ;;  %v6570_v62 = vld [vmem:[#allocation26_spill] sm:$0xff]  ;;  %v1374_v10 = vrot.slane %v1278_v63, 1 }
  0xac   : > { %6548 = vst [vmem:[#allocation86_spill] sm:$0xff] %v4203_v4  ;;  %6550 = vst [vmem:[#allocation7_spill] sm:$0xff] %v4206_v49  ;;  %v1281_v20 = vmul.f32 %v6564_v53, %v6567_v33  ;;  %v1284_v1 = vmul.f32 %v6564_v53, %v6570_v62  ;;  %v6571_v57 = vld [vmem:[#allocation11_spill] sm:$0xff]  ;;  %v6573_v42 = vld [vmem:[#allocation28_spill] sm:$0xff]  ;;  %v1375_v37 = vrot.slane %v1279_v28, 1  ;;  %v1380_v16 = vrot.slane %v1282_v27, 1 }
  0xad   : > { %6552 = vst [vmem:[#allocation6_spill] sm:$0xff] %v4209_v50  ;;  %6554 = vst [vmem:[#allocation57_spill] sm:$0xff] %v4212_v17  ;;  %v1285_v19 = vmul.f32 %v6564_v53, %v6571_v57  ;;  %v6572_v52 = vld [vmem:[#allocation43_spill] sm:$0xff]  ;;  %v1287_v58 = vmul.f32 %v6564_v53, %v6573_v42  ;;  %v6574_v14 = vld [vmem:[#allocation12_spill] sm:$0xff]  ;;  %v1382_v8 = vrot.slane %v1283_v29, 1 }
  0xae   : > { %6556 = vst [vmem:[#allocation58_spill] sm:$0xff] %v4215_v9  ;;  %6558 = vst [vmem:[#allocation59_spill] sm:$0xff] %v4218_v13  ;;  %v1286_v22 = vmul.f32 %v6564_v53, %v6572_v52  ;;  %v4248_v56 = vmul.f32 %v6564_v53, %v6574_v14  ;;  %v6575_v45 = vld [vmem:[#allocation44_spill] sm:$0xff]  ;;  %v6576_v6 = vld [vmem:[#allocation29_spill] sm:$0xff]  ;;  %v1379_v0 = vrot.slane %v1281_v20, 1  ;;  %v4397_v47 = vsel %vm816_vm1, %v1374_v10, %v1375_v37 }
  0xaf   : > { %6560 = vst [vmem:[#allocation60_spill] sm:$0xff] %v4221_v2  ;;  %6562 = vst [vmem:[#allocation61_spill] sm:$0xff] %v4224_v24  ;;  %v1289_v41 = vmul.f32 %v6564_v53, %v6575_v45  ;;  %v4254_v3 = vmul.f32 %v6564_v53, %v6576_v6  ;;  %v6577_v48 = vld [vmem:[#allocation13_spill] sm:$0xff]  ;;  %v6579_v36 = vld [vmem:[#allocation30_spill] sm:$0xff]  ;;  %v1385_v25 = vrot.slane %v1285_v19, 1  ;;  %v1389_v63 = vrot.slane %v1287_v58, 1 }
  0xb0   : > { %v4258_v59 = vmul.f32 %v6564_v53, %v6577_v48  ;;  %v6578_v38 = vld [vmem:[#allocation45_spill] sm:$0xff]  ;;  %v4266_v7 = vmul.f32 %v6564_v53, %v6579_v36  ;;  %v6580_v40 = vld [vmem:[#allocation14_spill] sm:$0xff]  ;;  %v6582_v42 = vld [vmem:[#allocation31_spill] sm:$0xff]  ;;  %v4403_v55 = vsel %vm816_vm1, %v1379_v0, %v1380_v16  ;;  %v1390_v28 = vrot.slane %v4248_v56, 1 }
  0xb1   : > { %v4262_v60 = vmul.f32 %v6564_v53, %v6578_v38  ;;  %v4270_v14 = vmul.f32 %v6564_v53, %v6580_v40  ;;  %v6581_v45 = vld [vmem:[#allocation46_spill] sm:$0xff]  ;;  %v4278_v48 = vmul.f32 %v6564_v53, %v6582_v42  ;;  %v6583_v52 = vld [vmem:[#allocation15_spill] sm:$0xff]  ;;  %v6585_v62 = vld [vmem:[#allocation32_spill] sm:$0xff]  ;;  %v1392_v20 = vrot.slane %v1289_v41, 1 }
  0xb2   : > { %v4274_v6 = vmul.f32 %v6564_v53, %v6581_v45  ;;  %v4282_v38 = vmul.f32 %v6564_v53, %v6583_v52  ;;  %v6584_v57 = vld [vmem:[#allocation47_spill] sm:$0xff]  ;;  %v4290_v40 = vmul.f32 %v6564_v53, %v6585_v62  ;;  %v6586_v30 = vld [vmem:[#allocation16_spill] sm:$0xff]  ;;  %v6588_v33 = vld [vmem:[#allocation33_spill] sm:$0xff]  ;;  %v1395_v0 = vrot.slane %v4258_v59, 1 }
  0xb3   : > { %v4286_v36 = vmul.f32 %v6564_v53, %v6584_v57  ;;  %v4294_v45 = vmul.f32 %v6564_v53, %v6586_v30  ;;  %v6587_v43 = vld [vmem:[#allocation48_spill] sm:$0xff]  ;;  %v4302_v52 = vmul.f32 %v6564_v53, %v6588_v33  ;;  %v6589_v24 = vld [vmem:[#allocation17_spill] sm:$0xff]  ;;  %v6591_v13 = vld [vmem:[#allocation34_spill] sm:$0xff]  ;;  %v4423_v27 = vsel %vm816_vm1, %v1390_v28, %v1392_v20 }
  0xb4   : > { %v4298_v42 = vmul.f32 %v6564_v53, %v6587_v43  ;;  %v4306_v57 = vmul.f32 %v6564_v53, %v6589_v24  ;;  %v6590_v2 = vld [vmem:[#allocation49_spill] sm:$0xff]  ;;  %v4314_v30 = vmul.f32 %v6564_v53, %v6591_v13  ;;  %v6592_v9 = vld [vmem:[#allocation18_spill] sm:$0xff]  ;;  %v6594_v50 = vld [vmem:[#allocation35_spill] sm:$0xff]  ;;  %v1405_v19 = vrot.slane %v4282_v38, 1 }
  0xb5   : > { %v4310_v62 = vmul.f32 %v6564_v53, %v6590_v2  ;;  %v4318_v43 = vmul.f32 %v6564_v53, %v6592_v9  ;;  %v6593_v17 = vld [vmem:[#allocation50_spill] sm:$0xff]  ;;  %v4326_v24 = vmul.f32 %v6564_v53, %v6594_v50  ;;  %v6595_v49 = vld [vmem:[#allocation19_spill] sm:$0xff]  ;;  %v6597_v34 = vld [vmem:[#allocation36_spill] sm:$0xff]  ;;  %v1409_v56 = vrot.slane %v4290_v40, 1 }
  0xb6   : > { %v4322_v33 = vmul.f32 %v6564_v53, %v6593_v17  ;;  %v4330_v2 = vmul.f32 %v6564_v53, %v6595_v49  ;;  %v6596_v4 = vld [vmem:[#allocation51_spill] sm:$0xff]  ;;  %v4338_v9 = vmul.f32 %v6564_v53, %v6597_v34  ;;  %v6598_v39 = vld [vmem:[#allocation20_spill] sm:$0xff]  ;;  %v6600_v15 = vld [vmem:[#allocation37_spill] sm:$0xff] }
  0xb7   : > { %v4334_v13 = vmul.f32 %v6564_v53, %v6596_v4  ;;  %v4342_v17 = vmul.f32 %v6564_v53, %v6598_v39  ;;  %v6599_v21 = vld [vmem:[#allocation52_spill] sm:$0xff]  ;;  %v4350_v49 = vmul.f32 %v6564_v53, %v6600_v15  ;;  %v6601_v23 = vld [vmem:[#allocation21_spill] sm:$0xff]  ;;  %v6603_v5 = vld [vmem:[#allocation38_spill] sm:$0xff]  ;;  %v1417_v38 = vrot.slane %v4310_v62, 1 }
  0xb8   : > { %v4346_v50 = vmul.f32 %v6564_v53, %v6599_v21  ;;  %v4354_v4 = vmul.f32 %v6564_v53, %v6601_v23  ;;  %v6602_v12 = vld [vmem:[#allocation53_spill] sm:$0xff]  ;;  %v4362_v39 = vmul.f32 %v6564_v53, %v6603_v5  ;;  %v6604_v18 = vld [vmem:[#allocation23_spill] sm:$0xff]  ;;  %v6605_v44 = vld [vmem:[#allocation54_spill] sm:$0xff]  ;;  %v1425_v20 = vrot.slane %v4330_v2, 1 }
  0xb9   : > { %v4358_v34 = vmul.f32 %v6564_v53, %v6602_v12  ;;  %v4366_v21 = vmul.f32 %v6564_v53, %v6604_v18  ;;  %v4370_v15 = vmul.f32 %v6564_v53, %v6605_v44  ;;  %v6606_v26 = vld [vmem:[#allocation39_spill] sm:$0xff]  ;;  %v6607_v31 = vld [vmem:[#allocation24_spill] sm:$0xff]  ;;  %v4390_v44 = vmul.f32 %v6564_v53, %v6524_v54 }
  0xba   : > { %v4374_v23 = vmul.f32 %v6564_v53, %v6606_v26  ;;  %v4378_v12 = vmul.f32 %v6564_v53, %v6607_v31  ;;  %v6608_v51 = vld [vmem:[#allocation55_spill] sm:$0xff]  ;;  %v6609_v61 = vld [vmem:[#allocation40_spill] sm:$0xff]  ;;  %v1377_v31 = vrot.slane %v1280_v46, 1  ;;  %v1387_v54 = vrot.slane %v1286_v22, 1 }
  0xbb   : > { %v4382_v5 = vmul.f32 %v6564_v53, %v6608_v51  ;;  %v4386_v18 = vmul.f32 %v6564_v53, %v6609_v61  ;;  %v6610_v11 = vld [vmem:[#allocation56_spill] sm:$0xff]  ;;  %v1384_v51 = vrot.slane %v1284_v1, 1  ;;  %v1407_v22 = vrot.slane %v4286_v36, 1 }
  0xbc   : > { %v4394_v26 = vmul.f32 %v6564_v53, %v6610_v11  ;;  %v4400_v61 = vsel %vm816_vm1, %v1375_v37, %v1377_v31  ;;  %v4406_v53 = vsel %vm816_vm1, %v1380_v16, %v1382_v8  ;;  %v4413_v10 = vsel %vm816_vm1, %v1385_v25, %v1387_v54 }
  0xbd   : > { %v4410_v46 = vsel %vm816_vm1, %v1384_v51, %v1385_v25  ;;  %v1394_v37 = vrot.slane %v4254_v3, 1  ;;  %v4417_v31 = vsel %vm816_vm1, %v1389_v63, %v1390_v28  ;;  %v1397_v8 = vrot.slane %v4262_v60, 1 }
  0xbe   : > { %v1399_v16 = vrot.slane %v4266_v7, 1  ;;  %v1400_v51 = vrot.slane %v4270_v14, 1  ;;  %v1402_v54 = vrot.slane %v4274_v6, 1  ;;  %v1404_v25 = vrot.slane %v4278_v48, 1 }
  0xbf   : > { %v1396_v29 = vsel %vm816_vm1, %v1394_v37, %v1395_v0  ;;  %v1398_v1 = vsel %vm816_vm1, %v1395_v0, %v1397_v8  ;;  %v1410_v14 = vrot.slane %v4294_v45, 1  ;;  %v1408_v6 = vsel %vm816_vm1, %v1405_v19, %v1407_v22 }
  0xc0   : > { %v1401_v58 = vsel %vm816_vm1, %v1399_v16, %v1400_v51  ;;  %v1403_v7 = vsel %vm816_vm1, %v1400_v51, %v1402_v54  ;;  %v1406_v41 = vsel %vm816_vm1, %v1404_v25, %v1405_v19  ;;  %v1412_v3 = vrot.slane %v4298_v42, 1 }
  0xc1   : > { %v1414_v48 = vrot.slane %v4302_v52, 1  ;;  %v1411_v59 = vsel %vm816_vm1, %v1409_v56, %v1410_v14  ;;  %v1415_v36 = vrot.slane %v4306_v57, 1  ;;  %v1419_v60 = vrot.slane %v4314_v30, 1 }
  0xc2   : > { %v1413_v40 = vsel %vm816_vm1, %v1410_v14, %v1412_v3  ;;  %v1420_v45 = vrot.slane %v4318_v43, 1  ;;  %v1422_v63 = vrot.slane %v4322_v33, 1  ;;  %v1424_v28 = vrot.slane %v4326_v24, 1  ;;  %v6612_v3 = vld [vmem:[#allocation64_spill] sm:$0xff] }
  0xc3   : > { %v1416_v42 = vsel %vm816_vm1, %v1414_v48, %v1415_v36  ;;  %v1418_v52 = vsel %vm816_vm1, %v1415_v36, %v1417_v38  ;;  %v1427_v57 = vrot.slane %v4334_v13, 1  ;;  %v1429_v37 = vrot.slane %v4338_v9, 1  ;;  %v6616_v36 = vld [vmem:[#allocation66_spill] sm:$0xff] }
  0xc4   : > { %v1421_v62 = vsel %vm816_vm1, %v1419_v60, %v1420_v45  ;;  %v1423_v30 = vsel %vm816_vm1, %v1420_v45, %v1422_v63  ;;  %v1430_v43 = vrot.slane %v4342_v17, 1  ;;  %v1426_v33 = vsel %vm816_vm1, %v1424_v28, %v1425_v20  ;;  %v6626_v63 = vld [vmem:[#allocation71_spill] sm:$0xff] }
  0xc5   : > { %v1428_v24 = vsel %vm816_vm1, %v1425_v20, %v1427_v57  ;;  %v1432_v0 = vrot.slane %v4346_v50, 1  ;;  %v1434_v8 = vrot.slane %v4350_v49, 1  ;;  %v1435_v13 = vrot.slane %v4354_v4, 1  ;;  %v6630_v57 = vld [vmem:[#allocation73_spill] sm:$0xff] }
  0xc6   : > { %v1431_v2 = vsel %vm816_vm1, %v1429_v37, %v1430_v43  ;;  %v1437_v16 = vrot.slane %v4358_v34, 1  ;;  %v1439_v51 = vrot.slane %v4362_v39, 1  ;;  %v1440_v17 = vrot.slane %v4366_v21, 1  ;;  %v6632_v37 = vld [vmem:[#allocation74_spill] sm:$0xff] }
  0xc7   : > { %v1433_v9 = vsel %vm816_vm1, %v1430_v43, %v1432_v0  ;;  %v1442_v54 = vrot.slane %v4370_v15, 1  ;;  %v1444_v25 = vrot.slane %v4374_v23, 1  ;;  %v1436_v50 = vsel %vm816_vm1, %v1434_v8, %v1435_v13 }
  0xc8   : > { %v1438_v49 = vsel %vm816_vm1, %v1435_v13, %v1437_v16  ;;  %v1445_v19 = vrot.slane %v4378_v12, 1  ;;  %v1447_v4 = vrot.slane %v4382_v5, 1  ;;  %v1441_v34 = vsel %vm816_vm1, %v1439_v51, %v1440_v17 }
  0xc9   : > { %v1443_v39 = vsel %vm816_vm1, %v1440_v17, %v1442_v54  ;;  %v1449_v22 = vrot.slane %v4386_v18, 1  ;;  %v1450_v21 = vrot.slane %v4390_v44, 1  ;;  %v1452_v56 = vrot.slane %v4394_v26, 1  ;;  %v6614_v44 = vld [vmem:[#allocation65_spill] sm:$0xff] }
  0xca   : > { %v1446_v15 = vsel %vm816_vm1, %v1444_v25, %v1445_v19  ;;  %v1448_v23 = vsel %vm816_vm1, %v1445_v19, %v1447_v4  ;;  %v4481_v14 = vadd.f32 %v4397_v47, %v4131_v35  ;;  %v4486_v12 = vadd.f32 %v4400_v61, %v4134_v32  ;;  %v6618_v35 = vld [vmem:[#allocation67_spill] sm:$0xff]  ;;  %v6620_v32 = vld [vmem:[#allocation68_spill] sm:$0xff] }
  0xcb   : > { %v1451_v5 = vsel %vm816_vm1, %v1449_v22, %v1450_v21  ;;  %v4490_v18 = vadd.f32 %v4403_v55, %v6612_v3  ;;  %v4494_v48 = vadd.f32 %v4406_v53, %v6614_v44  ;;  %v1453_v26 = vsel %vm816_vm1, %v1450_v21, %v1452_v56  ;;  %v6622_v55 = vld [vmem:[#allocation69_spill] sm:$0xff]  ;;  %v6624_v53 = vld [vmem:[#allocation70_spill] sm:$0xff]  ;;  %v6659_v21 = vld [vmem:[#allocation7_spill] sm:$0xff] }
  0xcc   : > { %6611 = vst [vmem:[#allocation62_spill] sm:$0xff] %v4486_v12  ;;  %v4499_v47 = vadd.f32 %v4410_v46, %v6616_v36  ;;  %v4503_v38 = vadd.f32 %v4413_v10, %v6618_v35  ;;  %v4507_v61 = vadd.f32 %v4417_v31, %v6620_v32  ;;  %v4511_v60 = vadd.f32 %v4423_v27, %v6622_v55  ;;  %v6628_v46 = vld [vmem:[#allocation72_spill] sm:$0xff]  ;;  %v6634_v31 = vld [vmem:[#allocation75_spill] sm:$0xff]  ;;  %v6657_v22 = vld [vmem:[#allocation86_spill] sm:$0xff] }
  0xcd   : > { %6613 = vst [vmem:[#allocation63_spill] sm:$0xff] %v4490_v18  ;;  %6615 = vst [vmem:[#allocation8_spill] sm:$0xff] %v4494_v48  ;;  %v4514_v45 = vadd.f32 %v1396_v29, %v6624_v53  ;;  %v4517_v28 = vadd.f32 %v1398_v1, %v6626_v63  ;;  %v4520_v20 = vadd.f32 %v1401_v58, %v6628_v46  ;;  %v6636_v27 = vld [vmem:[#allocation76_spill] sm:$0xff]  ;;  %v6638_v29 = vld [vmem:[#allocation77_spill] sm:$0xff] }
  0xce   : > { %6617 = vst [vmem:[#allocation64_spill] sm:$0xff] %v4499_v47  ;;  %6619 = vst [vmem:[#allocation65_spill] sm:$0xff] %v4503_v38  ;;  %v4523_v10 = vadd.f32 %v1403_v7, %v6630_v57  ;;  %v4526_v43 = vadd.f32 %v1406_v41, %v6632_v37  ;;  %v4529_v0 = vadd.f32 %v1408_v6, %v6634_v31  ;;  %v6640_v1 = vld [vmem:[#allocation78_spill] sm:$0xff]  ;;  %v6642_v58 = vld [vmem:[#allocation79_spill] sm:$0xff] }
  0xcf   : > { %6621 = vst [vmem:[#allocation66_spill] sm:$0xff] %v4507_v61  ;;  %6623 = vst [vmem:[#allocation67_spill] sm:$0xff] %v4511_v60  ;;  %v4532_v8 = vadd.f32 %v1411_v59, %v6636_v27  ;;  %v4535_v13 = vadd.f32 %v1413_v40, %v6638_v29  ;;  %v4538_v16 = vadd.f32 %v1416_v42, %v6640_v1  ;;  %v6644_v7 = vld [vmem:[#allocation80_spill] sm:$0xff]  ;;  %v6646_v41 = vld [vmem:[#allocation81_spill] sm:$0xff] }
  0xd0   : > { %6625 = vst [vmem:[#allocation68_spill] sm:$0xff] %v4514_v45  ;;  %6627 = vst [vmem:[#allocation69_spill] sm:$0xff] %v4517_v28  ;;  %v4541_v51 = vadd.f32 %v1418_v52, %v6642_v58  ;;  %v4544_v17 = vadd.f32 %v1421_v62, %v6644_v7  ;;  %v4547_v54 = vadd.f32 %v1423_v30, %v6646_v41  ;;  %v6648_v6 = vld [vmem:[#allocation82_spill] sm:$0xff]  ;;  %v6650_v59 = vld [vmem:[#allocation83_spill] sm:$0xff] }
  0xd1   : > { %6629 = vst [vmem:[#allocation70_spill] sm:$0xff] %v4520_v20  ;;  %6631 = vst [vmem:[#allocation71_spill] sm:$0xff] %v4523_v10  ;;  %v4550_v25 = vadd.f32 %v1426_v33, %v6648_v6  ;;  %v4553_v19 = vadd.f32 %v1428_v24, %v6650_v59  ;;  %v6652_v40 = vld [vmem:[#allocation84_spill] sm:$0xff]  ;;  %v4561_v42 = vld [vmem:[%s6115_s3 + $0x8] ss:$0 sm:$0xff]  ;;  %v4567_v30 = vadd.f32 %v1436_v50, %v6657_v22 }
  0xd2   : > { %6633 = vst [vmem:[#allocation72_spill] sm:$0xff] %v4526_v43  ;;  %6635 = vst [vmem:[#allocation73_spill] sm:$0xff] %v4529_v0  ;;  %v4556_v4 = vadd.f32 %v1431_v2, %v6652_v40  ;;  %v6655_v52 = vld [vmem:[#allocation85_spill] sm:$0xff]  ;;  %v4570_v33 = vadd.f32 %v1438_v49, %v6659_v21  ;;  %v6661_v56 = vld [vmem:[#allocation6_spill] sm:$0xff] }
  0xd3   : > { %6637 = vst [vmem:[#allocation74_spill] sm:$0xff] %v4532_v8  ;;  %6639 = vst [vmem:[#allocation75_spill] sm:$0xff] %v4535_v13  ;;  %v4564_v62 = vadd.f32 %v1433_v9, %v6655_v52  ;;  %v4573_v24 = vadd.f32 %v1441_v34, %v6661_v56  ;;  %v6663_v3 = vld [vmem:[#allocation57_spill] sm:$0xff]  ;;  %v6665_v44 = vld [vmem:[#allocation58_spill] sm:$0xff] }
  0xd4   : > { %6641 = vst [vmem:[#allocation76_spill] sm:$0xff] %v4538_v16  ;;  %6643 = vst [vmem:[#allocation77_spill] sm:$0xff] %v4541_v51  ;;  %v4576_v2 = vadd.f32 %v1443_v39, %v6663_v3  ;;  %v4579_v36 = vadd.f32 %v1446_v15, %v6665_v44  ;;  %v6667_v35 = vld [vmem:[#allocation59_spill] sm:$0xff]  ;;  %v6669_v9 = vld [vmem:[#allocation60_spill] sm:$0xff] }
  0xd5   : > { %6645 = vst [vmem:[#allocation78_spill] sm:$0xff] %v4544_v17  ;;  %6647 = vst [vmem:[#allocation79_spill] sm:$0xff] %v4547_v54  ;;  %v4582_v32 = vadd.f32 %v1448_v23, %v6667_v35  ;;  %v4585_v55 = vadd.f32 %v1451_v5, %v6669_v9  ;;  %v6671_v50 = vld [vmem:[#allocation61_spill] sm:$0xff]  ;;  %v6673_v49 = vld [vmem:[#allocation3_spill] sm:$0xff] }
  0xd6   : > { %6649 = vst [vmem:[#allocation80_spill] sm:$0xff] %v4550_v25  ;;  %6651 = vst [vmem:[#allocation81_spill] sm:$0xff] %v4553_v19  ;;  %v4588_v53 = vadd.f32 %v1453_v26, %v6671_v50  ;;  %v1520_v63 = vsub.s32 5, %v6673_v49  ;;  %v1764_v34 = vsub.s32 6, %v6673_v49  ;;  %v1832_v46 = vsub.s32 7, %v6673_v49  ;;  %v6674_v39 = vld [vmem:[#allocation25_spill] sm:$0xff] }
  0xd7   : > { %6653 = vst [vmem:[#allocation82_spill] sm:$0xff] %v4556_v4  ;;  %6654 = vst [vmem:[#allocation83_spill] sm:$0xff] %v4561_v42  ;;  %v4595_v57 = vmul.f32 %v4561_v42, %v6674_v39  ;;  %v6676_v15 = vld [vmem:[#allocation10_spill] sm:$0xff]  ;;  %v6684_v7 = vld [vmem:[#allocation11_spill] sm:$0xff] }
  0xd8   : > { %6656 = vst [vmem:[#allocation84_spill] sm:$0xff] %v4564_v62  ;;  %6658 = vst [vmem:[#allocation85_spill] sm:$0xff] %v4567_v30  ;;  %v4599_v23 = vmul.f32 %v4561_v42, %v6676_v15  ;;  %v6678_v37 = vld [vmem:[#allocation42_spill] sm:$0xff]  ;;  %v4618_v41 = vmul.f32 %v4561_v42, %v6684_v7  ;;  %v6686_v6 = vld [vmem:[#allocation43_spill] sm:$0xff] }
  0xd9   : > { %6660 = vst [vmem:[#allocation86_spill] sm:$0xff] %v4570_v33  ;;  %6662 = vst [vmem:[#allocation7_spill] sm:$0xff] %v4573_v24  ;;  %v4603_v5 = vmul.f32 %v4561_v42, %v6678_v37  ;;  %v6680_v26 = vld [vmem:[#allocation26_spill] sm:$0xff]  ;;  %v4622_v59 = vmul.f32 %v4561_v42, %v6686_v6  ;;  %v6688_v40 = vld [vmem:[#allocation28_spill] sm:$0xff] }
  0xda   : > { %6664 = vst [vmem:[#allocation6_spill] sm:$0xff] %v4576_v2  ;;  %6666 = vst [vmem:[#allocation57_spill] sm:$0xff] %v4579_v36  ;;  %v4607_v31 = vmul.f32 %v4561_v42, %v6680_v26  ;;  %v2811_v27 = vld [vmem:[%s6115_s3] sm:$0xff]  ;;  %v4626_v52 = vmul.f32 %v4561_v42, %v6688_v40  ;;  %v6690_v22 = vld [vmem:[#allocation12_spill] sm:$0xff] }
  0xdb   : > { %6668 = vst [vmem:[#allocation58_spill] sm:$0xff] %v4582_v32  ;;  %6670 = vst [vmem:[#allocation59_spill] sm:$0xff] %v4585_v55  ;;  %v1521_v29 = vrot.slane %v2811_v27, %v1520_v63  ;;  %v4612_v1 = vrot.slane %v2811_v27, %v1764_v34  ;;  %v4614_v58 = vrot.slane %v2811_v27, %v1832_v46  ;;  %v6692_v56 = vld [vmem:[#allocation44_spill] sm:$0xff]  ;;  %v6694_v44 = vld [vmem:[#allocation22_spill] sm:$0xff] }
  0xdc   : > { %6672 = vst [vmem:[#allocation60_spill] sm:$0xff] %v4588_v53  ;;  %6675 = vst [vmem:[#allocation61_spill] sm:$0xff] %v4595_v57  ;;  %v4630_v21 = vmul.f32 %v4561_v42, %v6690_v22  ;;  %v4634_v3 = vmul.f32 %v4561_v42, %v6692_v56  ;;  %v6695_v9 = vld [vmem:[#allocation9_spill] sm:$0xff]  ;;  %v6700_v42 = vld [vmem:[#allocation30_spill] sm:$0xff] }
  0xdd   : > { %6677 = vst [vmem:[#allocation3_spill] sm:$0xff] %v4599_v23  ;;  %6679 = vst [vmem:[#allocation87_spill] sm:$0xff] %v4603_v5  ;;  %v1522_v35 = vmul.f32 %v1521_v29, %v6694_v44  ;;  %v1523_v50 = vmul.f32 %v1521_v29, %v6695_v9  ;;  %v6696_v49 = vld [vmem:[#allocation41_spill] sm:$0xff]  ;;  %v1525_v34 = vmul.f32 %v1521_v29, %v6674_v39 }
  0xde   : > { %6681 = vst [vmem:[#allocation88_spill] sm:$0xff] %v4607_v31  ;;  %6682 = vst [vmem:[#allocation89_spill] sm:$0xff] %v4612_v1  ;;  %v1524_v63 = vmul.f32 %v1521_v29, %v6696_v49  ;;  %v1526_v46 = vmul.f32 %v1521_v29, %v6676_v15  ;;  %v1527_v27 = vmul.f32 %v1521_v29, %v6678_v37  ;;  %v6697_v49 = vld [vmem:[#allocation29_spill] sm:$0xff] }
  0xdf   : > { %6683 = vst [vmem:[#allocation90_spill] sm:$0xff] %v4614_v58  ;;  %6685 = vst [vmem:[#allocation91_spill] sm:$0xff] %v4618_v41  ;;  %v4647_v44 = vmul.f32 %v1521_v29, %v6690_v22  ;;  %v4650_v9 = vmul.f32 %v1521_v29, %v6692_v56  ;;  %v4653_v41 = vmul.f32 %v1521_v29, %v6697_v49  ;;  %v6698_v31 = vld [vmem:[#allocation13_spill] sm:$0xff]  ;;  %v6702_v22 = vld [vmem:[#allocation46_spill] sm:$0xff]  ;;  %v1619_v60 = vrot.slane %v1523_v50, 2 }
  0xe0   : > { %6687 = vst [vmem:[#allocation92_spill] sm:$0xff] %v4622_v59  ;;  %6689 = vst [vmem:[#allocation93_spill] sm:$0xff] %v4626_v52  ;;  %v1528_v52 = vmul.f32 %v1521_v29, %v6680_v26  ;;  %v1530_v59 = vmul.f32 %v1521_v29, %v6686_v6  ;;  %v4656_v5 = vmul.f32 %v1521_v29, %v6698_v31  ;;  %v6699_v23 = vld [vmem:[#allocation45_spill] sm:$0xff]  ;;  %v6701_v6 = vld [vmem:[#allocation14_spill] sm:$0xff]  ;;  %v1621_v61 = vrot.slane %v1524_v63, 2 }
  0xe1   : > { %6691 = vst [vmem:[#allocation94_spill] sm:$0xff] %v4630_v21  ;;  %6693 = vst [vmem:[#allocation95_spill] sm:$0xff] %v4634_v3  ;;  %v1529_v21 = vmul.f32 %v1521_v29, %v6684_v7  ;;  %v1531_v3 = vmul.f32 %v1521_v29, %v6688_v40  ;;  %v4659_v57 = vmul.f32 %v1521_v29, %v6699_v23  ;;  %v6703_v56 = vld [vmem:[#allocation31_spill] sm:$0xff]  ;;  %v6706_v23 = vld [vmem:[#allocation32_spill] sm:$0xff]  ;;  %v1624_v38 = vrot.slane %v1526_v46, 2 }
  0xe2   : > { %v4662_v37 = vmul.f32 %v1521_v29, %v6700_v42  ;;  %v4665_v58 = vmul.f32 %v1521_v29, %v6701_v6  ;;  %v4668_v40 = vmul.f32 %v1521_v29, %v6702_v22  ;;  %v4671_v7 = vmul.f32 %v1521_v29, %v6703_v56  ;;  %v6704_v49 = vld [vmem:[#allocation15_spill] sm:$0xff]  ;;  %v6707_v42 = vld [vmem:[#allocation16_spill] sm:$0xff]  ;;  %v6709_v22 = vld [vmem:[#allocation33_spill] sm:$0xff] }
  0xe3   : > { %v4674_v26 = vmul.f32 %v1521_v29, %v6704_v49  ;;  %v6705_v31 = vld [vmem:[#allocation47_spill] sm:$0xff]  ;;  %v4680_v1 = vmul.f32 %v1521_v29, %v6706_v23  ;;  %v4683_v39 = vmul.f32 %v1521_v29, %v6707_v42  ;;  %v6708_v6 = vld [vmem:[#allocation48_spill] sm:$0xff]  ;;  %v4689_v55 = vmul.f32 %v1521_v29, %v6709_v22  ;;  %v6710_v56 = vld [vmem:[#allocation17_spill] sm:$0xff] }
  0xe4   : > { %v4677_v15 = vmul.f32 %v1521_v29, %v6705_v31  ;;  %v4686_v53 = vmul.f32 %v1521_v29, %v6708_v6  ;;  %v4692_v32 = vmul.f32 %v1521_v29, %v6710_v56  ;;  %v6711_v49 = vld [vmem:[#allocation49_spill] sm:$0xff]  ;;  %v6712_v31 = vld [vmem:[#allocation34_spill] sm:$0xff]  ;;  %v6715_v6 = vld [vmem:[#allocation35_spill] sm:$0xff]  ;;  %v1626_v47 = vrot.slane %v1527_v27, 2 }
  0xe5   : > { %v4695_v36 = vmul.f32 %v1521_v29, %v6711_v49  ;;  %v4698_v2 = vmul.f32 %v1521_v29, %v6712_v31  ;;  %v6713_v23 = vld [vmem:[#allocation18_spill] sm:$0xff]  ;;  %v4707_v30 = vmul.f32 %v1521_v29, %v6715_v6  ;;  %v6716_v22 = vld [vmem:[#allocation19_spill] sm:$0xff]  ;;  %v6718_v49 = vld [vmem:[#allocation36_spill] sm:$0xff]  ;;  %v1629_v48 = vrot.slane %v1529_v21, 2 }
  0xe6   : > { %v4701_v24 = vmul.f32 %v1521_v29, %v6713_v23  ;;  %v6714_v42 = vld [vmem:[#allocation50_spill] sm:$0xff]  ;;  %v4710_v62 = vmul.f32 %v1521_v29, %v6716_v22  ;;  %v6717_v56 = vld [vmem:[#allocation51_spill] sm:$0xff]  ;;  %v4716_v19 = vmul.f32 %v1521_v29, %v6718_v49  ;;  %v6719_v31 = vld [vmem:[#allocation20_spill] sm:$0xff]  ;;  %v1631_v18 = vrot.slane %v1530_v59, 2 }
  0xe7   : > { %v4704_v33 = vmul.f32 %v1521_v29, %v6714_v42  ;;  %v4713_v4 = vmul.f32 %v1521_v29, %v6717_v56  ;;  %v4719_v25 = vmul.f32 %v1521_v29, %v6719_v31  ;;  %v6720_v23 = vld [vmem:[#allocation52_spill] sm:$0xff]  ;;  %v6721_v42 = vld [vmem:[#allocation37_spill] sm:$0xff]  ;;  %v6724_v56 = vld [vmem:[#allocation38_spill] sm:$0xff]  ;;  %v1654_v50 = vrot.slane %v4683_v39, 2 }
  0xe8   : > { %v4722_v54 = vmul.f32 %v1521_v29, %v6720_v23  ;;  %v4725_v17 = vmul.f32 %v1521_v29, %v6721_v42  ;;  %v6722_v6 = vld [vmem:[#allocation21_spill] sm:$0xff]  ;;  %v4734_v13 = vmul.f32 %v1521_v29, %v6724_v56  ;;  %v6725_v49 = vld [vmem:[#allocation23_spill] sm:$0xff]  ;;  %v6726_v31 = vld [vmem:[#allocation54_spill] sm:$0xff]  ;;  %v4777_v21 = vsel %vm1061_vm2, %v1629_v48, %v1631_v18 }
  0xe9   : > { %v4728_v51 = vmul.f32 %v1521_v29, %v6722_v6  ;;  %v6723_v22 = vld [vmem:[#allocation53_spill] sm:$0xff]  ;;  %v4737_v8 = vmul.f32 %v1521_v29, %v6725_v49  ;;  %v4740_v0 = vmul.f32 %v1521_v29, %v6726_v31  ;;  %v6727_v23 = vld [vmem:[#allocation39_spill] sm:$0xff]  ;;  %v6728_v42 = vld [vmem:[#allocation24_spill] sm:$0xff]  ;;  %v4758_v49 = vmul.f32 %v1521_v29, %v6610_v11 }
  0xea   : > { %v4731_v16 = vmul.f32 %v1521_v29, %v6723_v22  ;;  %v4743_v43 = vmul.f32 %v1521_v29, %v6727_v23  ;;  %v4746_v10 = vmul.f32 %v1521_v29, %v6728_v42  ;;  %v6729_v6 = vld [vmem:[#allocation55_spill] sm:$0xff]  ;;  %v6730_v22 = vld [vmem:[#allocation40_spill] sm:$0xff]  ;;  %v1618_v31 = vrot.slane %v1522_v35, 2  ;;  %v6787_v11 = vld [vmem:[#allocation17_spill] sm:$0xff] }
  0xeb   : > { %v4749_v20 = vmul.f32 %v1521_v29, %v6729_v6  ;;  %v4752_v28 = vmul.f32 %v1521_v29, %v6730_v22  ;;  %v6731_v56 = vld [vmem:[#allocation27_spill] sm:$0xff]  ;;  %v1623_v23 = vrot.slane %v1525_v34, 2  ;;  %v1628_v42 = vrot.slane %v1528_v52, 2 }
  0xec   : > { %v4755_v45 = vmul.f32 %v1521_v29, %v6731_v56  ;;  %v4761_v6 = vsel %vm1061_vm2, %v1618_v31, %v1619_v60  ;;  %v4764_v22 = vsel %vm1061_vm2, %v1619_v60, %v1621_v61  ;;  %v1633_v56 = vrot.slane %v1531_v3, 2 }
  0xed   : > { %v4767_v12 = vsel %vm1061_vm2, %v1623_v23, %v1624_v38  ;;  %v4770_v29 = vsel %vm1061_vm2, %v1624_v38, %v1626_v47  ;;  %v4773_v35 = vsel %vm1061_vm2, %v1628_v42, %v1629_v48  ;;  %v1634_v52 = vrot.slane %v4647_v44, 2 }
  0xee   : > { %v1636_v31 = vrot.slane %v4650_v9, 2  ;;  %v1638_v61 = vrot.slane %v4653_v41, 2  ;;  %v1639_v60 = vrot.slane %v4656_v5, 2  ;;  %v1641_v47 = vrot.slane %v4659_v57, 2 }
  0xef   : > { %v4783_v23 = vsel %vm1061_vm2, %v1633_v56, %v1634_v52  ;;  %v1643_v38 = vrot.slane %v4662_v37, 2  ;;  %v1644_v42 = vrot.slane %v4665_v58, 2  ;;  %v1646_v48 = vrot.slane %v4668_v40, 2 }
  0xf0   : > { %v4789_v59 = vsel %vm1061_vm2, %v1634_v52, %v1636_v31  ;;  %v4792_v18 = vsel %vm1061_vm2, %v1638_v61, %v1639_v60  ;;  %v1648_v41 = vrot.slane %v4671_v7, 2  ;;  %v1642_v5 = vsel %vm1061_vm2, %v1639_v60, %v1641_v47 }
  0xf1   : > { %v1645_v56 = vsel %vm1061_vm2, %v1643_v38, %v1644_v42  ;;  %v1649_v57 = vrot.slane %v4674_v26, 2  ;;  %v1651_v37 = vrot.slane %v4677_v15, 2  ;;  %v1647_v58 = vsel %vm1061_vm2, %v1644_v42, %v1646_v48 }
  0xf2   : > { %v1653_v3 = vrot.slane %v4680_v1, 2  ;;  %v1656_v63 = vrot.slane %v4686_v53, 2  ;;  %v1658_v34 = vrot.slane %v4689_v55, 2  ;;  %v1659_v46 = vrot.slane %v4692_v32, 2 }
  0xf3   : > { %v1650_v40 = vsel %vm1061_vm2, %v1648_v41, %v1649_v57  ;;  %v1652_v7 = vsel %vm1061_vm2, %v1649_v57, %v1651_v37  ;;  %v1661_v27 = vrot.slane %v4695_v36, 2  ;;  %v1663_v1 = vrot.slane %v4698_v2, 2 }
  0xf4   : > { %v1655_v26 = vsel %vm1061_vm2, %v1653_v3, %v1654_v50  ;;  %v1657_v15 = vsel %vm1061_vm2, %v1654_v50, %v1656_v63  ;;  %v1660_v39 = vsel %vm1061_vm2, %v1658_v34, %v1659_v46  ;;  %v1664_v53 = vrot.slane %v4701_v24, 2  ;;  %v6733_v63 = vld [vmem:[#allocation63_spill] sm:$0xff] }
  0xf5   : > { %v1666_v44 = vrot.slane %v4704_v33, 2  ;;  %v1668_v9 = vrot.slane %v4707_v30, 2  ;;  %v1662_v55 = vsel %vm1061_vm2, %v1659_v46, %v1661_v27  ;;  %v1669_v32 = vrot.slane %v4710_v62, 2  ;;  %v6735_v46 = vld [vmem:[#allocation64_spill] sm:$0xff]  ;;  %v6737_v27 = vld [vmem:[#allocation66_spill] sm:$0xff] }
  0xf6   : > { %v1671_v52 = vrot.slane %v4713_v4, 2  ;;  %v1673_v31 = vrot.slane %v4716_v19, 2  ;;  %v1665_v36 = vsel %vm1061_vm2, %v1663_v1, %v1664_v53  ;;  %v1674_v61 = vrot.slane %v4719_v25, 2 }
  0xf7   : > { %v1667_v2 = vsel %vm1061_vm2, %v1664_v53, %v1666_v44  ;;  %v1676_v24 = vrot.slane %v4722_v54, 2  ;;  %v1670_v33 = vsel %vm1061_vm2, %v1668_v9, %v1669_v32  ;;  %v1678_v60 = vrot.slane %v4725_v17, 2  ;;  %v6738_v53 = vld [vmem:[#allocation67_spill] sm:$0xff]  ;;  %v6739_v44 = vld [vmem:[#allocation68_spill] sm:$0xff]  ;;  %v6740_v9 = vld [vmem:[#allocation69_spill] sm:$0xff] }
  0xf8   : > { %v1672_v30 = vsel %vm1061_vm2, %v1669_v32, %v1671_v52  ;;  %v1679_v62 = vrot.slane %v4728_v51, 2  ;;  %v1675_v4 = vsel %vm1061_vm2, %v1673_v31, %v1674_v61  ;;  %v1681_v47 = vrot.slane %v4731_v16, 2 }
  0xf9   : > { %v1677_v19 = vsel %vm1061_vm2, %v1674_v61, %v1676_v24  ;;  %v1683_v38 = vrot.slane %v4734_v13, 2  ;;  %v1684_v54 = vrot.slane %v4737_v8, 2  ;;  %v1686_v42 = vrot.slane %v4740_v0, 2  ;;  %v6743_v61 = vld [vmem:[#allocation72_spill] sm:$0xff]  ;;  %v6744_v24 = vld [vmem:[#allocation73_spill] sm:$0xff] }
  0xfa   : > { %v1680_v25 = vsel %vm1061_vm2, %v1678_v60, %v1679_v62  ;;  %v1688_v48 = vrot.slane %v4743_v43, 2  ;;  %v1682_v17 = vsel %vm1061_vm2, %v1679_v62, %v1681_v47  ;;  %v1689_v51 = vrot.slane %v4746_v10, 2  ;;  %v6732_v10 = vld [vmem:[#allocation62_spill] sm:$0xff] }
  0xfb   : > { %v1691_v41 = vrot.slane %v4749_v20, 2  ;;  %v1693_v57 = vrot.slane %v4752_v28, 2  ;;  %v1685_v16 = vsel %vm1061_vm2, %v1683_v38, %v1684_v54  ;;  %v1687_v13 = vsel %vm1061_vm2, %v1684_v54, %v1686_v42 }
  0xfc   : > { %v1694_v37 = vrot.slane %v4755_v45, 2  ;;  %v1696_v8 = vrot.slane %v4758_v49, 2  ;;  %v1690_v0 = vsel %vm1061_vm2, %v1688_v48, %v1689_v51  ;;  %v4848_v3 = vadd.f32 %v4761_v6, %v4481_v14  ;;  %v6734_v49 = vld [vmem:[#allocation8_spill] sm:$0xff]  ;;  %v6736_v6 = vld [vmem:[#allocation65_spill] sm:$0xff] }
  0xfd   : > { %v1692_v43 = vsel %vm1061_vm2, %v1689_v51, %v1691_v41  ;;  %v4852_v20 = vadd.f32 %v4764_v22, %v6732_v10  ;;  %v4858_v45 = vadd.f32 %v4767_v12, %v6733_v63  ;;  %v4862_v34 = vadd.f32 %v4770_v29, %v6734_v49 }
  0xfe   : > { %v1695_v28 = vsel %vm1061_vm2, %v1693_v57, %v1694_v37  ;;  %v1697_v50 = vsel %vm1061_vm2, %v1694_v37, %v1696_v8  ;;  %v4866_v14 = vadd.f32 %v4773_v35, %v6735_v46  ;;  %v4870_v22 = vadd.f32 %v4777_v21, %v6736_v6  ;;  %v6741_v35 = vld [vmem:[#allocation70_spill] sm:$0xff]  ;;  %v6742_v21 = vld [vmem:[#allocation71_spill] sm:$0xff] }
  0xff   : > { %v4874_v1 = vadd.f32 %v4783_v23, %v6737_v27  ;;  %v4878_v12 = vadd.f32 %v4789_v59, %v6738_v53  ;;  %v4882_v29 = vadd.f32 %v4792_v18, %v6739_v44  ;;  %v4885_v32 = vadd.f32 %v1642_v5, %v6740_v9  ;;  %v6745_v59 = vld [vmem:[#allocation74_spill] sm:$0xff]  ;;  %v6746_v18 = vld [vmem:[#allocation75_spill] sm:$0xff]  ;;  %v6747_v5 = vld [vmem:[#allocation76_spill] sm:$0xff] }
 0x100   : > { %v4888_v52 = vadd.f32 %v1645_v56, %v6741_v35  ;;  %v4891_v31 = vadd.f32 %v1647_v58, %v6742_v21  ;;  %v4894_v23 = vadd.f32 %v1650_v40, %v6743_v61  ;;  %v4897_v60 = vadd.f32 %v1652_v7, %v6744_v24  ;;  %v6748_v56 = vld [vmem:[#allocation77_spill] sm:$0xff]  ;;  %v6749_v58 = vld [vmem:[#allocation78_spill] sm:$0xff]  ;;  %v6750_v40 = vld [vmem:[#allocation79_spill] sm:$0xff] }
 0x101   : > { %v4900_v62 = vadd.f32 %v1655_v26, %v6745_v59  ;;  %v4903_v47 = vadd.f32 %v1657_v15, %v6746_v18  ;;  %v4906_v38 = vadd.f32 %v1660_v39, %v6747_v5  ;;  %v4909_v54 = vadd.f32 %v1662_v55, %v6748_v56  ;;  %v6751_v7 = vld [vmem:[#allocation80_spill] sm:$0xff]  ;;  %v6752_v26 = vld [vmem:[#allocation81_spill] sm:$0xff]  ;;  %v6753_v15 = vld [vmem:[#allocation82_spill] sm:$0xff] }
 0x102   : > { %v4912_v42 = vadd.f32 %v1665_v36, %v6749_v58  ;;  %v4915_v48 = vadd.f32 %v1667_v2, %v6750_v40  ;;  %v4918_v51 = vadd.f32 %v1670_v33, %v6751_v7  ;;  %v4921_v41 = vadd.f32 %v1672_v30, %v6752_v26  ;;  %v6754_v39 = vld [vmem:[#allocation84_spill] sm:$0xff]  ;;  %v6755_v55 = vld [vmem:[#allocation85_spill] sm:$0xff]  ;;  %v6757_v36 = vld [vmem:[#allocation86_spill] sm:$0xff] }
 0x103   : > { %v4924_v57 = vadd.f32 %v1675_v4, %v6753_v15  ;;  %v4927_v37 = vadd.f32 %v1677_v19, %v6754_v39  ;;  %v4930_v8 = vadd.f32 %v1680_v25, %v6755_v55  ;;  %v4933_v10 = vadd.f32 %v1682_v17, %v6757_v36  ;;  %v6759_v2 = vld [vmem:[#allocation7_spill] sm:$0xff]  ;;  %v6761_v33 = vld [vmem:[#allocation6_spill] sm:$0xff]  ;;  %v6763_v30 = vld [vmem:[#allocation57_spill] sm:$0xff] }
 0x104   : > { %v4936_v63 = vadd.f32 %v1685_v16, %v6759_v2  ;;  %v4939_v49 = vadd.f32 %v1687_v13, %v6761_v33  ;;  %v4942_v46 = vadd.f32 %v1690_v0, %v6763_v30  ;;  %v6765_v4 = vld [vmem:[#allocation58_spill] sm:$0xff]  ;;  %v6767_v19 = vld [vmem:[#allocation59_spill] sm:$0xff]  ;;  %v6769_v25 = vld [vmem:[#allocation60_spill] sm:$0xff] }
 0x105   : > { %6756 = vst [vmem:[#allocation22_spill] sm:$0xff] %v4930_v8  ;;  %6758 = vst [vmem:[#allocation9_spill] sm:$0xff] %v4933_v10  ;;  %v4945_v6 = vadd.f32 %v1692_v43, %v6765_v4  ;;  %v4948_v27 = vadd.f32 %v1695_v28, %v6767_v19  ;;  %v4951_v53 = vadd.f32 %v1697_v50, %v6769_v25  ;;  %v6771_v17 = vld [vmem:[#allocation25_spill] sm:$0xff]  ;;  %v6773_v16 = vld [vmem:[#allocation10_spill] sm:$0xff] }
 0x106   : > { %6760 = vst [vmem:[#allocation41_spill] sm:$0xff] %v4936_v63  ;;  %6762 = vst [vmem:[#allocation62_spill] sm:$0xff] %v4939_v49  ;;  %v6772_v44 = vld [vmem:[#allocation89_spill] sm:$0xff]  ;;  %v6774_v13 = vld [vmem:[#allocation26_spill] sm:$0xff] }
 0x107   : > { %6764 = vst [vmem:[#allocation63_spill] sm:$0xff] %v4942_v46  ;;  %6766 = vst [vmem:[#allocation8_spill] sm:$0xff] %v4945_v6  ;;  %v1766_v9 = vmul.f32 %v6772_v44, %v6771_v17  ;;  %v1767_v35 = vmul.f32 %v6772_v44, %v6773_v16  ;;  %v1768_v21 = vmul.f32 %v6772_v44, %v6774_v13  ;;  %v6775_v0 = vld [vmem:[#allocation11_spill] sm:$0xff]  ;;  %v6776_v43 = vld [vmem:[#allocation28_spill] sm:$0xff] }
 0x108   : > { %6768 = vst [vmem:[#allocation64_spill] sm:$0xff] %v4948_v27  ;;  %6770 = vst [vmem:[#allocation65_spill] sm:$0xff] %v4951_v53  ;;  %v1769_v61 = vmul.f32 %v6772_v44, %v6775_v0  ;;  %v1770_v24 = vmul.f32 %v6772_v44, %v6776_v43  ;;  %v6777_v28 = vld [vmem:[#allocation12_spill] sm:$0xff]  ;;  %v6778_v50 = vld [vmem:[#allocation29_spill] sm:$0xff] }
 0x109   : > { %v1771_v59 = vmul.f32 %v6772_v44, %v6777_v28  ;;  %v1772_v18 = vmul.f32 %v6772_v44, %v6778_v50  ;;  %v6779_v5 = vld [vmem:[#allocation13_spill] sm:$0xff]  ;;  %v6780_v58 = vld [vmem:[#allocation30_spill] sm:$0xff]  ;;  %v6782_v15 = vld [vmem:[#allocation31_spill] sm:$0xff] }
 0x10a   : > { %v1773_v56 = vmul.f32 %v6772_v44, %v6779_v5  ;;  %v1774_v40 = vmul.f32 %v6772_v44, %v6780_v58  ;;  %v6781_v7 = vld [vmem:[#allocation14_spill] sm:$0xff]  ;;  %v1776_v39 = vmul.f32 %v6772_v44, %v6782_v15  ;;  %v6783_v55 = vld [vmem:[#allocation15_spill] sm:$0xff]  ;;  %v6784_v2 = vld [vmem:[#allocation32_spill] sm:$0xff]  ;;  %v1781_v58 = vmul.f32 %v6772_v44, %v6787_v11 }
 0x10b   : > { %v1775_v26 = vmul.f32 %v6772_v44, %v6781_v7  ;;  %v1777_v36 = vmul.f32 %v6772_v44, %v6783_v55  ;;  %v1778_v33 = vmul.f32 %v6772_v44, %v6784_v2  ;;  %v6785_v30 = vld [vmem:[#allocation16_spill] sm:$0xff]  ;;  %v6786_v19 = vld [vmem:[#allocation33_spill] sm:$0xff]  ;;  %v6788_v5 = vld [vmem:[#allocation34_spill] sm:$0xff] }
 0x10c   : > { %v1779_v4 = vmul.f32 %v6772_v44, %v6785_v30  ;;  %v1780_v25 = vmul.f32 %v6772_v44, %v6786_v19  ;;  %v1782_v7 = vmul.f32 %v6772_v44, %v6788_v5  ;;  %v6789_v50 = vld [vmem:[#allocation18_spill] sm:$0xff]  ;;  %v6790_v28 = vld [vmem:[#allocation35_spill] sm:$0xff]  ;;  %v6792_v0 = vld [vmem:[#allocation36_spill] sm:$0xff] }
 0x10d   : > { %v1783_v15 = vmul.f32 %v6772_v44, %v6789_v50  ;;  %v1784_v55 = vmul.f32 %v6772_v44, %v6790_v28  ;;  %v6791_v43 = vld [vmem:[#allocation19_spill] sm:$0xff]  ;;  %v1786_v30 = vmul.f32 %v6772_v44, %v6792_v0  ;;  %v6793_v13 = vld [vmem:[#allocation20_spill] sm:$0xff]  ;;  %v6794_v16 = vld [vmem:[#allocation37_spill] sm:$0xff] }
 0x10e   : > { %v1785_v2 = vmul.f32 %v6772_v44, %v6791_v43  ;;  %v1787_v19 = vmul.f32 %v6772_v44, %v6793_v13  ;;  %v1788_v11 = vmul.f32 %v6772_v44, %v6794_v16  ;;  %v6795_v17 = vld [vmem:[#allocation21_spill] sm:$0xff]  ;;  %v6796_v53 = vld [vmem:[#allocation38_spill] sm:$0xff]  ;;  %v6797_v27 = vld [vmem:[#allocation23_spill] sm:$0xff] }
 0x10f   : > { %v1789_v5 = vmul.f32 %v6772_v44, %v6795_v17  ;;  %v1790_v50 = vmul.f32 %v6772_v44, %v6796_v53  ;;  %v1791_v28 = vmul.f32 %v6772_v44, %v6797_v27  ;;  %v6798_v6 = vld [vmem:[#allocation39_spill] sm:$0xff]  ;;  %v6799_v46 = vld [vmem:[#allocation24_spill] sm:$0xff]  ;;  %v6803_v8 = vld [vmem:[#allocation2_spill] sm:$0xff]  ;;  %v5018_v27 = vadd.f32 %v1766_v9, %v4848_v3 }
 0x110   : > { %v1792_v43 = vmul.f32 %v6772_v44, %v6798_v6  ;;  %v1793_v0 = vmul.f32 %v6772_v44, %v6799_v46  ;;  %v6800_v49 = vld [vmem:[#allocation40_spill] sm:$0xff]  ;;  %v6801_v63 = vld [vmem:[#allocation27_spill] sm:$0xff]  ;;  %v1797_v53 = vmul.f32 %v6772_v44, %v6803_v8  ;;  %v5021_v6 = vadd.f32 %v1767_v35, %v4852_v20 }
 0x111   : > { %v1794_v13 = vmul.f32 %v6772_v44, %v6800_v49  ;;  %v1795_v16 = vmul.f32 %v6772_v44, %v6801_v63  ;;  %v6802_v10 = vld [vmem:[#allocation4_spill] sm:$0xff]  ;;  %v5024_v46 = vadd.f32 %v1768_v21, %v4858_v45  ;;  %v5027_v49 = vadd.f32 %v1769_v61, %v4862_v34 }
 0x112   : > { %v1796_v17 = vmul.f32 %v6772_v44, %v6802_v10  ;;  %6804 = vst [vmem:[#allocation66_spill] sm:$0xff] %v5021_v6  ;;  %v5030_v63 = vadd.f32 %v1770_v24, %v4866_v14  ;;  %v5033_v10 = vadd.f32 %v1771_v59, %v4870_v22  ;;  %v5036_v44 = vadd.f32 %v1772_v18, %v4874_v1 }
 0x113   : > { %6805 = vst [vmem:[#allocation67_spill] sm:$0xff] %v5024_v46  ;;  %6806 = vst [vmem:[#allocation68_spill] sm:$0xff] %v5027_v49  ;;  %v5039_v3 = vadd.f32 %v1773_v56, %v4878_v12  ;;  %v5042_v20 = vadd.f32 %v1774_v40, %v4882_v29  ;;  %v5045_v45 = vadd.f32 %v1775_v26, %v4885_v32 }
 0x114   : > { %6807 = vst [vmem:[#allocation69_spill] sm:$0xff] %v5030_v63  ;;  %6808 = vst [vmem:[#allocation70_spill] sm:$0xff] %v5033_v10  ;;  %v5048_v34 = vadd.f32 %v1776_v39, %v4888_v52  ;;  %v5051_v14 = vadd.f32 %v1777_v36, %v4891_v31  ;;  %v5054_v22 = vadd.f32 %v1778_v33, %v4894_v23 }
 0x115   : > { %6809 = vst [vmem:[#allocation71_spill] sm:$0xff] %v5036_v44  ;;  %6810 = vst [vmem:[#allocation72_spill] sm:$0xff] %v5039_v3  ;;  %v5057_v1 = vadd.f32 %v1779_v4, %v4897_v60  ;;  %v5060_v12 = vadd.f32 %v1780_v25, %v4900_v62  ;;  %v5063_v29 = vadd.f32 %v1781_v58, %v4903_v47 }
 0x116   : > { %6811 = vst [vmem:[#allocation73_spill] sm:$0xff] %v5042_v20  ;;  %6812 = vst [vmem:[#allocation74_spill] sm:$0xff] %v5045_v45  ;;  %v5066_v32 = vadd.f32 %v1782_v7, %v4906_v38  ;;  %v5069_v52 = vadd.f32 %v1783_v15, %v4909_v54  ;;  %v5072_v31 = vadd.f32 %v1784_v55, %v4912_v42  ;;  %v6827_v54 = vld [vmem:[#allocation22_spill] sm:$0xff]  ;;  %v6829_v42 = vld [vmem:[#allocation9_spill] sm:$0xff] }
 0x117   : > { %6813 = vst [vmem:[#allocation75_spill] sm:$0xff] %v5048_v34  ;;  %6814 = vst [vmem:[#allocation76_spill] sm:$0xff] %v5051_v14  ;;  %v5075_v23 = vadd.f32 %v1785_v2, %v4915_v48  ;;  %v5078_v60 = vadd.f32 %v1786_v30, %v4918_v51  ;;  %v5081_v62 = vadd.f32 %v1787_v19, %v4921_v41  ;;  %v6831_v48 = vld [vmem:[#allocation41_spill] sm:$0xff]  ;;  %v6833_v51 = vld [vmem:[#allocation62_spill] sm:$0xff] }
 0x118   : > { %6815 = vst [vmem:[#allocation77_spill] sm:$0xff] %v5054_v22  ;;  %6816 = vst [vmem:[#allocation78_spill] sm:$0xff] %v5057_v1  ;;  %v5084_v47 = vadd.f32 %v1788_v11, %v4924_v57  ;;  %v5087_v38 = vadd.f32 %v1789_v5, %v4927_v37  ;;  %v5090_v9 = vadd.f32 %v1790_v50, %v6827_v54  ;;  %v6835_v41 = vld [vmem:[#allocation63_spill] sm:$0xff]  ;;  %v6837_v11 = vld [vmem:[#allocation8_spill] sm:$0xff] }
 0x119   : > { %6817 = vst [vmem:[#allocation79_spill] sm:$0xff] %v5060_v12  ;;  %6818 = vst [vmem:[#allocation80_spill] sm:$0xff] %v5063_v29  ;;  %v5093_v35 = vadd.f32 %v1791_v28, %v6829_v42  ;;  %v5096_v21 = vadd.f32 %v1792_v43, %v6831_v48  ;;  %v5099_v61 = vadd.f32 %v1793_v0, %v6833_v51  ;;  %v6839_v37 = vld [vmem:[#allocation64_spill] sm:$0xff]  ;;  %v6841_v50 = vld [vmem:[#allocation65_spill] sm:$0xff] }
 0x11a   : > { %6819 = vst [vmem:[#allocation81_spill] sm:$0xff] %v5066_v32  ;;  %6820 = vst [vmem:[#allocation82_spill] sm:$0xff] %v5069_v52  ;;  %v5102_v24 = vadd.f32 %v1794_v13, %v6835_v41  ;;  %v5105_v57 = vadd.f32 %v1795_v16, %v6837_v11  ;;  %v5108_v59 = vadd.f32 %v1796_v17, %v6839_v37  ;;  %v6843_v28 = vld [vmem:[#allocation25_spill] sm:$0xff]  ;;  %v6844_v5 = vld [vmem:[#allocation90_spill] sm:$0xff] }
 0x11b   : > { %6821 = vst [vmem:[#allocation84_spill] sm:$0xff] %v5072_v31  ;;  %6822 = vst [vmem:[#allocation85_spill] sm:$0xff] %v5075_v23  ;;  %v5111_v18 = vadd.f32 %v1797_v53, %v6841_v50  ;;  %v1834_v56 = vmul.f32 %v6844_v5, %v6843_v28  ;;  %v6845_v43 = vld [vmem:[#allocation10_spill] sm:$0xff]  ;;  %v6848_v16 = vld [vmem:[#allocation11_spill] sm:$0xff] }
 0x11c   : > { %6823 = vst [vmem:[#allocation86_spill] sm:$0xff] %v5078_v60  ;;  %6824 = vst [vmem:[#allocation7_spill] sm:$0xff] %v5081_v62  ;;  %v1835_v58 = vmul.f32 %v6844_v5, %v6845_v43  ;;  %v6846_v0 = vld [vmem:[#allocation42_spill] sm:$0xff]  ;;  %v1838_v26 = vmul.f32 %v6844_v5, %v6848_v16  ;;  %v6849_v17 = vld [vmem:[#allocation43_spill] sm:$0xff] }
 0x11d   : > { %6825 = vst [vmem:[#allocation6_spill] sm:$0xff] %v5084_v47  ;;  %6826 = vst [vmem:[#allocation57_spill] sm:$0xff] %v5087_v38  ;;  %v1836_v40 = vmul.f32 %v6844_v5, %v6846_v0  ;;  %v6847_v13 = vld [vmem:[#allocation26_spill] sm:$0xff]  ;;  %v1839_v15 = vmul.f32 %v6844_v5, %v6849_v17  ;;  %v6850_v53 = vld [vmem:[#allocation28_spill] sm:$0xff]  ;;  %v1930_v45 = vrot.slane %v1834_v56, 1 }
 0x11e   : > { %6828 = vst [vmem:[#allocation58_spill] sm:$0xff] %v5090_v9  ;;  %6830 = vst [vmem:[#allocation59_spill] sm:$0xff] %v5093_v35  ;;  %v1837_v7 = vmul.f32 %v6844_v5, %v6847_v13  ;;  %v1840_v39 = vmul.f32 %v6844_v5, %v6850_v53  ;;  %v6851_v55 = vld [vmem:[#allocation12_spill] sm:$0xff]  ;;  %v6853_v30 = vld [vmem:[#allocation29_spill] sm:$0xff]  ;;  %v1931_v20 = vrot.slane %v1835_v58, 1  ;;  %v1936_v44 = vrot.slane %v1838_v26, 1 }
 0x11f   : > { %6832 = vst [vmem:[#allocation60_spill] sm:$0xff] %v5096_v21  ;;  %6834 = vst [vmem:[#allocation89_spill] sm:$0xff] %v5099_v61  ;;  %v1841_v36 = vmul.f32 %v6844_v5, %v6851_v55  ;;  %v6852_v2 = vld [vmem:[#allocation44_spill] sm:$0xff]  ;;  %v1843_v4 = vmul.f32 %v6844_v5, %v6853_v30  ;;  %v6854_v19 = vld [vmem:[#allocation13_spill] sm:$0xff]  ;;  %v1938_v10 = vrot.slane %v1839_v15, 1 }
 0x120   : > { %6836 = vst [vmem:[#allocation22_spill] sm:$0xff] %v5102_v24  ;;  %6838 = vst [vmem:[#allocation9_spill] sm:$0xff] %v5105_v57  ;;  %v1842_v33 = vmul.f32 %v6844_v5, %v6852_v2  ;;  %v5135_v25 = vmul.f32 %v6844_v5, %v6854_v19  ;;  %v6855_v54 = vld [vmem:[#allocation45_spill] sm:$0xff]  ;;  %v6856_v48 = vld [vmem:[#allocation30_spill] sm:$0xff]  ;;  %v1935_v3 = vrot.slane %v1837_v7, 1  ;;  %v5286_v49 = vsel %vm816_vm1, %v1930_v45, %v1931_v20 }
 0x121   : > { %6840 = vst [vmem:[#allocation41_spill] sm:$0xff] %v5108_v59  ;;  %6842 = vst [vmem:[#allocation62_spill] sm:$0xff] %v5111_v18  ;;  %v5139_v42 = vmul.f32 %v6844_v5, %v6855_v54  ;;  %v5143_v51 = vmul.f32 %v6844_v5, %v6856_v48  ;;  %v6857_v41 = vld [vmem:[#allocation14_spill] sm:$0xff]  ;;  %v6859_v28 = vld [vmem:[#allocation31_spill] sm:$0xff]  ;;  %v1941_v63 = vrot.slane %v1841_v36, 1  ;;  %v1945_v46 = vrot.slane %v1843_v4, 1 }
 0x122   : > { %v5147_v11 = vmul.f32 %v6844_v5, %v6857_v41  ;;  %v6858_v37 = vld [vmem:[#allocation46_spill] sm:$0xff]  ;;  %v5155_v43 = vmul.f32 %v6844_v5, %v6859_v28  ;;  %v6860_v0 = vld [vmem:[#allocation15_spill] sm:$0xff]  ;;  %v6862_v53 = vld [vmem:[#allocation32_spill] sm:$0xff]  ;;  %v5292_v6 = vsel %vm816_vm1, %v1935_v3, %v1936_v44  ;;  %v1946_v58 = vrot.slane %v5135_v25, 1 }
 0x123   : > { %v5151_v50 = vmul.f32 %v6844_v5, %v6858_v37  ;;  %v5159_v13 = vmul.f32 %v6844_v5, %v6860_v0  ;;  %v6861_v16 = vld [vmem:[#allocation47_spill] sm:$0xff]  ;;  %v5167_v55 = vmul.f32 %v6844_v5, %v6862_v53  ;;  %v6863_v2 = vld [vmem:[#allocation16_spill] sm:$0xff]  ;;  %v6865_v48 = vld [vmem:[#allocation33_spill] sm:$0xff]  ;;  %v1948_v45 = vrot.slane %v5139_v42, 1 }
 0x124   : > { %v5163_v17 = vmul.f32 %v6844_v5, %v6861_v16  ;;  %v5171_v37 = vmul.f32 %v6844_v5, %v6863_v2  ;;  %v6864_v41 = vld [vmem:[#allocation48_spill] sm:$0xff]  ;;  %v5179_v0 = vmul.f32 %v6844_v5, %v6865_v48  ;;  %v6866_v54 = vld [vmem:[#allocation17_spill] sm:$0xff]  ;;  %v6868_v30 = vld [vmem:[#allocation34_spill] sm:$0xff]  ;;  %v5308_v3 = vsel %vm816_vm1, %v1945_v46, %v1946_v58 }
 0x125   : > { %v5175_v28 = vmul.f32 %v6844_v5, %v6864_v41  ;;  %v5183_v16 = vmul.f32 %v6844_v5, %v6866_v54  ;;  %v6867_v19 = vld [vmem:[#allocation49_spill] sm:$0xff]  ;;  %v5191_v2 = vmul.f32 %v6844_v5, %v6868_v30  ;;  %v6869_v18 = vld [vmem:[#allocation18_spill] sm:$0xff]  ;;  %v6871_v57 = vld [vmem:[#allocation35_spill] sm:$0xff]  ;;  %v5314_v7 = vsel %vm816_vm1, %v1946_v58, %v1948_v45 }
 0x126   : > { %v5187_v53 = vmul.f32 %v6844_v5, %v6867_v19  ;;  %v5195_v41 = vmul.f32 %v6844_v5, %v6869_v18  ;;  %v6870_v59 = vld [vmem:[#allocation50_spill] sm:$0xff]  ;;  %v5203_v54 = vmul.f32 %v6844_v5, %v6871_v57  ;;  %v6872_v24 = vld [vmem:[#allocation19_spill] sm:$0xff]  ;;  %v6874_v21 = vld [vmem:[#allocation36_spill] sm:$0xff]  ;;  %v1960_v26 = vrot.slane %v5167_v55, 1 }
 0x127   : > { %v5199_v48 = vmul.f32 %v6844_v5, %v6870_v59  ;;  %v5207_v19 = vmul.f32 %v6844_v5, %v6872_v24  ;;  %v6873_v61 = vld [vmem:[#allocation51_spill] sm:$0xff]  ;;  %v5215_v18 = vmul.f32 %v6844_v5, %v6874_v21  ;;  %v6875_v35 = vld [vmem:[#allocation20_spill] sm:$0xff]  ;;  %v6877_v38 = vld [vmem:[#allocation37_spill] sm:$0xff]  ;;  %v1963_v36 = vrot.slane %v5175_v28, 1 }
 0x128   : > { %v5211_v30 = vmul.f32 %v6844_v5, %v6873_v61  ;;  %v5219_v59 = vmul.f32 %v6844_v5, %v6875_v35  ;;  %v6876_v9 = vld [vmem:[#allocation52_spill] sm:$0xff]  ;;  %v5227_v24 = vmul.f32 %v6844_v5, %v6877_v38  ;;  %v6878_v47 = vld [vmem:[#allocation21_spill] sm:$0xff]  ;;  %v6880_v60 = vld [vmem:[#allocation38_spill] sm:$0xff]  ;;  %v1965_v4 = vrot.slane %v5179_v0, 1 }
 0x129   : > { %v5223_v57 = vmul.f32 %v6844_v5, %v6876_v9  ;;  %v5231_v61 = vmul.f32 %v6844_v5, %v6878_v47  ;;  %v6879_v62 = vld [vmem:[#allocation53_spill] sm:$0xff]  ;;  %v5239_v35 = vmul.f32 %v6844_v5, %v6880_v60  ;;  %v6881_v23 = vld [vmem:[#allocation23_spill] sm:$0xff]  ;;  %v6882_v31 = vld [vmem:[#allocation54_spill] sm:$0xff]  ;;  %v1966_v25 = vrot.slane %v5183_v16, 1 }
 0x12a   : > { %v5235_v21 = vmul.f32 %v6844_v5, %v6879_v62  ;;  %v5243_v9 = vmul.f32 %v6844_v5, %v6881_v23  ;;  %v5247_v38 = vmul.f32 %v6844_v5, %v6882_v31  ;;  %v6883_v52 = vld [vmem:[#allocation39_spill] sm:$0xff]  ;;  %v6884_v32 = vld [vmem:[#allocation24_spill] sm:$0xff]  ;;  %v6890_v34 = vld [vmem:[#allocation5_spill] sm:$0xff]  ;;  %v1968_v42 = vrot.slane %v5187_v53, 1 }
 0x12b   : > { %v5251_v47 = vmul.f32 %v6844_v5, %v6883_v52  ;;  %v5255_v62 = vmul.f32 %v6844_v5, %v6884_v32  ;;  %v6885_v29 = vld [vmem:[#allocation55_spill] sm:$0xff]  ;;  %v6886_v12 = vld [vmem:[#allocation40_spill] sm:$0xff]  ;;  %v1975_v0 = vrot.slane %v5203_v54, 1  ;;  %v1978_v53 = vrot.slane %v5211_v30, 1 }
 0x12c   : > { %v5259_v60 = vmul.f32 %v6844_v5, %v6885_v29  ;;  %v5263_v23 = vmul.f32 %v6844_v5, %v6886_v12  ;;  %v6887_v1 = vld [vmem:[#allocation27_spill] sm:$0xff]  ;;  %v6888_v22 = vld [vmem:[#allocation56_spill] sm:$0xff]  ;;  %v5279_v29 = vmul.f32 %v6844_v5, %v6803_v8  ;;  %v5283_v12 = vmul.f32 %v6844_v5, %v6890_v34 }
 0x12d   : > { %v5267_v31 = vmul.f32 %v6844_v5, %v6887_v1  ;;  %v5271_v52 = vmul.f32 %v6844_v5, %v6888_v22  ;;  %v6889_v14 = vld [vmem:[#allocation4_spill] sm:$0xff]  ;;  %v1933_v1 = vrot.slane %v1836_v40, 1  ;;  %v1940_v22 = vrot.slane %v1840_v39, 1 }
 0x12e   : > { %v5275_v32 = vmul.f32 %v6844_v5, %v6889_v14  ;;  %v1943_v8 = vrot.slane %v1842_v33, 1  ;;  %v5295_v5 = vsel %vm816_vm1, %v1936_v44, %v1938_v10  ;;  %v1953_v10 = vrot.slane %v5151_v50, 1 }
 0x12f   : > { %v5289_v14 = vsel %vm816_vm1, %v1931_v20, %v1933_v1  ;;  %v5298_v56 = vsel %vm816_vm1, %v1940_v22, %v1941_v63  ;;  %v1950_v20 = vrot.slane %v5143_v51, 1  ;;  %v1951_v1 = vrot.slane %v5147_v11, 1 }
 0x130   : > { %v5302_v40 = vsel %vm816_vm1, %v1941_v63, %v1943_v8  ;;  %v1955_v44 = vrot.slane %v5155_v43, 1  ;;  %v1956_v22 = vrot.slane %v5159_v13, 1  ;;  %v1958_v63 = vrot.slane %v5163_v17, 1 }
 0x131   : > { %v5317_v8 = vsel %vm816_vm1, %v1950_v20, %v1951_v1  ;;  %v1954_v15 = vsel %vm816_vm1, %v1951_v1, %v1953_v10  ;;  %v1961_v39 = vrot.slane %v5171_v37, 1  ;;  %v1970_v50 = vrot.slane %v5191_v2, 1 }
 0x132   : > { %v1957_v46 = vsel %vm816_vm1, %v1955_v44, %v1956_v22  ;;  %v1959_v33 = vsel %vm816_vm1, %v1956_v22, %v1958_v63  ;;  %v1971_v43 = vrot.slane %v5195_v41, 1  ;;  %v1967_v37 = vsel %vm816_vm1, %v1965_v4, %v1966_v25 }
 0x133   : > { %v1962_v51 = vsel %vm816_vm1, %v1960_v26, %v1961_v39  ;;  %v1964_v11 = vsel %vm816_vm1, %v1961_v39, %v1963_v36  ;;  %v1969_v28 = vsel %vm816_vm1, %v1966_v25, %v1968_v42  ;;  %v1973_v13 = vrot.slane %v5199_v48, 1  ;;  %v6892_v42 = vld [vmem:[#allocation67_spill] sm:$0xff] }
 0x134   : > { %v1972_v16 = vsel %vm816_vm1, %v1970_v50, %v1971_v43  ;;  %v1976_v17 = vrot.slane %v5207_v19, 1  ;;  %v1980_v55 = vrot.slane %v5215_v18, 1  ;;  %v1981_v41 = vrot.slane %v5219_v59, 1 }
 0x135   : > { %v1974_v2 = vsel %vm816_vm1, %v1971_v43, %v1973_v13  ;;  %v1983_v58 = vrot.slane %v5223_v57, 1  ;;  %v1985_v45 = vrot.slane %v5227_v24, 1  ;;  %v1986_v20 = vrot.slane %v5231_v61, 1  ;;  %v6894_v43 = vld [vmem:[#allocation69_spill] sm:$0xff]  ;;  %v6897_v13 = vld [vmem:[#allocation71_spill] sm:$0xff] }
 0x136   : > { %v1977_v48 = vsel %vm816_vm1, %v1975_v0, %v1976_v17  ;;  %v1979_v54 = vsel %vm816_vm1, %v1976_v17, %v1978_v53  ;;  %v1988_v19 = vrot.slane %v5235_v21, 1  ;;  %v1982_v30 = vsel %vm816_vm1, %v1980_v55, %v1981_v41  ;;  %v6899_v17 = vld [vmem:[#allocation72_spill] sm:$0xff]  ;;  %v6901_v53 = vld [vmem:[#allocation73_spill] sm:$0xff]  ;;  %v6903_v55 = vld [vmem:[#allocation74_spill] sm:$0xff] }
 0x137   : > { %v1984_v18 = vsel %vm816_vm1, %v1981_v41, %v1983_v58  ;;  %v1990_v1 = vrot.slane %v5239_v35, 1  ;;  %v1991_v59 = vrot.slane %v5243_v9, 1  ;;  %v1987_v57 = vsel %vm816_vm1, %v1985_v45, %v1986_v20 }
 0x138   : > { %v1989_v24 = vsel %vm816_vm1, %v1986_v20, %v1988_v19  ;;  %v1993_v10 = vrot.slane %v5247_v38, 1  ;;  %v1995_v44 = vrot.slane %v5251_v47, 1  ;;  %v1996_v21 = vrot.slane %v5255_v62, 1  ;;  %v6909_v20 = vld [vmem:[#allocation77_spill] sm:$0xff]  ;;  %v6911_v19 = vld [vmem:[#allocation78_spill] sm:$0xff] }
 0x139   : > { %v1992_v61 = vsel %vm816_vm1, %v1990_v1, %v1991_v59  ;;  %v1998_v22 = vrot.slane %v5259_v60, 1  ;;  %v2000_v63 = vrot.slane %v5263_v23, 1  ;;  %v2001_v9 = vrot.slane %v5267_v31, 1  ;;  %v6891_v31 = vld [vmem:[#allocation66_spill] sm:$0xff] }
 0x13a   : > { %v1994_v35 = vsel %vm816_vm1, %v1991_v59, %v1993_v10  ;;  %v2003_v26 = vrot.slane %v5271_v52, 1  ;;  %v2005_v39 = vrot.slane %v5275_v32, 1  ;;  %v1997_v38 = vsel %vm816_vm1, %v1995_v44, %v1996_v21 }
 0x13b   : > { %v1999_v47 = vsel %vm816_vm1, %v1996_v21, %v1998_v22  ;;  %v2006_v36 = vrot.slane %v5279_v29, 1  ;;  %v2008_v62 = vrot.slane %v5283_v12, 1  ;;  %v2002_v60 = vsel %vm816_vm1, %v2000_v63, %v2001_v9  ;;  %v6893_v12 = vld [vmem:[#allocation68_spill] sm:$0xff] }
 0x13c   : > { %v2004_v23 = vsel %vm816_vm1, %v2001_v9, %v2003_v26  ;;  %v5373_v4 = vadd.f32 %v5286_v49, %v5018_v27  ;;  %v5377_v52 = vadd.f32 %v5289_v14, %v6891_v31  ;;  %v5383_v29 = vadd.f32 %v5292_v6, %v6892_v42  ;;  %v6895_v27 = vld [vmem:[#allocation70_spill] sm:$0xff] }
 0x13d   : > { %v2007_v32 = vsel %vm816_vm1, %v2005_v39, %v2006_v36  ;;  %v2009_v25 = vsel %vm816_vm1, %v2006_v36, %v2008_v62  ;;  %v5387_v50 = vadd.f32 %v5295_v5, %v6893_v12  ;;  %v5391_v49 = vadd.f32 %v5298_v56, %v6894_v43  ;;  %v6905_v56 = vld [vmem:[#allocation75_spill] sm:$0xff] }
 0x13e   : > { %v5395_v14 = vadd.f32 %v5302_v40, %v6895_v27  ;;  %v5399_v0 = vadd.f32 %v5308_v3, %v6897_v13  ;;  %v5403_v6 = vadd.f32 %v5314_v7, %v6899_v17  ;;  %v5407_v5 = vadd.f32 %v5317_v8, %v6901_v53  ;;  %v6907_v40 = vld [vmem:[#allocation76_spill] sm:$0xff]  ;;  %v6913_v7 = vld [vmem:[#allocation79_spill] sm:$0xff] }
 0x13f   : > { %v5410_v41 = vadd.f32 %v1954_v15, %v6903_v55  ;;  %v5413_v58 = vadd.f32 %v1957_v46, %v6905_v56  ;;  %v5416_v45 = vadd.f32 %v1959_v33, %v6907_v40  ;;  %v5419_v3 = vadd.f32 %v1962_v51, %v6909_v20  ;;  %v6915_v8 = vld [vmem:[#allocation80_spill] sm:$0xff]  ;;  %v6917_v15 = vld [vmem:[#allocation81_spill] sm:$0xff]  ;;  %v6919_v46 = vld [vmem:[#allocation82_spill] sm:$0xff] }
 0x140   : > { %6896 = vst [vmem:[#allocation63_spill] sm:$0xff] %v5395_v14  ;;  %6898 = vst [vmem:[#allocation8_spill] sm:$0xff] %v5399_v0  ;;  %v5422_v1 = vadd.f32 %v1964_v11, %v6911_v19  ;;  %v5425_v59 = vadd.f32 %v1967_v37, %v6913_v7  ;;  %v5428_v10 = vadd.f32 %v1969_v28, %v6915_v8  ;;  %v6921_v33 = vld [vmem:[#allocation84_spill] sm:$0xff]  ;;  %v6923_v51 = vld [vmem:[#allocation85_spill] sm:$0xff] }
 0x141   : > { %6900 = vst [vmem:[#allocation64_spill] sm:$0xff] %v5403_v6  ;;  %6902 = vst [vmem:[#allocation65_spill] sm:$0xff] %v5407_v5  ;;  %v5431_v44 = vadd.f32 %v1972_v16, %v6917_v15  ;;  %v5434_v21 = vadd.f32 %v1974_v2, %v6919_v46  ;;  %v5437_v22 = vadd.f32 %v1977_v48, %v6921_v33  ;;  %v6925_v11 = vld [vmem:[#allocation86_spill] sm:$0xff]  ;;  %v6927_v37 = vld [vmem:[#allocation7_spill] sm:$0xff] }
 0x142   : > { %6904 = vst [vmem:[#allocation25_spill] sm:$0xff] %v5410_v41  ;;  %6906 = vst [vmem:[#allocation90_spill] sm:$0xff] %v5413_v58  ;;  %v5440_v63 = vadd.f32 %v1979_v54, %v6923_v51  ;;  %v5443_v9 = vadd.f32 %v1982_v30, %v6925_v11  ;;  %v5446_v26 = vadd.f32 %v1984_v18, %v6927_v37  ;;  %v6929_v28 = vld [vmem:[#allocation6_spill] sm:$0xff]  ;;  %v6931_v16 = vld [vmem:[#allocation57_spill] sm:$0xff] }
 0x143   : > { %6908 = vst [vmem:[#allocation10_spill] sm:$0xff] %v5416_v45  ;;  %6910 = vst [vmem:[#allocation42_spill] sm:$0xff] %v5419_v3  ;;  %v5449_v39 = vadd.f32 %v1987_v57, %v6929_v28  ;;  %v5452_v36 = vadd.f32 %v1989_v24, %v6931_v16  ;;  %v6933_v2 = vld [vmem:[#allocation58_spill] sm:$0xff]  ;;  %v6935_v48 = vld [vmem:[#allocation59_spill] sm:$0xff] }
 0x144   : > { %6912 = vst [vmem:[#allocation26_spill] sm:$0xff] %v5422_v1  ;;  %6914 = vst [vmem:[#allocation11_spill] sm:$0xff] %v5425_v59  ;;  %v5455_v62 = vadd.f32 %v1992_v61, %v6933_v2  ;;  %v5458_v31 = vadd.f32 %v1994_v35, %v6935_v48  ;;  %v6937_v54 = vld [vmem:[#allocation60_spill] sm:$0xff]  ;;  %v6939_v30 = vld [vmem:[#allocation89_spill] sm:$0xff] }
 0x145   : > { %6916 = vst [vmem:[#allocation43_spill] sm:$0xff] %v5428_v10  ;;  %6918 = vst [vmem:[#allocation28_spill] sm:$0xff] %v5431_v44  ;;  %v5461_v42 = vadd.f32 %v1997_v38, %v6937_v54  ;;  %v5464_v12 = vadd.f32 %v1999_v47, %v6939_v30  ;;  %v6941_v18 = vld [vmem:[#allocation22_spill] sm:$0xff]  ;;  %v6943_v57 = vld [vmem:[#allocation9_spill] sm:$0xff] }
 0x146   : > { %6920 = vst [vmem:[#allocation12_spill] sm:$0xff] %v5434_v21  ;;  %6922 = vst [vmem:[#allocation44_spill] sm:$0xff] %v5437_v22  ;;  %v5467_v43 = vadd.f32 %v2002_v60, %v6941_v18  ;;  %v5470_v27 = vadd.f32 %v2004_v23, %v6943_v57  ;;  %v6945_v24 = vld [vmem:[#allocation41_spill] sm:$0xff]  ;;  %v6947_v61 = vld [vmem:[#allocation62_spill] sm:$0xff] }
 0x147   : > { %6924 = vst [vmem:[#allocation5_spill] sm:$0xff] %v5440_v63  ;;  %6926 = vst [vmem:[#allocation66_spill] sm:$0xff] %v5443_v9  ;;  %v5473_v13 = vadd.f32 %v2007_v32, %v6945_v24  ;;  %v5476_v17 = vadd.f32 %v2009_v25, %v6947_v61  ;;  %v6949_v35 = vld [vmem:[#allocation29_spill] sm:$0xff]  ;;  %v6950_v53 = vld [vmem:[#allocation83_spill] sm:$0xff] }
 0x148   : > { %6928 = vst [vmem:[#allocation67_spill] sm:$0xff] %v5446_v26  ;;  %6930 = vst [vmem:[#allocation68_spill] sm:$0xff] %v5449_v39  ;;  %v2087_v55 = vmul.f32 %v6950_v53, %v6949_v35  ;;  %v6951_v38 = vld [vmem:[#allocation13_spill] sm:$0xff]  ;;  %v6953_v40 = vld [vmem:[#allocation30_spill] sm:$0xff] }
 0x149   : > { %6932 = vst [vmem:[#allocation69_spill] sm:$0xff] %v5452_v36  ;;  %6934 = vst [vmem:[#allocation70_spill] sm:$0xff] %v5455_v62  ;;  %v5482_v56 = vmul.f32 %v6950_v53, %v6951_v38  ;;  %v6952_v47 = vld [vmem:[#allocation45_spill] sm:$0xff]  ;;  %v5490_v23 = vmul.f32 %v6950_v53, %v6953_v40  ;;  %v6954_v32 = vld [vmem:[#allocation14_spill] sm:$0xff] }
 0x14a   : > { %6936 = vst [vmem:[#allocation71_spill] sm:$0xff] %v5458_v31  ;;  %6938 = vst [vmem:[#allocation72_spill] sm:$0xff] %v5461_v42  ;;  %v5486_v60 = vmul.f32 %v6950_v53, %v6952_v47  ;;  %v5494_v20 = vmul.f32 %v6950_v53, %v6954_v32  ;;  %v6955_v25 = vld [vmem:[#allocation46_spill] sm:$0xff]  ;;  %v6956_v7 = vld [vmem:[#allocation31_spill] sm:$0xff] }
 0x14b   : > { %6940 = vst [vmem:[#allocation73_spill] sm:$0xff] %v5464_v12  ;;  %6942 = vst [vmem:[#allocation74_spill] sm:$0xff] %v5467_v43  ;;  %v5498_v19 = vmul.f32 %v6950_v53, %v6955_v25  ;;  %v5502_v8 = vmul.f32 %v6950_v53, %v6956_v7  ;;  %v6957_v15 = vld [vmem:[#allocation15_spill] sm:$0xff]  ;;  %v6959_v11 = vld [vmem:[#allocation32_spill] sm:$0xff] }
 0x14c   : > { %6944 = vst [vmem:[#allocation75_spill] sm:$0xff] %v5470_v27  ;;  %6946 = vst [vmem:[#allocation76_spill] sm:$0xff] %v5473_v13  ;;  %v5506_v46 = vmul.f32 %v6950_v53, %v6957_v15  ;;  %v6958_v33 = vld [vmem:[#allocation47_spill] sm:$0xff]  ;;  %v5514_v37 = vmul.f32 %v6950_v53, %v6959_v11  ;;  %v6960_v28 = vld [vmem:[#allocation16_spill] sm:$0xff] }
 0x14d   : > { %6948 = vst [vmem:[#allocation77_spill] sm:$0xff] %v5476_v17  ;;  %v5510_v51 = vmul.f32 %v6950_v53, %v6958_v33  ;;  %v5518_v16 = vmul.f32 %v6950_v53, %v6960_v28  ;;  %v6961_v2 = vld [vmem:[#allocation48_spill] sm:$0xff]  ;;  %v6962_v54 = vld [vmem:[#allocation33_spill] sm:$0xff]  ;;  %v6965_v35 = vld [vmem:[#allocation34_spill] sm:$0xff] }
 0x14e   : > { %v5522_v48 = vmul.f32 %v6950_v53, %v6961_v2  ;;  %v5526_v30 = vmul.f32 %v6950_v53, %v6962_v54  ;;  %v6963_v18 = vld [vmem:[#allocation17_spill] sm:$0xff]  ;;  %v5538_v38 = vmul.f32 %v6950_v53, %v6965_v35  ;;  %v6966_v47 = vld [vmem:[#allocation18_spill] sm:$0xff]  ;;  %v6968_v7 = vld [vmem:[#allocation35_spill] sm:$0xff] }
 0x14f   : > { %v5530_v57 = vmul.f32 %v6950_v53, %v6963_v18  ;;  %v6964_v24 = vld [vmem:[#allocation49_spill] sm:$0xff]  ;;  %v5542_v40 = vmul.f32 %v6950_v53, %v6966_v47  ;;  %v6967_v32 = vld [vmem:[#allocation50_spill] sm:$0xff]  ;;  %v5550_v15 = vmul.f32 %v6950_v53, %v6968_v7  ;;  %v6969_v33 = vld [vmem:[#allocation19_spill] sm:$0xff] }
 0x150   : > { %v5534_v61 = vmul.f32 %v6950_v53, %v6964_v24  ;;  %v5546_v25 = vmul.f32 %v6950_v53, %v6967_v32  ;;  %v5554_v11 = vmul.f32 %v6950_v53, %v6969_v33  ;;  %v6970_v28 = vld [vmem:[#allocation51_spill] sm:$0xff]  ;;  %v6971_v54 = vld [vmem:[#allocation36_spill] sm:$0xff]  ;;  %v6974_v7 = vld [vmem:[#allocation37_spill] sm:$0xff] }
 0x151   : > { %v5558_v2 = vmul.f32 %v6950_v53, %v6970_v28  ;;  %v5562_v18 = vmul.f32 %v6950_v53, %v6971_v54  ;;  %v6972_v24 = vld [vmem:[#allocation20_spill] sm:$0xff]  ;;  %v5574_v33 = vmul.f32 %v6950_v53, %v6974_v7  ;;  %v6975_v17 = vld [vmem:[#allocation21_spill] sm:$0xff]  ;;  %v6977_v27 = vld [vmem:[#allocation38_spill] sm:$0xff] }
 0x152   : > { %v5566_v35 = vmul.f32 %v6950_v53, %v6972_v24  ;;  %v6973_v47 = vld [vmem:[#allocation52_spill] sm:$0xff]  ;;  %v5578_v28 = vmul.f32 %v6950_v53, %v6975_v17  ;;  %v6976_v13 = vld [vmem:[#allocation53_spill] sm:$0xff]  ;;  %v5586_v24 = vmul.f32 %v6950_v53, %v6977_v27  ;;  %v6978_v43 = vld [vmem:[#allocation23_spill] sm:$0xff] }
 0x153   : > { %v5570_v32 = vmul.f32 %v6950_v53, %v6973_v47  ;;  %v5582_v54 = vmul.f32 %v6950_v53, %v6976_v13  ;;  %v5590_v47 = vmul.f32 %v6950_v53, %v6978_v43  ;;  %v6979_v12 = vld [vmem:[#allocation54_spill] sm:$0xff]  ;;  %v6980_v42 = vld [vmem:[#allocation39_spill] sm:$0xff]  ;;  %v6981_v31 = vld [vmem:[#allocation24_spill] sm:$0xff] }
 0x154   : > { %v5594_v7 = vmul.f32 %v6950_v53, %v6979_v12  ;;  %v5598_v17 = vmul.f32 %v6950_v53, %v6980_v42  ;;  %v5602_v13 = vmul.f32 %v6950_v53, %v6981_v31  ;;  %v6982_v62 = vld [vmem:[#allocation55_spill] sm:$0xff]  ;;  %v6983_v36 = vld [vmem:[#allocation40_spill] sm:$0xff]  ;;  %v6987_v63 = vld [vmem:[#allocation2_spill] sm:$0xff] }
 0x155   : > { %v5606_v27 = vmul.f32 %v6950_v53, %v6982_v62  ;;  %v5610_v43 = vmul.f32 %v6950_v53, %v6983_v36  ;;  %v6984_v39 = vld [vmem:[#allocation27_spill] sm:$0xff]  ;;  %v6985_v26 = vld [vmem:[#allocation56_spill] sm:$0xff]  ;;  %v5626_v62 = vmul.f32 %v6950_v53, %v6987_v63  ;;  %v5630_v36 = vmul.f32 %v6950_v53, %v6890_v34  ;;  %v6988_v22 = vld [vmem:[#allocation61_spill] sm:$0xff] }
 0x156   : > { %v5614_v12 = vmul.f32 %v6950_v53, %v6984_v39  ;;  %v5618_v42 = vmul.f32 %v6950_v53, %v6985_v26  ;;  %v6986_v9 = vld [vmem:[#allocation4_spill] sm:$0xff]  ;;  %v2174_v21 = vrot.slane %v6988_v22, 2  ;;  %v6989_v39 = vld [vmem:[#allocation3_spill] sm:$0xff]  ;;  %v6994_v41 = vld [vmem:[#allocation93_spill] sm:$0xff] }
 0x157   : > { %v5622_v31 = vmul.f32 %v6950_v53, %v6986_v9  ;;  %v2175_v44 = vrot.slane %v6989_v39, 2  ;;  %v6990_v10 = vld [vmem:[#allocation87_spill] sm:$0xff]  ;;  %v6991_v26 = vld [vmem:[#allocation88_spill] sm:$0xff]  ;;  %v2184_v5 = vrot.slane %v6994_v41, 2  ;;  %v6995_v63 = vld [vmem:[#allocation94_spill] sm:$0xff]  ;;  %v2189_v53 = vrot.slane %v2087_v55, 2 }
 0x158   : > { %v2177_v59 = vrot.slane %v6990_v10, 2  ;;  %v2179_v1 = vrot.slane %v6991_v26, 2  ;;  %v6992_v3 = vld [vmem:[#allocation91_spill] sm:$0xff]  ;;  %v6993_v9 = vld [vmem:[#allocation92_spill] sm:$0xff]  ;;  %v2185_v6 = vrot.slane %v6995_v63, 2  ;;  %v2212_v26 = vrot.slane %v5534_v61, 2 }
 0x159   : > { %v2180_v45 = vrot.slane %v6992_v3, 2  ;;  %v2182_v58 = vrot.slane %v6993_v9, 2  ;;  %v6996_v0 = vld [vmem:[#allocation95_spill] sm:$0xff]  ;;  %v5642_v34 = vsel %vm1061_vm2, %v2174_v21, %v2175_v44  ;;  %v2192_v21 = vrot.slane %v5486_v60, 2 }
 0x15a   : > { %v2187_v14 = vrot.slane %v6996_v0, 2  ;;  %v5645_v22 = vsel %vm1061_vm2, %v2175_v44, %v2177_v59  ;;  %v5654_v39 = vsel %vm1061_vm2, %v2184_v5, %v2185_v6  ;;  %v2190_v0 = vrot.slane %v5482_v56, 2 }
 0x15b   : > { %v5648_v10 = vsel %vm1061_vm2, %v2179_v1, %v2180_v45  ;;  %v5651_v3 = vsel %vm1061_vm2, %v2180_v45, %v2182_v58  ;;  %v2194_v59 = vrot.slane %v5490_v23, 2  ;;  %v2195_v44 = vrot.slane %v5494_v20, 2 }
 0x15c   : > { %v5657_v41 = vsel %vm1061_vm2, %v2185_v6, %v2187_v14  ;;  %v2197_v1 = vrot.slane %v5498_v19, 2  ;;  %v5665_v55 = vsel %vm1061_vm2, %v2189_v53, %v2190_v0  ;;  %v2199_v58 = vrot.slane %v5502_v8, 2 }
 0x15d   : > { %v2200_v5 = vrot.slane %v5506_v46, 2  ;;  %v2202_v14 = vrot.slane %v5510_v51, 2  ;;  %v2193_v6 = vsel %vm1061_vm2, %v2190_v0, %v2192_v21  ;;  %v2196_v45 = vsel %vm1061_vm2, %v2194_v59, %v2195_v44 }
 0x15e   : > { %v2198_v56 = vsel %vm1061_vm2, %v2195_v44, %v2197_v1  ;;  %v2204_v60 = vrot.slane %v5514_v37, 2  ;;  %v2205_v19 = vrot.slane %v5518_v16, 2  ;;  %v2207_v8 = vrot.slane %v5522_v48, 2 }
 0x15f   : > { %v2201_v23 = vsel %vm1061_vm2, %v2199_v58, %v2200_v5  ;;  %v2203_v20 = vsel %vm1061_vm2, %v2200_v5, %v2202_v14  ;;  %v2209_v46 = vrot.slane %v5526_v30, 2  ;;  %v2210_v51 = vrot.slane %v5530_v57, 2 }
 0x160   : > { %v2214_v9 = vrot.slane %v5538_v38, 2  ;;  %v2206_v63 = vsel %vm1061_vm2, %v2204_v60, %v2205_v19  ;;  %v2208_v37 = vsel %vm1061_vm2, %v2205_v19, %v2207_v8  ;;  %v2215_v53 = vrot.slane %v5542_v40, 2 }
 0x161   : > { %v2217_v0 = vrot.slane %v5546_v25, 2  ;;  %v2211_v16 = vsel %vm1061_vm2, %v2209_v46, %v2210_v51  ;;  %v2213_v48 = vsel %vm1061_vm2, %v2210_v51, %v2212_v26  ;;  %v2219_v30 = vrot.slane %v5550_v15, 2 }
 0x162   : > { %v2220_v57 = vrot.slane %v5554_v11, 2  ;;  %v2216_v61 = vsel %vm1061_vm2, %v2214_v9, %v2215_v53  ;;  %v2222_v21 = vrot.slane %v5558_v2, 2  ;;  %v2224_v59 = vrot.slane %v5562_v18, 2 }
 0x163   : > { %v2218_v38 = vsel %vm1061_vm2, %v2215_v53, %v2217_v0  ;;  %v2225_v25 = vrot.slane %v5566_v35, 2  ;;  %v2227_v44 = vrot.slane %v5570_v32, 2  ;;  %v2229_v1 = vrot.slane %v5574_v33, 2  ;;  %v7000_v0 = vld [vmem:[#allocation65_spill] sm:$0xff] }
 0x164   : > { %v2221_v40 = vsel %vm1061_vm2, %v2219_v30, %v2220_v57  ;;  %v2223_v15 = vsel %vm1061_vm2, %v2220_v57, %v2222_v21  ;;  %v2230_v11 = vrot.slane %v5578_v28, 2  ;;  %v2232_v58 = vrot.slane %v5582_v54, 2  ;;  %v7003_v57 = vld [vmem:[#allocation10_spill] sm:$0xff] }
 0x165   : > { %v2234_v5 = vrot.slane %v5586_v24, 2  ;;  %v2226_v2 = vsel %vm1061_vm2, %v2224_v59, %v2225_v25  ;;  %v2228_v18 = vsel %vm1061_vm2, %v2225_v25, %v2227_v44  ;;  %v2235_v14 = vrot.slane %v5590_v47, 2  ;;  %v7004_v21 = vld [vmem:[#allocation42_spill] sm:$0xff] }
 0x166   : > { %v2237_v35 = vrot.slane %v5594_v7, 2  ;;  %v2231_v32 = vsel %vm1061_vm2, %v2229_v1, %v2230_v11  ;;  %v2233_v33 = vsel %vm1061_vm2, %v2230_v11, %v2232_v58  ;;  %v2239_v60 = vrot.slane %v5598_v17, 2 }
 0x167   : > { %v2240_v28 = vrot.slane %v5602_v13, 2  ;;  %v2236_v54 = vsel %vm1061_vm2, %v2234_v5, %v2235_v14  ;;  %v2242_v19 = vrot.slane %v5606_v27, 2  ;;  %v2244_v8 = vrot.slane %v5610_v43, 2 }
 0x168   : > { %v2238_v24 = vsel %vm1061_vm2, %v2235_v14, %v2237_v35  ;;  %v2245_v7 = vrot.slane %v5614_v12, 2  ;;  %v2247_v46 = vrot.slane %v5618_v42, 2  ;;  %v2249_v51 = vrot.slane %v5622_v31, 2 }
 0x169   : > { %v2241_v47 = vsel %vm1061_vm2, %v2239_v60, %v2240_v28  ;;  %v2243_v17 = vsel %vm1061_vm2, %v2240_v28, %v2242_v19  ;;  %v2250_v13 = vrot.slane %v5626_v62, 2  ;;  %v2252_v26 = vrot.slane %v5630_v36, 2  ;;  %v7017_v28 = vld [vmem:[#allocation71_spill] sm:$0xff] }
 0x16a   : > { %v5723_v9 = vadd.f32 %v5642_v34, %v5373_v4  ;;  %v2246_v27 = vsel %vm1061_vm2, %v2244_v8, %v2245_v7  ;;  %v2248_v43 = vsel %vm1061_vm2, %v2245_v7, %v2247_v46  ;;  %v5729_v12 = vadd.f32 %v5645_v22, %v5377_v52  ;;  %v6997_v34 = vld [vmem:[#allocation63_spill] sm:$0xff]  ;;  %v6998_v22 = vld [vmem:[#allocation8_spill] sm:$0xff]  ;;  %v7019_v7 = vld [vmem:[#allocation73_spill] sm:$0xff] }
 0x16b   : > { %v5733_v42 = vadd.f32 %v5648_v10, %v5383_v29  ;;  %v2251_v31 = vsel %vm1061_vm2, %v2249_v51, %v2250_v13  ;;  %v2253_v62 = vsel %vm1061_vm2, %v2250_v13, %v2252_v26  ;;  %v5739_v4 = vadd.f32 %v5651_v3, %v5387_v50  ;;  %v6999_v10 = vld [vmem:[#allocation64_spill] sm:$0xff]  ;;  %v7001_v50 = vld [vmem:[#allocation25_spill] sm:$0xff]  ;;  %v7020_v46 = vld [vmem:[#allocation74_spill] sm:$0xff] }
 0x16c   : > { %v5743_v36 = vadd.f32 %v5654_v39, %v5391_v49  ;;  %v5747_v52 = vadd.f32 %v5657_v41, %v6997_v34  ;;  %v5751_v29 = vadd.f32 %v5665_v55, %v6998_v22  ;;  %v5754_v53 = vadd.f32 %v2193_v6, %v6999_v10  ;;  %v7002_v49 = vld [vmem:[#allocation90_spill] sm:$0xff]  ;;  %v7006_v6 = vld [vmem:[#allocation11_spill] sm:$0xff]  ;;  %v7018_v8 = vld [vmem:[#allocation72_spill] sm:$0xff]  ;;  %2319 = vst.msk [vmem:[%s5800_s11] sm:$0xff] %vm2318_vm3, %v5723_v9 }
 0x16d   : > { %v5757_v30 = vadd.f32 %v2196_v45, %v7000_v0  ;;  %v5760_v3 = vadd.f32 %v2198_v56, %v7001_v50  ;;  %v5763_v39 = vadd.f32 %v2201_v23, %v7002_v49  ;;  %v5766_v41 = vadd.f32 %v2203_v20, %v7003_v57  ;;  %v7005_v55 = vld [vmem:[#allocation26_spill] sm:$0xff]  ;;  %v7007_v45 = vld [vmem:[#allocation43_spill] sm:$0xff]  ;;  %v7008_v56 = vld [vmem:[#allocation28_spill] sm:$0xff]  ;;  %2320 = vst.msk [vmem:[%s5800_s11 + $0x8] sm:$0xff] %vm2318_vm3, %v5729_v12 }
 0x16e   : > { %v5769_v59 = vadd.f32 %v2206_v63, %v7004_v21  ;;  %v5772_v25 = vadd.f32 %v2208_v37, %v7005_v55  ;;  %v5775_v44 = vadd.f32 %v2211_v16, %v7006_v6  ;;  %v5778_v1 = vadd.f32 %v2213_v48, %v7007_v45  ;;  %v7009_v23 = vld [vmem:[#allocation12_spill] sm:$0xff]  ;;  %v7011_v63 = vld [vmem:[#allocation5_spill] sm:$0xff]  ;;  %v7012_v37 = vld [vmem:[#allocation66_spill] sm:$0xff]  ;;  %2321 = vst.msk [vmem:[%s5800_s11 + $0x10] sm:$0xff] %vm2318_vm3, %v5733_v42 }
 0x16f   : > { %v5781_v11 = vadd.f32 %v2216_v61, %v7008_v56  ;;  %v5784_v58 = vadd.f32 %v2218_v38, %v7009_v23  ;;  %v7010_v20 = vld [vmem:[#allocation44_spill] sm:$0xff]  ;;  %v5790_v14 = vadd.f32 %v2223_v15, %v7011_v63  ;;  %v5793_v35 = vadd.f32 %v2226_v2, %v7012_v37  ;;  %v7013_v16 = vld [vmem:[#allocation67_spill] sm:$0xff]  ;;  %v7016_v2 = vld [vmem:[#allocation70_spill] sm:$0xff]  ;;  %2322 = vst.msk [vmem:[%s5800_s11 + $0x18] sm:$0xff] %vm2318_vm3, %v5739_v4 }
 0x170   : > { %v5787_v5 = vadd.f32 %v2221_v40, %v7010_v20  ;;  %v5803_v48 = vadd.f32 %v2228_v18, %v7013_v16  ;;  %v7014_v61 = vld [vmem:[#allocation68_spill] sm:$0xff]  ;;  %v7015_v40 = vld [vmem:[#allocation69_spill] sm:$0xff]  ;;  %v5812_v60 = vadd.f32 %v2236_v54, %v7016_v2  ;;  %v5815_v19 = vadd.f32 %v2238_v24, %v7017_v28  ;;  %v7021_v51 = vld [vmem:[#allocation75_spill] sm:$0xff]  ;;  %2323 = vst.msk [vmem:[%s5800_s11 + $0x20] sm:$0xff] %vm2318_vm3, %v5743_v36 }
 0x171   : > { %v5806_v38 = vadd.f32 %v2231_v32, %v7014_v61  ;;  %v5809_v15 = vadd.f32 %v2233_v33, %v7015_v40  ;;  %v5818_v18 = vadd.f32 %v2241_v47, %v7018_v8  ;;  %v5821_v32 = vadd.f32 %v2243_v17, %v7019_v7  ;;  %v7022_v13 = vld [vmem:[#allocation76_spill] sm:$0xff]  ;;  %v7023_v26 = vld [vmem:[#allocation77_spill] sm:$0xff]  ;;  %2324 = vst.msk [vmem:[%s5800_s11 + $0x28] sm:$0xff] %vm2318_vm3, %v5747_v52 }
 0x172   : > { %v5824_v33 = vadd.f32 %v2246_v27, %v7020_v46  ;;  %v5827_v54 = vadd.f32 %v2248_v43, %v7021_v51  ;;  %v5830_v24 = vadd.f32 %v2251_v31, %v7022_v13  ;;  %v5833_v47 = vadd.f32 %v2253_v62, %v7023_v26  ;;  %2325 = vst.msk [vmem:[%s5800_s11 + $0x30] sm:$0xff] %vm2318_vm3, %v5751_v29 }
 0x173   : > { %v2351_v17 = vsel %vm2318_vm3, %v5723_v9, 0.0  ;;  %v2352_v27 = vsel %vm2318_vm3, %v5729_v12, 0.0  ;;  %v2354_v43 = vsel %vm2318_vm3, %v5733_v42, 0.0  ;;  %2326 = vst.msk [vmem:[%s5800_s11 + $0x38] sm:$0xff] %vm2318_vm3, %v5754_v53  ;;  %2327 = vst.msk [vmem:[%s5800_s11 + $0x40] sm:$0xff] %vm2318_vm3, %v5757_v30  ;;  %v2356_v62 = vsel %vm2318_vm3, %v5739_v4, 0.0 }
 0x174   : > { %2328 = vst.msk [vmem:[%s5800_s11 + $0x48] sm:$0xff] %vm2318_vm3, %v5760_v3  ;;  %2329 = vst.msk [vmem:[%s5800_s11 + $0x50] sm:$0xff] %vm2318_vm3, %v5763_v39  ;;  %v2353_v31 = vadd.f32 %v2352_v27, %v2351_v17  ;;  %v2358_v22 = vsel %vm2318_vm3, %v5743_v36, 0.0  ;;  %v2360_v0 = vsel %vm2318_vm3, %v5747_v52, 0.0  ;;  %v2362_v49 = vsel %vm2318_vm3, %v5751_v29, 0.0 }
 0x175   : > { %2330 = vst.msk [vmem:[%s5800_s11 + $0x58] sm:$0xff] %vm2318_vm3, %v5766_v41  ;;  %2331 = vst.msk [vmem:[%s5800_s11 + $0x60] sm:$0xff] %vm2318_vm3, %v5769_v59  ;;  %v2364_v21 = vsel %vm2318_vm3, %v5754_v53, 0.0  ;;  %v2366_v6 = vsel %vm2318_vm3, %v5757_v30, 0.0  ;;  %v2368_v56 = vsel %vm2318_vm3, %v5760_v3, 0.0  ;;  %v2370_v20 = vsel %vm2318_vm3, %v5763_v39, 0.0 }
 0x176   : > { %2332 = vst.msk [vmem:[%s5800_s11 + $0x68] sm:$0xff] %vm2318_vm3, %v5772_v25  ;;  %2333 = vst.msk [vmem:[%s5800_s11 + $0x70] sm:$0xff] %vm2318_vm3, %v5775_v44  ;;  %v2355_v34 = vadd.f32 %v2354_v43, %v2353_v31  ;;  %v2372_v37 = vsel %vm2318_vm3, %v5766_v41, 0.0  ;;  %v2374_v61 = vsel %vm2318_vm3, %v5769_v59, 0.0  ;;  %v2376_v2 = vsel %vm2318_vm3, %v5772_v25, 0.0 }
 0x177   : > { %2334 = vst.msk [vmem:[%s5800_s11 + $0x78] sm:$0xff] %vm2318_vm3, %v5778_v1  ;;  %2335 = vst.msk [vmem:[%s5800_s11 + $0x80] sm:$0xff] %vm2318_vm3, %v5781_v11  ;;  %v2378_v8 = vsel %vm2318_vm3, %v5775_v44, 0.0  ;;  %v2380_v46 = vsel %vm2318_vm3, %v5778_v1, 0.0  ;;  %v2382_v13 = vsel %vm2318_vm3, %v5781_v11, 0.0  ;;  %v2384_v17 = vsel %vm2318_vm3, %v5784_v58, 0.0 }
 0x178   : > { %2336 = vst.msk [vmem:[%s5800_s11 + $0x88] sm:$0xff] %vm2318_vm3, %v5784_v58  ;;  %2337 = vst.msk [vmem:[%s5800_s11 + $0x90] sm:$0xff] %vm2318_vm3, %v5787_v5  ;;  %v2357_v10 = vadd.f32 %v2356_v62, %v2355_v34  ;;  %v2386_v43 = vsel %vm2318_vm3, %v5787_v5, 0.0  ;;  %v2388_v62 = vsel %vm2318_vm3, %v5790_v14, 0.0 }
 0x179   : > { %2338 = vst.msk [vmem:[%s5800_s11 + $0x98] sm:$0xff] %vm2318_vm3, %v5790_v14  ;;  %2339 = vst.msk [vmem:[%s5800_s11 + $0xa0] sm:$0xff] %vm2318_vm3, %v5793_v35 }
 0x17a   : > { %2340 = vst.msk [vmem:[%s5800_s11 + $0xa8] sm:$0xff] %vm2318_vm3, %v5803_v48  ;;  %2341 = vst.msk [vmem:[%s5800_s11 + $0xb0] sm:$0xff] %vm2318_vm3, %v5806_v38  ;;  %v2359_v50 = vadd.f32 %v2358_v22, %v2357_v10  ;;  %v2390_v22 = vsel %vm2318_vm3, %v5793_v35, 0.0 }
 0x17b   : > { %2342 = vst.msk [vmem:[%s5800_s11 + $0xb8] sm:$0xff] %vm2318_vm3, %v5809_v15  ;;  %2343 = vst.msk [vmem:[%s5800_s11 + $0xc0] sm:$0xff] %vm2318_vm3, %v5812_v60 }
 0x17c   : > { %2344 = vst.msk [vmem:[%s5800_s11 + $0xc8] sm:$0xff] %vm2318_vm3, %v5815_v19  ;;  %2345 = vst.msk [vmem:[%s5800_s11 + $0xd0] sm:$0xff] %vm2318_vm3, %v5818_v18  ;;  %v2361_v57 = vadd.f32 %v2360_v0, %v2359_v50  ;;  %v2392_v0 = vsel %vm2318_vm3, %v5803_v48, 0.0 }
 0x17d   : > { %2346 = vst.msk [vmem:[%s5800_s11 + $0xd8] sm:$0xff] %vm2318_vm3, %v5821_v32  ;;  %2347 = vst.msk [vmem:[%s5800_s11 + $0xe0] sm:$0xff] %vm2318_vm3, %v5824_v33 }
 0x17e   : > { %2348 = vst.msk [vmem:[%s5800_s11 + $0xe8] sm:$0xff] %vm2318_vm3, %v5827_v54  ;;  %2349 = vst.msk [vmem:[%s5800_s11 + $0xf0] sm:$0xff] %vm2318_vm3, %v5830_v24  ;;  %v2363_v55 = vadd.f32 %v2362_v49, %v2361_v57  ;;  %v2394_v49 = vsel %vm2318_vm3, %v5806_v38, 0.0 }
 0x17f   : > { %2350 = vst.msk [vmem:[%s5800_s11 + $0xf8] sm:$0xff] %vm2318_vm3, %v5833_v47 }
 0x180   : > { %v2365_v45 = vadd.f32 %v2364_v21, %v2363_v55  ;;  %v2396_v21 = vsel %vm2318_vm3, %v5809_v15, 0.0 }
 0x182   : > { %v2367_v23 = vadd.f32 %v2366_v6, %v2365_v45  ;;  %v2398_v6 = vsel %vm2318_vm3, %v5812_v60, 0.0 }
 0x184   : > { %v2369_v63 = vadd.f32 %v2368_v56, %v2367_v23  ;;  %v2400_v56 = vsel %vm2318_vm3, %v5815_v19, 0.0 }
 0x186   : > { %v2371_v16 = vadd.f32 %v2370_v20, %v2369_v63  ;;  %v2402_v20 = vsel %vm2318_vm3, %v5818_v18, 0.0 }
 0x188   : > { %v2373_v40 = vadd.f32 %v2372_v37, %v2371_v16  ;;  %v2404_v37 = vsel %vm2318_vm3, %v5821_v32, 0.0 }
 0x18a   : > { %v2375_v28 = vadd.f32 %v2374_v61, %v2373_v40  ;;  %v2406_v61 = vsel %vm2318_vm3, %v5824_v33, 0.0 }
 0x18c   : > { %v2377_v7 = vadd.f32 %v2376_v2, %v2375_v28  ;;  %v2408_v2 = vsel %vm2318_vm3, %v5827_v54, 0.0 }
 0x18e   : > { %v2379_v51 = vadd.f32 %v2378_v8, %v2377_v7  ;;  %v2410_v8 = vsel %vm2318_vm3, %v5830_v24, 0.0 }
 0x190   : > { %v2381_v26 = vadd.f32 %v2380_v46, %v2379_v51  ;;  %v2412_v46 = vsel %vm2318_vm3, %v5833_v47, 0.0 }
 0x192   : > { %v2383_v27 = vadd.f32 %v2382_v13, %v2381_v26 }
 0x194   : > { %v2385_v31 = vadd.f32 %v2384_v17, %v2383_v27 }
 0x196   : > { %v2387_v34 = vadd.f32 %v2386_v43, %v2385_v31 }
 0x198   : > { %v2389_v10 = vadd.f32 %v2388_v62, %v2387_v34 }
 0x19a   : > { %v2391_v50 = vadd.f32 %v2390_v22, %v2389_v10 }
 0x19c   : > { %v2393_v57 = vadd.f32 %v2392_v0, %v2391_v50 }
 0x19e   : > { %v2395_v55 = vadd.f32 %v2394_v49, %v2393_v57 }
 0x1a0   : > { %v2397_v45 = vadd.f32 %v2396_v21, %v2395_v55 }
 0x1a2   : > { %v2399_v23 = vadd.f32 %v2398_v6, %v2397_v45 }
 0x1a4   : > { %v2401_v63 = vadd.f32 %v2400_v56, %v2399_v23 }
 0x1a6   : > { %v2403_v16 = vadd.f32 %v2402_v20, %v2401_v63 }
 0x1a8   : > { %v2405_v40 = vadd.f32 %v2404_v37, %v2403_v16 }
 0x1aa   : > { %v2407_v28 = vadd.f32 %v2406_v61, %v2405_v40 }
 0x1ac   : > { %v2409_v7 = vadd.f32 %v2408_v2, %v2407_v28 }
 0x1ae   : > { %v2411_v51 = vadd.f32 %v2410_v8, %v2409_v7 }
 0x1b0   : > { %v2413_v13 = vadd.f32 %v2412_v46, %v2411_v51 }
 0x1b2   : > { %v2414_v26 = vrot.slane %v2413_v13, 4 }
 0x1b4   : > { %v2415_v17 = vadd.f32 %v2414_v26, %v2413_v13 }
 0x1b6   : > { %v2416_v27 = vrot.slane %v2415_v17, 2 }
 0x1b8   : > { %v2417_v43 = vadd.f32 %v2416_v27, %v2415_v17 }
 0x1ba   : > { %v2418_v31 = vrot.slane %v2417_v43, 1 }
 0x1bc   : > { %v2419_v62 = vadd.f32 %v2418_v31, %v2417_v43 }
 0x1be   : > { %2555 = vst.msk [vmem:[%s446_s14] sm:$0x1] %vm2554_vm4, %v2419_v62  ;;  %v6000_v34 = vmul.f32 0.00390625, %v2419_v62 }
 0x1c0   : > { %v2421_v22 = vsub.f32 %v5723_v9, %v6000_v34  ;;  %v2422_v10 = vsub.f32 %v5729_v12, %v6000_v34  ;;  %v2423_v0 = vsub.f32 %v5733_v42, %v6000_v34  ;;  %v2424_v49 = vsub.f32 %v5739_v4, %v6000_v34 }
 0x1c1   : > { %v2425_v57 = vsub.f32 %v5743_v36, %v6000_v34  ;;  %v2426_v9 = vsub.f32 %v5747_v52, %v6000_v34  ;;  %v2427_v12 = vsub.f32 %v5751_v29, %v6000_v34  ;;  %v2428_v36 = vsub.f32 %v5754_v53, %v6000_v34 }
 0x1c2   : > { %v2453_v50 = vmul.f32 %v2421_v22, %v2421_v22  ;;  %v2454_v21 = vmul.f32 %v2422_v10, %v2422_v10  ;;  %v2455_v55 = vmul.f32 %v2423_v0, %v2423_v0  ;;  %v2456_v45 = vmul.f32 %v2424_v49, %v2424_v49 }
 0x1c3   : > { %v2457_v56 = vmul.f32 %v2425_v57, %v2425_v57  ;;  %v2458_v20 = vmul.f32 %v2426_v9, %v2426_v9  ;;  %v2429_v52 = vsub.f32 %v5757_v30, %v6000_v34  ;;  %v2459_v16 = vmul.f32 %v2427_v12, %v2427_v12 }
 0x1c4   : > { %v2485_v6 = vsel %vm2318_vm3, %v2453_v50, 0.0  ;;  %v2486_v42 = vsel %vm2318_vm3, %v2454_v21, 0.0  ;;  %v2488_v23 = vsel %vm2318_vm3, %v2455_v55, 0.0  ;;  %v2490_v63 = vsel %vm2318_vm3, %v2456_v45, 0.0 }
 0x1c5   : > { %v2487_v4 = vadd.f32 %v2486_v42, %v2485_v6  ;;  %v2492_v61 = vsel %vm2318_vm3, %v2457_v56, 0.0  ;;  %v2430_v40 = vsub.f32 %v5760_v3, %v6000_v34  ;;  %v2460_v2 = vmul.f32 %v2428_v36, %v2428_v36 }
 0x1c6   : > { %v2494_v28 = vsel %vm2318_vm3, %v2458_v20, 0.0  ;;  %v2431_v53 = vsub.f32 %v5763_v39, %v6000_v34  ;;  %v2461_v7 = vmul.f32 %v2429_v52, %v2429_v52  ;;  %v2496_v46 = vsel %vm2318_vm3, %v2459_v16, 0.0 }
 0x1c7   : > { %v2489_v37 = vadd.f32 %v2488_v23, %v2487_v4  ;;  %v2432_v30 = vsub.f32 %v5766_v41, %v6000_v34  ;;  %v2462_v13 = vmul.f32 %v2430_v40, %v2430_v40  ;;  %v2498_v26 = vsel %vm2318_vm3, %v2460_v2, 0.0 }
 0x1c8   : > { %v2433_v3 = vsub.f32 %v5769_v59, %v6000_v34  ;;  %v2463_v27 = vmul.f32 %v2431_v53, %v2431_v53  ;;  %v2500_v43 = vsel %vm2318_vm3, %v2461_v7, 0.0  ;;  %v2434_v39 = vsub.f32 %v5772_v25, %v6000_v34 }
 0x1c9   : > { %v2491_v29 = vadd.f32 %v2490_v63, %v2489_v37  ;;  %v2464_v62 = vmul.f32 %v2432_v30, %v2432_v30  ;;  %v2502_v22 = vsel %vm2318_vm3, %v2462_v13, 0.0  ;;  %v2435_v41 = vsub.f32 %v5775_v44, %v6000_v34 }
 0x1ca   : > { %v2465_v0 = vmul.f32 %v2433_v3, %v2433_v3  ;;  %v2504_v50 = vsel %vm2318_vm3, %v2463_v27, 0.0  ;;  %v2436_v59 = vsub.f32 %v5778_v1, %v6000_v34  ;;  %v2466_v57 = vmul.f32 %v2434_v39, %v2434_v39 }
 0x1cb   : > { %v2493_v8 = vadd.f32 %v2492_v61, %v2491_v29  ;;  %v2506_v21 = vsel %vm2318_vm3, %v2464_v62, 0.0  ;;  %v2437_v25 = vsub.f32 %v5781_v11, %v6000_v34  ;;  %v2467_v6 = vmul.f32 %v2435_v41, %v2435_v41 }
 0x1cc   : > { %v2508_v9 = vsel %vm2318_vm3, %v2465_v0, 0.0  ;;  %v2438_v44 = vsub.f32 %v5784_v58, %v6000_v34  ;;  %v2468_v12 = vmul.f32 %v2436_v59, %v2436_v59  ;;  %v2510_v56 = vsel %vm2318_vm3, %v2466_v57, 0.0 }
 0x1cd   : > { %v2495_v51 = vadd.f32 %v2494_v28, %v2493_v8  ;;  %v2439_v1 = vsub.f32 %v5787_v5, %v6000_v34  ;;  %v2469_v23 = vmul.f32 %v2437_v25, %v2437_v25  ;;  %v2512_v4 = vsel %vm2318_vm3, %v2467_v6, 0.0 }
 0x1ce   : > { %v2440_v11 = vsub.f32 %v5790_v14, %v6000_v34  ;;  %v2470_v20 = vmul.f32 %v2438_v44, %v2438_v44  ;;  %v2514_v63 = vsel %vm2318_vm3, %v2468_v12, 0.0  ;;  %v2441_v58 = vsub.f32 %v5793_v35, %v6000_v34 }
 0x1cf   : > { %v2497_v17 = vadd.f32 %v2496_v46, %v2495_v51  ;;  %v2471_v52 = vmul.f32 %v2439_v1, %v2439_v1  ;;  %v2516_v16 = vsel %vm2318_vm3, %v2469_v23, 0.0  ;;  %v2442_v5 = vsub.f32 %v5803_v48, %v6000_v34 }
 0x1d0   : > { %v2472_v29 = vmul.f32 %v2440_v11, %v2440_v11  ;;  %v2518_v40 = vsel %vm2318_vm3, %v2470_v20, 0.0  ;;  %v2443_v14 = vsub.f32 %v5806_v38, %v6000_v34  ;;  %v2473_v28 = vmul.f32 %v2441_v58, %v2441_v58 }
 0x1d1   : > { %v2499_v31 = vadd.f32 %v2498_v26, %v2497_v17  ;;  %v2520_v8 = vsel %vm2318_vm3, %v2471_v52, 0.0  ;;  %v2444_v35 = vsub.f32 %v5809_v15, %v6000_v34  ;;  %v2474_v7 = vmul.f32 %v2442_v5, %v2442_v5 }
 0x1d2   : > { %v2522_v46 = vsel %vm2318_vm3, %v2472_v29, 0.0  ;;  %v2445_v48 = vsub.f32 %v5812_v60, %v6000_v34  ;;  %v2475_v30 = vmul.f32 %v2443_v14, %v2443_v14  ;;  %v2524_v13 = vsel %vm2318_vm3, %v2473_v28, 0.0 }
 0x1d3   : > { %v2501_v10 = vadd.f32 %v2500_v43, %v2499_v31  ;;  %v2446_v38 = vsub.f32 %v5815_v19, %v6000_v34  ;;  %v2476_v17 = vmul.f32 %v2444_v35, %v2444_v35  ;;  %v2526_v3 = vsel %vm2318_vm3, %v2474_v7, 0.0 }
 0x1d4   : > { %v2447_v15 = vsub.f32 %v5818_v18, %v6000_v34  ;;  %v2477_v43 = vmul.f32 %v2445_v48, %v2445_v48  ;;  %v2528_v31 = vsel %vm2318_vm3, %v2475_v30, 0.0  ;;  %v2448_v60 = vsub.f32 %v5821_v32, %v6000_v34 }
 0x1d5   : > { %v2503_v49 = vadd.f32 %v2502_v22, %v2501_v10  ;;  %v2478_v62 = vmul.f32 %v2446_v38, %v2446_v38  ;;  %v2530_v22 = vsel %vm2318_vm3, %v2476_v17, 0.0  ;;  %v2449_v19 = vsub.f32 %v5824_v33, %v6000_v34 }
 0x1d6   : > { %v2479_v41 = vmul.f32 %v2447_v15, %v2447_v15  ;;  %v2532_v0 = vsel %vm2318_vm3, %v2477_v43, 0.0  ;;  %v2450_v18 = vsub.f32 %v5827_v54, %v6000_v34  ;;  %v2451_v32 = vsub.f32 %v5830_v24, %v6000_v34 }
 0x1d7   : > { %v2505_v55 = vadd.f32 %v2504_v50, %v2503_v49  ;;  %v2480_v49 = vmul.f32 %v2448_v60, %v2448_v60  ;;  %v2534_v59 = vsel %vm2318_vm3, %v2478_v62, 0.0  ;;  %v2452_v33 = vsub.f32 %v5833_v47, %v6000_v34 }
 0x1d8   : > { %v2482_v6 = vmul.f32 %v2450_v18, %v2450_v18  ;;  %v2483_v44 = vmul.f32 %v2451_v32, %v2451_v32 }
 0x1d9   : > { %v2507_v45 = vadd.f32 %v2506_v21, %v2505_v55  ;;  %v2481_v21 = vmul.f32 %v2449_v19, %v2449_v19  ;;  %v2536_v55 = vsel %vm2318_vm3, %v2479_v41, 0.0 }
 0x1da   : > { %v2544_v1 = vsel %vm2318_vm3, %v2483_v44, 0.0 }
 0x1db   : > { %v2509_v42 = vadd.f32 %v2508_v9, %v2507_v45  ;;  %v2538_v9 = vsel %vm2318_vm3, %v2480_v49, 0.0  ;;  %v2540_v54 = vsel %vm2318_vm3, %v2481_v21, 0.0 }
 0x1dd   : > { %v2511_v36 = vadd.f32 %v2510_v56, %v2509_v42  ;;  %v2484_v56 = vmul.f32 %v2452_v33, %v2452_v33  ;;  %v2542_v42 = vsel %vm2318_vm3, %v2482_v6, 0.0 }
 0x1df   : > { %v2513_v37 = vadd.f32 %v2512_v4, %v2511_v36  ;;  %v2546_v4 = vsel %vm2318_vm3, %v2484_v56, 0.0 }
 0x1e1   : > { %v2515_v61 = vadd.f32 %v2514_v63, %v2513_v37 }
 0x1e3   : > { %v2517_v2 = vadd.f32 %v2516_v16, %v2515_v61 }
 0x1e5   : > { %v2519_v53 = vadd.f32 %v2518_v40, %v2517_v2 }
 0x1e7   : > { %v2521_v51 = vadd.f32 %v2520_v8, %v2519_v53 }
 0x1e9   : > { %v2523_v26 = vadd.f32 %v2522_v46, %v2521_v51 }
 0x1eb   : > { %v2525_v27 = vadd.f32 %v2524_v13, %v2523_v26 }
 0x1ed   : > { %v2527_v39 = vadd.f32 %v2526_v3, %v2525_v27 }
 0x1ef   : > { %v2529_v10 = vadd.f32 %v2528_v31, %v2527_v39 }
 0x1f1   : > { %v2531_v50 = vadd.f32 %v2530_v22, %v2529_v10 }
 0x1f3   : > { %v2533_v57 = vadd.f32 %v2532_v0, %v2531_v50 }
 0x1f5   : > { %v2535_v25 = vadd.f32 %v2534_v59, %v2533_v57 }
 0x1f7   : > { %v2537_v45 = vadd.f32 %v2536_v55, %v2535_v25 }
 0x1f9   : > { %v2539_v12 = vadd.f32 %v2538_v9, %v2537_v45 }
 0x1fb   : > { %v2541_v24 = vadd.f32 %v2540_v54, %v2539_v12 }
 0x1fd   : > { %v2543_v23 = vadd.f32 %v2542_v42, %v2541_v24 }
 0x1ff   : > { %v2545_v36 = vadd.f32 %v2544_v1, %v2543_v23 }
 0x201   : > { %v2547_v47 = vadd.f32 %v2546_v4, %v2545_v36 }
 0x203   : > { %v2548_v34 = vrot.slane %v2547_v47, 4 }
 0x205   : > { %v2549_v11 = vadd.f32 %v2548_v34, %v2547_v47 }
 0x207   : > { %v2550_v20 = vrot.slane %v2549_v11, 2 }
 0x209   : > { %v2551_v63 = vadd.f32 %v2550_v20, %v2549_v11 }
 0x20b   : > { %v2552_v37 = vrot.slane %v2551_v63, 1 }
 0x20d   : > { %v2553_v58 = vadd.f32 %v2552_v37, %v2551_v63 }
 0x20f   : > { %2556 = vst.msk [vmem:[%s452_s17] sm:$0x1] %vm2554_vm4, %v2553_v58 }
 0x210 PF: > { %s17_s1 = sadd.s32 1, %s2834_s1   ;;  %s7024_s21 = smov %s2830_s22 }
 0x211   : > { %p14_p5 = scmp.ge.s32.totalorder %s17_s1, 4   ;;  %s7025_s22 = smov %s7027_s2 }
 0x213   :  { %16 = sbr.rel (!%p14_p5) target bundleno = 2 (0x2), region = 96 }

// kernel: res_block_forward.4
= control target key start
LH: loop header
LB: loop body
LE: loop exit
PB: predicated region body
PF: predicated region fallthrough
CT: control target
= control target key end

     0   :  { %s3061_s26 = smov 0   ;;  %s3063_s2 = smov 0   ;;  %s6314_s0 = inlined_call_operand.vmem [shape: f32[2,16,16,4], index: 0, kind: input, shape index: {}, may-alias: {0,1,2}]   ;;  %s6315_s1 = inlined_call_operand.vmem [shape: f32[2,16,16,4], index: 1, kind: input, shape index: {}, may-alias: {0,1,2}]   ;;  %s6316_s2 = inlined_call_operand.vmem [shape: f32[2,16,16,4], index: 2, kind: input, shape index: {}, may-alias: {0,1,2}]   ;;  %s6317_s3 = inlined_call_operand.vmem [shape: f32[9,4], index: 3, kind: input, shape index: {}]   ;;  %s6318_s4 = inlined_call_operand.vmem [shape: f32[1,4], index: 4, kind: input, shape index: {}]   ;;  %s6319_s5 = inlined_call_operand.vmem [shape: f32[1,4], index: 5, kind: input, shape index: {}]   ;;  %s6320_s6 = inlined_call_operand.vmem [shape: f32[2,16,16,4], index: 6, kind: output, shape index: {0}]   ;;  %s6321_s7 = inlined_call_operand.vmem [shape: f32[2,1,1,4], index: 7, kind: output, shape index: {1}]   ;;  %s6322_s8 = inlined_call_operand.vmem [shape: f32[2,1,1,4], index: 8, kind: output, shape index: {2}]  }
   0x1   :  { %s3065_s27 = smov 0  }
   0x2 LB: > { %s31_s28 = sadd.s32 1, %s3009_s2  ;;  %p2945_p0 = scmp.ge.s32.totalorder %s3013_s27, 1  ;;  %s3013_s27 = sphi %s3065_s27, %s19_s27   ;;  %s3009_s2 = sphi %s3063_s2, %s7201_s2   ;;  %s3005_s26 = sphi %s3061_s26, %s7200_s26  }
   0x3   : > { %p33_p1 = scmp.ge.s32.totalorder %s31_s28, 2  ;;  %p357_p2 = scmp.lt.s32.totalorder %s3013_s27, 3 }
   0x5   : > { %s7203_s28 = smov (%p33_p1, %s31_s28), 0  ;;  %p358_p3 = pnand %p2945_p0, %p357_p2 }
   0x7   : > { %361 = sbr.rel (%p358_p3) target bundleno = 547 (0x223), region = 44 }
   0xe   : > { %p440_p4 = scmp.lt.s32.totalorder %s3005_s26, 1  ;;  %v856_v0 = vlaneseq  ;;  %v3015_v1 = vmov 0.0   ;;  %vm709_vm0 = vcmask 1040384   ;;  %v3089_v4 = vld [vmem:[%s6318_s4] ss:$0 sm:$0xff]  ;;  %vm992_vm1 = vcmask 1046528  }
   0xf   : > { %v3081_v2 = vrot.slane %v3015_v1, 7  ;;  %v854_v5 = vld [vmem:[%s6317_s3] sm:$0xff]  ;;  %vm1237_vm2 = vcmask 1045504   ;;  %vm2494_vm3 = vcmask 31744   ;;  %vm2730_vm4 = vcmask 24576  }
  0x10   : > { %s7205_s26 = smov (!%p440_p4, %s3005_s26), 1  ;;  %v3083_v3 = vshrl.u32 %v856_v0, 7  ;;  %v3106_v8 = vld [vmem:[%s6319_s5] ss:$0 sm:$0xff] }
  0x11   : > { %6441 = vst [vmem:[#allocation2_spill] sm:$0xff] %v3081_v2  ;;  %s2959_s29 = sshll.u32 %s7205_s26, 8  ;;  %v3114_v13 = vsel %vm709_vm0, 0.0, %v3081_v2  ;;  %v3118_v14 = vsel %vm709_vm0, %v3081_v2, 0.0  ;;  %s500_s30 = scalar_lea.vmem %s6321_s7, %s7205_s26 }
  0x12   : > { %6442 = vst [vmem:[#allocation3_spill] sm:$0xff] %v3083_v3  ;;  %v858_v6 = vsub.s32 0, %v3083_v3  ;;  %v894_v7 = vsub.s32 1, %v3083_v3  ;;  %s3101_s14 = scalar_lea.vmem %s6314_s0, %s2959_s29  ;;  %v1139_v9 = vsub.s32 2, %v3083_v3  ;;  %6443 = vst [vmem:[#allocation4_spill] sm:$0xff] %v3114_v13  ;;  %s6011_s25 = scalar_lea.vmem %s6320_s6, %s2959_s29 }
  0x13   : > { %v509_v10 = vld [vmem:[%s3101_s14] sm:$0xff]  ;;  %v510_v11 = vld [vmem:[%s3101_s14 + $0x8] sm:$0xff]  ;;  %v511_v12 = vld [vmem:[%s3101_s14 + $0x10] sm:$0xff]  ;;  %6444 = vst [vmem:[#allocation5_spill] sm:$0xff] %v3118_v14  ;;  %s506_s11 = scalar_lea.vmem %s6322_s8, %s7205_s26 }
  0x14   : > { %v3120_v15 = vrot.slane %v854_v5, %v858_v6  ;;  %v512_v16 = vld [vmem:[%s3101_s14 + $0x18] sm:$0xff]  ;;  %v513_v17 = vld [vmem:[%s3101_s14 + $0x20] sm:$0xff]  ;;  %v514_v18 = vld [vmem:[%s3101_s14 + $0x28] sm:$0xff]  ;;  %v547_v19 = vmul.f32 %v3089_v4, %v509_v10  ;;  %v548_v20 = vmul.f32 %v3089_v4, %v510_v11  ;;  %v3127_v21 = vrot.slane %v854_v5, %v894_v7 }
  0x15   : > { %v515_v23 = vld [vmem:[%s3101_s14 + $0x30] sm:$0xff]  ;;  %v516_v24 = vld [vmem:[%s3101_s14 + $0x38] sm:$0xff]  ;;  %v517_v25 = vld [vmem:[%s3101_s14 + $0x40] sm:$0xff]  ;;  %v549_v26 = vmul.f32 %v3089_v4, %v511_v12  ;;  %v550_v27 = vmul.f32 %v3089_v4, %v512_v16  ;;  %v551_v28 = vmul.f32 %v3089_v4, %v513_v17  ;;  %v3136_v29 = vrot.slane %v854_v5, %v1139_v9 }
  0x16   : > { %v518_v30 = vld [vmem:[%s3101_s14 + $0x48] sm:$0xff]  ;;  %v519_v31 = vld [vmem:[%s3101_s14 + $0x50] sm:$0xff]  ;;  %v520_v32 = vld [vmem:[%s3101_s14 + $0x58] sm:$0xff]  ;;  %v552_v33 = vmul.f32 %v3089_v4, %v514_v18  ;;  %v553_v34 = vmul.f32 %v3089_v4, %v515_v23  ;;  %v554_v35 = vmul.f32 %v3089_v4, %v516_v24  ;;  %v3146_v36 = vmul.f32 %v3120_v15, %v3114_v13 }
  0x17   : > { %6445 = vst [vmem:[#allocation6_spill] sm:$0xff] %v3136_v29  ;;  %v521_v37 = vld [vmem:[%s3101_s14 + $0x60] sm:$0xff]  ;;  %v522_v38 = vld [vmem:[%s3101_s14 + $0x68] sm:$0xff]  ;;  %v523_v39 = vld [vmem:[%s3101_s14 + $0x70] sm:$0xff]  ;;  %v555_v40 = vmul.f32 %v3089_v4, %v517_v25  ;;  %v556_v41 = vmul.f32 %v3089_v4, %v518_v30  ;;  %v557_v42 = vmul.f32 %v3089_v4, %v519_v31  ;;  %v3155_v43 = vadd.f32 %v3106_v8, %v547_v19 }
  0x18   : > { %v524_v44 = vld [vmem:[%s3101_s14 + $0x78] sm:$0xff]  ;;  %v525_v45 = vld [vmem:[%s3101_s14 + $0x80] sm:$0xff]  ;;  %v526_v46 = vld [vmem:[%s3101_s14 + $0x88] sm:$0xff]  ;;  %v558_v47 = vmul.f32 %v3089_v4, %v520_v32  ;;  %v559_v48 = vmul.f32 %v3089_v4, %v521_v37  ;;  %v560_v49 = vmul.f32 %v3089_v4, %v522_v38  ;;  %v3164_v50 = vadd.f32 %v3106_v8, %v548_v20 }
  0x19   : > { %v527_v51 = vld [vmem:[%s3101_s14 + $0x90] sm:$0xff]  ;;  %v528_v52 = vld [vmem:[%s3101_s14 + $0x98] sm:$0xff]  ;;  %v529_v53 = vld [vmem:[%s3101_s14 + $0xa0] sm:$0xff]  ;;  %v561_v54 = vmul.f32 %v3089_v4, %v523_v39  ;;  %v562_v55 = vmul.f32 %v3089_v4, %v524_v44  ;;  %v563_v56 = vmul.f32 %v3089_v4, %v525_v45  ;;  %v3173_v57 = vadd.f32 %v3106_v8, %v549_v26 }
  0x1a   : > { %v530_v58 = vld [vmem:[%s3101_s14 + $0xa8] sm:$0xff]  ;;  %v531_v59 = vld [vmem:[%s3101_s14 + $0xb0] sm:$0xff]  ;;  %v532_v60 = vld [vmem:[%s3101_s14 + $0xb8] sm:$0xff]  ;;  %v564_v61 = vmul.f32 %v3089_v4, %v526_v46  ;;  %v565_v62 = vmul.f32 %v3089_v4, %v527_v51  ;;  %v566_v63 = vmul.f32 %v3089_v4, %v528_v52  ;;  %v3182_v0 = vadd.f32 %v3106_v8, %v550_v27 }
  0x1b   : > { %v533_v1 = vld [vmem:[%s3101_s14 + $0xc0] sm:$0xff]  ;;  %v534_v5 = vld [vmem:[%s3101_s14 + $0xc8] sm:$0xff]  ;;  %v535_v6 = vld [vmem:[%s3101_s14 + $0xd0] sm:$0xff]  ;;  %v567_v7 = vmul.f32 %v3089_v4, %v529_v53  ;;  %v568_v9 = vmul.f32 %v3089_v4, %v530_v58  ;;  %v569_v10 = vmul.f32 %v3089_v4, %v531_v59  ;;  %v3191_v11 = vadd.f32 %v3106_v8, %v551_v28 }
  0x1c   : > { %v536_v12 = vld [vmem:[%s3101_s14 + $0xd8] sm:$0xff]  ;;  %v537_v16 = vld [vmem:[%s3101_s14 + $0xe0] sm:$0xff]  ;;  %v538_v17 = vld [vmem:[%s3101_s14 + $0xe8] sm:$0xff]  ;;  %v570_v18 = vmul.f32 %v3089_v4, %v532_v60  ;;  %v571_v19 = vmul.f32 %v3089_v4, %v533_v1  ;;  %v572_v20 = vmul.f32 %v3089_v4, %v534_v5  ;;  %v3200_v23 = vadd.f32 %v3106_v8, %v552_v33 }
  0x1d   : > { %v539_v24 = vld [vmem:[%s3101_s14 + $0xf0] sm:$0xff]  ;;  %v540_v25 = vld [vmem:[%s3101_s14 + $0xf8] sm:$0xff]  ;;  %v573_v26 = vmul.f32 %v3089_v4, %v535_v6  ;;  %v574_v27 = vmul.f32 %v3089_v4, %v536_v12  ;;  %v575_v28 = vmul.f32 %v3089_v4, %v537_v16  ;;  %v3208_v30 = vadd.f32 %v3106_v8, %v553_v34 }
  0x1e   : > { %v576_v31 = vmul.f32 %v3089_v4, %v538_v17  ;;  %v577_v32 = vmul.f32 %v3089_v4, %v539_v24  ;;  %v578_v37 = vmul.f32 %v3089_v4, %v540_v25  ;;  %v3214_v33 = vadd.f32 %v3106_v8, %v554_v35 }
  0x1f   : > { %v3217_v38 = vadd.f32 %v3106_v8, %v555_v40  ;;  %v3220_v39 = vadd.f32 %v3106_v8, %v556_v41  ;;  %v3223_v44 = vadd.f32 %v3106_v8, %v557_v42  ;;  %v3226_v34 = vadd.f32 %v3106_v8, %v558_v47 }
  0x20   : > { %v3229_v45 = vadd.f32 %v3106_v8, %v559_v48  ;;  %v3232_v4 = vadd.f32 %v3106_v8, %v560_v49  ;;  %v3235_v35 = vadd.f32 %v3106_v8, %v561_v54  ;;  %v3238_v40 = vadd.f32 %v3106_v8, %v562_v55 }
  0x21   : > { %v3241_v41 = vadd.f32 %v3106_v8, %v563_v56  ;;  %v3244_v42 = vadd.f32 %v3106_v8, %v564_v61  ;;  %v3247_v46 = vadd.f32 %v3106_v8, %v565_v62  ;;  %v3250_v47 = vadd.f32 %v3106_v8, %v566_v63 }
  0x22   : > { %v3253_v48 = vadd.f32 %v3106_v8, %v567_v7  ;;  %v3256_v49 = vadd.f32 %v3106_v8, %v568_v9  ;;  %v3259_v51 = vadd.f32 %v3106_v8, %v569_v10  ;;  %v3262_v52 = vadd.f32 %v3106_v8, %v570_v18 }
  0x23   : > { %v3265_v53 = vadd.f32 %v3106_v8, %v571_v19  ;;  %v3268_v54 = vadd.f32 %v3106_v8, %v572_v20  ;;  %v3271_v55 = vadd.f32 %v3106_v8, %v573_v26  ;;  %v3274_v56 = vadd.f32 %v3106_v8, %v574_v27 }
  0x24   : > { %v3277_v58 = vadd.f32 %v3106_v8, %v575_v28  ;;  %v3280_v59 = vadd.f32 %v3106_v8, %v576_v31  ;;  %v3283_v60 = vadd.f32 %v3106_v8, %v577_v32  ;;  %v3286_v61 = vadd.f32 %v3106_v8, %v578_v37 }
  0x25   : > { %v617_v62 = vmax.f32 %v3155_v43, 0.0  ;;  %v618_v63 = vmax.f32 %v3164_v50, 0.0  ;;  %v619_v1 = vmax.f32 %v3173_v57, 0.0  ;;  %v620_v5 = vmax.f32 %v3182_v0, 0.0 }
  0x26   : > { %v621_v6 = vmax.f32 %v3191_v11, 0.0  ;;  %v622_v7 = vmax.f32 %v3200_v23, 0.0  ;;  %v623_v9 = vmax.f32 %v3208_v30, 0.0  ;;  %v624_v10 = vmax.f32 %v3214_v33, 0.0 }
  0x27   : > { %v625_v12 = vmax.f32 %v3217_v38, 0.0  ;;  %v626_v8 = vmax.f32 %v3220_v39, 0.0  ;;  %v627_v43 = vmax.f32 %v3223_v44, 0.0  ;;  %v628_v50 = vmax.f32 %v3226_v34, 0.0 }
  0x28   : > { %v629_v57 = vmax.f32 %v3229_v45, 0.0  ;;  %v630_v0 = vmax.f32 %v3232_v4, 0.0  ;;  %v631_v11 = vmax.f32 %v3235_v35, 0.0  ;;  %v632_v16 = vmax.f32 %v3238_v40, 0.0 }
  0x29   : > { %v633_v17 = vmax.f32 %v3241_v41, 0.0  ;;  %v634_v18 = vmax.f32 %v3244_v42, 0.0  ;;  %v635_v19 = vmax.f32 %v3247_v46, 0.0  ;;  %v636_v20 = vmax.f32 %v3250_v47, 0.0 }
  0x2a   : > { %v637_v23 = vmax.f32 %v3253_v48, 0.0  ;;  %v638_v24 = vmax.f32 %v3256_v49, 0.0  ;;  %v639_v25 = vmax.f32 %v3259_v51, 0.0  ;;  %v640_v26 = vmax.f32 %v3262_v52, 0.0 }
  0x2b   : > { %v641_v27 = vmax.f32 %v3265_v53, 0.0  ;;  %v642_v28 = vmax.f32 %v3268_v54, 0.0  ;;  %v643_v30 = vmax.f32 %v3271_v55, 0.0  ;;  %v644_v31 = vmax.f32 %v3274_v56, 0.0 }
  0x2c   : > { %v645_v32 = vmax.f32 %v3277_v58, 0.0  ;;  %v646_v37 = vmax.f32 %v3280_v59, 0.0  ;;  %v713_v33 = vrot.slane %v617_v62, 7  ;;  %v3318_v38 = vrot.slane %v618_v63, 7 }
  0x2d   : > { %v716_v39 = vrot.slane %v619_v1, 7  ;;  %v3320_v44 = vrot.slane %v620_v5, 7  ;;  %v719_v34 = vrot.slane %v621_v6, 7  ;;  %v3322_v45 = vrot.slane %v622_v7, 7 }
  0x2e   : > { %v647_v4 = vmax.f32 %v3283_v60, 0.0  ;;  %v722_v35 = vrot.slane %v623_v9, 7  ;;  %v723_v40 = vrot.slane %v624_v10, 7  ;;  %v725_v41 = vrot.slane %v625_v12, 7 }
  0x2f   : > { %v648_v42 = vmax.f32 %v3286_v61, 0.0  ;;  %v3328_v46 = vsel %vm709_vm0, %v713_v33, %v3318_v38  ;;  %v726_v47 = vrot.slane %v626_v8, 7  ;;  %v728_v48 = vrot.slane %v627_v43, 7 }
  0x30   : > { %6446 = vst [vmem:[#allocation7_spill] sm:$0xff] %v3328_v46  ;;  %v3332_v49 = vsel %vm709_vm0, %v716_v39, %v3320_v44  ;;  %v729_v51 = vrot.slane %v628_v50, 7  ;;  %v731_v52 = vrot.slane %v629_v57, 7  ;;  %v732_v53 = vrot.slane %v630_v0, 7 }
  0x31   : > { %6447 = vst [vmem:[#allocation8_spill] sm:$0xff] %v3332_v49  ;;  %v3336_v54 = vsel %vm709_vm0, %v719_v34, %v3322_v45  ;;  %v734_v55 = vrot.slane %v631_v11, 7  ;;  %v735_v56 = vrot.slane %v632_v16, 7  ;;  %v737_v58 = vrot.slane %v633_v17, 7 }
  0x32   : > { %6448 = vst [vmem:[#allocation9_spill] sm:$0xff] %v3336_v54  ;;  %v3339_v59 = vsel %vm709_vm0, %v722_v35, %v723_v40  ;;  %v3342_v60 = vsel %vm709_vm0, %v725_v41, %v726_v47  ;;  %v738_v61 = vrot.slane %v634_v18, 7  ;;  %v740_v62 = vrot.slane %v635_v19, 7 }
  0x33   : > { %6449 = vst [vmem:[#allocation10_spill] sm:$0xff] %v3339_v59  ;;  %6450 = vst [vmem:[#allocation11_spill] sm:$0xff] %v3342_v60  ;;  %v3345_v63 = vsel %vm709_vm0, %v728_v48, %v729_v51  ;;  %v741_v1 = vrot.slane %v636_v20, 7  ;;  %v743_v5 = vrot.slane %v637_v23, 7  ;;  %v744_v6 = vrot.slane %v638_v24, 7 }
  0x34   : > { %6451 = vst [vmem:[#allocation12_spill] sm:$0xff] %v3345_v63  ;;  %v3348_v7 = vsel %vm709_vm0, %v731_v52, %v732_v53  ;;  %v746_v9 = vrot.slane %v639_v25, 7  ;;  %v747_v10 = vrot.slane %v640_v26, 7  ;;  %v749_v12 = vrot.slane %v641_v27, 7 }
  0x35   : > { %6452 = vst [vmem:[#allocation13_spill] sm:$0xff] %v3348_v7  ;;  %v3351_v8 = vsel %vm709_vm0, %v734_v55, %v735_v56  ;;  %v3354_v43 = vsel %vm709_vm0, %v737_v58, %v738_v61  ;;  %v750_v50 = vrot.slane %v642_v28, 7  ;;  %v752_v57 = vrot.slane %v643_v30, 7 }
  0x36   : > { %6453 = vst [vmem:[#allocation14_spill] sm:$0xff] %v3351_v8  ;;  %6454 = vst [vmem:[#allocation15_spill] sm:$0xff] %v3354_v43  ;;  %v3357_v0 = vsel %vm709_vm0, %v740_v62, %v741_v1  ;;  %v753_v11 = vrot.slane %v644_v31, 7  ;;  %v755_v16 = vrot.slane %v645_v32, 7  ;;  %v756_v17 = vrot.slane %v646_v37, 7 }
  0x37   : > { %6455 = vst [vmem:[#allocation16_spill] sm:$0xff] %v3357_v0  ;;  %v3360_v18 = vsel %vm709_vm0, %v743_v5, %v744_v6  ;;  %v3363_v19 = vsel %vm709_vm0, %v746_v9, %v747_v10  ;;  %v758_v20 = vrot.slane %v647_v4, 7  ;;  %v759_v23 = vrot.slane %v648_v42, 7 }
  0x38   : > { %6456 = vst [vmem:[#allocation17_spill] sm:$0xff] %v3360_v18  ;;  %6457 = vst [vmem:[#allocation18_spill] sm:$0xff] %v3363_v19  ;;  %v3366_v24 = vsel %vm709_vm0, %v749_v12, %v750_v50  ;;  %v3369_v25 = vsel %vm709_vm0, %v752_v57, %v753_v11  ;;  %v3372_v26 = vsel %vm709_vm0, %v755_v16, %v756_v17  ;;  %v3375_v27 = vsel %vm709_vm0, 0.0, %v713_v33 }
  0x39   : > { %6458 = vst [vmem:[#allocation19_spill] sm:$0xff] %v3366_v24  ;;  %6459 = vst [vmem:[#allocation20_spill] sm:$0xff] %v3369_v25  ;;  %v3378_v28 = vsel %vm709_vm0, %v758_v20, %v759_v23  ;;  %v3381_v30 = vsel %vm709_vm0, 0.0, %v716_v39  ;;  %v3384_v31 = vsel %vm709_vm0, 0.0, %v719_v34  ;;  %v3387_v32 = vsel %vm709_vm0, 0.0, %v722_v35 }
  0x3a   : > { %6460 = vst [vmem:[#allocation21_spill] sm:$0xff] %v3372_v26  ;;  %6461 = vst [vmem:[#allocation22_spill] sm:$0xff] %v3375_v27  ;;  %v3390_v37 = vsel %vm709_vm0, 0.0, %v725_v41  ;;  %v3393_v4 = vsel %vm709_vm0, 0.0, %v728_v48  ;;  %v3396_v33 = vsel %vm709_vm0, 0.0, %v731_v52  ;;  %v3399_v42 = vsel %vm709_vm0, 0.0, %v734_v55 }
  0x3b   : > { %6462 = vst [vmem:[#allocation23_spill] sm:$0xff] %v3378_v28  ;;  %6463 = vst [vmem:[#allocation24_spill] sm:$0xff] %v3381_v30  ;;  %v3402_v39 = vsel %vm709_vm0, 0.0, %v737_v58  ;;  %v3405_v34 = vsel %vm709_vm0, 0.0, %v740_v62  ;;  %v3408_v35 = vsel %vm709_vm0, 0.0, %v743_v5  ;;  %v3411_v41 = vsel %vm709_vm0, 0.0, %v746_v9 }
  0x3c   : > { %6464 = vst [vmem:[#allocation25_spill] sm:$0xff] %v3384_v31  ;;  %6465 = vst [vmem:[#allocation26_spill] sm:$0xff] %v3387_v32  ;;  %v3414_v48 = vsel %vm709_vm0, 0.0, %v749_v12  ;;  %v3417_v52 = vsel %vm709_vm0, 0.0, %v752_v57  ;;  %v3420_v55 = vsel %vm709_vm0, 0.0, %v755_v16  ;;  %v3423_v58 = vsel %vm709_vm0, 0.0, %v758_v20 }
  0x3d   : > { %6466 = vst [vmem:[#allocation27_spill] sm:$0xff] %v3390_v37  ;;  %6467 = vst [vmem:[#allocation28_spill] sm:$0xff] %v3393_v4  ;;  %v3427_v62 = vsel %vm709_vm0, %v3318_v38, 0.0  ;;  %v3431_v5 = vsel %vm709_vm0, %v3320_v44, 0.0  ;;  %v3435_v9 = vsel %vm709_vm0, %v3322_v45, 0.0  ;;  %v3438_v12 = vsel %vm709_vm0, %v723_v40, 0.0 }
  0x3e   : > { %6468 = vst [vmem:[#allocation29_spill] sm:$0xff] %v3396_v33  ;;  %6469 = vst [vmem:[#allocation30_spill] sm:$0xff] %v3399_v42  ;;  %v3441_v57 = vsel %vm709_vm0, %v726_v47, 0.0  ;;  %v3444_v16 = vsel %vm709_vm0, %v729_v51, 0.0  ;;  %v3447_v38 = vsel %vm709_vm0, %v732_v53, 0.0  ;;  %v3450_v20 = vsel %vm709_vm0, %v735_v56, 0.0 }
  0x3f   : > { %6470 = vst [vmem:[#allocation31_spill] sm:$0xff] %v3402_v39  ;;  %6471 = vst [vmem:[#allocation32_spill] sm:$0xff] %v3405_v34  ;;  %v3453_v44 = vsel %vm709_vm0, %v738_v61, 0.0  ;;  %v3456_v45 = vsel %vm709_vm0, %v741_v1, 0.0  ;;  %v3459_v40 = vsel %vm709_vm0, %v744_v6, 0.0  ;;  %v3462_v47 = vsel %vm709_vm0, %v747_v10, 0.0 }
  0x40   : > { %6472 = vst [vmem:[#allocation33_spill] sm:$0xff] %v3408_v35  ;;  %6473 = vst [vmem:[#allocation34_spill] sm:$0xff] %v3411_v41  ;;  %v3465_v51 = vsel %vm709_vm0, %v750_v50, 0.0  ;;  %v3468_v53 = vsel %vm709_vm0, %v753_v11, 0.0  ;;  %v3471_v56 = vsel %vm709_vm0, %v756_v17, 0.0  ;;  %v3474_v61 = vsel %vm709_vm0, %v759_v23, 0.0 }
  0x41   : > { %6474 = vst [vmem:[#allocation35_spill] sm:$0xff] %v3414_v48  ;;  %6475 = vst [vmem:[#allocation36_spill] sm:$0xff] %v3417_v52  ;;  %v3478_v1 = vmul.f32 %v3120_v15, %v3081_v2  ;;  %v3482_v6 = vmul.f32 %v3120_v15, %v3375_v27  ;;  %v3486_v10 = vmul.f32 %v3120_v15, %v3328_v46 }
  0x42   : > { %6476 = vst [vmem:[#allocation37_spill] sm:$0xff] %v3420_v55  ;;  %6477 = vst [vmem:[#allocation38_spill] sm:$0xff] %v3423_v58  ;;  %v3490_v50 = vmul.f32 %v3120_v15, %v3381_v30  ;;  %v3494_v11 = vmul.f32 %v3120_v15, %v3332_v49  ;;  %v3498_v17 = vmul.f32 %v3120_v15, %v3384_v31 }
  0x43   : > { %6478 = vst [vmem:[#allocation39_spill] sm:$0xff] %v3427_v62  ;;  %6479 = vst [vmem:[#allocation40_spill] sm:$0xff] %v3431_v5  ;;  %v3502_v23 = vmul.f32 %v3120_v15, %v3336_v54  ;;  %v3506_v22 = vmul.f32 %v3120_v15, %v3387_v32  ;;  %v3514_v28 = vmul.f32 %v3120_v15, %v3390_v37 }
  0x44   : > { %6480 = vst [vmem:[#allocation41_spill] sm:$0xff] %v3435_v9  ;;  %6481 = vst [vmem:[#allocation42_spill] sm:$0xff] %v3438_v12  ;;  %v3518_v58 = vmul.f32 %v3120_v15, %v3342_v60  ;;  %v3522_v3 = vmul.f32 %v3120_v15, %v3393_v4  ;;  %v3526_v29 = vmul.f32 %v3120_v15, %v3345_v63 }
  0x45   : > { %6482 = vst [vmem:[#allocation43_spill] sm:$0xff] %v3441_v57  ;;  %6483 = vst [vmem:[#allocation44_spill] sm:$0xff] %v3444_v16 }
  0x46   : > { %6484 = vst [vmem:[#allocation45_spill] sm:$0xff] %v3447_v38  ;;  %6485 = vst [vmem:[#allocation46_spill] sm:$0xff] %v3450_v20 }
  0x47   : > { %6486 = vst [vmem:[#allocation47_spill] sm:$0xff] %v3453_v44  ;;  %6487 = vst [vmem:[#allocation48_spill] sm:$0xff] %v3456_v45 }
  0x48   : > { %6488 = vst [vmem:[#allocation49_spill] sm:$0xff] %v3459_v40  ;;  %6489 = vst [vmem:[#allocation50_spill] sm:$0xff] %v3462_v47 }
  0x49   : > { %6490 = vst [vmem:[#allocation51_spill] sm:$0xff] %v3465_v51  ;;  %6491 = vst [vmem:[#allocation52_spill] sm:$0xff] %v3468_v53 }
  0x4a   : > { %6492 = vst [vmem:[#allocation53_spill] sm:$0xff] %v3471_v56  ;;  %6493 = vst [vmem:[#allocation54_spill] sm:$0xff] %v3474_v61  ;;  %v3510_v61 = vmul.f32 %v3120_v15, %v3339_v59 }
  0x4b   : > { %6494 = vst [vmem:[#allocation55_spill] sm:$0xff] %v3490_v50  ;;  %6495 = vst [vmem:[#allocation56_spill] sm:$0xff] %v3494_v11  ;;  %v3772_v50 = vmul.f32 %v3127_v21, %v3372_v26 }
  0x4c   : > { %6496 = vst [vmem:[#allocation57_spill] sm:$0xff] %v3498_v17  ;;  %6497 = vst [vmem:[#allocation58_spill] sm:$0xff] %v3502_v23  ;;  %v900_v23 = vmul.f32 %v3127_v21, %v3328_v46  ;;  %v3628_v46 = vmul.f32 %v3127_v21, %v3336_v54  ;;  %v3648_v54 = vmul.f32 %v3127_v21, %v3390_v37 }
  0x4d   : > { %6498 = vst [vmem:[#allocation59_spill] sm:$0xff] %v3506_v22  ;;  %6499 = vst [vmem:[#allocation60_spill] sm:$0xff] %v3510_v61  ;;  %v3530_v22 = vmul.f32 %v3120_v15, %v3396_v33  ;;  %v3534_v61 = vmul.f32 %v3120_v15, %v3348_v7  ;;  %v3668_v37 = vmul.f32 %v3127_v21, %v3444_v16 }
  0x4e   : > { %6500 = vst [vmem:[#allocation61_spill] sm:$0xff] %v3514_v28  ;;  %6501 = vst [vmem:[#allocation62_spill] sm:$0xff] %v3518_v58  ;;  %v3538_v28 = vmul.f32 %v3120_v15, %v3399_v42  ;;  %v3542_v58 = vmul.f32 %v3120_v15, %v3351_v8  ;;  %v3688_v16 = vmul.f32 %v3127_v21, %v3351_v8  ;;  %v999_v17 = vrot.slane %v900_v23, 1 }
  0x4f   : > { %6502 = vst [vmem:[#allocation63_spill] sm:$0xff] %v3522_v3  ;;  %6503 = vst [vmem:[#allocation64_spill] sm:$0xff] %v3526_v29  ;;  %v3546_v3 = vmul.f32 %v3120_v15, %v3402_v39  ;;  %v3550_v29 = vmul.f32 %v3120_v15, %v3354_v43  ;;  %v3708_v8 = vmul.f32 %v3127_v21, %v3405_v34 }
  0x50   : > { %6504 = vst [vmem:[#allocation65_spill] sm:$0xff] %v3530_v22  ;;  %6505 = vst [vmem:[#allocation66_spill] sm:$0xff] %v3534_v61  ;;  %v3554_v22 = vmul.f32 %v3120_v15, %v3405_v34  ;;  %v3558_v61 = vmul.f32 %v3120_v15, %v3357_v0  ;;  %v3728_v34 = vmul.f32 %v3127_v21, %v3459_v40 }
  0x51   : > { %6506 = vst [vmem:[#allocation67_spill] sm:$0xff] %v3538_v28  ;;  %6507 = vst [vmem:[#allocation68_spill] sm:$0xff] %v3542_v58  ;;  %v3562_v28 = vmul.f32 %v3120_v15, %v3408_v35  ;;  %v3566_v58 = vmul.f32 %v3120_v15, %v3360_v18  ;;  %v3748_v40 = vmul.f32 %v3127_v21, %v3366_v24 }
  0x52   : > { %6508 = vst [vmem:[#allocation69_spill] sm:$0xff] %v3546_v3  ;;  %6509 = vst [vmem:[#allocation70_spill] sm:$0xff] %v3550_v29  ;;  %v3570_v3 = vmul.f32 %v3120_v15, %v3411_v41  ;;  %v3574_v29 = vmul.f32 %v3120_v15, %v3363_v19 }
  0x53   : > { %6510 = vst [vmem:[#allocation71_spill] sm:$0xff] %v3554_v22  ;;  %6511 = vst [vmem:[#allocation72_spill] sm:$0xff] %v3558_v61  ;;  %v3578_v22 = vmul.f32 %v3120_v15, %v3414_v48  ;;  %v3582_v61 = vmul.f32 %v3120_v15, %v3366_v24  ;;  %v3768_v24 = vmul.f32 %v3127_v21, %v3420_v55 }
  0x54   : > { %6512 = vst [vmem:[#allocation73_spill] sm:$0xff] %v3562_v28  ;;  %6513 = vst [vmem:[#allocation74_spill] sm:$0xff] %v3566_v58  ;;  %v3586_v28 = vmul.f32 %v3120_v15, %v3417_v52  ;;  %v3590_v58 = vmul.f32 %v3120_v15, %v3369_v25 }
  0x55   : > { %6514 = vst [vmem:[#allocation75_spill] sm:$0xff] %v3570_v3  ;;  %6515 = vst [vmem:[#allocation76_spill] sm:$0xff] %v3574_v29  ;;  %v3594_v3 = vmul.f32 %v3120_v15, %v3420_v55  ;;  %v3598_v29 = vmul.f32 %v3120_v15, %v3372_v26  ;;  %v902_v15 = vmul.f32 %v3127_v21, %v3381_v30 }
  0x56   : > { %6516 = vst [vmem:[#allocation77_spill] sm:$0xff] %v3578_v22  ;;  %6517 = vst [vmem:[#allocation78_spill] sm:$0xff] %v3582_v61  ;;  %v896_v22 = vmul.f32 %v3127_v21, %v3114_v13  ;;  %v897_v61 = vmul.f32 %v3127_v21, %v3081_v2  ;;  %v3616_v13 = vmul.f32 %v3127_v21, %v3332_v49 }
  0x57   : > { %6518 = vst [vmem:[#allocation79_spill] sm:$0xff] %v3586_v28  ;;  %6519 = vst [vmem:[#allocation80_spill] sm:$0xff] %v3590_v58  ;;  %v898_v28 = vmul.f32 %v3127_v21, %v3118_v14  ;;  %v899_v58 = vmul.f32 %v3127_v21, %v3375_v27  ;;  %v3620_v2 = vmul.f32 %v3127_v21, %v3431_v5 }
  0x58   : > { %6520 = vst [vmem:[#allocation81_spill] sm:$0xff] %v3594_v3  ;;  %6521 = vst [vmem:[#allocation82_spill] sm:$0xff] %v3598_v29  ;;  %v901_v3 = vmul.f32 %v3127_v21, %v3427_v62  ;;  %v3624_v27 = vmul.f32 %v3127_v21, %v3384_v31  ;;  %v3632_v62 = vmul.f32 %v3127_v21, %v3435_v9  ;;  %v993_v30 = vrot.slane %v896_v22, 1 }
  0x59   : > { %v3636_v49 = vmul.f32 %v3127_v21, %v3387_v32  ;;  %v3640_v5 = vmul.f32 %v3127_v21, %v3339_v59  ;;  %v3644_v31 = vmul.f32 %v3127_v21, %v3438_v12  ;;  %v3652_v9 = vmul.f32 %v3127_v21, %v3342_v60 }
  0x5a   : > { %v3656_v32 = vmul.f32 %v3127_v21, %v3441_v57  ;;  %v3660_v59 = vmul.f32 %v3127_v21, %v3393_v4  ;;  %v3664_v12 = vmul.f32 %v3127_v21, %v3345_v63  ;;  %v3672_v60 = vmul.f32 %v3127_v21, %v3396_v33 }
  0x5b   : > { %v3676_v57 = vmul.f32 %v3127_v21, %v3348_v7  ;;  %v3680_v4 = vmul.f32 %v3127_v21, %v3447_v38  ;;  %v3684_v63 = vmul.f32 %v3127_v21, %v3399_v42  ;;  %v3692_v33 = vmul.f32 %v3127_v21, %v3450_v20 }
  0x5c   : > { %v3696_v7 = vmul.f32 %v3127_v21, %v3402_v39  ;;  %v3700_v38 = vmul.f32 %v3127_v21, %v3354_v43  ;;  %v3704_v42 = vmul.f32 %v3127_v21, %v3453_v44  ;;  %v3712_v20 = vmul.f32 %v3127_v21, %v3357_v0 }
  0x5d   : > { %v3716_v39 = vmul.f32 %v3127_v21, %v3456_v45  ;;  %v3720_v43 = vmul.f32 %v3127_v21, %v3408_v35  ;;  %v3724_v44 = vmul.f32 %v3127_v21, %v3360_v18  ;;  %v3732_v0 = vmul.f32 %v3127_v21, %v3411_v41 }
  0x5e   : > { %v3736_v45 = vmul.f32 %v3127_v21, %v3363_v19  ;;  %v3740_v35 = vmul.f32 %v3127_v21, %v3462_v47  ;;  %v3744_v18 = vmul.f32 %v3127_v21, %v3414_v48  ;;  %v3752_v41 = vmul.f32 %v3127_v21, %v3465_v51 }
  0x5f   : > { %v3756_v19 = vmul.f32 %v3127_v21, %v3417_v52  ;;  %v3760_v47 = vmul.f32 %v3127_v21, %v3369_v25  ;;  %v3764_v48 = vmul.f32 %v3127_v21, %v3468_v53  ;;  %v994_v14 = vrot.slane %v897_v61, 1 }
  0x60   : > { %v996_v51 = vrot.slane %v898_v28, 1  ;;  %v998_v29 = vrot.slane %v899_v58, 1  ;;  %v1001_v11 = vrot.slane %v901_v3, 1  ;;  %v1003_v52 = vrot.slane %v902_v15, 1 }
  0x61   : > { %v3776_v25 = vmul.f32 %v3127_v21, %v3471_v56  ;;  %v1004_v53 = vrot.slane %v3616_v13, 1  ;;  %v1006_v55 = vrot.slane %v3620_v2, 1  ;;  %v3781_v22 = vsel %vm992_vm1, %v993_v30, %v994_v14 }
  0x62   : > { %v3784_v28 = vsel %vm992_vm1, %v994_v14, %v996_v51  ;;  %v1008_v3 = vrot.slane %v3624_v27, 1  ;;  %v1009_v58 = vrot.slane %v3628_v46, 1  ;;  %v3789_v61 = vsel %vm992_vm1, %v998_v29, %v999_v17 }
  0x63   : > { %v3792_v21 = vsel %vm992_vm1, %v999_v17, %v1001_v11  ;;  %v1011_v13 = vrot.slane %v3632_v62, 1  ;;  %v1013_v2 = vrot.slane %v3636_v49, 1  ;;  %v3797_v30 = vsel %vm992_vm1, %v1003_v52, %v1004_v53 }
  0x64   : > { %v1014_v14 = vrot.slane %v3640_v5, 1  ;;  %v1016_v51 = vrot.slane %v3644_v31, 1  ;;  %v1018_v27 = vrot.slane %v3648_v54, 1  ;;  %v3803_v46 = vsel %vm992_vm1, %v1004_v53, %v1006_v55 }
  0x65   : > { %v1019_v29 = vrot.slane %v3652_v9, 1  ;;  %v1021_v11 = vrot.slane %v3656_v32, 1  ;;  %v1023_v62 = vrot.slane %v3660_v59, 1  ;;  %v1010_v49 = vsel %vm992_vm1, %v1008_v3, %v1009_v58 }
  0x66   : > { %v1012_v52 = vsel %vm992_vm1, %v1009_v58, %v1011_v13  ;;  %v1024_v17 = vrot.slane %v3664_v12, 1  ;;  %v1026_v5 = vrot.slane %v3668_v37, 1  ;;  %v1015_v31 = vsel %vm992_vm1, %v1013_v2, %v1014_v14 }
  0x67   : > { %v1017_v54 = vsel %vm992_vm1, %v1014_v14, %v1016_v51  ;;  %v1028_v55 = vrot.slane %v3672_v60, 1  ;;  %v1029_v9 = vrot.slane %v3676_v57, 1  ;;  %v1020_v32 = vsel %vm992_vm1, %v1018_v27, %v1019_v29 }
  0x68   : > { %v1022_v59 = vsel %vm992_vm1, %v1019_v29, %v1021_v11  ;;  %v1031_v53 = vrot.slane %v3680_v4, 1  ;;  %v1033_v23 = vrot.slane %v3684_v63, 1  ;;  %v1025_v12 = vsel %vm992_vm1, %v1023_v62, %v1024_v17 }
  0x69   : > { %v1034_v37 = vrot.slane %v3688_v16, 1  ;;  %v1036_v15 = vrot.slane %v3692_v33, 1  ;;  %v1038_v3 = vrot.slane %v3696_v7, 1  ;;  %v1027_v60 = vsel %vm992_vm1, %v1024_v17, %v1026_v5 }
  0x6a   : > { %v1039_v57 = vrot.slane %v3700_v38, 1  ;;  %v1041_v58 = vrot.slane %v3704_v42, 1  ;;  %v1043_v13 = vrot.slane %v3708_v8, 1  ;;  %v1030_v4 = vsel %vm992_vm1, %v1028_v55, %v1029_v9 }
  0x6b   : > { %v1032_v63 = vsel %vm992_vm1, %v1029_v9, %v1031_v53  ;;  %v1044_v2 = vrot.slane %v3712_v20, 1  ;;  %v1046_v16 = vrot.slane %v3716_v39, 1  ;;  %v1035_v33 = vsel %vm992_vm1, %v1033_v23, %v1034_v37 }
  0x6c   : > { %v1037_v7 = vsel %vm992_vm1, %v1034_v37, %v1036_v15  ;;  %v1048_v14 = vrot.slane %v3720_v43, 1  ;;  %v1049_v38 = vrot.slane %v3724_v44, 1  ;;  %v1040_v42 = vsel %vm992_vm1, %v1038_v3, %v1039_v57  ;;  %v6522_v15 = vld [vmem:[#allocation55_spill] sm:$0xff] }
  0x6d   : > { %v1042_v8 = vsel %vm992_vm1, %v1039_v57, %v1041_v58  ;;  %v1051_v51 = vrot.slane %v3728_v34, 1  ;;  %v1053_v27 = vrot.slane %v3732_v0, 1  ;;  %v1045_v20 = vsel %vm992_vm1, %v1043_v13, %v1044_v2  ;;  %v6528_v57 = vld [vmem:[#allocation58_spill] sm:$0xff]  ;;  %v6532_v13 = vld [vmem:[#allocation60_spill] sm:$0xff] }
  0x6e   : > { %v1054_v39 = vrot.slane %v3736_v45, 1  ;;  %v1056_v29 = vrot.slane %v3740_v35, 1  ;;  %v1058_v11 = vrot.slane %v3744_v18, 1  ;;  %v1047_v43 = vsel %vm992_vm1, %v1044_v2, %v1046_v16 }
  0x6f   : > { %v1059_v44 = vrot.slane %v3748_v40, 1  ;;  %v1061_v62 = vrot.slane %v3752_v41, 1  ;;  %v1063_v17 = vrot.slane %v3756_v19, 1  ;;  %v1050_v34 = vsel %vm992_vm1, %v1048_v14, %v1049_v38 }
  0x70   : > { %v1052_v0 = vsel %vm992_vm1, %v1049_v38, %v1051_v51  ;;  %v1064_v5 = vrot.slane %v3760_v47, 1  ;;  %v1066_v45 = vrot.slane %v3764_v48, 1  ;;  %v1055_v35 = vsel %vm992_vm1, %v1053_v27, %v1054_v39 }
  0x71   : > { %v1057_v18 = vsel %vm992_vm1, %v1054_v39, %v1056_v29  ;;  %v1068_v55 = vrot.slane %v3768_v24, 1  ;;  %v1069_v40 = vrot.slane %v3772_v50, 1  ;;  %v1060_v41 = vsel %vm992_vm1, %v1058_v11, %v1059_v44 }
  0x72   : > { %v1062_v19 = vsel %vm992_vm1, %v1059_v44, %v1061_v62  ;;  %v1065_v9 = vsel %vm992_vm1, %v1063_v17, %v1064_v5  ;;  %v1071_v53 = vrot.slane %v3776_v25, 1  ;;  %v1067_v47 = vsel %vm992_vm1, %v1064_v5, %v1066_v45 }
  0x73   : > { %v1070_v48 = vsel %vm992_vm1, %v1068_v55, %v1069_v40  ;;  %v3864_v23 = vadd.f32 %v3781_v22, %v3146_v36  ;;  %v3868_v24 = vadd.f32 %v3784_v28, %v3478_v1  ;;  %v3873_v37 = vadd.f32 %v3789_v61, %v3482_v6  ;;  %v6524_v36 = vld [vmem:[#allocation56_spill] sm:$0xff]  ;;  %v6526_v1 = vld [vmem:[#allocation57_spill] sm:$0xff]  ;;  %v6530_v6 = vld [vmem:[#allocation59_spill] sm:$0xff] }
  0x74   : > { %v1072_v50 = vsel %vm992_vm1, %v1069_v40, %v1071_v53  ;;  %v3877_v25 = vadd.f32 %v3792_v21, %v3486_v10  ;;  %v3881_v3 = vadd.f32 %v3797_v30, %v6522_v15  ;;  %v3885_v22 = vadd.f32 %v3803_v46, %v6524_v36  ;;  %v6534_v21 = vld [vmem:[#allocation61_spill] sm:$0xff]  ;;  %v6536_v30 = vld [vmem:[#allocation62_spill] sm:$0xff]  ;;  %v6538_v46 = vld [vmem:[#allocation63_spill] sm:$0xff] }
  0x75   : > { %v3888_v28 = vadd.f32 %v1010_v49, %v6526_v1  ;;  %v3891_v58 = vadd.f32 %v1012_v52, %v6528_v57  ;;  %v3894_v61 = vadd.f32 %v1015_v31, %v6530_v6  ;;  %v3897_v10 = vadd.f32 %v1017_v54, %v6532_v13  ;;  %v6540_v49 = vld [vmem:[#allocation64_spill] sm:$0xff]  ;;  %v6542_v52 = vld [vmem:[#allocation65_spill] sm:$0xff]  ;;  %v6544_v31 = vld [vmem:[#allocation66_spill] sm:$0xff] }
  0x76   : > { %6523 = vst [vmem:[#allocation55_spill] sm:$0xff] %v3881_v3  ;;  %6525 = vst [vmem:[#allocation56_spill] sm:$0xff] %v3885_v22  ;;  %v3900_v2 = vadd.f32 %v1020_v32, %v6534_v21  ;;  %v3903_v16 = vadd.f32 %v1022_v59, %v6536_v30  ;;  %v3906_v14 = vadd.f32 %v1025_v12, %v6538_v46  ;;  %v6546_v54 = vld [vmem:[#allocation67_spill] sm:$0xff]  ;;  %v6548_v32 = vld [vmem:[#allocation68_spill] sm:$0xff] }
  0x77   : > { %6527 = vst [vmem:[#allocation57_spill] sm:$0xff] %v3888_v28  ;;  %6529 = vst [vmem:[#allocation58_spill] sm:$0xff] %v3891_v58  ;;  %v3909_v38 = vadd.f32 %v1027_v60, %v6540_v49  ;;  %v3912_v51 = vadd.f32 %v1030_v4, %v6542_v52  ;;  %v3915_v27 = vadd.f32 %v1032_v63, %v6544_v31  ;;  %v6550_v59 = vld [vmem:[#allocation69_spill] sm:$0xff]  ;;  %v6552_v12 = vld [vmem:[#allocation70_spill] sm:$0xff] }
  0x78   : > { %6531 = vst [vmem:[#allocation59_spill] sm:$0xff] %v3894_v61  ;;  %6533 = vst [vmem:[#allocation60_spill] sm:$0xff] %v3897_v10  ;;  %v3918_v39 = vadd.f32 %v1035_v33, %v6546_v54  ;;  %v3921_v29 = vadd.f32 %v1037_v7, %v6548_v32  ;;  %v3924_v11 = vadd.f32 %v1040_v42, %v6550_v59  ;;  %v6554_v60 = vld [vmem:[#allocation71_spill] sm:$0xff]  ;;  %v6556_v4 = vld [vmem:[#allocation72_spill] sm:$0xff] }
  0x79   : > { %6535 = vst [vmem:[#allocation61_spill] sm:$0xff] %v3900_v2  ;;  %6537 = vst [vmem:[#allocation62_spill] sm:$0xff] %v3903_v16  ;;  %v3927_v44 = vadd.f32 %v1042_v8, %v6552_v12  ;;  %v3930_v62 = vadd.f32 %v1045_v20, %v6554_v60  ;;  %v3933_v17 = vadd.f32 %v1047_v43, %v6556_v4  ;;  %v6558_v63 = vld [vmem:[#allocation73_spill] sm:$0xff]  ;;  %v6560_v33 = vld [vmem:[#allocation74_spill] sm:$0xff] }
  0x7a   : > { %6539 = vst [vmem:[#allocation63_spill] sm:$0xff] %v3906_v14  ;;  %6541 = vst [vmem:[#allocation64_spill] sm:$0xff] %v3909_v38  ;;  %v3936_v5 = vadd.f32 %v1050_v34, %v6558_v63  ;;  %v3939_v45 = vadd.f32 %v1052_v0, %v6560_v33  ;;  %v6562_v7 = vld [vmem:[#allocation75_spill] sm:$0xff]  ;;  %v6564_v42 = vld [vmem:[#allocation76_spill] sm:$0xff] }
  0x7b   : > { %6543 = vst [vmem:[#allocation65_spill] sm:$0xff] %v3912_v51  ;;  %6545 = vst [vmem:[#allocation66_spill] sm:$0xff] %v3915_v27  ;;  %v3942_v55 = vadd.f32 %v1055_v35, %v6562_v7  ;;  %v3945_v40 = vadd.f32 %v1057_v18, %v6564_v42  ;;  %v6566_v8 = vld [vmem:[#allocation77_spill] sm:$0xff]  ;;  %v6568_v20 = vld [vmem:[#allocation78_spill] sm:$0xff] }
  0x7c   : > { %6547 = vst [vmem:[#allocation67_spill] sm:$0xff] %v3918_v39  ;;  %6549 = vst [vmem:[#allocation68_spill] sm:$0xff] %v3921_v29  ;;  %v3948_v53 = vadd.f32 %v1060_v41, %v6566_v8  ;;  %v3951_v15 = vadd.f32 %v1062_v19, %v6568_v20  ;;  %v6570_v43 = vld [vmem:[#allocation79_spill] sm:$0xff]  ;;  %v6572_v34 = vld [vmem:[#allocation80_spill] sm:$0xff] }
  0x7d   : > { %6551 = vst [vmem:[#allocation69_spill] sm:$0xff] %v3924_v11  ;;  %6553 = vst [vmem:[#allocation70_spill] sm:$0xff] %v3927_v44  ;;  %v3954_v36 = vadd.f32 %v1065_v9, %v6570_v43  ;;  %v3957_v1 = vadd.f32 %v1067_v47, %v6572_v34  ;;  %v6574_v0 = vld [vmem:[#allocation81_spill] sm:$0xff]  ;;  %v6576_v35 = vld [vmem:[#allocation82_spill] sm:$0xff] }
  0x7e   : > { %6555 = vst [vmem:[#allocation71_spill] sm:$0xff] %v3930_v62  ;;  %6557 = vst [vmem:[#allocation72_spill] sm:$0xff] %v3933_v17  ;;  %v3960_v57 = vadd.f32 %v1070_v48, %v6574_v0  ;;  %v3963_v6 = vadd.f32 %v1072_v50, %v6576_v35  ;;  %v6578_v18 = vld [vmem:[#allocation4_spill] sm:$0xff]  ;;  %v6579_v13 = vld [vmem:[#allocation6_spill] sm:$0xff] }
  0x7f   : > { %6559 = vst [vmem:[#allocation73_spill] sm:$0xff] %v3936_v5  ;;  %6561 = vst [vmem:[#allocation74_spill] sm:$0xff] %v3939_v45  ;;  %v1141_v21 = vmul.f32 %v6579_v13, %v6578_v18  ;;  %v6580_v41 = vld [vmem:[#allocation2_spill] sm:$0xff]  ;;  %v6581_v19 = vld [vmem:[#allocation5_spill] sm:$0xff]  ;;  %v4137_v3 = vmul.f32 %v6579_v13, %v3372_v26 }
  0x80   : > { %6563 = vst [vmem:[#allocation75_spill] sm:$0xff] %v3942_v55  ;;  %6565 = vst [vmem:[#allocation76_spill] sm:$0xff] %v3945_v40  ;;  %v1142_v30 = vmul.f32 %v6579_v13, %v6580_v41  ;;  %v1143_v46 = vmul.f32 %v6579_v13, %v6581_v19  ;;  %v6582_v9 = vld [vmem:[#allocation22_spill] sm:$0xff]  ;;  %v6583_v47 = vld [vmem:[#allocation7_spill] sm:$0xff] }
  0x81   : > { %6567 = vst [vmem:[#allocation77_spill] sm:$0xff] %v3948_v53  ;;  %6569 = vst [vmem:[#allocation78_spill] sm:$0xff] %v3951_v15  ;;  %v1144_v49 = vmul.f32 %v6579_v13, %v6582_v9  ;;  %v1145_v52 = vmul.f32 %v6579_v13, %v6583_v47  ;;  %v6584_v48 = vld [vmem:[#allocation39_spill] sm:$0xff]  ;;  %v6585_v50 = vld [vmem:[#allocation24_spill] sm:$0xff]  ;;  %v1238_v10 = vrot.slane %v1141_v21, 2 }
  0x82   : > { %6571 = vst [vmem:[#allocation79_spill] sm:$0xff] %v3954_v36  ;;  %6573 = vst [vmem:[#allocation80_spill] sm:$0xff] %v3957_v1  ;;  %v1146_v31 = vmul.f32 %v6579_v13, %v6584_v48  ;;  %v1147_v54 = vmul.f32 %v6579_v13, %v6585_v50  ;;  %v6586_v32 = vld [vmem:[#allocation8_spill] sm:$0xff]  ;;  %v6588_v4 = vld [vmem:[#allocation25_spill] sm:$0xff]  ;;  %v1239_v61 = vrot.slane %v1142_v30, 2 }
  0x83   : > { %6575 = vst [vmem:[#allocation81_spill] sm:$0xff] %v3960_v57  ;;  %6577 = vst [vmem:[#allocation82_spill] sm:$0xff] %v3963_v6  ;;  %v3981_v59 = vmul.f32 %v6579_v13, %v6586_v32  ;;  %v6587_v12 = vld [vmem:[#allocation40_spill] sm:$0xff]  ;;  %v3989_v63 = vmul.f32 %v6579_v13, %v6588_v4  ;;  %v6589_v33 = vld [vmem:[#allocation9_spill] sm:$0xff]  ;;  %v1243_v58 = vrot.slane %v1144_v49, 2  ;;  %v1244_v28 = vrot.slane %v1145_v52, 2 }
  0x84   : > { %v3985_v60 = vmul.f32 %v6579_v13, %v6587_v12  ;;  %v3993_v7 = vmul.f32 %v6579_v13, %v6589_v33  ;;  %v6590_v42 = vld [vmem:[#allocation41_spill] sm:$0xff]  ;;  %v6591_v20 = vld [vmem:[#allocation26_spill] sm:$0xff]  ;;  %v6594_v41 = vld [vmem:[#allocation27_spill] sm:$0xff]  ;;  %v1246_v22 = vrot.slane %v1146_v31, 2  ;;  %v4146_v21 = vsel %vm1237_vm2, %v1238_v10, %v1239_v61 }
  0x85   : > { %v3997_v8 = vmul.f32 %v6579_v13, %v6590_v42  ;;  %v4001_v43 = vmul.f32 %v6579_v13, %v6591_v20  ;;  %v6592_v34 = vld [vmem:[#allocation10_spill] sm:$0xff]  ;;  %v4013_v18 = vmul.f32 %v6579_v13, %v6594_v41  ;;  %v6595_v48 = vld [vmem:[#allocation11_spill] sm:$0xff]  ;;  %v6597_v33 = vld [vmem:[#allocation28_spill] sm:$0xff]  ;;  %v4154_v52 = vsel %vm1237_vm2, %v1243_v58, %v1244_v28 }
  0x86   : > { %v4005_v0 = vmul.f32 %v6579_v13, %v6592_v34  ;;  %v6593_v35 = vld [vmem:[#allocation42_spill] sm:$0xff]  ;;  %v4017_v42 = vmul.f32 %v6579_v13, %v6595_v48  ;;  %v6596_v12 = vld [vmem:[#allocation43_spill] sm:$0xff]  ;;  %v4025_v34 = vmul.f32 %v6579_v13, %v6597_v33  ;;  %v6598_v4 = vld [vmem:[#allocation12_spill] sm:$0xff]  ;;  %v1254_v49 = vrot.slane %v3993_v7, 2 }
  0x87   : > { %v4009_v19 = vmul.f32 %v6579_v13, %v6593_v35  ;;  %v4021_v20 = vmul.f32 %v6579_v13, %v6596_v12  ;;  %v4029_v35 = vmul.f32 %v6579_v13, %v6598_v4  ;;  %v6599_v32 = vld [vmem:[#allocation44_spill] sm:$0xff]  ;;  %v6600_v50 = vld [vmem:[#allocation29_spill] sm:$0xff]  ;;  %v6603_v6 = vld [vmem:[#allocation30_spill] sm:$0xff]  ;;  %v1256_v31 = vrot.slane %v3997_v8, 2 }
  0x88   : > { %v4033_v41 = vmul.f32 %v6579_v13, %v6599_v32  ;;  %v4037_v48 = vmul.f32 %v6579_v13, %v6600_v50  ;;  %v6601_v47 = vld [vmem:[#allocation13_spill] sm:$0xff]  ;;  %v4049_v4 = vmul.f32 %v6579_v13, %v6603_v6  ;;  %v6604_v57 = vld [vmem:[#allocation14_spill] sm:$0xff]  ;;  %v6606_v36 = vld [vmem:[#allocation31_spill] sm:$0xff]  ;;  %v1264_v58 = vrot.slane %v4017_v42, 2 }
  0x89   : > { %v4041_v12 = vmul.f32 %v6579_v13, %v6601_v47  ;;  %v6602_v9 = vld [vmem:[#allocation45_spill] sm:$0xff]  ;;  %v4053_v32 = vmul.f32 %v6579_v13, %v6604_v57  ;;  %v6605_v1 = vld [vmem:[#allocation46_spill] sm:$0xff]  ;;  %v4061_v47 = vmul.f32 %v6579_v13, %v6606_v36  ;;  %v6607_v15 = vld [vmem:[#allocation15_spill] sm:$0xff]  ;;  %v1269_v7 = vrot.slane %v4029_v35, 2 }
  0x8a   : > { %v4045_v33 = vmul.f32 %v6579_v13, %v6602_v9  ;;  %v4057_v50 = vmul.f32 %v6579_v13, %v6605_v1  ;;  %v4065_v9 = vmul.f32 %v6579_v13, %v6607_v15  ;;  %v6608_v53 = vld [vmem:[#allocation47_spill] sm:$0xff]  ;;  %v6609_v40 = vld [vmem:[#allocation32_spill] sm:$0xff]  ;;  %v6612_v5 = vld [vmem:[#allocation33_spill] sm:$0xff]  ;;  %v1271_v8 = vrot.slane %v4033_v41, 2 }
  0x8b   : > { %v4069_v6 = vmul.f32 %v6579_v13, %v6608_v53  ;;  %v4073_v57 = vmul.f32 %v6579_v13, %v6609_v40  ;;  %v6610_v55 = vld [vmem:[#allocation16_spill] sm:$0xff]  ;;  %v4085_v15 = vmul.f32 %v6579_v13, %v6612_v5  ;;  %v6613_v17 = vld [vmem:[#allocation17_spill] sm:$0xff]  ;;  %v6615_v44 = vld [vmem:[#allocation34_spill] sm:$0xff]  ;;  %v1279_v41 = vrot.slane %v4053_v32, 2 }
  0x8c   : > { %v4077_v1 = vmul.f32 %v6579_v13, %v6610_v55  ;;  %v6611_v45 = vld [vmem:[#allocation48_spill] sm:$0xff]  ;;  %v4089_v53 = vmul.f32 %v6579_v13, %v6613_v17  ;;  %v6614_v62 = vld [vmem:[#allocation49_spill] sm:$0xff]  ;;  %v4097_v55 = vmul.f32 %v6579_v13, %v6615_v44  ;;  %v6616_v11 = vld [vmem:[#allocation18_spill] sm:$0xff]  ;;  %v1281_v35 = vrot.slane %v4057_v50, 2 }
  0x8d   : > { %v4081_v36 = vmul.f32 %v6579_v13, %v6611_v45  ;;  %v4093_v40 = vmul.f32 %v6579_v13, %v6614_v62  ;;  %v4101_v45 = vmul.f32 %v6579_v13, %v6616_v11  ;;  %v6617_v29 = vld [vmem:[#allocation50_spill] sm:$0xff]  ;;  %v6618_v39 = vld [vmem:[#allocation35_spill] sm:$0xff]  ;;  %v6621_v38 = vld [vmem:[#allocation36_spill] sm:$0xff] }
  0x8e   : > { %v4105_v5 = vmul.f32 %v6579_v13, %v6617_v29  ;;  %v4109_v17 = vmul.f32 %v6579_v13, %v6618_v39  ;;  %v6619_v27 = vld [vmem:[#allocation19_spill] sm:$0xff]  ;;  %v4121_v11 = vmul.f32 %v6579_v13, %v6621_v38  ;;  %v6622_v14 = vld [vmem:[#allocation20_spill] sm:$0xff]  ;;  %v6624_v2 = vld [vmem:[#allocation37_spill] sm:$0xff]  ;;  %v1248_v38 = vrot.slane %v1147_v54, 2 }
  0x8f   : > { %v4113_v62 = vmul.f32 %v6579_v13, %v6619_v27  ;;  %v6620_v51 = vld [vmem:[#allocation51_spill] sm:$0xff]  ;;  %v4125_v29 = vmul.f32 %v6579_v13, %v6622_v14  ;;  %v6623_v16 = vld [vmem:[#allocation52_spill] sm:$0xff]  ;;  %v4133_v27 = vmul.f32 %v6579_v13, %v6624_v2  ;;  %v4141_v14 = vmul.f32 %v6579_v13, %v3471_v56 }
  0x90   : > { %v4117_v44 = vmul.f32 %v6579_v13, %v6620_v51  ;;  %v4129_v39 = vmul.f32 %v6579_v13, %v6623_v16  ;;  %v1241_v51 = vrot.slane %v1143_v46, 2  ;;  %v1249_v16 = vrot.slane %v3981_v59, 2 }
  0x91   : > { %v1251_v2 = vrot.slane %v3985_v60, 2  ;;  %v1253_v46 = vrot.slane %v3989_v63, 2  ;;  %v4157_v13 = vsel %vm1237_vm2, %v1244_v28, %v1246_v22  ;;  %v1258_v54 = vrot.slane %v4001_v43, 2 }
  0x92   : > { %v4149_v30 = vsel %vm1237_vm2, %v1239_v61, %v1241_v51  ;;  %v4162_v10 = vsel %vm1237_vm2, %v1248_v38, %v1249_v16  ;;  %v1259_v61 = vrot.slane %v4005_v0, 2  ;;  %v1261_v51 = vrot.slane %v4009_v19, 2 }
  0x93   : > { %v1263_v59 = vrot.slane %v4013_v18, 2  ;;  %v4168_v60 = vsel %vm1237_vm2, %v1249_v16, %v1251_v2  ;;  %v1266_v22 = vrot.slane %v4021_v20, 2  ;;  %v1268_v28 = vrot.slane %v4025_v34, 2 }
  0x94   : > { %v1255_v63 = vsel %vm1237_vm2, %v1253_v46, %v1254_v49  ;;  %v1257_v38 = vsel %vm1237_vm2, %v1254_v49, %v1256_v31  ;;  %v1260_v19 = vsel %vm1237_vm2, %v1258_v54, %v1259_v61  ;;  %v1262_v18 = vsel %vm1237_vm2, %v1259_v61, %v1261_v51 }
  0x95   : > { %v1273_v2 = vrot.slane %v4037_v48, 2  ;;  %v1274_v16 = vrot.slane %v4041_v12, 2  ;;  %v1265_v42 = vsel %vm1237_vm2, %v1263_v59, %v1264_v58  ;;  %v1267_v20 = vsel %vm1237_vm2, %v1264_v58, %v1266_v22 }
  0x96   : > { %v1276_v43 = vrot.slane %v4045_v33, 2  ;;  %v1278_v34 = vrot.slane %v4049_v4, 2  ;;  %v1270_v0 = vsel %vm1237_vm2, %v1268_v28, %v1269_v7  ;;  %v1283_v46 = vrot.slane %v4061_v47, 2 }
  0x97   : > { %v1272_v48 = vsel %vm1237_vm2, %v1269_v7, %v1271_v8  ;;  %v1284_v12 = vrot.slane %v4065_v9, 2  ;;  %v1286_v49 = vrot.slane %v4069_v6, 2  ;;  %v1288_v31 = vrot.slane %v4073_v57, 2 }
  0x98   : > { %v1275_v33 = vsel %vm1237_vm2, %v1273_v2, %v1274_v16  ;;  %v1277_v4 = vsel %vm1237_vm2, %v1274_v16, %v1276_v43  ;;  %v1289_v54 = vrot.slane %v4077_v1, 2  ;;  %v1291_v32 = vrot.slane %v4081_v36, 2 }
  0x99   : > { %v1280_v50 = vsel %vm1237_vm2, %v1278_v34, %v1279_v41  ;;  %v1282_v47 = vsel %vm1237_vm2, %v1279_v41, %v1281_v35  ;;  %v1293_v61 = vrot.slane %v4085_v15, 2  ;;  %v1294_v9 = vrot.slane %v4089_v53, 2  ;;  %v6625_v35 = vld [vmem:[#allocation55_spill] sm:$0xff] }
  0x9a   : > { %v1285_v6 = vsel %vm1237_vm2, %v1283_v46, %v1284_v12  ;;  %v1287_v57 = vsel %vm1237_vm2, %v1284_v12, %v1286_v49  ;;  %v1296_v51 = vrot.slane %v4093_v40, 2  ;;  %v1298_v59 = vrot.slane %v4097_v55, 2  ;;  %v6628_v12 = vld [vmem:[#allocation58_spill] sm:$0xff] }
  0x9b   : > { %v1290_v1 = vsel %vm1237_vm2, %v1288_v31, %v1289_v54  ;;  %v1299_v36 = vrot.slane %v4101_v45, 2  ;;  %v1301_v58 = vrot.slane %v4105_v5, 2  ;;  %v1303_v22 = vrot.slane %v4109_v17, 2  ;;  %v6630_v31 = vld [vmem:[#allocation60_spill] sm:$0xff] }
  0x9c   : > { %v1292_v15 = vsel %vm1237_vm2, %v1289_v54, %v1291_v32  ;;  %v1304_v53 = vrot.slane %v4113_v62, 2  ;;  %v1306_v28 = vrot.slane %v4117_v44, 2  ;;  %v1308_v7 = vrot.slane %v4121_v11, 2 }
  0x9d   : > { %v1295_v40 = vsel %vm1237_vm2, %v1293_v61, %v1294_v9  ;;  %v1297_v55 = vsel %vm1237_vm2, %v1294_v9, %v1296_v51  ;;  %v1309_v8 = vrot.slane %v4125_v29, 2  ;;  %v1311_v45 = vrot.slane %v4129_v39, 2 }
  0x9e   : > { %v1300_v5 = vsel %vm1237_vm2, %v1298_v59, %v1299_v36  ;;  %v1302_v17 = vsel %vm1237_vm2, %v1299_v36, %v1301_v58  ;;  %v1313_v2 = vrot.slane %v4133_v27, 2  ;;  %v1314_v62 = vrot.slane %v4137_v3, 2 }
  0x9f   : > { %v1305_v44 = vsel %vm1237_vm2, %v1303_v22, %v1304_v53  ;;  %v1307_v11 = vsel %vm1237_vm2, %v1304_v53, %v1306_v28  ;;  %v1310_v16 = vsel %vm1237_vm2, %v1308_v7, %v1309_v8  ;;  %v1316_v43 = vrot.slane %v4141_v14, 2 }
  0xa0   : > { %v1312_v29 = vsel %vm1237_vm2, %v1309_v8, %v1311_v45  ;;  %v1315_v39 = vsel %vm1237_vm2, %v1313_v2, %v1314_v62  ;;  %v4229_v34 = vadd.f32 %v4146_v21, %v3864_v23  ;;  %v4233_v27 = vadd.f32 %v4149_v30, %v3868_v24  ;;  %v6626_v23 = vld [vmem:[#allocation56_spill] sm:$0xff]  ;;  %v6627_v24 = vld [vmem:[#allocation57_spill] sm:$0xff] }
  0xa1   : > { %v1317_v3 = vsel %vm1237_vm2, %v1314_v62, %v1316_v43  ;;  %v4238_v41 = vadd.f32 %v4154_v52, %v3873_v37  ;;  %v4242_v14 = vadd.f32 %v4157_v13, %v3877_v25  ;;  %v4246_v46 = vadd.f32 %v4162_v10, %v6625_v35  ;;  %v6629_v37 = vld [vmem:[#allocation59_spill] sm:$0xff]  ;;  %v6631_v13 = vld [vmem:[#allocation61_spill] sm:$0xff]  ;;  %v6632_v10 = vld [vmem:[#allocation62_spill] sm:$0xff] }
  0xa2   : > { %v4250_v21 = vadd.f32 %v4168_v60, %v6626_v23  ;;  %v4253_v30 = vadd.f32 %v1255_v63, %v6627_v24  ;;  %v4256_v49 = vadd.f32 %v1257_v38, %v6628_v12  ;;  %v4259_v52 = vadd.f32 %v1260_v19, %v6629_v37  ;;  %v6633_v60 = vld [vmem:[#allocation63_spill] sm:$0xff]  ;;  %v6634_v63 = vld [vmem:[#allocation64_spill] sm:$0xff]  ;;  %v6635_v38 = vld [vmem:[#allocation65_spill] sm:$0xff] }
  0xa3   : > { %v4262_v25 = vadd.f32 %v1262_v18, %v6630_v31  ;;  %v4265_v54 = vadd.f32 %v1265_v42, %v6631_v13  ;;  %v4268_v32 = vadd.f32 %v1267_v20, %v6632_v10  ;;  %v4271_v61 = vadd.f32 %v1270_v0, %v6633_v60  ;;  %v6636_v19 = vld [vmem:[#allocation66_spill] sm:$0xff]  ;;  %v6637_v18 = vld [vmem:[#allocation67_spill] sm:$0xff]  ;;  %v6638_v42 = vld [vmem:[#allocation68_spill] sm:$0xff] }
  0xa4   : > { %v4274_v9 = vadd.f32 %v1272_v48, %v6634_v63  ;;  %v4277_v51 = vadd.f32 %v1275_v33, %v6635_v38  ;;  %v4280_v59 = vadd.f32 %v1277_v4, %v6636_v19  ;;  %v4283_v36 = vadd.f32 %v1280_v50, %v6637_v18  ;;  %v6639_v20 = vld [vmem:[#allocation69_spill] sm:$0xff]  ;;  %v6640_v0 = vld [vmem:[#allocation70_spill] sm:$0xff]  ;;  %v6641_v48 = vld [vmem:[#allocation71_spill] sm:$0xff] }
  0xa5   : > { %v4286_v58 = vadd.f32 %v1282_v47, %v6638_v42  ;;  %v4289_v22 = vadd.f32 %v1285_v6, %v6639_v20  ;;  %v4292_v53 = vadd.f32 %v1287_v57, %v6640_v0  ;;  %v4295_v28 = vadd.f32 %v1290_v1, %v6641_v48  ;;  %v6642_v33 = vld [vmem:[#allocation72_spill] sm:$0xff]  ;;  %v6644_v4 = vld [vmem:[#allocation73_spill] sm:$0xff]  ;;  %v6646_v50 = vld [vmem:[#allocation74_spill] sm:$0xff] }
  0xa6   : > { %v4298_v7 = vadd.f32 %v1292_v15, %v6642_v33  ;;  %v4301_v8 = vadd.f32 %v1295_v40, %v6644_v4  ;;  %v4304_v45 = vadd.f32 %v1297_v55, %v6646_v50  ;;  %v6648_v47 = vld [vmem:[#allocation75_spill] sm:$0xff]  ;;  %v6650_v6 = vld [vmem:[#allocation76_spill] sm:$0xff]  ;;  %v6652_v57 = vld [vmem:[#allocation77_spill] sm:$0xff] }
  0xa7   : > { %v4307_v2 = vadd.f32 %v1300_v5, %v6648_v47  ;;  %v4310_v62 = vadd.f32 %v1302_v17, %v6650_v6  ;;  %v4313_v43 = vadd.f32 %v1305_v44, %v6652_v57  ;;  %v6654_v1 = vld [vmem:[#allocation78_spill] sm:$0xff]  ;;  %v6656_v15 = vld [vmem:[#allocation79_spill] sm:$0xff]  ;;  %v6658_v40 = vld [vmem:[#allocation80_spill] sm:$0xff] }
  0xa8   : > { %6643 = vst [vmem:[#allocation6_spill] sm:$0xff] %v4298_v7  ;;  %6645 = vst [vmem:[#allocation55_spill] sm:$0xff] %v4301_v8  ;;  %v4316_v35 = vadd.f32 %v1307_v11, %v6654_v1  ;;  %v4319_v23 = vadd.f32 %v1310_v16, %v6656_v15  ;;  %v4322_v24 = vadd.f32 %v1312_v29, %v6658_v40  ;;  %v6660_v55 = vld [vmem:[#allocation81_spill] sm:$0xff]  ;;  %v6662_v5 = vld [vmem:[#allocation82_spill] sm:$0xff] }
  0xa9   : > { %6647 = vst [vmem:[#allocation56_spill] sm:$0xff] %v4304_v45  ;;  %6649 = vst [vmem:[#allocation57_spill] sm:$0xff] %v4307_v2  ;;  %v4325_v12 = vadd.f32 %v1315_v39, %v6660_v55  ;;  %v4328_v37 = vadd.f32 %v1317_v3, %v6662_v5  ;;  %v4333_v17 = vld [vmem:[%s6317_s3] sm:$0xff]  ;;  %v6665_v44 = vld [vmem:[#allocation3_spill] sm:$0xff] }
  0xaa   : > { %6651 = vst [vmem:[#allocation58_spill] sm:$0xff] %v4310_v62  ;;  %6653 = vst [vmem:[#allocation59_spill] sm:$0xff] %v4313_v43  ;;  %v6666_v11 = vsub.s32 3, %v6665_v44  ;;  %v6667_v10 = vld [vmem:[#allocation22_spill] sm:$0xff]  ;;  %v6668_v60 = vld [vmem:[#allocation7_spill] sm:$0xff] }
  0xab   : > { %6655 = vst [vmem:[#allocation60_spill] sm:$0xff] %v4316_v35  ;;  %6657 = vst [vmem:[#allocation61_spill] sm:$0xff] %v4319_v23  ;;  %v6669_v38 = vld [vmem:[#allocation24_spill] sm:$0xff]  ;;  %v6671_v20 = vld [vmem:[#allocation25_spill] sm:$0xff] }
  0xac   : > { %6659 = vst [vmem:[#allocation62_spill] sm:$0xff] %v4322_v24  ;;  %6661 = vst [vmem:[#allocation63_spill] sm:$0xff] %v4325_v12  ;;  %v1385_v31 = vrot.slane %v4333_v17, %v6666_v11  ;;  %v6670_v18 = vld [vmem:[#allocation8_spill] sm:$0xff]  ;;  %v6672_v48 = vld [vmem:[#allocation9_spill] sm:$0xff] }
  0xad   : > { %6663 = vst [vmem:[#allocation64_spill] sm:$0xff] %v4328_v37  ;;  %6664 = vst [vmem:[#allocation65_spill] sm:$0xff] %v4333_v17  ;;  %v6673_v4 = vld [vmem:[#allocation26_spill] sm:$0xff]  ;;  %v6675_v57 = vld [vmem:[#allocation27_spill] sm:$0xff] }
  0xae   : > { %v1386_v3 = vmul.f32 %v1385_v31, %v6667_v10  ;;  %v1387_v63 = vmul.f32 %v1385_v31, %v6668_v60  ;;  %v1388_v19 = vmul.f32 %v1385_v31, %v6669_v38  ;;  %v1389_v42 = vmul.f32 %v1385_v31, %v6670_v18  ;;  %v6674_v47 = vld [vmem:[#allocation10_spill] sm:$0xff]  ;;  %v6676_v15 = vld [vmem:[#allocation11_spill] sm:$0xff]  ;;  %v6677_v55 = vld [vmem:[#allocation28_spill] sm:$0xff] }
  0xaf   : > { %v1390_v0 = vmul.f32 %v1385_v31, %v6671_v20  ;;  %v1391_v33 = vmul.f32 %v1385_v31, %v6672_v48  ;;  %v1392_v50 = vmul.f32 %v1385_v31, %v6673_v4  ;;  %v1393_v6 = vmul.f32 %v1385_v31, %v6674_v47  ;;  %v6678_v11 = vld [vmem:[#allocation12_spill] sm:$0xff]  ;;  %v6679_v13 = vld [vmem:[#allocation29_spill] sm:$0xff]  ;;  %v6681_v60 = vld [vmem:[#allocation30_spill] sm:$0xff] }
  0xb0   : > { %v1394_v1 = vmul.f32 %v1385_v31, %v6675_v57  ;;  %v1395_v40 = vmul.f32 %v1385_v31, %v6676_v15  ;;  %v1396_v5 = vmul.f32 %v1385_v31, %v6677_v55  ;;  %v1397_v39 = vmul.f32 %v1385_v31, %v6678_v11  ;;  %v6680_v16 = vld [vmem:[#allocation13_spill] sm:$0xff]  ;;  %v6682_v20 = vld [vmem:[#allocation14_spill] sm:$0xff]  ;;  %v6683_v18 = vld [vmem:[#allocation31_spill] sm:$0xff] }
  0xb1   : > { %v1398_v29 = vmul.f32 %v1385_v31, %v6679_v13  ;;  %v1399_v56 = vmul.f32 %v1385_v31, %v6680_v16  ;;  %v1400_v10 = vmul.f32 %v1385_v31, %v6681_v60  ;;  %v1401_v48 = vmul.f32 %v1385_v31, %v6682_v20  ;;  %v6684_v38 = vld [vmem:[#allocation15_spill] sm:$0xff]  ;;  %v6685_v17 = vld [vmem:[#allocation32_spill] sm:$0xff]  ;;  %v6687_v37 = vld [vmem:[#allocation33_spill] sm:$0xff] }
  0xb2   : > { %v1402_v4 = vmul.f32 %v1385_v31, %v6683_v18  ;;  %v1403_v47 = vmul.f32 %v1385_v31, %v6684_v38  ;;  %v1404_v57 = vmul.f32 %v1385_v31, %v6685_v17  ;;  %v6686_v44 = vld [vmem:[#allocation16_spill] sm:$0xff]  ;;  %v1406_v55 = vmul.f32 %v1385_v31, %v6687_v37  ;;  %v6688_v12 = vld [vmem:[#allocation17_spill] sm:$0xff]  ;;  %v6689_v24 = vld [vmem:[#allocation34_spill] sm:$0xff] }
  0xb3   : > { %v1405_v15 = vmul.f32 %v1385_v31, %v6686_v44  ;;  %v1407_v11 = vmul.f32 %v1385_v31, %v6688_v12  ;;  %v1408_v13 = vmul.f32 %v1385_v31, %v6689_v24  ;;  %v6690_v23 = vld [vmem:[#allocation18_spill] sm:$0xff]  ;;  %v6691_v35 = vld [vmem:[#allocation35_spill] sm:$0xff]  ;;  %v6693_v62 = vld [vmem:[#allocation36_spill] sm:$0xff]  ;;  %v1415_v44 = vmul.f32 %v1385_v31, %v3372_v26 }
  0xb4   : > { %v1409_v16 = vmul.f32 %v1385_v31, %v6690_v23  ;;  %v1410_v60 = vmul.f32 %v1385_v31, %v6691_v35  ;;  %v6692_v43 = vld [vmem:[#allocation19_spill] sm:$0xff]  ;;  %v1412_v18 = vmul.f32 %v1385_v31, %v6693_v62  ;;  %v6694_v2 = vld [vmem:[#allocation20_spill] sm:$0xff]  ;;  %v6695_v45 = vld [vmem:[#allocation37_spill] sm:$0xff]  ;;  %v4375_v24 = vadd.f32 %v1386_v3, %v4229_v34 }
  0xb5   : > { %v1411_v20 = vmul.f32 %v1385_v31, %v6692_v43  ;;  %v1413_v38 = vmul.f32 %v1385_v31, %v6694_v2  ;;  %v1414_v17 = vmul.f32 %v1385_v31, %v6695_v45  ;;  %v6696_v8 = vld [vmem:[#allocation38_spill] sm:$0xff]  ;;  %v6697_v7 = vld [vmem:[#allocation23_spill] sm:$0xff]  ;;  %v4378_v23 = vadd.f32 %v1387_v63, %v4233_v27 }
  0xb6   : > { %v1416_v37 = vmul.f32 %v1385_v31, %v6696_v8  ;;  %v1417_v12 = vmul.f32 %v1385_v31, %v6697_v7  ;;  %v4381_v43 = vadd.f32 %v1388_v19, %v4238_v41  ;;  %v4384_v62 = vadd.f32 %v1389_v42, %v4242_v14  ;;  %v6730_v19 = vld [vmem:[#allocation60_spill] sm:$0xff] }
  0xb7   : > { %6698 = vst [vmem:[#allocation66_spill] sm:$0xff] %v4378_v23  ;;  %v4387_v45 = vadd.f32 %v1390_v0, %v4246_v46  ;;  %v4390_v26 = vadd.f32 %v1391_v33, %v4250_v21  ;;  %v4393_v31 = vadd.f32 %v1392_v50, %v4253_v30  ;;  %v4396_v34 = vadd.f32 %v1393_v6, %v4256_v49  ;;  %v6736_v33 = vld [vmem:[#allocation63_spill] sm:$0xff]  ;;  %v6742_v6 = vld [vmem:[#allocation65_spill] sm:$0xff] }
  0xb8   : > { %6699 = vst [vmem:[#allocation67_spill] sm:$0xff] %v4381_v43  ;;  %6700 = vst [vmem:[#allocation68_spill] sm:$0xff] %v4384_v62  ;;  %v4399_v27 = vadd.f32 %v1394_v1, %v4259_v52  ;;  %v4402_v41 = vadd.f32 %v1395_v40, %v4262_v25  ;;  %v4405_v14 = vadd.f32 %v1396_v5, %v4265_v54  ;;  %v6751_v40 = vld [vmem:[#allocation8_spill] sm:$0xff] }
  0xb9   : > { %6701 = vst [vmem:[#allocation69_spill] sm:$0xff] %v4387_v45  ;;  %6702 = vst [vmem:[#allocation70_spill] sm:$0xff] %v4390_v26  ;;  %v4408_v46 = vadd.f32 %v1397_v39, %v4268_v32  ;;  %v4411_v21 = vadd.f32 %v1398_v29, %v4271_v61  ;;  %v4414_v30 = vadd.f32 %v1399_v56, %v4274_v9  ;;  %v6718_v9 = vld [vmem:[#allocation6_spill] sm:$0xff]  ;;  %v6753_v5 = vld [vmem:[#allocation40_spill] sm:$0xff] }
  0xba   : > { %6703 = vst [vmem:[#allocation71_spill] sm:$0xff] %v4393_v31  ;;  %6704 = vst [vmem:[#allocation72_spill] sm:$0xff] %v4396_v34  ;;  %v4417_v49 = vadd.f32 %v1400_v10, %v4277_v51  ;;  %v4420_v52 = vadd.f32 %v1401_v48, %v4280_v59  ;;  %v4423_v25 = vadd.f32 %v1402_v4, %v4283_v36  ;;  %v6720_v59 = vld [vmem:[#allocation55_spill] sm:$0xff]  ;;  %v6722_v36 = vld [vmem:[#allocation56_spill] sm:$0xff] }
  0xbb   : > { %6705 = vst [vmem:[#allocation73_spill] sm:$0xff] %v4399_v27  ;;  %6706 = vst [vmem:[#allocation74_spill] sm:$0xff] %v4402_v41  ;;  %v4426_v54 = vadd.f32 %v1403_v47, %v4286_v58  ;;  %v4429_v32 = vadd.f32 %v1404_v57, %v4289_v22  ;;  %v4432_v61 = vadd.f32 %v1405_v15, %v4292_v53  ;;  %v2956_v58 = vld [vmem:[%s6317_s3 + $0x8] ss:$0 sm:$0xff]  ;;  %v6724_v22 = vld [vmem:[#allocation57_spill] sm:$0xff] }
  0xbc   : > { %6707 = vst [vmem:[#allocation75_spill] sm:$0xff] %v4405_v14  ;;  %6708 = vst [vmem:[#allocation76_spill] sm:$0xff] %v4408_v46  ;;  %v4435_v56 = vadd.f32 %v1406_v55, %v4295_v28  ;;  %v4438_v51 = vadd.f32 %v1407_v11, %v6718_v9  ;;  %v4441_v29 = vadd.f32 %v1408_v13, %v6720_v59  ;;  %v6726_v53 = vld [vmem:[#allocation58_spill] sm:$0xff]  ;;  %v6728_v28 = vld [vmem:[#allocation59_spill] sm:$0xff] }
  0xbd   : > { %6709 = vst [vmem:[#allocation77_spill] sm:$0xff] %v4411_v21  ;;  %6710 = vst [vmem:[#allocation78_spill] sm:$0xff] %v4414_v30  ;;  %v4444_v39 = vadd.f32 %v1409_v16, %v6722_v36  ;;  %v4450_v10 = vadd.f32 %v1410_v60, %v6724_v22  ;;  %v4453_v3 = vadd.f32 %v1411_v20, %v6726_v53  ;;  %v6732_v13 = vld [vmem:[#allocation61_spill] sm:$0xff]  ;;  %v6734_v16 = vld [vmem:[#allocation62_spill] sm:$0xff] }
  0xbe   : > { %6711 = vst [vmem:[#allocation79_spill] sm:$0xff] %v4417_v49  ;;  %6712 = vst [vmem:[#allocation80_spill] sm:$0xff] %v4420_v52  ;;  %v4456_v63 = vadd.f32 %v1412_v18, %v6728_v28  ;;  %v4459_v42 = vadd.f32 %v1413_v38, %v6730_v19  ;;  %v4462_v0 = vadd.f32 %v1414_v17, %v6732_v13  ;;  %v6738_v60 = vld [vmem:[#allocation64_spill] sm:$0xff]  ;;  %v6740_v20 = vld [vmem:[#allocation3_spill] sm:$0xff] }
  0xbf   : > { %6713 = vst [vmem:[#allocation81_spill] sm:$0xff] %v4423_v25  ;;  %6714 = vst [vmem:[#allocation82_spill] sm:$0xff] %v4426_v54  ;;  %v4465_v48 = vadd.f32 %v1415_v44, %v6734_v16  ;;  %v4468_v4 = vadd.f32 %v1416_v37, %v6736_v33  ;;  %v4471_v50 = vadd.f32 %v1417_v12, %v6738_v60  ;;  %v6741_v47 = vsub.s32 4, %v6740_v20  ;;  %v6749_v12 = vld [vmem:[#allocation24_spill] sm:$0xff]  ;;  %v6755_v9 = vld [vmem:[#allocation25_spill] sm:$0xff] }
  0xc0   : > { %6715 = vst [vmem:[#allocation83_spill] sm:$0xff] %v4429_v32  ;;  %6716 = vst [vmem:[#allocation84_spill] sm:$0xff] %v4432_v61  ;;  %v6743_v57 = vsub.s32 5, %v6740_v20  ;;  %v6745_v17 = vsub.s32 6, %v6740_v20  ;;  %v6747_v37 = vsub.s32 7, %v6740_v20  ;;  %v4492_v15 = vmul.f32 %v2956_v58, %v6749_v12  ;;  %v6757_v36 = vld [vmem:[#allocation22_spill] sm:$0xff] }
  0xc1   : > { %6717 = vst [vmem:[#allocation85_spill] sm:$0xff] %v4435_v56  ;;  %6719 = vst [vmem:[#allocation6_spill] sm:$0xff] %v4438_v51  ;;  %v1453_v18 = vrot.slane %v6742_v6, %v6741_v47  ;;  %v4495_v55 = vmul.f32 %v2956_v58, %v6751_v40  ;;  %v4498_v11 = vmul.f32 %v2956_v58, %v6753_v5  ;;  %v6758_v53 = vld [vmem:[#allocation7_spill] sm:$0xff]  ;;  %v6760_v47 = vld [vmem:[#allocation9_spill] sm:$0xff] }
  0xc2   : > { %6721 = vst [vmem:[#allocation55_spill] sm:$0xff] %v4441_v29  ;;  %6723 = vst [vmem:[#allocation56_spill] sm:$0xff] %v4444_v39  ;;  %v4479_v38 = vrot.slane %v6742_v6, %v6743_v57  ;;  %v4484_v44 = vrot.slane %v6742_v6, %v6745_v17  ;;  %v4489_v1 = vrot.slane %v6742_v6, %v6747_v37  ;;  %v6759_v19 = vld [vmem:[#allocation39_spill] sm:$0xff]  ;;  %v6761_v57 = vld [vmem:[#allocation41_spill] sm:$0xff] }
  0xc3   : > { %6725 = vst [vmem:[#allocation57_spill] sm:$0xff] %v4450_v10  ;;  %6727 = vst [vmem:[#allocation58_spill] sm:$0xff] %v4453_v3  ;;  %v4501_v59 = vmul.f32 %v2956_v58, %v6755_v9  ;;  %v1454_v22 = vmul.f32 %v1453_v18, %v6757_v36  ;;  %v1455_v28 = vmul.f32 %v1453_v18, %v6758_v53  ;;  %v6762_v58 = vld [vmem:[#allocation26_spill] sm:$0xff] }
  0xc4   : > { %6729 = vst [vmem:[#allocation59_spill] sm:$0xff] %v4456_v63  ;;  %6731 = vst [vmem:[#allocation60_spill] sm:$0xff] %v4459_v42  ;;  %v1456_v13 = vmul.f32 %v1453_v18, %v6759_v19  ;;  %v1457_v16 = vmul.f32 %v1453_v18, %v6749_v12  ;;  %v1458_v33 = vmul.f32 %v1453_v18, %v6751_v40  ;;  %v6766_v40 = vld [vmem:[#allocation11_spill] sm:$0xff] }
  0xc5   : > { %6733 = vst [vmem:[#allocation61_spill] sm:$0xff] %v4462_v0  ;;  %6735 = vst [vmem:[#allocation62_spill] sm:$0xff] %v4465_v48  ;;  %v1459_v60 = vmul.f32 %v1453_v18, %v6753_v5  ;;  %v1460_v20 = vmul.f32 %v1453_v18, %v6755_v9  ;;  %v1461_v6 = vmul.f32 %v1453_v18, %v6760_v47  ;;  %v6767_v5 = vld [vmem:[#allocation43_spill] sm:$0xff]  ;;  %v6768_v47 = vld [vmem:[#allocation28_spill] sm:$0xff]  ;;  %v1551_v34 = vrot.slane %v1455_v28, 1 }
  0xc6   : > { %6737 = vst [vmem:[#allocation63_spill] sm:$0xff] %v4468_v4  ;;  %6739 = vst [vmem:[#allocation64_spill] sm:$0xff] %v4471_v50  ;;  %v1462_v17 = vmul.f32 %v1453_v18, %v6761_v57  ;;  %v1463_v37 = vmul.f32 %v1453_v18, %v6762_v58  ;;  %v4523_v12 = vmul.f32 %v1453_v18, %v6766_v40  ;;  %v6769_v57 = vld [vmem:[#allocation12_spill] sm:$0xff]  ;;  %v6773_v40 = vld [vmem:[#allocation45_spill] sm:$0xff]  ;;  %v1553_v31 = vrot.slane %v1456_v13, 1 }
  0xc7   : > { %6744 = vst [vmem:[#allocation3_spill] sm:$0xff] %v4479_v38  ;;  %6746 = vst [vmem:[#allocation65_spill] sm:$0xff] %v4484_v44  ;;  %v4526_v9 = vmul.f32 %v1453_v18, %v6767_v5  ;;  %v4529_v19 = vmul.f32 %v1453_v18, %v6768_v47  ;;  %v4532_v58 = vmul.f32 %v1453_v18, %v6769_v57  ;;  %v6774_v5 = vld [vmem:[#allocation30_spill] sm:$0xff]  ;;  %v1556_v26 = vrot.slane %v1458_v33, 1 }
  0xc8   : > { %6748 = vst [vmem:[#allocation86_spill] sm:$0xff] %v4489_v1  ;;  %6750 = vst [vmem:[#allocation87_spill] sm:$0xff] %v4492_v15  ;;  %v6765_v1 = vld [vmem:[#allocation27_spill] sm:$0xff]  ;;  %v4544_v50 = vmul.f32 %v1453_v18, %v6773_v40  ;;  %v4547_v4 = vmul.f32 %v1453_v18, %v6774_v5  ;;  %v6775_v47 = vld [vmem:[#allocation14_spill] sm:$0xff]  ;;  %v1558_v45 = vrot.slane %v1459_v60, 1  ;;  %v1561_v62 = vrot.slane %v1461_v6, 1 }
  0xc9   : > { %6752 = vst [vmem:[#allocation88_spill] sm:$0xff] %v4495_v55  ;;  %6754 = vst [vmem:[#allocation89_spill] sm:$0xff] %v4498_v11  ;;  %v6764_v55 = vld [vmem:[#allocation42_spill] sm:$0xff]  ;;  %v4520_v44 = vmul.f32 %v1453_v18, %v6765_v1  ;;  %v6772_v1 = vld [vmem:[#allocation13_spill] sm:$0xff]  ;;  %v4550_v48 = vmul.f32 %v1453_v18, %v6775_v47  ;;  %v1563_v43 = vrot.slane %v1462_v17, 1 }
  0xca   : > { %6756 = vst [vmem:[#allocation90_spill] sm:$0xff] %v4501_v59  ;;  %v6763_v59 = vld [vmem:[#allocation10_spill] sm:$0xff]  ;;  %v4517_v15 = vmul.f32 %v1453_v18, %v6764_v55  ;;  %v6771_v55 = vld [vmem:[#allocation29_spill] sm:$0xff]  ;;  %v4541_v36 = vmul.f32 %v1453_v18, %v6772_v1  ;;  %v6779_v1 = vld [vmem:[#allocation47_spill] sm:$0xff] }
  0xcb   : > { %v4514_v11 = vmul.f32 %v1453_v18, %v6763_v59  ;;  %v6770_v59 = vld [vmem:[#allocation44_spill] sm:$0xff]  ;;  %v4538_v38 = vmul.f32 %v1453_v18, %v6771_v55  ;;  %v6776_v57 = vld [vmem:[#allocation46_spill] sm:$0xff]  ;;  %v6778_v55 = vld [vmem:[#allocation15_spill] sm:$0xff]  ;;  %v4562_v3 = vmul.f32 %v1453_v18, %v6779_v1  ;;  %v4644_v13 = vsel %vm992_vm1, %v1561_v62, %v1563_v43 }
  0xcc   : > { %v4535_v53 = vmul.f32 %v1453_v18, %v6770_v59  ;;  %v4553_v0 = vmul.f32 %v1453_v18, %v6776_v57  ;;  %v6777_v59 = vld [vmem:[#allocation31_spill] sm:$0xff]  ;;  %v4559_v63 = vmul.f32 %v1453_v18, %v6778_v55  ;;  %v6780_v40 = vld [vmem:[#allocation32_spill] sm:$0xff]  ;;  %v6783_v57 = vld [vmem:[#allocation33_spill] sm:$0xff]  ;;  %v1586_v33 = vrot.slane %v4550_v48, 1 }
  0xcd   : > { %v4556_v42 = vmul.f32 %v1453_v18, %v6777_v59  ;;  %v4565_v10 = vmul.f32 %v1453_v18, %v6780_v40  ;;  %v6781_v5 = vld [vmem:[#allocation16_spill] sm:$0xff]  ;;  %v4574_v51 = vmul.f32 %v1453_v18, %v6783_v57  ;;  %v6784_v59 = vld [vmem:[#allocation17_spill] sm:$0xff]  ;;  %v6786_v1 = vld [vmem:[#allocation34_spill] sm:$0xff]  ;;  %v1566_v28 = vrot.slane %v4514_v11, 1 }
  0xce   : > { %v4568_v39 = vmul.f32 %v1453_v18, %v6781_v5  ;;  %v6782_v47 = vld [vmem:[#allocation48_spill] sm:$0xff]  ;;  %v4577_v56 = vmul.f32 %v1453_v18, %v6784_v59  ;;  %v6785_v55 = vld [vmem:[#allocation49_spill] sm:$0xff]  ;;  %v4583_v32 = vmul.f32 %v1453_v18, %v6786_v1  ;;  %v6787_v40 = vld [vmem:[#allocation18_spill] sm:$0xff]  ;;  %v4604_v1 = vmul.f32 %v1453_v18, %v6694_v2 }
  0xcf   : > { %v4571_v29 = vmul.f32 %v1453_v18, %v6782_v47  ;;  %v4580_v61 = vmul.f32 %v1453_v18, %v6785_v55  ;;  %v4586_v54 = vmul.f32 %v1453_v18, %v6787_v40  ;;  %v6788_v5 = vld [vmem:[#allocation50_spill] sm:$0xff]  ;;  %v4592_v47 = vmul.f32 %v1453_v18, %v6691_v35  ;;  %v6789_v57 = vld [vmem:[#allocation19_spill] sm:$0xff]  ;;  %v6791_v55 = vld [vmem:[#allocation36_spill] sm:$0xff] }
  0xd0   : > { %v4589_v25 = vmul.f32 %v1453_v18, %v6788_v5  ;;  %v4595_v52 = vmul.f32 %v1453_v18, %v6789_v57  ;;  %v6790_v59 = vld [vmem:[#allocation51_spill] sm:$0xff]  ;;  %v4601_v30 = vmul.f32 %v1453_v18, %v6791_v55  ;;  %v6792_v40 = vld [vmem:[#allocation52_spill] sm:$0xff]  ;;  %v6793_v5 = vld [vmem:[#allocation37_spill] sm:$0xff]  ;;  %v4622_v55 = vmul.f32 %v1453_v18, %v6697_v7 }
  0xd1   : > { %v4598_v49 = vmul.f32 %v1453_v18, %v6790_v59  ;;  %v4607_v21 = vmul.f32 %v1453_v18, %v6792_v40  ;;  %v4610_v46 = vmul.f32 %v1453_v18, %v6793_v5  ;;  %v6794_v35 = vld [vmem:[#allocation21_spill] sm:$0xff]  ;;  %v4619_v59 = vmul.f32 %v1453_v18, %v6696_v8  ;;  %v6796_v2 = vld [vmem:[#allocation54_spill] sm:$0xff] }
  0xd2   : > { %v4613_v14 = vmul.f32 %v1453_v18, %v6794_v35  ;;  %v6795_v57 = vld [vmem:[#allocation53_spill] sm:$0xff]  ;;  %v4625_v27 = vmul.f32 %v1453_v18, %v6796_v2  ;;  %v1550_v40 = vrot.slane %v1454_v22, 1  ;;  %v1555_v5 = vrot.slane %v1457_v16, 1 }
  0xd3   : > { %v4616_v41 = vmul.f32 %v1453_v18, %v6795_v57  ;;  %v1560_v35 = vrot.slane %v1460_v20, 1  ;;  %v4631_v8 = vsel %vm992_vm1, %v1551_v34, %v1553_v31  ;;  %v1565_v7 = vrot.slane %v1463_v37, 1 }
  0xd4   : > { %v4628_v57 = vsel %vm992_vm1, %v1550_v40, %v1551_v34  ;;  %v4634_v23 = vsel %vm992_vm1, %v1555_v5, %v1556_v26  ;;  %v4637_v18 = vsel %vm992_vm1, %v1556_v26, %v1558_v45  ;;  %v1568_v40 = vrot.slane %v4517_v15, 1 }
  0xd5   : > { %v4640_v22 = vsel %vm992_vm1, %v1560_v35, %v1561_v62  ;;  %v1570_v31 = vrot.slane %v4520_v44, 1  ;;  %v1571_v34 = vrot.slane %v4523_v12, 1  ;;  %v4650_v5 = vsel %vm992_vm1, %v1565_v7, %v1566_v28 }
  0xd6   : > { %v1573_v26 = vrot.slane %v4526_v9, 1  ;;  %v1575_v45 = vrot.slane %v4529_v19, 1  ;;  %v1576_v35 = vrot.slane %v4532_v58, 1  ;;  %v4656_v11 = vsel %vm992_vm1, %v1566_v28, %v1568_v40 }
  0xd7   : > { %v4659_v62 = vsel %vm992_vm1, %v1570_v31, %v1571_v34  ;;  %v1578_v43 = vrot.slane %v4535_v53, 1  ;;  %v1580_v44 = vrot.slane %v4538_v38, 1  ;;  %v1581_v15 = vrot.slane %v4541_v36, 1 }
  0xd8   : > { %v1574_v12 = vsel %vm992_vm1, %v1571_v34, %v1573_v26  ;;  %v1577_v7 = vsel %vm992_vm1, %v1575_v45, %v1576_v35  ;;  %v1583_v9 = vrot.slane %v4544_v50, 1  ;;  %v1585_v16 = vrot.slane %v4547_v4, 1 }
  0xd9   : > { %v1579_v19 = vsel %vm992_vm1, %v1576_v35, %v1578_v43  ;;  %v1588_v60 = vrot.slane %v4553_v0, 1  ;;  %v1582_v53 = vsel %vm992_vm1, %v1580_v44, %v1581_v15  ;;  %v1590_v20 = vrot.slane %v4556_v42, 1 }
  0xda   : > { %v1584_v38 = vsel %vm992_vm1, %v1581_v15, %v1583_v9  ;;  %v1591_v6 = vrot.slane %v4559_v63, 1  ;;  %v1587_v36 = vsel %vm992_vm1, %v1585_v16, %v1586_v33  ;;  %v1593_v17 = vrot.slane %v4562_v3, 1 }
  0xdb   : > { %v1589_v50 = vsel %vm992_vm1, %v1586_v33, %v1588_v60  ;;  %v1595_v4 = vrot.slane %v4565_v10, 1  ;;  %v1596_v0 = vrot.slane %v4568_v39, 1  ;;  %v1598_v58 = vrot.slane %v4571_v29, 1  ;;  %v6799_v60 = vld [vmem:[#allocation67_spill] sm:$0xff] }
  0xdc   : > { %v1592_v48 = vsel %vm992_vm1, %v1590_v20, %v1591_v6  ;;  %v1600_v37 = vrot.slane %v4574_v51, 1  ;;  %v1594_v42 = vsel %vm992_vm1, %v1591_v6, %v1593_v17  ;;  %v1601_v63 = vrot.slane %v4577_v56, 1  ;;  %v6803_v6 = vld [vmem:[#allocation69_spill] sm:$0xff]  ;;  %v6807_v17 = vld [vmem:[#allocation71_spill] sm:$0xff] }
  0xdd   : > { %v1603_v28 = vrot.slane %v4580_v61, 1  ;;  %v1605_v40 = vrot.slane %v4583_v32, 1  ;;  %v1597_v3 = vsel %vm992_vm1, %v1595_v4, %v1596_v0  ;;  %v1599_v10 = vsel %vm992_vm1, %v1596_v0, %v1598_v58  ;;  %v6809_v0 = vld [vmem:[#allocation72_spill] sm:$0xff]  ;;  %v6811_v58 = vld [vmem:[#allocation73_spill] sm:$0xff] }
  0xde   : > { %v1606_v31 = vrot.slane %v4586_v54, 1  ;;  %v1608_v39 = vrot.slane %v4589_v25, 1  ;;  %v1602_v29 = vsel %vm992_vm1, %v1600_v37, %v1601_v63  ;;  %v1610_v34 = vrot.slane %v4592_v47, 1  ;;  %v6813_v37 = vld [vmem:[#allocation74_spill] sm:$0xff] }
  0xdf   : > { %v1604_v51 = vsel %vm992_vm1, %v1601_v63, %v1603_v28  ;;  %v1611_v56 = vrot.slane %v4595_v52, 1  ;;  %v1613_v26 = vrot.slane %v4598_v49, 1  ;;  %v1615_v45 = vrot.slane %v4601_v30, 1 }
  0xe0   : > { %v1607_v61 = vsel %vm992_vm1, %v1605_v40, %v1606_v31  ;;  %v1609_v32 = vsel %vm992_vm1, %v1606_v31, %v1608_v39  ;;  %v1616_v25 = vrot.slane %v4604_v1, 1  ;;  %v1618_v35 = vrot.slane %v4607_v21, 1  ;;  %v6819_v31 = vld [vmem:[#allocation77_spill] sm:$0xff]  ;;  %v6821_v39 = vld [vmem:[#allocation78_spill] sm:$0xff] }
  0xe1   : > { %v1612_v54 = vsel %vm992_vm1, %v1610_v34, %v1611_v56  ;;  %v1620_v43 = vrot.slane %v4610_v46, 1  ;;  %v1614_v47 = vsel %vm992_vm1, %v1611_v56, %v1613_v26  ;;  %v1621_v52 = vrot.slane %v4613_v14, 1  ;;  %v6797_v14 = vld [vmem:[#allocation66_spill] sm:$0xff] }
  0xe2   : > { %v1623_v44 = vrot.slane %v4616_v41, 1  ;;  %v1625_v15 = vrot.slane %v4619_v59, 1  ;;  %v1617_v49 = vsel %vm992_vm1, %v1615_v45, %v1616_v25  ;;  %v1619_v30 = vsel %vm992_vm1, %v1616_v25, %v1618_v35 }
  0xe3   : > { %v1626_v9 = vrot.slane %v4622_v55, 1  ;;  %v1628_v1 = vrot.slane %v4625_v27, 1  ;;  %v1622_v21 = vsel %vm992_vm1, %v1620_v43, %v1621_v52  ;;  %v4715_v16 = vadd.f32 %v4628_v57, %v4375_v24  ;;  %v6801_v27 = vld [vmem:[#allocation68_spill] sm:$0xff]  ;;  %v6805_v57 = vld [vmem:[#allocation70_spill] sm:$0xff] }
  0xe4   : > { %v1624_v46 = vsel %vm992_vm1, %v1621_v52, %v1623_v44  ;;  %v4719_v41 = vadd.f32 %v4631_v8, %v6797_v14  ;;  %v4725_v55 = vadd.f32 %v4634_v23, %v6799_v60  ;;  %v4729_v20 = vadd.f32 %v4637_v18, %v6801_v27 }
  0xe5   : > { %v1627_v59 = vsel %vm992_vm1, %v1625_v15, %v1626_v9  ;;  %v1629_v33 = vsel %vm992_vm1, %v1626_v9, %v1628_v1  ;;  %v4733_v24 = vadd.f32 %v4640_v22, %v6803_v6  ;;  %v4737_v8 = vadd.f32 %v4644_v13, %v6805_v57  ;;  %v6815_v22 = vld [vmem:[#allocation75_spill] sm:$0xff]  ;;  %v6817_v13 = vld [vmem:[#allocation76_spill] sm:$0xff] }
  0xe6   : > { %6798 = vst [vmem:[#allocation66_spill] sm:$0xff] %v4719_v41  ;;  %6800 = vst [vmem:[#allocation67_spill] sm:$0xff] %v4725_v55  ;;  %v4741_v4 = vadd.f32 %v4650_v5, %v6807_v17  ;;  %v4745_v23 = vadd.f32 %v4656_v11, %v6809_v0  ;;  %v4749_v18 = vadd.f32 %v4659_v62, %v6811_v58  ;;  %v6823_v11 = vld [vmem:[#allocation79_spill] sm:$0xff]  ;;  %v6825_v62 = vld [vmem:[#allocation80_spill] sm:$0xff] }
  0xe7   : > { %6802 = vst [vmem:[#allocation68_spill] sm:$0xff] %v4729_v20  ;;  %6804 = vst [vmem:[#allocation69_spill] sm:$0xff] %v4733_v24  ;;  %v4752_v63 = vadd.f32 %v1574_v12, %v6813_v37  ;;  %v4755_v28 = vadd.f32 %v1577_v7, %v6815_v22  ;;  %v4758_v40 = vadd.f32 %v1579_v19, %v6817_v13  ;;  %v6827_v12 = vld [vmem:[#allocation81_spill] sm:$0xff]  ;;  %v6829_v7 = vld [vmem:[#allocation82_spill] sm:$0xff] }
  0xe8   : > { %6806 = vst [vmem:[#allocation70_spill] sm:$0xff] %v4737_v8  ;;  %6808 = vst [vmem:[#allocation71_spill] sm:$0xff] %v4741_v4  ;;  %v4761_v5 = vadd.f32 %v1582_v53, %v6819_v31  ;;  %v4764_v34 = vadd.f32 %v1584_v38, %v6821_v39  ;;  %v4767_v56 = vadd.f32 %v1587_v36, %v6823_v11  ;;  %v6831_v19 = vld [vmem:[#allocation83_spill] sm:$0xff]  ;;  %v6833_v53 = vld [vmem:[#allocation84_spill] sm:$0xff] }
  0xe9   : > { %6810 = vst [vmem:[#allocation72_spill] sm:$0xff] %v4745_v23  ;;  %6812 = vst [vmem:[#allocation73_spill] sm:$0xff] %v4749_v18  ;;  %v4770_v26 = vadd.f32 %v1589_v50, %v6825_v62  ;;  %v4773_v45 = vadd.f32 %v1592_v48, %v6827_v12  ;;  %v4776_v25 = vadd.f32 %v1594_v42, %v6829_v7  ;;  %v6835_v38 = vld [vmem:[#allocation85_spill] sm:$0xff]  ;;  %v6837_v36 = vld [vmem:[#allocation6_spill] sm:$0xff] }
  0xea   : > { %6814 = vst [vmem:[#allocation74_spill] sm:$0xff] %v4752_v63  ;;  %6816 = vst [vmem:[#allocation75_spill] sm:$0xff] %v4755_v28  ;;  %v4779_v35 = vadd.f32 %v1597_v3, %v6831_v19  ;;  %v4782_v43 = vadd.f32 %v1599_v10, %v6833_v53  ;;  %v4785_v52 = vadd.f32 %v1602_v29, %v6835_v38  ;;  %v6839_v50 = vld [vmem:[#allocation55_spill] sm:$0xff]  ;;  %v6841_v48 = vld [vmem:[#allocation56_spill] sm:$0xff] }
  0xeb   : > { %6818 = vst [vmem:[#allocation76_spill] sm:$0xff] %v4758_v40  ;;  %6820 = vst [vmem:[#allocation77_spill] sm:$0xff] %v4761_v5  ;;  %v4788_v44 = vadd.f32 %v1604_v51, %v6837_v36  ;;  %v4791_v15 = vadd.f32 %v1607_v61, %v6839_v50  ;;  %v4794_v9 = vadd.f32 %v1609_v32, %v6841_v48  ;;  %v6843_v42 = vld [vmem:[#allocation57_spill] sm:$0xff]  ;;  %v6845_v3 = vld [vmem:[#allocation58_spill] sm:$0xff] }
  0xec   : > { %6822 = vst [vmem:[#allocation78_spill] sm:$0xff] %v4764_v34  ;;  %6824 = vst [vmem:[#allocation79_spill] sm:$0xff] %v4767_v56  ;;  %v4797_v1 = vadd.f32 %v1612_v54, %v6843_v42  ;;  %v4800_v14 = vadd.f32 %v1614_v47, %v6845_v3  ;;  %v6847_v10 = vld [vmem:[#allocation59_spill] sm:$0xff]  ;;  %v6849_v29 = vld [vmem:[#allocation60_spill] sm:$0xff] }
  0xed   : > { %6826 = vst [vmem:[#allocation80_spill] sm:$0xff] %v4770_v26  ;;  %6828 = vst [vmem:[#allocation81_spill] sm:$0xff] %v4773_v45  ;;  %v4803_v60 = vadd.f32 %v1617_v49, %v6847_v10  ;;  %v4806_v27 = vadd.f32 %v1619_v30, %v6849_v29  ;;  %v6851_v51 = vld [vmem:[#allocation61_spill] sm:$0xff]  ;;  %v6853_v61 = vld [vmem:[#allocation62_spill] sm:$0xff] }
  0xee   : > { %6830 = vst [vmem:[#allocation82_spill] sm:$0xff] %v4776_v25  ;;  %6832 = vst [vmem:[#allocation83_spill] sm:$0xff] %v4779_v35  ;;  %v4809_v6 = vadd.f32 %v1622_v21, %v6851_v51  ;;  %v4812_v57 = vadd.f32 %v1624_v46, %v6853_v61  ;;  %v6855_v32 = vld [vmem:[#allocation63_spill] sm:$0xff]  ;;  %v6857_v54 = vld [vmem:[#allocation64_spill] sm:$0xff] }
  0xef   : > { %6834 = vst [vmem:[#allocation84_spill] sm:$0xff] %v4782_v43  ;;  %6836 = vst [vmem:[#allocation85_spill] sm:$0xff] %v4785_v52  ;;  %v4815_v17 = vadd.f32 %v1627_v59, %v6855_v32  ;;  %v4818_v0 = vadd.f32 %v1629_v33, %v6857_v54  ;;  %v6859_v47 = vld [vmem:[#allocation22_spill] sm:$0xff]  ;;  %v6860_v58 = vld [vmem:[#allocation3_spill] sm:$0xff] }
  0xf0   : > { %6838 = vst [vmem:[#allocation6_spill] sm:$0xff] %v4788_v44  ;;  %6840 = vst [vmem:[#allocation55_spill] sm:$0xff] %v4791_v15  ;;  %v1698_v37 = vmul.f32 %v6860_v58, %v6859_v47  ;;  %v6861_v49 = vld [vmem:[#allocation7_spill] sm:$0xff]  ;;  %v6863_v21 = vld [vmem:[#allocation24_spill] sm:$0xff] }
  0xf1   : > { %6842 = vst [vmem:[#allocation56_spill] sm:$0xff] %v4794_v9  ;;  %6844 = vst [vmem:[#allocation57_spill] sm:$0xff] %v4797_v1  ;;  %v1699_v22 = vmul.f32 %v6860_v58, %v6861_v49  ;;  %v6862_v30 = vld [vmem:[#allocation39_spill] sm:$0xff]  ;;  %v1701_v31 = vmul.f32 %v6860_v58, %v6863_v21  ;;  %v6864_v46 = vld [vmem:[#allocation8_spill] sm:$0xff] }
  0xf2   : > { %6846 = vst [vmem:[#allocation58_spill] sm:$0xff] %v4800_v14  ;;  %6848 = vst [vmem:[#allocation59_spill] sm:$0xff] %v4803_v60  ;;  %v1700_v13 = vmul.f32 %v6860_v58, %v6862_v30  ;;  %v1702_v39 = vmul.f32 %v6860_v58, %v6864_v46  ;;  %v6865_v59 = vld [vmem:[#allocation40_spill] sm:$0xff]  ;;  %v6866_v33 = vld [vmem:[#allocation25_spill] sm:$0xff]  ;;  %v1794_v63 = vrot.slane %v1698_v37, 2 }
  0xf3   : > { %6850 = vst [vmem:[#allocation60_spill] sm:$0xff] %v4806_v27  ;;  %6852 = vst [vmem:[#allocation61_spill] sm:$0xff] %v4809_v6  ;;  %v1703_v11 = vmul.f32 %v6860_v58, %v6865_v59  ;;  %v1704_v62 = vmul.f32 %v6860_v58, %v6866_v33  ;;  %v6867_v12 = vld [vmem:[#allocation9_spill] sm:$0xff]  ;;  %v6869_v38 = vld [vmem:[#allocation26_spill] sm:$0xff]  ;;  %v1795_v18 = vrot.slane %v1699_v22, 2  ;;  %v1799_v23 = vrot.slane %v1701_v31, 2 }
  0xf4   : > { %6854 = vst [vmem:[#allocation62_spill] sm:$0xff] %v4812_v57  ;;  %6856 = vst [vmem:[#allocation63_spill] sm:$0xff] %v4815_v17  ;;  %v1705_v7 = vmul.f32 %v6860_v58, %v6867_v12  ;;  %v6868_v19 = vld [vmem:[#allocation41_spill] sm:$0xff]  ;;  %v1707_v36 = vmul.f32 %v6860_v58, %v6869_v38  ;;  %v6870_v50 = vld [vmem:[#allocation10_spill] sm:$0xff]  ;;  %v1800_v4 = vrot.slane %v1702_v39, 2 }
  0xf5   : > { %6858 = vst [vmem:[#allocation64_spill] sm:$0xff] %v4818_v0  ;;  %v1706_v53 = vmul.f32 %v6860_v58, %v6868_v19  ;;  %v4842_v48 = vmul.f32 %v6860_v58, %v6870_v50  ;;  %v6871_v42 = vld [vmem:[#allocation42_spill] sm:$0xff]  ;;  %v6872_v10 = vld [vmem:[#allocation27_spill] sm:$0xff]  ;;  %v6875_v47 = vld [vmem:[#allocation28_spill] sm:$0xff]  ;;  %v1802_v8 = vrot.slane %v1703_v11, 2  ;;  %v4993_v20 = vsel %vm1237_vm2, %v1794_v63, %v1795_v18 }
  0xf6   : > { %v4846_v3 = vmul.f32 %v6860_v58, %v6871_v42  ;;  %v4850_v29 = vmul.f32 %v6860_v58, %v6872_v10  ;;  %v6873_v51 = vld [vmem:[#allocation11_spill] sm:$0xff]  ;;  %v4862_v49 = vmul.f32 %v6860_v58, %v6875_v47  ;;  %v6876_v30 = vld [vmem:[#allocation12_spill] sm:$0xff]  ;;  %v6878_v10 = vld [vmem:[#allocation29_spill] sm:$0xff]  ;;  %v1805_v24 = vrot.slane %v1705_v7, 2 }
  0xf7   : > { %v4854_v61 = vmul.f32 %v6860_v58, %v6873_v51  ;;  %v6874_v32 = vld [vmem:[#allocation43_spill] sm:$0xff]  ;;  %v4866_v42 = vmul.f32 %v6860_v58, %v6876_v30  ;;  %v6877_v19 = vld [vmem:[#allocation44_spill] sm:$0xff]  ;;  %v4874_v51 = vmul.f32 %v6860_v58, %v6878_v10  ;;  %v6879_v50 = vld [vmem:[#allocation13_spill] sm:$0xff]  ;;  %v1809_v55 = vrot.slane %v1707_v36, 2 }
  0xf8   : > { %v4858_v54 = vmul.f32 %v6860_v58, %v6874_v32  ;;  %v4870_v59 = vmul.f32 %v6860_v58, %v6877_v19  ;;  %v4878_v32 = vmul.f32 %v6860_v58, %v6879_v50  ;;  %v6880_v38 = vld [vmem:[#allocation45_spill] sm:$0xff]  ;;  %v6881_v12 = vld [vmem:[#allocation30_spill] sm:$0xff]  ;;  %v6884_v21 = vld [vmem:[#allocation31_spill] sm:$0xff]  ;;  %v4999_v41 = vsel %vm1237_vm2, %v1799_v23, %v1800_v4 }
  0xf9   : > { %v4882_v47 = vmul.f32 %v6860_v58, %v6880_v38  ;;  %v4886_v30 = vmul.f32 %v6860_v58, %v6881_v12  ;;  %v6882_v33 = vld [vmem:[#allocation14_spill] sm:$0xff]  ;;  %v4898_v50 = vmul.f32 %v6860_v58, %v6884_v21  ;;  %v6885_v0 = vld [vmem:[#allocation15_spill] sm:$0xff]  ;;  %v6887_v57 = vld [vmem:[#allocation32_spill] sm:$0xff]  ;;  %v1810_v22 = vrot.slane %v4842_v48, 2 }
  0xfa   : > { %v4890_v19 = vmul.f32 %v6860_v58, %v6882_v33  ;;  %v6883_v46 = vld [vmem:[#allocation46_spill] sm:$0xff]  ;;  %v4902_v38 = vmul.f32 %v6860_v58, %v6885_v0  ;;  %v6886_v17 = vld [vmem:[#allocation47_spill] sm:$0xff]  ;;  %v4910_v33 = vmul.f32 %v6860_v58, %v6887_v57  ;;  %v6888_v6 = vld [vmem:[#allocation16_spill] sm:$0xff]  ;;  %v1812_v63 = vrot.slane %v4846_v3, 2 }
  0xfb   : > { %v4894_v10 = vmul.f32 %v6860_v58, %v6883_v46  ;;  %v4906_v12 = vmul.f32 %v6860_v58, %v6886_v17  ;;  %v4914_v46 = vmul.f32 %v6860_v58, %v6888_v6  ;;  %v6889_v27 = vld [vmem:[#allocation48_spill] sm:$0xff]  ;;  %v6890_v60 = vld [vmem:[#allocation33_spill] sm:$0xff]  ;;  %v6893_v9 = vld [vmem:[#allocation34_spill] sm:$0xff]  ;;  %v5015_v23 = vsel %vm1237_vm2, %v1809_v55, %v1810_v22 }
  0xfc   : > { %v4918_v21 = vmul.f32 %v6860_v58, %v6889_v27  ;;  %v4922_v0 = vmul.f32 %v6860_v58, %v6890_v60  ;;  %v6891_v14 = vld [vmem:[#allocation17_spill] sm:$0xff]  ;;  %v4934_v6 = vmul.f32 %v6860_v58, %v6893_v9  ;;  %v6894_v15 = vld [vmem:[#allocation18_spill] sm:$0xff]  ;;  %v6896_v52 = vld [vmem:[#allocation35_spill] sm:$0xff]  ;;  %v5021_v31 = vsel %vm1237_vm2, %v1810_v22, %v1812_v63 }
  0xfd   : > { %v4926_v17 = vmul.f32 %v6860_v58, %v6891_v14  ;;  %v6892_v1 = vld [vmem:[#allocation49_spill] sm:$0xff]  ;;  %v4938_v27 = vmul.f32 %v6860_v58, %v6894_v15  ;;  %v6895_v44 = vld [vmem:[#allocation50_spill] sm:$0xff]  ;;  %v4946_v14 = vmul.f32 %v6860_v58, %v6896_v52  ;;  %v6897_v43 = vld [vmem:[#allocation19_spill] sm:$0xff]  ;;  %v1824_v39 = vrot.slane %v4874_v51, 2 }
  0xfe   : > { %v4930_v57 = vmul.f32 %v6860_v58, %v6892_v1  ;;  %v4942_v60 = vmul.f32 %v6860_v58, %v6895_v44  ;;  %v4950_v1 = vmul.f32 %v6860_v58, %v6897_v43  ;;  %v6898_v35 = vld [vmem:[#allocation51_spill] sm:$0xff]  ;;  %v6899_v25 = vld [vmem:[#allocation36_spill] sm:$0xff]  ;;  %v6902_v56 = vld [vmem:[#allocation37_spill] sm:$0xff]  ;;  %v1827_v7 = vrot.slane %v4882_v47, 2 }
  0xff   : > { %v4954_v9 = vmul.f32 %v6860_v58, %v6898_v35  ;;  %v4958_v15 = vmul.f32 %v6860_v58, %v6899_v25  ;;  %v6900_v45 = vld [vmem:[#allocation20_spill] sm:$0xff]  ;;  %v4970_v43 = vmul.f32 %v6860_v58, %v6902_v56  ;;  %v6903_v34 = vld [vmem:[#allocation21_spill] sm:$0xff]  ;;  %v6905_v40 = vld [vmem:[#allocation38_spill] sm:$0xff]  ;;  %v4990_v56 = vmul.f32 %v6860_v58, %v6796_v2 }
 0x100   : > { %v4962_v44 = vmul.f32 %v6860_v58, %v6900_v45  ;;  %v6901_v26 = vld [vmem:[#allocation52_spill] sm:$0xff]  ;;  %v4974_v35 = vmul.f32 %v6860_v58, %v6903_v34  ;;  %v6904_v5 = vld [vmem:[#allocation53_spill] sm:$0xff]  ;;  %v4982_v45 = vmul.f32 %v6860_v58, %v6905_v40  ;;  %v6906_v28 = vld [vmem:[#allocation23_spill] sm:$0xff]  ;;  %v1797_v34 = vrot.slane %v1700_v13, 2 }
 0x101   : > { %v4966_v52 = vmul.f32 %v6860_v58, %v6901_v26  ;;  %v4978_v25 = vmul.f32 %v6860_v58, %v6904_v5  ;;  %v4986_v26 = vmul.f32 %v6860_v58, %v6906_v28  ;;  %v1804_v5 = vrot.slane %v1704_v62, 2  ;;  %v6962_v2 = vld [vmem:[#allocation15_spill] sm:$0xff] }
 0x102   : > { %v4996_v40 = vsel %vm1237_vm2, %v1795_v18, %v1797_v34  ;;  %v1807_v28 = vrot.slane %v1706_v53, 2  ;;  %v5002_v58 = vsel %vm1237_vm2, %v1800_v4, %v1802_v8  ;;  %v1814_v18 = vrot.slane %v4850_v29, 2 }
 0x103   : > { %v5005_v37 = vsel %vm1237_vm2, %v1804_v5, %v1805_v24  ;;  %v1815_v34 = vrot.slane %v4854_v61, 2  ;;  %v1817_v8 = vrot.slane %v4858_v54, 2  ;;  %v1819_v4 = vrot.slane %v4862_v49, 2 }
 0x104   : > { %v5009_v13 = vsel %vm1237_vm2, %v1805_v24, %v1807_v28  ;;  %v1820_v5 = vrot.slane %v4866_v42, 2  ;;  %v1822_v28 = vrot.slane %v4870_v59, 2  ;;  %v1825_v62 = vrot.slane %v4878_v32, 2 }
 0x105   : > { %v5024_v24 = vsel %vm1237_vm2, %v1814_v18, %v1815_v34  ;;  %v1818_v11 = vsel %vm1237_vm2, %v1815_v34, %v1817_v8  ;;  %v1829_v36 = vrot.slane %v4886_v30, 2  ;;  %v1830_v48 = vrot.slane %v4890_v19, 2 }
 0x106   : > { %v1821_v55 = vsel %vm1237_vm2, %v1819_v4, %v1820_v5  ;;  %v1823_v53 = vsel %vm1237_vm2, %v1820_v5, %v1822_v28  ;;  %v1832_v42 = vrot.slane %v4894_v10, 2  ;;  %v1826_v59 = vsel %vm1237_vm2, %v1824_v39, %v1825_v62 }
 0x107   : > { %v1828_v3 = vsel %vm1237_vm2, %v1825_v62, %v1827_v7  ;;  %v1834_v29 = vrot.slane %v4898_v50, 2  ;;  %v1835_v51 = vrot.slane %v4902_v38, 2  ;;  %v1831_v61 = vsel %vm1237_vm2, %v1829_v36, %v1830_v48 }
 0x108   : > { %v1833_v32 = vsel %vm1237_vm2, %v1830_v48, %v1832_v42  ;;  %v1837_v54 = vrot.slane %v4906_v12, 2  ;;  %v1839_v47 = vrot.slane %v4910_v33, 2  ;;  %v1840_v10 = vrot.slane %v4914_v46, 2  ;;  %v6908_v42 = vld [vmem:[#allocation67_spill] sm:$0xff] }
 0x109   : > { %v1836_v19 = vsel %vm1237_vm2, %v1834_v29, %v1835_v51  ;;  %v1842_v49 = vrot.slane %v4918_v21, 2  ;;  %v1844_v30 = vrot.slane %v4922_v0, 2  ;;  %v1845_v38 = vrot.slane %v4926_v17, 2 }
 0x10a   : > { %v1838_v50 = vsel %vm1237_vm2, %v1835_v51, %v1837_v54  ;;  %v1847_v22 = vrot.slane %v4930_v57, 2  ;;  %v1849_v63 = vrot.slane %v4934_v6, 2  ;;  %v1841_v12 = vsel %vm1237_vm2, %v1839_v47, %v1840_v10  ;;  %v6910_v51 = vld [vmem:[#allocation69_spill] sm:$0xff]  ;;  %v6912_v54 = vld [vmem:[#allocation71_spill] sm:$0xff] }
 0x10b   : > { %v1843_v33 = vsel %vm1237_vm2, %v1840_v10, %v1842_v49  ;;  %v1850_v18 = vrot.slane %v4938_v27, 2  ;;  %v1852_v46 = vrot.slane %v4942_v60, 2  ;;  %v1846_v21 = vsel %vm1237_vm2, %v1844_v30, %v1845_v38  ;;  %v6913_v10 = vld [vmem:[#allocation72_spill] sm:$0xff]  ;;  %v6914_v49 = vld [vmem:[#allocation73_spill] sm:$0xff]  ;;  %v6915_v30 = vld [vmem:[#allocation74_spill] sm:$0xff] }
 0x10c   : > { %v1848_v0 = vsel %vm1237_vm2, %v1845_v38, %v1847_v22  ;;  %v1854_v34 = vrot.slane %v4946_v14, 2  ;;  %v1855_v17 = vrot.slane %v4950_v1, 2  ;;  %v1857_v8 = vrot.slane %v4954_v9, 2 }
 0x10d   : > { %v1851_v57 = vsel %vm1237_vm2, %v1849_v63, %v1850_v18  ;;  %v1853_v6 = vsel %vm1237_vm2, %v1850_v18, %v1852_v46  ;;  %v1859_v4 = vrot.slane %v4958_v15, 2  ;;  %v1860_v60 = vrot.slane %v4962_v44, 2  ;;  %v6918_v18 = vld [vmem:[#allocation77_spill] sm:$0xff]  ;;  %v6919_v46 = vld [vmem:[#allocation78_spill] sm:$0xff] }
 0x10e   : > { %v1856_v27 = vsel %vm1237_vm2, %v1854_v34, %v1855_v17  ;;  %v1862_v5 = vrot.slane %v4966_v52, 2  ;;  %v1864_v28 = vrot.slane %v4970_v43, 2  ;;  %v1858_v14 = vsel %vm1237_vm2, %v1855_v17, %v1857_v8 }
 0x10f   : > { %v1865_v1 = vrot.slane %v4974_v35, 2  ;;  %v1867_v39 = vrot.slane %v4978_v25, 2  ;;  %v1869_v62 = vrot.slane %v4982_v45, 2  ;;  %v1861_v9 = vsel %vm1237_vm2, %v1859_v4, %v1860_v60  ;;  %v6907_v35 = vld [vmem:[#allocation66_spill] sm:$0xff] }
 0x110   : > { %v1863_v15 = vsel %vm1237_vm2, %v1860_v60, %v1862_v5  ;;  %v1870_v7 = vrot.slane %v4986_v26, 2  ;;  %v1872_v44 = vrot.slane %v4990_v56, 2  ;;  %v5080_v36 = vadd.f32 %v4993_v20, %v4715_v16  ;;  %v6909_v56 = vld [vmem:[#allocation68_spill] sm:$0xff]  ;;  %v6911_v20 = vld [vmem:[#allocation70_spill] sm:$0xff] }
 0x111   : > { %v1866_v52 = vsel %vm1237_vm2, %v1864_v28, %v1865_v1  ;;  %v1868_v43 = vsel %vm1237_vm2, %v1865_v1, %v1867_v39  ;;  %v5084_v25 = vadd.f32 %v4996_v40, %v6907_v35  ;;  %v5090_v26 = vadd.f32 %v4999_v41, %v6908_v42 }
 0x112   : > { %v1871_v45 = vsel %vm1237_vm2, %v1869_v62, %v1870_v7  ;;  %v1873_v48 = vsel %vm1237_vm2, %v1870_v7, %v1872_v44  ;;  %v5094_v29 = vadd.f32 %v5002_v58, %v6909_v56  ;;  %v5098_v16 = vadd.f32 %v5005_v37, %v6910_v51  ;;  %v6916_v37 = vld [vmem:[#allocation75_spill] sm:$0xff] }
 0x113   : > { %v5102_v40 = vadd.f32 %v5009_v13, %v6911_v20  ;;  %v5106_v47 = vadd.f32 %v5015_v23, %v6912_v54  ;;  %v5110_v41 = vadd.f32 %v5021_v31, %v6913_v10  ;;  %v5114_v58 = vadd.f32 %v5024_v24, %v6914_v49  ;;  %v6917_v13 = vld [vmem:[#allocation76_spill] sm:$0xff]  ;;  %v6920_v31 = vld [vmem:[#allocation79_spill] sm:$0xff]  ;;  %v6947_v49 = vld [vmem:[#allocation65_spill] sm:$0xff] }
 0x114   : > { %v5117_v38 = vadd.f32 %v1818_v11, %v6915_v30  ;;  %v5120_v22 = vadd.f32 %v1821_v55, %v6916_v37  ;;  %v5123_v63 = vadd.f32 %v1823_v53, %v6917_v13  ;;  %v5126_v23 = vadd.f32 %v1826_v59, %v6918_v18  ;;  %v6921_v24 = vld [vmem:[#allocation80_spill] sm:$0xff]  ;;  %v6922_v11 = vld [vmem:[#allocation81_spill] sm:$0xff]  ;;  %v6923_v55 = vld [vmem:[#allocation82_spill] sm:$0xff] }
 0x115   : > { %v5129_v34 = vadd.f32 %v1828_v3, %v6919_v46  ;;  %v5132_v17 = vadd.f32 %v1831_v61, %v6920_v31  ;;  %v5135_v8 = vadd.f32 %v1833_v32, %v6921_v24  ;;  %v5138_v4 = vadd.f32 %v1836_v19, %v6922_v11  ;;  %v6924_v53 = vld [vmem:[#allocation83_spill] sm:$0xff]  ;;  %v6925_v59 = vld [vmem:[#allocation84_spill] sm:$0xff]  ;;  %v6926_v3 = vld [vmem:[#allocation85_spill] sm:$0xff] }
 0x116   : > { %v5141_v60 = vadd.f32 %v1838_v50, %v6923_v55  ;;  %v5144_v5 = vadd.f32 %v1841_v12, %v6924_v53  ;;  %v5147_v28 = vadd.f32 %v1843_v33, %v6925_v59  ;;  %v5150_v1 = vadd.f32 %v1846_v21, %v6926_v3  ;;  %v6927_v61 = vld [vmem:[#allocation6_spill] sm:$0xff]  ;;  %v6928_v32 = vld [vmem:[#allocation55_spill] sm:$0xff]  ;;  %v6929_v19 = vld [vmem:[#allocation56_spill] sm:$0xff] }
 0x117   : > { %v5153_v39 = vadd.f32 %v1848_v0, %v6927_v61  ;;  %v5156_v62 = vadd.f32 %v1851_v57, %v6928_v32  ;;  %v5159_v7 = vadd.f32 %v1853_v6, %v6929_v19  ;;  %v6930_v50 = vld [vmem:[#allocation57_spill] sm:$0xff]  ;;  %v6932_v12 = vld [vmem:[#allocation58_spill] sm:$0xff]  ;;  %v6934_v33 = vld [vmem:[#allocation59_spill] sm:$0xff] }
 0x118   : > { %v5162_v44 = vadd.f32 %v1856_v27, %v6930_v50  ;;  %v5165_v35 = vadd.f32 %v1858_v14, %v6932_v12  ;;  %v5168_v42 = vadd.f32 %v1861_v9, %v6934_v33  ;;  %v6936_v21 = vld [vmem:[#allocation60_spill] sm:$0xff]  ;;  %v6938_v0 = vld [vmem:[#allocation61_spill] sm:$0xff]  ;;  %v6940_v57 = vld [vmem:[#allocation62_spill] sm:$0xff] }
 0x119   : > { %v5171_v56 = vadd.f32 %v1863_v15, %v6936_v21  ;;  %v5174_v51 = vadd.f32 %v1866_v52, %v6938_v0  ;;  %v5177_v20 = vadd.f32 %v1868_v43, %v6940_v57  ;;  %v6942_v6 = vld [vmem:[#allocation63_spill] sm:$0xff]  ;;  %v6944_v27 = vld [vmem:[#allocation64_spill] sm:$0xff]  ;;  %v6949_v15 = vld [vmem:[#allocation25_spill] sm:$0xff] }
 0x11a   : > { %6931 = vst [vmem:[#allocation22_spill] sm:$0xff] %v5162_v44  ;;  %6933 = vst [vmem:[#allocation3_spill] sm:$0xff] %v5165_v35  ;;  %v5180_v54 = vadd.f32 %v1871_v45, %v6942_v6  ;;  %v5183_v10 = vadd.f32 %v1873_v48, %v6944_v27  ;;  %v6946_v14 = vld [vmem:[#allocation24_spill] sm:$0xff]  ;;  %v1944_v13 = vmul.f32 %v6947_v49, %v6949_v15  ;;  %v6950_v52 = vld [vmem:[#allocation9_spill] sm:$0xff] }
 0x11b   : > { %6935 = vst [vmem:[#allocation7_spill] sm:$0xff] %v5168_v42  ;;  %6937 = vst [vmem:[#allocation39_spill] sm:$0xff] %v5171_v56  ;;  %v1942_v30 = vmul.f32 %v6947_v49, %v6946_v14  ;;  %v6948_v9 = vld [vmem:[#allocation8_spill] sm:$0xff]  ;;  %v1945_v18 = vmul.f32 %v6947_v49, %v6950_v52  ;;  %v6951_v43 = vld [vmem:[#allocation26_spill] sm:$0xff] }
 0x11c   : > { %6939 = vst [vmem:[#allocation66_spill] sm:$0xff] %v5174_v51  ;;  %6941 = vst [vmem:[#allocation67_spill] sm:$0xff] %v5177_v20  ;;  %v1943_v37 = vmul.f32 %v6947_v49, %v6948_v9  ;;  %v1946_v46 = vmul.f32 %v6947_v49, %v6951_v43  ;;  %v6952_v45 = vld [vmem:[#allocation10_spill] sm:$0xff]  ;;  %v6953_v48 = vld [vmem:[#allocation27_spill] sm:$0xff] }
 0x11d   : > { %6943 = vst [vmem:[#allocation68_spill] sm:$0xff] %v5180_v54  ;;  %6945 = vst [vmem:[#allocation69_spill] sm:$0xff] %v5183_v10  ;;  %v1947_v31 = vmul.f32 %v6947_v49, %v6952_v45  ;;  %v1948_v24 = vmul.f32 %v6947_v49, %v6953_v48  ;;  %v6954_v11 = vld [vmem:[#allocation11_spill] sm:$0xff]  ;;  %v6955_v53 = vld [vmem:[#allocation28_spill] sm:$0xff] }
 0x11e   : > { %v1949_v55 = vmul.f32 %v6947_v49, %v6954_v11  ;;  %v1950_v59 = vmul.f32 %v6947_v49, %v6955_v53  ;;  %v6956_v3 = vld [vmem:[#allocation12_spill] sm:$0xff]  ;;  %v6957_v32 = vld [vmem:[#allocation29_spill] sm:$0xff]  ;;  %v6959_v33 = vld [vmem:[#allocation30_spill] sm:$0xff]  ;;  %v1957_v53 = vmul.f32 %v6947_v49, %v6962_v2 }
 0x11f   : > { %v1951_v61 = vmul.f32 %v6947_v49, %v6956_v3  ;;  %v1952_v19 = vmul.f32 %v6947_v49, %v6957_v32  ;;  %v6958_v50 = vld [vmem:[#allocation13_spill] sm:$0xff]  ;;  %v1954_v21 = vmul.f32 %v6947_v49, %v6959_v33  ;;  %v6960_v0 = vld [vmem:[#allocation14_spill] sm:$0xff]  ;;  %v6961_v6 = vld [vmem:[#allocation31_spill] sm:$0xff] }
 0x120   : > { %v1953_v12 = vmul.f32 %v6947_v49, %v6958_v50  ;;  %v1955_v57 = vmul.f32 %v6947_v49, %v6960_v0  ;;  %v1956_v27 = vmul.f32 %v6947_v49, %v6961_v6  ;;  %v6963_v11 = vld [vmem:[#allocation32_spill] sm:$0xff]  ;;  %v6965_v45 = vld [vmem:[#allocation33_spill] sm:$0xff]  ;;  %v6967_v52 = vld [vmem:[#allocation34_spill] sm:$0xff] }
 0x121   : > { %v1958_v3 = vmul.f32 %v6947_v49, %v6963_v11  ;;  %v6964_v48 = vld [vmem:[#allocation16_spill] sm:$0xff]  ;;  %v1960_v50 = vmul.f32 %v6947_v49, %v6965_v45  ;;  %v6966_v43 = vld [vmem:[#allocation17_spill] sm:$0xff]  ;;  %v1962_v0 = vmul.f32 %v6947_v49, %v6967_v52  ;;  %v6968_v15 = vld [vmem:[#allocation18_spill] sm:$0xff] }
 0x122   : > { %v1959_v32 = vmul.f32 %v6947_v49, %v6964_v48  ;;  %v1961_v33 = vmul.f32 %v6947_v49, %v6966_v43  ;;  %v1963_v6 = vmul.f32 %v6947_v49, %v6968_v15  ;;  %v6969_v9 = vld [vmem:[#allocation35_spill] sm:$0xff]  ;;  %v6971_v10 = vld [vmem:[#allocation36_spill] sm:$0xff]  ;;  %v6973_v20 = vld [vmem:[#allocation37_spill] sm:$0xff] }
 0x123   : > { %v1964_v2 = vmul.f32 %v6947_v49, %v6969_v9  ;;  %v6970_v14 = vld [vmem:[#allocation19_spill] sm:$0xff]  ;;  %v1966_v48 = vmul.f32 %v6947_v49, %v6971_v10  ;;  %v6972_v54 = vld [vmem:[#allocation20_spill] sm:$0xff]  ;;  %v1968_v43 = vmul.f32 %v6947_v49, %v6973_v20  ;;  %v6974_v51 = vld [vmem:[#allocation21_spill] sm:$0xff]  ;;  %v5253_v20 = vadd.f32 %v1943_v37, %v5084_v25 }
 0x124   : > { %v1965_v11 = vmul.f32 %v6947_v49, %v6970_v14  ;;  %v1967_v45 = vmul.f32 %v6947_v49, %v6972_v54  ;;  %v1969_v52 = vmul.f32 %v6947_v49, %v6974_v51  ;;  %v6975_v56 = vld [vmem:[#allocation38_spill] sm:$0xff]  ;;  %v6976_v42 = vld [vmem:[#allocation23_spill] sm:$0xff]  ;;  %v6977_v35 = vld [vmem:[#allocation4_spill] sm:$0xff]  ;;  %v5250_v54 = vadd.f32 %v1942_v30, %v5080_v36 }
 0x125   : > { %v1970_v15 = vmul.f32 %v6947_v49, %v6975_v56  ;;  %v1971_v9 = vmul.f32 %v6947_v49, %v6976_v42  ;;  %v1972_v14 = vmul.f32 %v6947_v49, %v6977_v35  ;;  %v6978_v44 = vld [vmem:[#allocation2_spill] sm:$0xff]  ;;  %6979 = vst [vmem:[#allocation70_spill] sm:$0xff] %v5253_v20  ;;  %v5256_v51 = vadd.f32 %v1944_v13, %v5090_v26 }
 0x126   : > { %v1973_v10 = vmul.f32 %v6947_v49, %v6978_v44  ;;  %v5259_v56 = vadd.f32 %v1945_v18, %v5094_v29  ;;  %v5262_v42 = vadd.f32 %v1946_v46, %v5098_v16  ;;  %v5265_v35 = vadd.f32 %v1947_v31, %v5102_v40 }
 0x127   : > { %6980 = vst [vmem:[#allocation71_spill] sm:$0xff] %v5256_v51  ;;  %v5268_v49 = vadd.f32 %v1948_v24, %v5106_v47  ;;  %v5271_v36 = vadd.f32 %v1949_v55, %v5110_v41  ;;  %v5274_v25 = vadd.f32 %v1950_v59, %v5114_v58  ;;  %v5277_v26 = vadd.f32 %v1951_v61, %v5117_v38 }
 0x128   : > { %6981 = vst [vmem:[#allocation72_spill] sm:$0xff] %v5259_v56  ;;  %6982 = vst [vmem:[#allocation73_spill] sm:$0xff] %v5262_v42  ;;  %v5280_v29 = vadd.f32 %v1952_v19, %v5120_v22  ;;  %v5283_v16 = vadd.f32 %v1953_v12, %v5123_v63  ;;  %v5286_v40 = vadd.f32 %v1954_v21, %v5126_v23 }
 0x129   : > { %6983 = vst [vmem:[#allocation74_spill] sm:$0xff] %v5265_v35  ;;  %6984 = vst [vmem:[#allocation75_spill] sm:$0xff] %v5268_v49  ;;  %v5289_v47 = vadd.f32 %v1955_v57, %v5129_v34  ;;  %v5292_v41 = vadd.f32 %v1956_v27, %v5132_v17  ;;  %v5295_v58 = vadd.f32 %v1957_v53, %v5135_v8 }
 0x12a   : > { %6985 = vst [vmem:[#allocation76_spill] sm:$0xff] %v5271_v36  ;;  %6986 = vst [vmem:[#allocation77_spill] sm:$0xff] %v5274_v25  ;;  %v5298_v38 = vadd.f32 %v1958_v3, %v5138_v4  ;;  %v5301_v22 = vadd.f32 %v1959_v32, %v5141_v60  ;;  %v5304_v63 = vadd.f32 %v1960_v50, %v5144_v5  ;;  %v7002_v60 = vld [vmem:[#allocation22_spill] sm:$0xff]  ;;  %v7004_v5 = vld [vmem:[#allocation3_spill] sm:$0xff] }
 0x12b   : > { %6987 = vst [vmem:[#allocation78_spill] sm:$0xff] %v5277_v26  ;;  %6988 = vst [vmem:[#allocation79_spill] sm:$0xff] %v5280_v29  ;;  %v5307_v23 = vadd.f32 %v1961_v33, %v5147_v28  ;;  %v5310_v34 = vadd.f32 %v1962_v0, %v5150_v1  ;;  %v5313_v17 = vadd.f32 %v1963_v6, %v5153_v39  ;;  %v7006_v28 = vld [vmem:[#allocation7_spill] sm:$0xff]  ;;  %v7010_v39 = vld [vmem:[#allocation66_spill] sm:$0xff] }
 0x12c   : > { %6989 = vst [vmem:[#allocation80_spill] sm:$0xff] %v5283_v16  ;;  %6990 = vst [vmem:[#allocation81_spill] sm:$0xff] %v5286_v40  ;;  %v5316_v8 = vadd.f32 %v1964_v2, %v5156_v62  ;;  %v5319_v4 = vadd.f32 %v1965_v11, %v5159_v7  ;;  %v5322_v30 = vadd.f32 %v1966_v48, %v7002_v60  ;;  %v7008_v1 = vld [vmem:[#allocation39_spill] sm:$0xff]  ;;  %v7014_v7 = vld [vmem:[#allocation68_spill] sm:$0xff] }
 0x12d   : > { %6991 = vst [vmem:[#allocation82_spill] sm:$0xff] %v5289_v47  ;;  %6992 = vst [vmem:[#allocation83_spill] sm:$0xff] %v5292_v41  ;;  %v5325_v37 = vadd.f32 %v1967_v45, %v7004_v5  ;;  %v5328_v13 = vadd.f32 %v1968_v43, %v7006_v28  ;;  %v5331_v18 = vadd.f32 %v1969_v52, %v7008_v1  ;;  %v7012_v2 = vld [vmem:[#allocation67_spill] sm:$0xff]  ;;  %v7016_v48 = vld [vmem:[#allocation69_spill] sm:$0xff] }
 0x12e   : > { %6993 = vst [vmem:[#allocation84_spill] sm:$0xff] %v5295_v58  ;;  %6994 = vst [vmem:[#allocation85_spill] sm:$0xff] %v5298_v38  ;;  %v5334_v46 = vadd.f32 %v1970_v15, %v7010_v39  ;;  %v5337_v62 = vadd.f32 %v1971_v9, %v7012_v2  ;;  %v5340_v31 = vadd.f32 %v1972_v14, %v7014_v7  ;;  %v7018_v45 = vld [vmem:[#allocation24_spill] sm:$0xff]  ;;  %v7019_v11 = vld [vmem:[#allocation86_spill] sm:$0xff] }
 0x12f   : > { %6995 = vst [vmem:[#allocation6_spill] sm:$0xff] %v5301_v22  ;;  %6996 = vst [vmem:[#allocation55_spill] sm:$0xff] %v5304_v63  ;;  %v5343_v24 = vadd.f32 %v1973_v10, %v7016_v48  ;;  %v2010_v55 = vmul.f32 %v7019_v11, %v7018_v45  ;;  %v7020_v43 = vld [vmem:[#allocation8_spill] sm:$0xff]  ;;  %v7022_v15 = vld [vmem:[#allocation25_spill] sm:$0xff] }
 0x130   : > { %6997 = vst [vmem:[#allocation56_spill] sm:$0xff] %v5307_v23  ;;  %6998 = vst [vmem:[#allocation57_spill] sm:$0xff] %v5310_v34  ;;  %v2011_v53 = vmul.f32 %v7019_v11, %v7020_v43  ;;  %v7021_v52 = vld [vmem:[#allocation40_spill] sm:$0xff]  ;;  %v2013_v3 = vmul.f32 %v7019_v11, %v7022_v15  ;;  %v7023_v9 = vld [vmem:[#allocation9_spill] sm:$0xff] }
 0x131   : > { %6999 = vst [vmem:[#allocation58_spill] sm:$0xff] %v5313_v17  ;;  %7000 = vst [vmem:[#allocation59_spill] sm:$0xff] %v5316_v8  ;;  %v2012_v59 = vmul.f32 %v7019_v11, %v7021_v52  ;;  %v2014_v61 = vmul.f32 %v7019_v11, %v7023_v9  ;;  %v7024_v14 = vld [vmem:[#allocation41_spill] sm:$0xff]  ;;  %v7025_v10 = vld [vmem:[#allocation26_spill] sm:$0xff]  ;;  %v2106_v26 = vrot.slane %v2010_v55, 1 }
 0x132   : > { %7001 = vst [vmem:[#allocation60_spill] sm:$0xff] %v5319_v4  ;;  %7003 = vst [vmem:[#allocation61_spill] sm:$0xff] %v5322_v30  ;;  %v2015_v32 = vmul.f32 %v7019_v11, %v7024_v14  ;;  %v2016_v19 = vmul.f32 %v7019_v11, %v7025_v10  ;;  %v7026_v50 = vld [vmem:[#allocation10_spill] sm:$0xff]  ;;  %v7028_v0 = vld [vmem:[#allocation27_spill] sm:$0xff]  ;;  %v2107_v25 = vrot.slane %v2011_v53, 1  ;;  %v2111_v36 = vrot.slane %v2013_v3, 1 }
 0x133   : > { %7005 = vst [vmem:[#allocation62_spill] sm:$0xff] %v5325_v37  ;;  %7007 = vst [vmem:[#allocation63_spill] sm:$0xff] %v5328_v13  ;;  %v2017_v12 = vmul.f32 %v7019_v11, %v7026_v50  ;;  %v7027_v33 = vld [vmem:[#allocation42_spill] sm:$0xff]  ;;  %v2019_v57 = vmul.f32 %v7019_v11, %v7028_v0  ;;  %v7029_v6 = vld [vmem:[#allocation11_spill] sm:$0xff]  ;;  %v2112_v49 = vrot.slane %v2014_v61, 1 }
 0x134   : > { %7009 = vst [vmem:[#allocation64_spill] sm:$0xff] %v5331_v18  ;;  %7011 = vst [vmem:[#allocation65_spill] sm:$0xff] %v5334_v46  ;;  %v2018_v21 = vmul.f32 %v7019_v11, %v7027_v33  ;;  %v5367_v27 = vmul.f32 %v7019_v11, %v7029_v6  ;;  %v7030_v60 = vld [vmem:[#allocation43_spill] sm:$0xff]  ;;  %v7031_v28 = vld [vmem:[#allocation28_spill] sm:$0xff]  ;;  %v2114_v35 = vrot.slane %v2015_v32, 1  ;;  %v5518_v56 = vsel %vm992_vm1, %v2106_v26, %v2107_v25 }
 0x135   : > { %7013 = vst [vmem:[#allocation22_spill] sm:$0xff] %v5337_v62  ;;  %7015 = vst [vmem:[#allocation3_spill] sm:$0xff] %v5340_v31  ;;  %v5371_v5 = vmul.f32 %v7019_v11, %v7030_v60  ;;  %v5375_v1 = vmul.f32 %v7019_v11, %v7031_v28  ;;  %v7032_v39 = vld [vmem:[#allocation12_spill] sm:$0xff]  ;;  %v7034_v45 = vld [vmem:[#allocation29_spill] sm:$0xff]  ;;  %v2117_v42 = vrot.slane %v2017_v12, 1  ;;  %v2121_v51 = vrot.slane %v2019_v57, 1 }
 0x136   : > { %7017 = vst [vmem:[#allocation7_spill] sm:$0xff] %v5343_v24  ;;  %v5379_v2 = vmul.f32 %v7019_v11, %v7032_v39  ;;  %v7033_v7 = vld [vmem:[#allocation44_spill] sm:$0xff]  ;;  %v5387_v43 = vmul.f32 %v7019_v11, %v7034_v45  ;;  %v7035_v52 = vld [vmem:[#allocation13_spill] sm:$0xff]  ;;  %v7037_v6 = vld [vmem:[#allocation30_spill] sm:$0xff]  ;;  %v5524_v20 = vsel %vm992_vm1, %v2111_v36, %v2112_v49  ;;  %v2122_v53 = vrot.slane %v5367_v27, 1 }
 0x137   : > { %v5383_v48 = vmul.f32 %v7019_v11, %v7033_v7  ;;  %v5391_v15 = vmul.f32 %v7019_v11, %v7035_v52  ;;  %v7036_v60 = vld [vmem:[#allocation45_spill] sm:$0xff]  ;;  %v5399_v39 = vmul.f32 %v7019_v11, %v7037_v6  ;;  %v7038_v0 = vld [vmem:[#allocation14_spill] sm:$0xff]  ;;  %v7040_v50 = vld [vmem:[#allocation31_spill] sm:$0xff]  ;;  %v2124_v26 = vrot.slane %v5371_v5, 1 }
 0x138   : > { %v5395_v28 = vmul.f32 %v7019_v11, %v7036_v60  ;;  %v5403_v7 = vmul.f32 %v7019_v11, %v7038_v0  ;;  %v7039_v33 = vld [vmem:[#allocation46_spill] sm:$0xff]  ;;  %v5411_v52 = vmul.f32 %v7019_v11, %v7040_v50  ;;  %v7041_v10 = vld [vmem:[#allocation15_spill] sm:$0xff]  ;;  %v7043_v9 = vld [vmem:[#allocation32_spill] sm:$0xff]  ;;  %v5540_v36 = vsel %vm992_vm1, %v2121_v51, %v2122_v53 }
 0x139   : > { %v5407_v45 = vmul.f32 %v7019_v11, %v7039_v33  ;;  %v5415_v60 = vmul.f32 %v7019_v11, %v7041_v10  ;;  %v7042_v14 = vld [vmem:[#allocation47_spill] sm:$0xff]  ;;  %v5423_v0 = vmul.f32 %v7019_v11, %v7043_v9  ;;  %v7044_v24 = vld [vmem:[#allocation16_spill] sm:$0xff]  ;;  %v7046_v62 = vld [vmem:[#allocation33_spill] sm:$0xff]  ;;  %v5546_v3 = vsel %vm992_vm1, %v2122_v53, %v2124_v26 }
 0x13a   : > { %v5419_v6 = vmul.f32 %v7019_v11, %v7042_v14  ;;  %v5427_v33 = vmul.f32 %v7019_v11, %v7044_v24  ;;  %v7045_v31 = vld [vmem:[#allocation48_spill] sm:$0xff]  ;;  %v5435_v10 = vmul.f32 %v7019_v11, %v7046_v62  ;;  %v7047_v46 = vld [vmem:[#allocation17_spill] sm:$0xff]  ;;  %v7049_v13 = vld [vmem:[#allocation34_spill] sm:$0xff]  ;;  %v2136_v61 = vrot.slane %v5399_v39, 1 }
 0x13b   : > { %v5431_v50 = vmul.f32 %v7019_v11, %v7045_v31  ;;  %v5439_v14 = vmul.f32 %v7019_v11, %v7047_v46  ;;  %v7048_v18 = vld [vmem:[#allocation49_spill] sm:$0xff]  ;;  %v5447_v24 = vmul.f32 %v7019_v11, %v7049_v13  ;;  %v7050_v37 = vld [vmem:[#allocation18_spill] sm:$0xff]  ;;  %v7052_v4 = vld [vmem:[#allocation35_spill] sm:$0xff]  ;;  %v2139_v12 = vrot.slane %v5407_v45, 1 }
 0x13c   : > { %v5443_v9 = vmul.f32 %v7019_v11, %v7048_v18  ;;  %v5451_v31 = vmul.f32 %v7019_v11, %v7050_v37  ;;  %v7051_v30 = vld [vmem:[#allocation50_spill] sm:$0xff]  ;;  %v5459_v46 = vmul.f32 %v7019_v11, %v7052_v4  ;;  %v7053_v8 = vld [vmem:[#allocation19_spill] sm:$0xff]  ;;  %v7055_v34 = vld [vmem:[#allocation36_spill] sm:$0xff]  ;;  %v2141_v57 = vrot.slane %v5411_v52, 1 }
 0x13d   : > { %v5455_v62 = vmul.f32 %v7019_v11, %v7051_v30  ;;  %v5463_v18 = vmul.f32 %v7019_v11, %v7053_v8  ;;  %v7054_v17 = vld [vmem:[#allocation51_spill] sm:$0xff]  ;;  %v5471_v37 = vmul.f32 %v7019_v11, %v7055_v34  ;;  %v7056_v23 = vld [vmem:[#allocation20_spill] sm:$0xff]  ;;  %v7058_v22 = vld [vmem:[#allocation37_spill] sm:$0xff]  ;;  %v2142_v27 = vrot.slane %v5415_v60, 1 }
 0x13e   : > { %v5467_v13 = vmul.f32 %v7019_v11, %v7054_v17  ;;  %v5475_v30 = vmul.f32 %v7019_v11, %v7056_v23  ;;  %v7057_v63 = vld [vmem:[#allocation52_spill] sm:$0xff]  ;;  %v5483_v8 = vmul.f32 %v7019_v11, %v7058_v22  ;;  %v7059_v38 = vld [vmem:[#allocation21_spill] sm:$0xff]  ;;  %v7061_v41 = vld [vmem:[#allocation38_spill] sm:$0xff]  ;;  %v2144_v5 = vrot.slane %v5419_v6, 1 }
 0x13f   : > { %v5479_v4 = vmul.f32 %v7019_v11, %v7057_v63  ;;  %v5487_v17 = vmul.f32 %v7019_v11, %v7059_v38  ;;  %v7060_v58 = vld [vmem:[#allocation53_spill] sm:$0xff]  ;;  %v5495_v23 = vmul.f32 %v7019_v11, %v7061_v41  ;;  %v7062_v47 = vld [vmem:[#allocation23_spill] sm:$0xff]  ;;  %v7063_v40 = vld [vmem:[#allocation54_spill] sm:$0xff]  ;;  %v2146_v39 = vrot.slane %v5423_v0, 1 }
 0x140   : > { %v5491_v34 = vmul.f32 %v7019_v11, %v7060_v58  ;;  %v5499_v63 = vmul.f32 %v7019_v11, %v7062_v47  ;;  %v5503_v22 = vmul.f32 %v7019_v11, %v7063_v40  ;;  %v7064_v16 = vld [vmem:[#allocation4_spill] sm:$0xff]  ;;  %v5511_v58 = vmul.f32 %v7019_v11, %v6978_v44  ;;  %v7065_v29 = vld [vmem:[#allocation5_spill] sm:$0xff] }
 0x141   : > { %v5507_v38 = vmul.f32 %v7019_v11, %v7064_v16  ;;  %v5515_v41 = vmul.f32 %v7019_v11, %v7065_v29  ;;  %v2109_v47 = vrot.slane %v2012_v59, 1  ;;  %v2116_v40 = vrot.slane %v2016_v19, 1 }
 0x142   : > { %v2119_v44 = vrot.slane %v2018_v21, 1  ;;  %v5527_v11 = vsel %vm992_vm1, %v2112_v49, %v2114_v35  ;;  %v2129_v35 = vrot.slane %v5383_v48, 1  ;;  %v2131_v49 = vrot.slane %v5387_v43, 1 }
 0x143   : > { %v5521_v16 = vsel %vm992_vm1, %v2107_v25, %v2109_v47  ;;  %v5530_v55 = vsel %vm992_vm1, %v2116_v40, %v2117_v42  ;;  %v2126_v25 = vrot.slane %v5375_v1, 1  ;;  %v2127_v47 = vrot.slane %v5379_v2, 1 }
 0x144   : > { %v5534_v59 = vsel %vm992_vm1, %v2117_v42, %v2119_v44  ;;  %v2132_v40 = vrot.slane %v5391_v15, 1  ;;  %v2134_v42 = vrot.slane %v5395_v28, 1  ;;  %v2137_v19 = vrot.slane %v5403_v7, 1 }
 0x145   : > { %v5549_v44 = vsel %vm992_vm1, %v2126_v25, %v2127_v47  ;;  %v2130_v32 = vsel %vm992_vm1, %v2127_v47, %v2129_v35  ;;  %v2147_v2 = vrot.slane %v5427_v33, 1  ;;  %v2143_v7 = vsel %vm992_vm1, %v2141_v57, %v2142_v27 }
 0x146   : > { %v2133_v51 = vsel %vm992_vm1, %v2131_v49, %v2132_v40  ;;  %v2135_v21 = vsel %vm992_vm1, %v2132_v40, %v2134_v42  ;;  %v2138_v28 = vsel %vm992_vm1, %v2136_v61, %v2137_v19  ;;  %v2140_v1 = vsel %vm992_vm1, %v2137_v19, %v2139_v12 }
 0x147   : > { %v2145_v48 = vsel %vm992_vm1, %v2142_v27, %v2144_v5  ;;  %v2149_v45 = vrot.slane %v5431_v50, 1  ;;  %v2151_v43 = vrot.slane %v5435_v10, 1  ;;  %v2148_v60 = vsel %vm992_vm1, %v2146_v39, %v2147_v2  ;;  %v7067_v5 = vld [vmem:[#allocation71_spill] sm:$0xff] }
 0x148   : > { %v2152_v6 = vrot.slane %v5439_v14, 1  ;;  %v2154_v52 = vrot.slane %v5443_v9, 1  ;;  %v2156_v15 = vrot.slane %v5447_v24, 1  ;;  %v2157_v33 = vrot.slane %v5451_v31, 1 }
 0x149   : > { %v2150_v0 = vsel %vm992_vm1, %v2147_v2, %v2149_v45  ;;  %v2159_v53 = vrot.slane %v5455_v62, 1  ;;  %v2161_v26 = vrot.slane %v5459_v46, 1  ;;  %v2162_v25 = vrot.slane %v5463_v18, 1  ;;  %v7069_v2 = vld [vmem:[#allocation73_spill] sm:$0xff]  ;;  %v7073_v45 = vld [vmem:[#allocation75_spill] sm:$0xff] }
 0x14a   : > { %v2153_v50 = vsel %vm992_vm1, %v2151_v43, %v2152_v6  ;;  %v2155_v10 = vsel %vm992_vm1, %v2152_v6, %v2154_v52  ;;  %v2164_v14 = vrot.slane %v5467_v13, 1  ;;  %v2158_v9 = vsel %vm992_vm1, %v2156_v15, %v2157_v33  ;;  %v7075_v6 = vld [vmem:[#allocation76_spill] sm:$0xff]  ;;  %v7077_v52 = vld [vmem:[#allocation77_spill] sm:$0xff]  ;;  %v7079_v15 = vld [vmem:[#allocation78_spill] sm:$0xff] }
 0x14b   : > { %v2160_v24 = vsel %vm992_vm1, %v2157_v33, %v2159_v53  ;;  %v2166_v47 = vrot.slane %v5471_v37, 1  ;;  %v2167_v31 = vrot.slane %v5475_v30, 1  ;;  %v2163_v62 = vsel %vm992_vm1, %v2161_v26, %v2162_v25 }
 0x14c   : > { %v2165_v46 = vsel %vm992_vm1, %v2162_v25, %v2164_v14  ;;  %v2169_v35 = vrot.slane %v5479_v4, 1  ;;  %v2171_v49 = vrot.slane %v5483_v8, 1  ;;  %v2172_v13 = vrot.slane %v5487_v17, 1  ;;  %v7085_v25 = vld [vmem:[#allocation81_spill] sm:$0xff]  ;;  %v7087_v14 = vld [vmem:[#allocation82_spill] sm:$0xff] }
 0x14d   : > { %v2168_v18 = vsel %vm992_vm1, %v2166_v47, %v2167_v31  ;;  %v2174_v40 = vrot.slane %v5491_v34, 1  ;;  %v2176_v42 = vrot.slane %v5495_v23, 1  ;;  %v2177_v30 = vrot.slane %v5499_v63, 1  ;;  %v7066_v63 = vld [vmem:[#allocation70_spill] sm:$0xff] }
 0x14e   : > { %v2170_v37 = vsel %vm992_vm1, %v2167_v31, %v2169_v35  ;;  %v2179_v61 = vrot.slane %v5503_v22, 1  ;;  %v2181_v19 = vrot.slane %v5507_v38, 1  ;;  %v2173_v4 = vsel %vm992_vm1, %v2171_v49, %v2172_v13 }
 0x14f   : > { %v2175_v8 = vsel %vm992_vm1, %v2172_v13, %v2174_v40  ;;  %v2182_v12 = vrot.slane %v5511_v58, 1  ;;  %v2184_v17 = vrot.slane %v5515_v41, 1  ;;  %v2178_v34 = vsel %vm992_vm1, %v2176_v42, %v2177_v30  ;;  %v7068_v41 = vld [vmem:[#allocation72_spill] sm:$0xff] }
 0x150   : > { %v2180_v23 = vsel %vm992_vm1, %v2177_v30, %v2179_v61  ;;  %v5605_v57 = vadd.f32 %v5518_v56, %v5250_v54  ;;  %v5609_v22 = vadd.f32 %v5521_v16, %v7066_v63  ;;  %v5615_v58 = vadd.f32 %v5524_v20, %v7067_v5  ;;  %v7071_v54 = vld [vmem:[#allocation74_spill] sm:$0xff] }
 0x151   : > { %v2183_v38 = vsel %vm992_vm1, %v2181_v19, %v2182_v12  ;;  %v2185_v27 = vsel %vm992_vm1, %v2182_v12, %v2184_v17  ;;  %v5619_v39 = vadd.f32 %v5527_v11, %v7068_v41  ;;  %v5623_v56 = vadd.f32 %v5530_v55, %v7069_v2  ;;  %v7081_v55 = vld [vmem:[#allocation79_spill] sm:$0xff] }
 0x152   : > { %v5627_v16 = vadd.f32 %v5534_v59, %v7071_v54  ;;  %v5631_v43 = vadd.f32 %v5540_v36, %v7073_v45  ;;  %v5635_v20 = vadd.f32 %v5546_v3, %v7075_v6  ;;  %v5639_v11 = vadd.f32 %v5549_v44, %v7077_v52  ;;  %v7083_v59 = vld [vmem:[#allocation80_spill] sm:$0xff]  ;;  %v7089_v3 = vld [vmem:[#allocation83_spill] sm:$0xff] }
 0x153   : > { %7070 = vst [vmem:[#allocation39_spill] sm:$0xff] %v5623_v56  ;;  %v5642_v33 = vadd.f32 %v2130_v32, %v7079_v15  ;;  %v5645_v53 = vadd.f32 %v2133_v51, %v7081_v55  ;;  %v5648_v26 = vadd.f32 %v2135_v21, %v7083_v59  ;;  %v5651_v36 = vadd.f32 %v2138_v28, %v7085_v25  ;;  %v7091_v44 = vld [vmem:[#allocation84_spill] sm:$0xff]  ;;  %v7093_v32 = vld [vmem:[#allocation85_spill] sm:$0xff]  ;;  %v7095_v51 = vld [vmem:[#allocation6_spill] sm:$0xff] }
 0x154   : > { %7072 = vst [vmem:[#allocation66_spill] sm:$0xff] %v5627_v16  ;;  %7074 = vst [vmem:[#allocation67_spill] sm:$0xff] %v5631_v43  ;;  %v5654_v47 = vadd.f32 %v2140_v1, %v7087_v14  ;;  %v5657_v31 = vadd.f32 %v2143_v7, %v7089_v3  ;;  %v5660_v35 = vadd.f32 %v2145_v48, %v7091_v44  ;;  %v7097_v21 = vld [vmem:[#allocation55_spill] sm:$0xff]  ;;  %v7099_v28 = vld [vmem:[#allocation56_spill] sm:$0xff] }
 0x155   : > { %7076 = vst [vmem:[#allocation68_spill] sm:$0xff] %v5635_v20  ;;  %7078 = vst [vmem:[#allocation69_spill] sm:$0xff] %v5639_v11  ;;  %v5663_v49 = vadd.f32 %v2148_v60, %v7093_v32  ;;  %v5666_v13 = vadd.f32 %v2150_v0, %v7095_v51  ;;  %v5669_v40 = vadd.f32 %v2153_v50, %v7097_v21  ;;  %v7101_v1 = vld [vmem:[#allocation57_spill] sm:$0xff]  ;;  %v7103_v7 = vld [vmem:[#allocation58_spill] sm:$0xff] }
 0x156   : > { %7080 = vst [vmem:[#allocation24_spill] sm:$0xff] %v5642_v33  ;;  %7082 = vst [vmem:[#allocation86_spill] sm:$0xff] %v5645_v53  ;;  %v5672_v42 = vadd.f32 %v2155_v10, %v7099_v28  ;;  %v5675_v30 = vadd.f32 %v2158_v9, %v7101_v1  ;;  %v5678_v61 = vadd.f32 %v2160_v24, %v7103_v7  ;;  %v7105_v48 = vld [vmem:[#allocation59_spill] sm:$0xff]  ;;  %v7107_v60 = vld [vmem:[#allocation60_spill] sm:$0xff] }
 0x157   : > { %7084 = vst [vmem:[#allocation8_spill] sm:$0xff] %v5648_v26  ;;  %7086 = vst [vmem:[#allocation40_spill] sm:$0xff] %v5651_v36  ;;  %v5681_v19 = vadd.f32 %v2163_v62, %v7105_v48  ;;  %v5684_v12 = vadd.f32 %v2165_v46, %v7107_v60  ;;  %v7109_v0 = vld [vmem:[#allocation61_spill] sm:$0xff]  ;;  %v7111_v50 = vld [vmem:[#allocation62_spill] sm:$0xff] }
 0x158   : > { %7088 = vst [vmem:[#allocation25_spill] sm:$0xff] %v5654_v47  ;;  %7090 = vst [vmem:[#allocation5_spill] sm:$0xff] %v5657_v31  ;;  %v5687_v17 = vadd.f32 %v2168_v18, %v7109_v0  ;;  %v5690_v63 = vadd.f32 %v2170_v37, %v7111_v50  ;;  %v7113_v10 = vld [vmem:[#allocation63_spill] sm:$0xff]  ;;  %v7115_v9 = vld [vmem:[#allocation64_spill] sm:$0xff] }
 0x159   : > { %7092 = vst [vmem:[#allocation70_spill] sm:$0xff] %v5660_v35  ;;  %7094 = vst [vmem:[#allocation71_spill] sm:$0xff] %v5663_v49  ;;  %v5693_v5 = vadd.f32 %v2173_v4, %v7113_v10  ;;  %v5696_v41 = vadd.f32 %v2175_v8, %v7115_v9  ;;  %v7117_v24 = vld [vmem:[#allocation65_spill] sm:$0xff]  ;;  %v7119_v62 = vld [vmem:[#allocation22_spill] sm:$0xff] }
 0x15a   : > { %7096 = vst [vmem:[#allocation72_spill] sm:$0xff] %v5666_v13  ;;  %7098 = vst [vmem:[#allocation73_spill] sm:$0xff] %v5669_v40  ;;  %v5699_v2 = vadd.f32 %v2178_v34, %v7117_v24  ;;  %v5702_v54 = vadd.f32 %v2180_v23, %v7119_v62  ;;  %v7121_v46 = vld [vmem:[#allocation3_spill] sm:$0xff]  ;;  %v7125_v4 = vld [vmem:[#allocation9_spill] sm:$0xff] }
 0x15b   : > { %7100 = vst [vmem:[#allocation74_spill] sm:$0xff] %v5672_v42  ;;  %7102 = vst [vmem:[#allocation75_spill] sm:$0xff] %v5675_v30  ;;  %v5705_v45 = vadd.f32 %v2183_v38, %v7121_v46  ;;  %v7123_v18 = vld [vmem:[#allocation7_spill] sm:$0xff]  ;;  %v7126_v8 = vld [vmem:[#allocation41_spill] sm:$0xff] }
 0x15c   : > { %7104 = vst [vmem:[#allocation76_spill] sm:$0xff] %v5678_v61  ;;  %7106 = vst [vmem:[#allocation77_spill] sm:$0xff] %v5681_v19  ;;  %v5708_v6 = vadd.f32 %v2185_v27, %v7123_v18  ;;  %v2990_v37 = vld [vmem:[%s6317_s3 + $0x8] ss:$0 sm:$0xff]  ;;  %v7127_v55 = vld [vmem:[#allocation26_spill] sm:$0xff] }
 0x15d   : > { %7108 = vst [vmem:[#allocation78_spill] sm:$0xff] %v5684_v12  ;;  %7110 = vst [vmem:[#allocation79_spill] sm:$0xff] %v5687_v17  ;;  %v2258_v52 = vmul.f32 %v2990_v37, %v7125_v4  ;;  %v2259_v15 = vmul.f32 %v2990_v37, %v7126_v8  ;;  %v2260_v34 = vmul.f32 %v2990_v37, %v7127_v55  ;;  %v7128_v59 = vld [vmem:[#allocation10_spill] sm:$0xff]  ;;  %v7130_v3 = vld [vmem:[#allocation27_spill] sm:$0xff] }
 0x15e   : > { %7112 = vst [vmem:[#allocation80_spill] sm:$0xff] %v5690_v63  ;;  %7114 = vst [vmem:[#allocation81_spill] sm:$0xff] %v5693_v5  ;;  %v2261_v25 = vmul.f32 %v2990_v37, %v7128_v59  ;;  %v7129_v23 = vld [vmem:[#allocation42_spill] sm:$0xff]  ;;  %v2263_v38 = vmul.f32 %v2990_v37, %v7130_v3  ;;  %v7131_v44 = vld [vmem:[#allocation11_spill] sm:$0xff] }
 0x15f   : > { %7116 = vst [vmem:[#allocation82_spill] sm:$0xff] %v5696_v41  ;;  %7118 = vst [vmem:[#allocation83_spill] sm:$0xff] %v5699_v2  ;;  %v2262_v14 = vmul.f32 %v2990_v37, %v7129_v23  ;;  %v5720_v32 = vmul.f32 %v2990_v37, %v7131_v44  ;;  %v7132_v27 = vld [vmem:[#allocation43_spill] sm:$0xff]  ;;  %v7133_v21 = vld [vmem:[#allocation28_spill] sm:$0xff]  ;;  %v2356_v43 = vrot.slane %v2258_v52, 2  ;;  %v2360_v16 = vrot.slane %v2260_v34, 2 }
 0x160   : > { %7120 = vst [vmem:[#allocation84_spill] sm:$0xff] %v5702_v54  ;;  %7122 = vst [vmem:[#allocation85_spill] sm:$0xff] %v5705_v45  ;;  %v5723_v51 = vmul.f32 %v2990_v37, %v7132_v27  ;;  %v5726_v28 = vmul.f32 %v2990_v37, %v7133_v21  ;;  %v7134_v1 = vld [vmem:[#allocation12_spill] sm:$0xff]  ;;  %v7136_v0 = vld [vmem:[#allocation29_spill] sm:$0xff]  ;;  %v2361_v56 = vrot.slane %v2261_v25, 2 }
 0x161   : > { %7124 = vst [vmem:[#allocation6_spill] sm:$0xff] %v5708_v6  ;;  %v5729_v7 = vmul.f32 %v2990_v37, %v7134_v1  ;;  %v7135_v48 = vld [vmem:[#allocation44_spill] sm:$0xff]  ;;  %v5735_v50 = vmul.f32 %v2990_v37, %v7136_v0  ;;  %v7137_v10 = vld [vmem:[#allocation13_spill] sm:$0xff]  ;;  %v7139_v46 = vld [vmem:[#allocation30_spill] sm:$0xff]  ;;  %v2366_v52 = vrot.slane %v5720_v32, 2 }
 0x162   : > { %v5732_v60 = vmul.f32 %v2990_v37, %v7135_v48  ;;  %v5738_v9 = vmul.f32 %v2990_v37, %v7137_v10  ;;  %v7138_v24 = vld [vmem:[#allocation45_spill] sm:$0xff]  ;;  %v5744_v18 = vmul.f32 %v2990_v37, %v7139_v46  ;;  %v7140_v4 = vld [vmem:[#allocation14_spill] sm:$0xff]  ;;  %v7142_v23 = vld [vmem:[#allocation31_spill] sm:$0xff] }
 0x163   : > { %v5741_v62 = vmul.f32 %v2990_v37, %v7138_v24  ;;  %v5747_v8 = vmul.f32 %v2990_v37, %v7140_v4  ;;  %v7141_v55 = vld [vmem:[#allocation46_spill] sm:$0xff]  ;;  %v5753_v3 = vmul.f32 %v2990_v37, %v7142_v23  ;;  %v7143_v44 = vld [vmem:[#allocation15_spill] sm:$0xff]  ;;  %v7145_v48 = vld [vmem:[#allocation32_spill] sm:$0xff]  ;;  %v2371_v34 = vrot.slane %v5729_v7, 2 }
 0x164   : > { %v5750_v59 = vmul.f32 %v2990_v37, %v7141_v55  ;;  %v5756_v27 = vmul.f32 %v2990_v37, %v7143_v44  ;;  %v7144_v21 = vld [vmem:[#allocation47_spill] sm:$0xff]  ;;  %v5762_v0 = vmul.f32 %v2990_v37, %v7145_v48  ;;  %v7146_v10 = vld [vmem:[#allocation16_spill] sm:$0xff]  ;;  %v7148_v55 = vld [vmem:[#allocation33_spill] sm:$0xff]  ;;  %v2375_v25 = vrot.slane %v5735_v50, 2 }
 0x165   : > { %v5759_v1 = vmul.f32 %v2990_v37, %v7144_v21  ;;  %v5765_v24 = vmul.f32 %v2990_v37, %v7146_v10  ;;  %v7147_v46 = vld [vmem:[#allocation48_spill] sm:$0xff]  ;;  %v5771_v6 = vmul.f32 %v2990_v37, %v7148_v55  ;;  %v7149_v23 = vld [vmem:[#allocation17_spill] sm:$0xff]  ;;  %v7151_v21 = vld [vmem:[#allocation34_spill] sm:$0xff]  ;;  %v2380_v32 = vrot.slane %v5744_v18, 2 }
 0x166   : > { %v5768_v4 = vmul.f32 %v2990_v37, %v7147_v46  ;;  %v5774_v45 = vmul.f32 %v2990_v37, %v7149_v23  ;;  %v7150_v44 = vld [vmem:[#allocation49_spill] sm:$0xff]  ;;  %v5780_v2 = vmul.f32 %v2990_v37, %v7151_v21  ;;  %v7152_v48 = vld [vmem:[#allocation18_spill] sm:$0xff]  ;;  %v7154_v46 = vld [vmem:[#allocation35_spill] sm:$0xff]  ;;  %v2381_v7 = vrot.slane %v5747_v8, 2 }
 0x167   : > { %v5777_v54 = vmul.f32 %v2990_v37, %v7150_v44  ;;  %v5783_v41 = vmul.f32 %v2990_v37, %v7152_v48  ;;  %v7153_v10 = vld [vmem:[#allocation50_spill] sm:$0xff]  ;;  %v5789_v63 = vmul.f32 %v2990_v37, %v7154_v46  ;;  %v7155_v55 = vld [vmem:[#allocation19_spill] sm:$0xff]  ;;  %v7157_v44 = vld [vmem:[#allocation36_spill] sm:$0xff] }
 0x168   : > { %v5786_v5 = vmul.f32 %v2990_v37, %v7153_v10  ;;  %v5792_v17 = vmul.f32 %v2990_v37, %v7155_v55  ;;  %v7156_v23 = vld [vmem:[#allocation51_spill] sm:$0xff]  ;;  %v5798_v19 = vmul.f32 %v2990_v37, %v7157_v44  ;;  %v7158_v21 = vld [vmem:[#allocation20_spill] sm:$0xff]  ;;  %v7160_v10 = vld [vmem:[#allocation37_spill] sm:$0xff] }
 0x169   : > { %v5795_v12 = vmul.f32 %v2990_v37, %v7156_v23  ;;  %v5801_v61 = vmul.f32 %v2990_v37, %v7158_v21  ;;  %v7159_v48 = vld [vmem:[#allocation52_spill] sm:$0xff]  ;;  %v5807_v42 = vmul.f32 %v2990_v37, %v7160_v10  ;;  %v7161_v46 = vld [vmem:[#allocation21_spill] sm:$0xff]  ;;  %v7163_v23 = vld [vmem:[#allocation38_spill] sm:$0xff] }
 0x16a   : > { %v5804_v30 = vmul.f32 %v2990_v37, %v7159_v48  ;;  %v5810_v40 = vmul.f32 %v2990_v37, %v7161_v46  ;;  %v7162_v55 = vld [vmem:[#allocation53_spill] sm:$0xff]  ;;  %v5816_v49 = vmul.f32 %v2990_v37, %v7163_v23  ;;  %v7164_v44 = vld [vmem:[#allocation23_spill] sm:$0xff]  ;;  %v7165_v21 = vld [vmem:[#allocation54_spill] sm:$0xff]  ;;  %v5831_v46 = vmul.f32 %v2990_v37, %v7065_v29 }
 0x16b   : > { %v5813_v13 = vmul.f32 %v2990_v37, %v7162_v55  ;;  %v5819_v35 = vmul.f32 %v2990_v37, %v7164_v44  ;;  %v5822_v31 = vmul.f32 %v2990_v37, %v7165_v21  ;;  %v7166_v48 = vld [vmem:[#allocation4_spill] sm:$0xff]  ;;  %v7167_v10 = vld [vmem:[#allocation2_spill] sm:$0xff]  ;;  %v7168_v55 = vld [vmem:[#allocation87_spill] sm:$0xff]  ;;  %v2358_v21 = vrot.slane %v2259_v15, 2 }
 0x16c   : > { %v5825_v47 = vmul.f32 %v2990_v37, %v7166_v48  ;;  %v5828_v36 = vmul.f32 %v2990_v37, %v7167_v10  ;;  %v2350_v26 = vrot.slane %v7168_v55, 2  ;;  %v7169_v53 = vld [vmem:[#allocation88_spill] sm:$0xff]  ;;  %v7170_v33 = vld [vmem:[#allocation89_spill] sm:$0xff]  ;;  %v7171_v44 = vld [vmem:[#allocation90_spill] sm:$0xff]  ;;  %v2363_v29 = vrot.slane %v2262_v14, 2 }
 0x16d   : > { %v2351_v23 = vrot.slane %v7169_v53, 2  ;;  %v2353_v11 = vrot.slane %v7170_v33, 2  ;;  %v2355_v20 = vrot.slane %v7171_v44, 2  ;;  %v2365_v37 = vrot.slane %v2263_v38, 2 }
 0x16e   : > { %v5847_v53 = vsel %vm1237_vm2, %v2356_v43, %v2358_v21  ;;  %v5850_v33 = vsel %vm1237_vm2, %v2360_v16, %v2361_v56  ;;  %v5854_v15 = vsel %vm1237_vm2, %v2361_v56, %v2363_v29  ;;  %v2376_v16 = vrot.slane %v5738_v9, 2 }
 0x16f   : > { %v5838_v48 = vsel %vm1237_vm2, %v2350_v26, %v2351_v23  ;;  %v5841_v10 = vsel %vm1237_vm2, %v2351_v23, %v2353_v11  ;;  %v5844_v55 = vsel %vm1237_vm2, %v2355_v20, %v2356_v43  ;;  %v2368_v26 = vrot.slane %v5723_v51, 2 }
 0x170   : > { %v2370_v11 = vrot.slane %v5726_v28, 2  ;;  %v5860_v20 = vsel %vm1237_vm2, %v2365_v37, %v2366_v52  ;;  %v2373_v43 = vrot.slane %v5732_v60, 2  ;;  %v2378_v38 = vrot.slane %v5741_v62, 2 }
 0x171   : > { %v5866_v14 = vsel %vm1237_vm2, %v2366_v52, %v2368_v26  ;;  %v2377_v28 = vsel %vm1237_vm2, %v2375_v25, %v2376_v16  ;;  %v2383_v60 = vrot.slane %v5750_v59, 2  ;;  %v2385_v9 = vrot.slane %v5753_v3, 2 }
 0x172   : > { %v5869_v56 = vsel %vm1237_vm2, %v2370_v11, %v2371_v34  ;;  %v2374_v51 = vsel %vm1237_vm2, %v2371_v34, %v2373_v43  ;;  %v2379_v50 = vsel %vm1237_vm2, %v2376_v16, %v2378_v38  ;;  %v2386_v23 = vrot.slane %v5756_v27, 2 }
 0x173   : > { %v2388_v44 = vrot.slane %v5759_v1, 2  ;;  %v2382_v62 = vsel %vm1237_vm2, %v2380_v32, %v2381_v7  ;;  %v2384_v18 = vsel %vm1237_vm2, %v2381_v7, %v2383_v60  ;;  %v2390_v21 = vrot.slane %v5762_v0, 2 }
 0x174   : > { %v2391_v29 = vrot.slane %v5765_v24, 2  ;;  %v2387_v8 = vsel %vm1237_vm2, %v2385_v9, %v2386_v23  ;;  %v2393_v37 = vrot.slane %v5768_v4, 2  ;;  %v2395_v3 = vrot.slane %v5771_v6, 2 }
 0x175   : > { %v2389_v59 = vsel %vm1237_vm2, %v2386_v23, %v2388_v44  ;;  %v2396_v1 = vrot.slane %v5774_v45, 2  ;;  %v2398_v52 = vrot.slane %v5777_v54, 2  ;;  %v2400_v26 = vrot.slane %v5780_v2, 2 }
 0x176   : > { %v2392_v27 = vsel %vm1237_vm2, %v2390_v21, %v2391_v29  ;;  %v2394_v0 = vsel %vm1237_vm2, %v2391_v29, %v2393_v37  ;;  %v2401_v24 = vrot.slane %v5783_v41, 2  ;;  %v2403_v11 = vrot.slane %v5786_v5, 2  ;;  %v7172_v21 = vld [vmem:[#allocation39_spill] sm:$0xff]  ;;  %v7175_v37 = vld [vmem:[#allocation68_spill] sm:$0xff] }
 0x177   : > { %v2405_v34 = vrot.slane %v5789_v63, 2  ;;  %v2397_v4 = vsel %vm1237_vm2, %v2395_v3, %v2396_v1  ;;  %v2399_v6 = vsel %vm1237_vm2, %v2396_v1, %v2398_v52  ;;  %v2406_v43 = vrot.slane %v5792_v17, 2  ;;  %v7178_v3 = vld [vmem:[#allocation86_spill] sm:$0xff] }
 0x178   : > { %v2408_v45 = vrot.slane %v5795_v12, 2  ;;  %v2402_v54 = vsel %vm1237_vm2, %v2400_v26, %v2401_v24  ;;  %v2404_v2 = vsel %vm1237_vm2, %v2401_v24, %v2403_v11  ;;  %v2410_v25 = vrot.slane %v5798_v19, 2  ;;  %v7181_v24 = vld [vmem:[#allocation25_spill] sm:$0xff] }
 0x179   : > { %v2411_v41 = vrot.slane %v5801_v61, 2  ;;  %v2407_v5 = vsel %vm1237_vm2, %v2405_v34, %v2406_v43  ;;  %v2413_v16 = vrot.slane %v5804_v30, 2  ;;  %v2415_v38 = vrot.slane %v5807_v42, 2  ;;  %v7182_v11 = vld [vmem:[#allocation5_spill] sm:$0xff] }
 0x17a   : > { %v2409_v63 = vsel %vm1237_vm2, %v2406_v43, %v2408_v45  ;;  %v2416_v12 = vrot.slane %v5810_v40, 2  ;;  %v2418_v32 = vrot.slane %v5813_v13, 2  ;;  %v2420_v7 = vrot.slane %v5816_v49, 2 }
 0x17b   : > { %v2412_v17 = vsel %vm1237_vm2, %v2410_v25, %v2411_v41  ;;  %v2414_v19 = vsel %vm1237_vm2, %v2411_v41, %v2413_v16  ;;  %v2421_v61 = vrot.slane %v5819_v35, 2  ;;  %v2423_v60 = vrot.slane %v5822_v31, 2 }
 0x17c   : > { %v2425_v9 = vrot.slane %v5825_v47, 2  ;;  %v2417_v30 = vsel %vm1237_vm2, %v2415_v38, %v2416_v12  ;;  %v2419_v42 = vsel %vm1237_vm2, %v2416_v12, %v2418_v32  ;;  %v2426_v23 = vrot.slane %v5828_v36, 2 }
 0x17d   : > { %v2428_v40 = vrot.slane %v5831_v46, 2  ;;  %v2422_v13 = vsel %vm1237_vm2, %v2420_v7, %v2421_v61  ;;  %v2424_v49 = vsel %vm1237_vm2, %v2421_v61, %v2423_v60  ;;  %v5925_v44 = vadd.f32 %v5838_v48, %v5605_v57  ;;  %v7173_v48 = vld [vmem:[#allocation66_spill] sm:$0xff]  ;;  %v7196_v60 = vld [vmem:[#allocation83_spill] sm:$0xff] }
 0x17e   : > { %v5929_v31 = vadd.f32 %v5841_v10, %v5609_v22  ;;  %v2427_v47 = vsel %vm1237_vm2, %v2425_v9, %v2426_v23  ;;  %v5935_v36 = vadd.f32 %v5844_v55, %v5615_v58  ;;  %v5939_v46 = vadd.f32 %v5847_v53, %v5619_v39  ;;  %v7174_v10 = vld [vmem:[#allocation67_spill] sm:$0xff]  ;;  %v7176_v55 = vld [vmem:[#allocation69_spill] sm:$0xff]  ;;  %v7177_v53 = vld [vmem:[#allocation24_spill] sm:$0xff] }
 0x17f   : > { %v2429_v35 = vsel %vm1237_vm2, %v2426_v23, %v2428_v40  ;;  %v5943_v57 = vadd.f32 %v5850_v33, %v7172_v21  ;;  %v5947_v22 = vadd.f32 %v5854_v15, %v7173_v48  ;;  %v5951_v29 = vadd.f32 %v5860_v20, %v7174_v10  ;;  %v7179_v15 = vld [vmem:[#allocation8_spill] sm:$0xff]  ;;  %v7198_v40 = vld [vmem:[#allocation85_spill] sm:$0xff]  ;;  %v7199_v21 = vld [vmem:[#allocation6_spill] sm:$0xff]  ;;  %2495 = vst.msk [vmem:[%s6011_s25] sm:$0xff] %vm2494_vm3, %v5925_v44 }
 0x180   : > { %v5955_v58 = vadd.f32 %v5866_v14, %v7175_v37  ;;  %v5959_v39 = vadd.f32 %v5869_v56, %v7176_v55  ;;  %v5962_v33 = vadd.f32 %v2374_v51, %v7177_v53  ;;  %v5965_v1 = vadd.f32 %v2377_v28, %v7178_v3  ;;  %v7180_v20 = vld [vmem:[#allocation40_spill] sm:$0xff]  ;;  %v7183_v56 = vld [vmem:[#allocation70_spill] sm:$0xff]  ;;  %v7184_v51 = vld [vmem:[#allocation71_spill] sm:$0xff]  ;;  %2496 = vst.msk [vmem:[%s6011_s25 + $0x8] sm:$0xff] %vm2494_vm3, %v5929_v31 }
 0x181   : > { %v5968_v52 = vadd.f32 %v2379_v50, %v7179_v15  ;;  %v5971_v26 = vadd.f32 %v2382_v62, %v7180_v20  ;;  %v5974_v14 = vadd.f32 %v2384_v18, %v7181_v24  ;;  %v5977_v34 = vadd.f32 %v2387_v8, %v7182_v11  ;;  %v7185_v28 = vld [vmem:[#allocation72_spill] sm:$0xff]  ;;  %v7186_v50 = vld [vmem:[#allocation73_spill] sm:$0xff]  ;;  %v7187_v62 = vld [vmem:[#allocation74_spill] sm:$0xff]  ;;  %2497 = vst.msk [vmem:[%s6011_s25 + $0x10] sm:$0xff] %vm2494_vm3, %v5935_v36 }
 0x182   : > { %v5980_v43 = vadd.f32 %v2389_v59, %v7183_v56  ;;  %v5983_v45 = vadd.f32 %v2392_v27, %v7184_v51  ;;  %v5986_v25 = vadd.f32 %v2394_v0, %v7185_v28  ;;  %v5989_v41 = vadd.f32 %v2397_v4, %v7186_v50  ;;  %v7188_v18 = vld [vmem:[#allocation75_spill] sm:$0xff]  ;;  %v7189_v8 = vld [vmem:[#allocation76_spill] sm:$0xff]  ;;  %v7190_v59 = vld [vmem:[#allocation77_spill] sm:$0xff]  ;;  %2498 = vst.msk [vmem:[%s6011_s25 + $0x18] sm:$0xff] %vm2494_vm3, %v5939_v46 }
 0x183   : > { %v5992_v16 = vadd.f32 %v2399_v6, %v7187_v62  ;;  %v5995_v38 = vadd.f32 %v2402_v54, %v7188_v18  ;;  %v5998_v12 = vadd.f32 %v2404_v2, %v7189_v8  ;;  %v6001_v32 = vadd.f32 %v2407_v5, %v7190_v59  ;;  %v7191_v27 = vld [vmem:[#allocation78_spill] sm:$0xff]  ;;  %v7192_v0 = vld [vmem:[#allocation79_spill] sm:$0xff]  ;;  %v7193_v6 = vld [vmem:[#allocation80_spill] sm:$0xff]  ;;  %2499 = vst.msk [vmem:[%s6011_s25 + $0x20] sm:$0xff] %vm2494_vm3, %v5943_v57 }
 0x184   : > { %v6004_v7 = vadd.f32 %v2409_v63, %v7191_v27  ;;  %v6014_v4 = vadd.f32 %v2412_v17, %v7192_v0  ;;  %v6017_v54 = vadd.f32 %v2414_v19, %v7193_v6  ;;  %v7194_v2 = vld [vmem:[#allocation81_spill] sm:$0xff]  ;;  %v7195_v63 = vld [vmem:[#allocation82_spill] sm:$0xff]  ;;  %v6026_v9 = vadd.f32 %v2422_v13, %v7196_v60  ;;  %v7197_v23 = vld [vmem:[#allocation84_spill] sm:$0xff]  ;;  %2500 = vst.msk [vmem:[%s6011_s25 + $0x28] sm:$0xff] %vm2494_vm3, %v5947_v22 }
 0x185   : > { %v6020_v5 = vadd.f32 %v2417_v30, %v7194_v2  ;;  %v6023_v61 = vadd.f32 %v2419_v42, %v7195_v63  ;;  %v6029_v17 = vadd.f32 %v2424_v49, %v7197_v23  ;;  %v6032_v19 = vadd.f32 %v2427_v47, %v7198_v40  ;;  %2501 = vst.msk [vmem:[%s6011_s25 + $0x30] sm:$0xff] %vm2494_vm3, %v5951_v29 }
 0x186   : > { %v6035_v30 = vadd.f32 %v2429_v35, %v7199_v21  ;;  %v2527_v42 = vsel %vm2494_vm3, %v5925_v44, 0.0  ;;  %v2528_v13 = vsel %vm2494_vm3, %v5929_v31, 0.0  ;;  %v2530_v49 = vsel %vm2494_vm3, %v5935_v36, 0.0  ;;  %2502 = vst.msk [vmem:[%s6011_s25 + $0x38] sm:$0xff] %vm2494_vm3, %v5955_v58  ;;  %2503 = vst.msk [vmem:[%s6011_s25 + $0x40] sm:$0xff] %vm2494_vm3, %v5959_v39 }
 0x187   : > { %2504 = vst.msk [vmem:[%s6011_s25 + $0x48] sm:$0xff] %vm2494_vm3, %v5962_v33  ;;  %2505 = vst.msk [vmem:[%s6011_s25 + $0x50] sm:$0xff] %vm2494_vm3, %v5965_v1  ;;  %v2529_v47 = vadd.f32 %v2528_v13, %v2527_v42  ;;  %v2532_v35 = vsel %vm2494_vm3, %v5939_v46, 0.0  ;;  %v2534_v10 = vsel %vm2494_vm3, %v5943_v57, 0.0  ;;  %v2536_v55 = vsel %vm2494_vm3, %v5947_v22, 0.0 }
 0x188   : > { %2506 = vst.msk [vmem:[%s6011_s25 + $0x58] sm:$0xff] %vm2494_vm3, %v5968_v52  ;;  %2507 = vst.msk [vmem:[%s6011_s25 + $0x60] sm:$0xff] %vm2494_vm3, %v5971_v26  ;;  %v2538_v3 = vsel %vm2494_vm3, %v5951_v29, 0.0  ;;  %v2540_v20 = vsel %vm2494_vm3, %v5955_v58, 0.0  ;;  %v2542_v11 = vsel %vm2494_vm3, %v5959_v39, 0.0  ;;  %v2544_v51 = vsel %vm2494_vm3, %v5962_v33, 0.0 }
 0x189   : > { %2508 = vst.msk [vmem:[%s6011_s25 + $0x68] sm:$0xff] %vm2494_vm3, %v5974_v14  ;;  %2509 = vst.msk [vmem:[%s6011_s25 + $0x70] sm:$0xff] %vm2494_vm3, %v5977_v34  ;;  %v2531_v48 = vadd.f32 %v2530_v49, %v2529_v47  ;;  %v2546_v50 = vsel %vm2494_vm3, %v5965_v1, 0.0  ;;  %v2548_v18 = vsel %vm2494_vm3, %v5968_v52, 0.0  ;;  %v2550_v59 = vsel %vm2494_vm3, %v5971_v26, 0.0 }
 0x18a   : > { %2510 = vst.msk [vmem:[%s6011_s25 + $0x78] sm:$0xff] %vm2494_vm3, %v5980_v43  ;;  %2511 = vst.msk [vmem:[%s6011_s25 + $0x80] sm:$0xff] %vm2494_vm3, %v5983_v45  ;;  %v2552_v0 = vsel %vm2494_vm3, %v5974_v14, 0.0  ;;  %v2554_v2 = vsel %vm2494_vm3, %v5977_v34, 0.0  ;;  %v2556_v60 = vsel %vm2494_vm3, %v5980_v43, 0.0  ;;  %v2558_v40 = vsel %vm2494_vm3, %v5983_v45, 0.0 }
 0x18b   : > { %2512 = vst.msk [vmem:[%s6011_s25 + $0x88] sm:$0xff] %vm2494_vm3, %v5986_v25  ;;  %2513 = vst.msk [vmem:[%s6011_s25 + $0x90] sm:$0xff] %vm2494_vm3, %v5989_v41  ;;  %v2533_v37 = vadd.f32 %v2532_v35, %v2531_v48  ;;  %v2560_v42 = vsel %vm2494_vm3, %v5986_v25, 0.0  ;;  %v2562_v49 = vsel %vm2494_vm3, %v5989_v41, 0.0  ;;  %v2564_v35 = vsel %vm2494_vm3, %v5992_v16, 0.0 }
 0x18c   : > { %2514 = vst.msk [vmem:[%s6011_s25 + $0x98] sm:$0xff] %vm2494_vm3, %v5992_v16  ;;  %2515 = vst.msk [vmem:[%s6011_s25 + $0xa0] sm:$0xff] %vm2494_vm3, %v5995_v38 }
 0x18d   : > { %2516 = vst.msk [vmem:[%s6011_s25 + $0xa8] sm:$0xff] %vm2494_vm3, %v5998_v12  ;;  %2517 = vst.msk [vmem:[%s6011_s25 + $0xb0] sm:$0xff] %vm2494_vm3, %v6001_v32  ;;  %v2535_v53 = vadd.f32 %v2534_v10, %v2533_v37  ;;  %v2566_v10 = vsel %vm2494_vm3, %v5995_v38, 0.0 }
 0x18e   : > { %2518 = vst.msk [vmem:[%s6011_s25 + $0xb8] sm:$0xff] %vm2494_vm3, %v6004_v7  ;;  %2519 = vst.msk [vmem:[%s6011_s25 + $0xc0] sm:$0xff] %vm2494_vm3, %v6014_v4 }
 0x18f   : > { %2520 = vst.msk [vmem:[%s6011_s25 + $0xc8] sm:$0xff] %vm2494_vm3, %v6017_v54  ;;  %2521 = vst.msk [vmem:[%s6011_s25 + $0xd0] sm:$0xff] %vm2494_vm3, %v6020_v5  ;;  %v2537_v15 = vadd.f32 %v2536_v55, %v2535_v53  ;;  %v2568_v55 = vsel %vm2494_vm3, %v5998_v12, 0.0 }
 0x190   : > { %2522 = vst.msk [vmem:[%s6011_s25 + $0xd8] sm:$0xff] %vm2494_vm3, %v6023_v61  ;;  %2523 = vst.msk [vmem:[%s6011_s25 + $0xe0] sm:$0xff] %vm2494_vm3, %v6026_v9 }
 0x191   : > { %2524 = vst.msk [vmem:[%s6011_s25 + $0xe8] sm:$0xff] %vm2494_vm3, %v6029_v17  ;;  %2525 = vst.msk [vmem:[%s6011_s25 + $0xf0] sm:$0xff] %vm2494_vm3, %v6032_v19  ;;  %v2539_v24 = vadd.f32 %v2538_v3, %v2537_v15  ;;  %v2570_v3 = vsel %vm2494_vm3, %v6001_v32, 0.0 }
 0x192   : > { %2526 = vst.msk [vmem:[%s6011_s25 + $0xf8] sm:$0xff] %vm2494_vm3, %v6035_v30 }
 0x193   : > { %v2541_v56 = vadd.f32 %v2540_v20, %v2539_v24  ;;  %v2572_v20 = vsel %vm2494_vm3, %v6004_v7, 0.0 }
 0x195   : > { %v2543_v28 = vadd.f32 %v2542_v11, %v2541_v56  ;;  %v2574_v11 = vsel %vm2494_vm3, %v6014_v4, 0.0 }
 0x197   : > { %v2545_v62 = vadd.f32 %v2544_v51, %v2543_v28  ;;  %v2576_v51 = vsel %vm2494_vm3, %v6017_v54, 0.0 }
 0x199   : > { %v2547_v8 = vadd.f32 %v2546_v50, %v2545_v62  ;;  %v2578_v50 = vsel %vm2494_vm3, %v6020_v5, 0.0 }
 0x19b   : > { %v2549_v27 = vadd.f32 %v2548_v18, %v2547_v8  ;;  %v2580_v18 = vsel %vm2494_vm3, %v6023_v61, 0.0 }
 0x19d   : > { %v2551_v6 = vadd.f32 %v2550_v59, %v2549_v27  ;;  %v2582_v59 = vsel %vm2494_vm3, %v6026_v9, 0.0 }
 0x19f   : > { %v2553_v63 = vadd.f32 %v2552_v0, %v2551_v6  ;;  %v2584_v0 = vsel %vm2494_vm3, %v6029_v17, 0.0 }
 0x1a1   : > { %v2555_v23 = vadd.f32 %v2554_v2, %v2553_v63  ;;  %v2586_v2 = vsel %vm2494_vm3, %v6032_v19, 0.0 }
 0x1a3   : > { %v2557_v21 = vadd.f32 %v2556_v60, %v2555_v23  ;;  %v2588_v60 = vsel %vm2494_vm3, %v6035_v30, 0.0 }
 0x1a5   : > { %v2559_v13 = vadd.f32 %v2558_v40, %v2557_v21 }
 0x1a7   : > { %v2561_v47 = vadd.f32 %v2560_v42, %v2559_v13 }
 0x1a9   : > { %v2563_v48 = vadd.f32 %v2562_v49, %v2561_v47 }
 0x1ab   : > { %v2565_v37 = vadd.f32 %v2564_v35, %v2563_v48 }
 0x1ad   : > { %v2567_v53 = vadd.f32 %v2566_v10, %v2565_v37 }
 0x1af   : > { %v2569_v15 = vadd.f32 %v2568_v55, %v2567_v53 }
 0x1b1   : > { %v2571_v24 = vadd.f32 %v2570_v3, %v2569_v15 }
 0x1b3   : > { %v2573_v56 = vadd.f32 %v2572_v20, %v2571_v24 }
 0x1b5   : > { %v2575_v28 = vadd.f32 %v2574_v11, %v2573_v56 }
 0x1b7   : > { %v2577_v62 = vadd.f32 %v2576_v51, %v2575_v28 }
 0x1b9   : > { %v2579_v8 = vadd.f32 %v2578_v50, %v2577_v62 }
 0x1bb   : > { %v2581_v27 = vadd.f32 %v2580_v18, %v2579_v8 }
 0x1bd   : > { %v2583_v6 = vadd.f32 %v2582_v59, %v2581_v27 }
 0x1bf   : > { %v2585_v63 = vadd.f32 %v2584_v0, %v2583_v6 }
 0x1c1   : > { %v2587_v23 = vadd.f32 %v2586_v2, %v2585_v63 }
 0x1c3   : > { %v2589_v40 = vadd.f32 %v2588_v60, %v2587_v23 }
 0x1c5   : > { %v2590_v21 = vrot.slane %v2589_v40, 4 }
 0x1c7   : > { %v2591_v42 = vadd.f32 %v2590_v21, %v2589_v40 }
 0x1c9   : > { %v2592_v13 = vrot.slane %v2591_v42, 2 }
 0x1cb   : > { %v2593_v49 = vadd.f32 %v2592_v13, %v2591_v42 }
 0x1cd   : > { %v2594_v47 = vrot.slane %v2593_v49, 1 }
 0x1cf   : > { %v2595_v35 = vadd.f32 %v2594_v47, %v2593_v49 }
 0x1d1   : > { %2731 = vst.msk [vmem:[%s500_s30] sm:$0x1] %vm2730_vm4, %v2595_v35  ;;  %v6202_v48 = vmul.f32 0.00390625, %v2595_v35 }
 0x1d3   : > { %v2597_v10 = vsub.f32 %v5925_v44, %v6202_v48  ;;  %v2598_v37 = vsub.f32 %v5929_v31, %v6202_v48  ;;  %v2599_v55 = vsub.f32 %v5935_v36, %v6202_v48  ;;  %v2600_v3 = vsub.f32 %v5939_v46, %v6202_v48 }
 0x1d4   : > { %v2601_v15 = vsub.f32 %v5943_v57, %v6202_v48  ;;  %v2602_v44 = vsub.f32 %v5947_v22, %v6202_v48  ;;  %v2603_v31 = vsub.f32 %v5951_v29, %v6202_v48  ;;  %v2604_v57 = vsub.f32 %v5955_v58, %v6202_v48 }
 0x1d5   : > { %v2629_v53 = vmul.f32 %v2597_v10, %v2597_v10  ;;  %v2630_v20 = vmul.f32 %v2598_v37, %v2598_v37  ;;  %v2631_v24 = vmul.f32 %v2599_v55, %v2599_v55  ;;  %v2632_v56 = vmul.f32 %v2600_v3, %v2600_v3 }
 0x1d6   : > { %v2633_v51 = vmul.f32 %v2601_v15, %v2601_v15  ;;  %v2634_v50 = vmul.f32 %v2602_v44, %v2602_v44  ;;  %v2605_v22 = vsub.f32 %v5959_v39, %v6202_v48  ;;  %v2635_v8 = vmul.f32 %v2603_v31, %v2603_v31 }
 0x1d7   : > { %v2661_v11 = vsel %vm2494_vm3, %v2629_v53, 0.0  ;;  %v2662_v36 = vsel %vm2494_vm3, %v2630_v20, 0.0  ;;  %v2664_v28 = vsel %vm2494_vm3, %v2631_v24, 0.0  ;;  %v2666_v62 = vsel %vm2494_vm3, %v2632_v56, 0.0 }
 0x1d8   : > { %v2663_v46 = vadd.f32 %v2662_v36, %v2661_v11  ;;  %v2668_v59 = vsel %vm2494_vm3, %v2633_v51, 0.0  ;;  %v2606_v27 = vsub.f32 %v5962_v33, %v6202_v48  ;;  %v2636_v0 = vmul.f32 %v2604_v57, %v2604_v57 }
 0x1d9   : > { %v2670_v6 = vsel %vm2494_vm3, %v2634_v50, 0.0  ;;  %v2607_v58 = vsub.f32 %v5965_v1, %v6202_v48  ;;  %v2637_v63 = vmul.f32 %v2605_v22, %v2605_v22  ;;  %v2672_v60 = vsel %vm2494_vm3, %v2635_v8, 0.0 }
 0x1da   : > { %v2665_v18 = vadd.f32 %v2664_v28, %v2663_v46  ;;  %v2608_v39 = vsub.f32 %v5968_v52, %v6202_v48  ;;  %v2638_v40 = vmul.f32 %v2606_v27, %v2606_v27  ;;  %v2674_v21 = vsel %vm2494_vm3, %v2636_v0, 0.0 }
 0x1db   : > { %v2609_v33 = vsub.f32 %v5971_v26, %v6202_v48  ;;  %v2639_v13 = vmul.f32 %v2607_v58, %v2607_v58  ;;  %v2676_v49 = vsel %vm2494_vm3, %v2637_v63, 0.0  ;;  %v2610_v1 = vsub.f32 %v5974_v14, %v6202_v48 }
 0x1dc   : > { %v2667_v29 = vadd.f32 %v2666_v62, %v2665_v18  ;;  %v2640_v35 = vmul.f32 %v2608_v39, %v2608_v39  ;;  %v2678_v10 = vsel %vm2494_vm3, %v2638_v40, 0.0  ;;  %v2611_v52 = vsub.f32 %v5977_v34, %v6202_v48 }
 0x1dd   : > { %v2641_v55 = vmul.f32 %v2609_v33, %v2609_v33  ;;  %v2680_v53 = vsel %vm2494_vm3, %v2639_v13, 0.0  ;;  %v2612_v26 = vsub.f32 %v5980_v43, %v6202_v48  ;;  %v2642_v15 = vmul.f32 %v2610_v1, %v2610_v1 }
 0x1de   : > { %v2669_v2 = vadd.f32 %v2668_v59, %v2667_v29  ;;  %v2682_v20 = vsel %vm2494_vm3, %v2640_v35, 0.0  ;;  %v2613_v14 = vsub.f32 %v5983_v45, %v6202_v48  ;;  %v2643_v11 = vmul.f32 %v2611_v52, %v2611_v52 }
 0x1df   : > { %v2684_v44 = vsel %vm2494_vm3, %v2641_v55, 0.0  ;;  %v2614_v34 = vsub.f32 %v5986_v25, %v6202_v48  ;;  %v2644_v31 = vmul.f32 %v2612_v26, %v2612_v26  ;;  %v2686_v51 = vsel %vm2494_vm3, %v2642_v15, 0.0 }
 0x1e0   : > { %v2671_v23 = vadd.f32 %v2670_v6, %v2669_v2  ;;  %v2615_v43 = vsub.f32 %v5989_v41, %v6202_v48  ;;  %v2645_v28 = vmul.f32 %v2613_v14, %v2613_v14  ;;  %v2688_v46 = vsel %vm2494_vm3, %v2643_v11, 0.0 }
 0x1e1   : > { %v2616_v45 = vsub.f32 %v5992_v16, %v6202_v48  ;;  %v2646_v50 = vmul.f32 %v2614_v34, %v2614_v34  ;;  %v2690_v62 = vsel %vm2494_vm3, %v2644_v31, 0.0  ;;  %v2617_v25 = vsub.f32 %v5995_v38, %v6202_v48 }
 0x1e2   : > { %v2673_v42 = vadd.f32 %v2672_v60, %v2671_v23  ;;  %v2647_v22 = vmul.f32 %v2615_v43, %v2615_v43  ;;  %v2692_v8 = vsel %vm2494_vm3, %v2645_v28, 0.0  ;;  %v2618_v41 = vsub.f32 %v5998_v12, %v6202_v48 }
 0x1e3   : > { %v2648_v29 = vmul.f32 %v2616_v45, %v2616_v45  ;;  %v2694_v27 = vsel %vm2494_vm3, %v2646_v50, 0.0  ;;  %v2619_v16 = vsub.f32 %v6001_v32, %v6202_v48  ;;  %v2649_v6 = vmul.f32 %v2617_v25, %v2617_v25 }
 0x1e4   : > { %v2675_v47 = vadd.f32 %v2674_v21, %v2673_v42  ;;  %v2696_v2 = vsel %vm2494_vm3, %v2647_v22, 0.0  ;;  %v2620_v38 = vsub.f32 %v6004_v7, %v6202_v48  ;;  %v2650_v63 = vmul.f32 %v2618_v41, %v2618_v41 }
 0x1e5   : > { %v2698_v60 = vsel %vm2494_vm3, %v2648_v29, 0.0  ;;  %v2621_v12 = vsub.f32 %v6014_v4, %v6202_v48  ;;  %v2651_v39 = vmul.f32 %v2619_v16, %v2619_v16  ;;  %v2700_v40 = vsel %vm2494_vm3, %v2649_v6, 0.0 }
 0x1e6   : > { %v2677_v37 = vadd.f32 %v2676_v49, %v2675_v47  ;;  %v2622_v32 = vsub.f32 %v6017_v54, %v6202_v48  ;;  %v2652_v42 = vmul.f32 %v2620_v38, %v2620_v38  ;;  %v2702_v33 = vsel %vm2494_vm3, %v2650_v63, 0.0 }
 0x1e7   : > { %v2623_v7 = vsub.f32 %v6020_v5, %v6202_v48  ;;  %v2653_v49 = vmul.f32 %v2621_v12, %v2621_v12  ;;  %v2704_v47 = vsel %vm2494_vm3, %v2651_v39, 0.0  ;;  %v2624_v4 = vsub.f32 %v6023_v61, %v6202_v48 }
 0x1e8   : > { %v2679_v3 = vadd.f32 %v2678_v10, %v2677_v37  ;;  %v2654_v35 = vmul.f32 %v2622_v32, %v2622_v32  ;;  %v2706_v10 = vsel %vm2494_vm3, %v2652_v42, 0.0  ;;  %v2625_v54 = vsub.f32 %v6026_v9, %v6202_v48 }
 0x1e9   : > { %v2655_v52 = vmul.f32 %v2623_v7, %v2623_v7  ;;  %v2708_v55 = vsel %vm2494_vm3, %v2653_v49, 0.0  ;;  %v2626_v5 = vsub.f32 %v6029_v17, %v6202_v48  ;;  %v2627_v61 = vsub.f32 %v6032_v19, %v6202_v48 }
 0x1ea   : > { %v2681_v24 = vadd.f32 %v2680_v53, %v2679_v3  ;;  %v2656_v3 = vmul.f32 %v2624_v4, %v2624_v4  ;;  %v2710_v26 = vsel %vm2494_vm3, %v2654_v35, 0.0  ;;  %v2628_v9 = vsub.f32 %v6035_v30, %v6202_v48 }
 0x1eb   : > { %v2658_v11 = vmul.f32 %v2626_v5, %v2626_v5  ;;  %v2659_v34 = vmul.f32 %v2627_v61, %v2627_v61 }
 0x1ec   : > { %v2683_v56 = vadd.f32 %v2682_v20, %v2681_v24  ;;  %v2657_v20 = vmul.f32 %v2625_v54, %v2625_v54  ;;  %v2712_v24 = vsel %vm2494_vm3, %v2655_v52, 0.0 }
 0x1ed   : > { %v2720_v43 = vsel %vm2494_vm3, %v2659_v34, 0.0 }
 0x1ee   : > { %v2685_v36 = vadd.f32 %v2684_v44, %v2683_v56  ;;  %v2714_v44 = vsel %vm2494_vm3, %v2656_v3, 0.0  ;;  %v2716_v17 = vsel %vm2494_vm3, %v2657_v20, 0.0 }
 0x1f0   : > { %v2687_v57 = vadd.f32 %v2686_v51, %v2685_v36  ;;  %v2660_v51 = vmul.f32 %v2628_v9, %v2628_v9  ;;  %v2718_v36 = vsel %vm2494_vm3, %v2658_v11, 0.0 }
 0x1f2   : > { %v2689_v18 = vadd.f32 %v2688_v46, %v2687_v57  ;;  %v2722_v46 = vsel %vm2494_vm3, %v2660_v51, 0.0 }
 0x1f4   : > { %v2691_v59 = vadd.f32 %v2690_v62, %v2689_v18 }
 0x1f6   : > { %v2693_v0 = vadd.f32 %v2692_v8, %v2691_v59 }
 0x1f8   : > { %v2695_v58 = vadd.f32 %v2694_v27, %v2693_v0 }
 0x1fa   : > { %v2697_v23 = vadd.f32 %v2696_v2, %v2695_v58 }
 0x1fc   : > { %v2699_v21 = vadd.f32 %v2698_v60, %v2697_v23 }
 0x1fe   : > { %v2701_v13 = vadd.f32 %v2700_v40, %v2699_v21 }
 0x200   : > { %v2703_v1 = vadd.f32 %v2702_v33, %v2701_v13 }
 0x202   : > { %v2705_v37 = vadd.f32 %v2704_v47, %v2703_v1 }
 0x204   : > { %v2707_v53 = vadd.f32 %v2706_v10, %v2705_v37 }
 0x206   : > { %v2709_v15 = vadd.f32 %v2708_v55, %v2707_v53 }
 0x208   : > { %v2711_v14 = vadd.f32 %v2710_v26, %v2709_v15 }
 0x20a   : > { %v2713_v56 = vadd.f32 %v2712_v24, %v2711_v14 }
 0x20c   : > { %v2715_v31 = vadd.f32 %v2714_v44, %v2713_v56 }
 0x20e   : > { %v2717_v19 = vadd.f32 %v2716_v17, %v2715_v31 }
 0x210   : > { %v2719_v28 = vadd.f32 %v2718_v36, %v2717_v19 }
 0x212   : > { %v2721_v57 = vadd.f32 %v2720_v43, %v2719_v28 }
 0x214   : > { %v2723_v30 = vadd.f32 %v2722_v46, %v2721_v57 }
 0x216   : > { %v2724_v48 = vrot.slane %v2723_v30, 4 }
 0x218   : > { %v2725_v45 = vadd.f32 %v2724_v48, %v2723_v30 }
 0x21a   : > { %v2726_v50 = vrot.slane %v2725_v45, 2 }
 0x21c   : > { %v2727_v62 = vadd.f32 %v2726_v50, %v2725_v45 }
 0x21e   : > { %v2728_v18 = vrot.slane %v2727_v62, 1 }
 0x220   : > { %v2729_v25 = vadd.f32 %v2728_v18, %v2727_v62 }
 0x222   : > { %2732 = vst.msk [vmem:[%s506_s11] sm:$0x1] %vm2730_vm4, %v2729_v25 }
 0x223 PF: > { %s19_s27 = sadd.s32 1, %s3013_s27   ;;  %s7200_s26 = smov %s3009_s2 }
 0x224   : > { %p16_p5 = scmp.ge.s32.totalorder %s19_s27, 4   ;;  %s7201_s2 = smov %s7203_s28 }
 0x226   :  { %18 = sbr.rel (!%p16_p5) target bundleno = 2 (0x2), region = 104 }

</bundles_post_ra>
